<compile_context>
chip_gen: v5e
topology: v5e:2x2
jax: 0.10.0
libtpu: 0.0.40
codegen_flags: <defaults>
</compile_context>

<pallas_src>
import functools

import jax
import jax.numpy as jnp
import numpy as np
from jax import lax
from jax.experimental import pallas as pl
from jax.experimental.pallas import tpu as pltpu


S = 16                          # input spatial size (16 x 16)
PAD_T = PAD_L = 4               # leading canvas pad (covers max dilation 4)
PAD_B = PAD_R = 8               # trailing canvas pad (dil-4 conv tap + pool shift)
CANV = S + PAD_T + PAD_B        # 28: canvas side
RPS = CANV * CANV               # 784: canvas rows per sample (flat index y*CANV+x)
BASE = PAD_T * CANV + PAD_L     # 116: flat offset of the interior origin
K1 = 32                         # layer-1 im2col channels (27 real, padded to 32)
OFFS = (0, 8, 8 * CANV, 8 * CANV + 8)   # 2x2 pooled feature positions for the head


def _span(tb):
  """Rows (relative to BASE) covering every sample's 16x16 interior."""
  return (tb - 1) * RPS + (S - 1) * CANV + S


# ----------------------------------------------------------------------------
# Fused Pallas kernel (one batch tile per grid step)
# ----------------------------------------------------------------------------
def fused_cnn_kernel(xc_ref, mask_ref, w1_ref, b1_ref, w2_ref, b2_ref,
                     w3_ref, b3_ref, tmat_ref, ub_ref,
                     o_ref, c2_ref, c3_ref):
  tb = o_ref.shape[1]
  rows = tb * RPS
  span = _span(tb)
  mask = mask_ref[...]                                   # (span, 1) interior mask

  def pool(y, dil):
    dr, dc = dil * CANV, dil
    return jnp.maximum(
        jnp.maximum(y[0:span, :], y[dc:dc + span, :]),
        jnp.maximum(y[dr:dr + span, :], y[dr + dc:dr + dc + span, :]))

  def store_interior(dst_ref, p):
    # One masked streaming store; only the never-covered head/tail rows are
    # memset.  The where-mask (as a multiply) keeps the zero SAME-padding that
    # the next layer's dilated taps consume.
    c = dst_ref.shape[1]
    dst_ref[0:BASE, :] = jnp.zeros((BASE, c), jnp.float32)
    dst_ref[BASE + span:rows, :] = jnp.zeros((rows - BASE - span, c), jnp.float32)
    dst_ref[BASE:BASE + span, :] = p * mask

  def conv_relu_pool(src_ref, wm_ref, b_ref, dil):
    """3x3 conv with dilation `dil` on the un-decimated canvas, the 3 taps of
    each kernel row merged into K (3 dots instead of 9), + bias + ReLU, then
    2x2 maxpool as a max over {0,dil}^2 shifts."""
    span_y = span + dil * (CANV + 1)
    acc = None
    for ty in range(3):
      base = BASE + dil * ((ty - 1) * CANV - 1)
      lhs = jnp.concatenate(
          [src_ref[base + k * dil:base + k * dil + span_y, :] for k in range(3)],
          axis=1)
      part = jnp.dot(lhs, wm_ref[ty], preferred_element_type=jnp.float32)
      acc = part if acc is None else acc + part
    y = jnp.maximum(acc + b_ref[...], 0.0)
    return pool(y, dil)

  # Layer 1: wrapper-side im2col -> a single (M, 32) x (32, 32) MXU matmul.
  span_y1 = span + (CANV + 1)
  y1 = jnp.maximum(
      jnp.dot(xc_ref[0, BASE:BASE + span_y1, :], w1_ref[...],
              preferred_element_type=jnp.float32) + b1_ref[...], 0.0)
  store_interior(c2_ref, pool(y1, 1))                           # 16x16x3 -> 8x8x32

  store_interior(c3_ref, conv_relu_pool(c2_ref, w2_ref, b2_ref, 2))  # -> 4x4x64
  p3 = conv_relu_pool(c3_ref, w3_ref, b3_ref, 4)                     # -> 2x2x32
  # (Remaining opportunity: restrict the dil=4 conv to the 16 consumed positions
  #  per sample instead of the full span.)

  # Head: (3x3 conv 32->1) + bilinear 2x2->16x16 upsample + bias, folded into
  # tmat (128, 256) / ub (1, 256).  Gather the four pooled rows per sample into
  # a (tb, 128) operand and contract once -> lane-dense (tb, 256) image.
  feats = []
  for n in range(tb):
    b0 = n * RPS
    feats.append(jnp.concatenate(
        [p3[b0 + o:b0 + o + 1, :] for o in OFFS], axis=1))      # (1, 128)
  g = jnp.concatenate(feats, axis=0)                            # (tb, 128)
  u = jnp.dot(g, tmat_ref[...], preferred_element_type=jnp.float32) + ub_ref[...]
  o_ref[0, :, :] = 1.0 / (1.0 + jnp.exp(-u))


# ----------------------------------------------------------------------------
# Wrapper-side (weight-only / constant) preprocessing
# ----------------------------------------------------------------------------
def bilinear_matrix(out_size, in_size):
  """Row-interpolation matrix M (out,in): out = M @ in, align_corners=True."""
  if in_size == 1:
    return jnp.ones((out_size, 1), jnp.float32)
  scale = (in_size - 1) / (out_size - 1)
  src = jnp.arange(out_size, dtype=jnp.float32) * scale
  i0 = jnp.clip(jnp.floor(src).astype(jnp.int32), 0, in_size - 2)
  frac = src - i0.astype(jnp.float32)
  oh0 = jax.nn.one_hot(i0, in_size, dtype=jnp.float32)
  oh1 = jax.nn.one_hot(i0 + 1, in_size, dtype=jnp.float32)
  return oh0 * (1.0 - frac)[:, None] + oh1 * frac[:, None]


def _fold_head(w4, b4):
  """Fold the last conv (3x3, 32->1, SAME, on a 2x2 map), the bilinear
  2x2->16x16 upsample (align_corners=True) and the bias into a (128, 256)
  matrix + (1, 256) bias row.  Pure weight preprocessing (tiny)."""
  ry = bilinear_matrix(S, 2)
  rx = bilinear_matrix(S, 2)
  cin = w4.shape[2]
  t = jnp.zeros((2, 2, cin, S, S), jnp.float32)
  for u in range(2):
    for v in range(2):
      for a in range(2):
        for b in range(2):
          ky, kx = u - a + 1, v - b + 1
          if 0 <= ky < 3 and 0 <= kx < 3:
            t = t.at[u, v].add(w4[ky, kx, :, 0][:, None, None]
                               * ry[:, a][None, :, None]
                               * rx[:, b][None, None, :])
  tmat = t.reshape(4 * cin, S * S)
  ub = jnp.full((1, S * S), b4[0], jnp.float32)
  return tmat, ub


def _interior_mask(tb):
  idx = np.arange(_span(tb)) + BASE
  q = idx % RPS
  yy, xx = q // CANV, q % CANV
  m = ((yy >= PAD_T) & (yy < PAD_T + S) & (xx >= PAD_L) & (xx < PAD_L + S))
  return jnp.asarray(m.astype(np.float32).reshape(-1, 1))


def _replicated(shape):
  zeros = (0,) * len(shape)
  return pl.BlockSpec(shape, lambda i: zeros)


# ----------------------------------------------------------------------------
# SimpleCNN forward
# ----------------------------------------------------------------------------
@functools.partial(jax.jit, static_argnames=("batch_tile",))
def simple_cnn_forward(x_nchw, params, *, batch_tile=1):
  assert x_nchw.shape[1:] == (3, S, S), x_nchw.shape
  n = x_nchw.shape[0]
  tb = max(1, min(batch_tile, n))
  n_tiles = -(-n // tb)
  n_pad = n_tiles * tb
  span = _span(tb)

  x = jnp.transpose(x_nchw, (0, 2, 3, 1)).astype(jnp.float32)    # NCHW -> NHWC
  if n_pad != n:
    x = jnp.pad(x, ((0, n_pad - n), (0, 0), (0, 0), (0, 0)))

  # Layer-1 im2col (XLA side): 27 shifted-tap channels padded to 32, placed on
  # the zero-padded canvas -> (n_tiles, TB*784, 32).
  xp = jnp.pad(x, ((0, 0), (1, 1), (1, 1), (0, 0)))
  patches = jnp.concatenate(
      [xp[:, ty:ty + S, tx:tx + S, :] for ty in range(3) for tx in range(3)],
      axis=-1)
  xc = jnp.pad(patches, ((0, 0), (PAD_T, PAD_B), (PAD_L, PAD_R), (0, K1 - 27)))
  xc = xc.reshape(n_tiles, tb * RPS, K1)

  w1p = jnp.pad(params["w1"].reshape(27, 32), ((0, K1 - 27), (0, 0)))
  w2m = params["w2"].reshape(3, 3 * 32, 64)     # kernel-row taps merged into K
  w3m = params["w3"].reshape(3, 3 * 64, 32)
  b1 = params["b1"].reshape(1, 32)
  b2 = params["b2"].reshape(1, 64)
  b3 = params["b3"].reshape(1, 32)
  tmat, ub = _fold_head(params["w4"], params["b4"])
  mask = _interior_mask(tb)

  args = (xc, mask, w1p, b1, w2m, b2, w3m, b3, tmat, ub)
  in_specs = [pl.BlockSpec((1, tb * RPS, K1), lambda i: (i, 0, 0)),
              _replicated(mask.shape),
              _replicated(w1p.shape),
              _replicated(b1.shape),
              _replicated(w2m.shape),
              _replicated(b2.shape),
              _replicated(w3m.shape),
              _replicated(b3.shape),
              _replicated(tmat.shape),
              _replicated(ub.shape)]

  out = pl.pallas_call(
      fused_cnn_kernel,
      out_shape=jax.ShapeDtypeStruct((n_tiles, tb, S * S), jnp.float32),
      grid_spec=pltpu.PrefetchScalarGridSpec(
          num_scalar_prefetch=0,
          grid=(n_tiles,),
          in_specs=in_specs,
          out_specs=pl.BlockSpec((1, tb, S * S), lambda i: (i, 0, 0)),
          scratch_shapes=[pltpu.VMEM((tb * RPS, 32), jnp.float32),
                          pltpu.VMEM((tb * RPS, 64), jnp.float32)]),
      compiler_params=pltpu.CompilerParams(
          dimension_semantics=("parallel",),
          vmem_limit_bytes=32 * 1024 * 1024),
  )(*args)
  out = out.reshape(n_pad, S * S)[:n]
  return out.reshape(n, 1, S, S)


# ----------------------------------------------------------------------------
# Params + pure-JAX reference (correctness check)
# ----------------------------------------------------------------------------
def init_params(key):
  def init_conv(k, cin, cout):
    kw, kb = jax.random.split(k)
    fan_in = 9 * cin
    w = jax.random.normal(kw, (3, 3, cin, cout), jnp.float32) / np.sqrt(fan_in)
    b = 0.01 * jax.random.normal(kb, (cout,), jnp.float32)
    return w, b

  k1, k2, k3, k4 = jax.random.split(key, 4)
  w1, b1 = init_conv(k1, 3, 32)
  w2, b2 = init_conv(k2, 32, 64)
  w3, b3 = init_conv(k3, 64, 32)
  w4, b4 = init_conv(k4, 32, 1)
  return dict(w1=w1, b1=b1, w2=w2, b2=b2, w3=w3, b3=b3, w4=w4, b4=b4)


def reference_forward(x_nchw, params):
  x = jnp.transpose(x_nchw, (0, 2, 3, 1))

  def conv(x, w, b):
    y = lax.conv_general_dilated(
        x, w, (1, 1), "SAME",
        dimension_numbers=("NHWC", "HWIO", "NHWC"),
        precision=lax.Precision.HIGHEST)
    return y + b

  def pool(y):
    return lax.reduce_window(y, -jnp.inf, lax.max,
                             (1, 2, 2, 1), (1, 2, 2, 1), "VALID")

  h = pool(jax.nn.relu(conv(x, params["w1"], params["b1"])))
  h = pool(jax.nn.relu(conv(h, params["w2"], params["b2"])))
  h = pool(jax.nn.relu(conv(h, params["w3"], params["b3"])))
  r = conv(h, params["w4"], params["b4"])[..., 0]               # (N, 2, 2)
  ry = bilinear_matrix(x_nchw.shape[2], r.shape[1])
  rx = bilinear_matrix(x_nchw.shape[3], r.shape[2])
  up = jnp.einsum("Hh,nhw,Ww->nHW", ry, r, rx,
                  precision=lax.Precision.HIGHEST)
  return jax.nn.sigmoid(up)[:, None, :, :]


if __name__ == "__main__":
  key = jax.random.PRNGKey(0)
  k_x, k_p = jax.random.split(key)
  x = jax.random.normal(k_x, (2, 3, 16, 16), jnp.float32)       # NCHW like PyTorch
  params = init_params(k_p)

  out = jax.block_until_ready(simple_cnn_forward(x, params, batch_tile=1))
  assert out.shape == (2, 1, 16, 16), out.shape

  ref = jax.block_until_ready(reference_forward(x, params))
  np.testing.assert_allclose(np.asarray(out), np.asarray(ref),
                             rtol=1e-3, atol=1e-3)
  print("KERNEL_OK")
</pallas_src>

<mosaic_0001>
module attributes {stable_mosaic.version = 11 : i64} {
  func.func @fused_cnn_kernel(%arg0: i32, %arg1: memref<1x784x32xf32, #tpu.memory_space<vmem>>, %arg2: memref<436x1xf32, #tpu.memory_space<vmem>>, %arg3: memref<32x32xf32, #tpu.memory_space<vmem>>, %arg4: memref<1x32xf32, #tpu.memory_space<vmem>>, %arg5: memref<3x96x64xf32, #tpu.memory_space<vmem>>, %arg6: memref<1x64xf32, #tpu.memory_space<vmem>>, %arg7: memref<3x192x32xf32, #tpu.memory_space<vmem>>, %arg8: memref<1x32xf32, #tpu.memory_space<vmem>>, %arg9: memref<128x256xf32, #tpu.memory_space<vmem>>, %arg10: memref<1x256xf32, #tpu.memory_space<vmem>>, %arg11: memref<1x1x256xf32, #tpu.memory_space<vmem>>, %arg12: memref<784x32xf32, #tpu.memory_space<vmem>>, %arg13: memref<784x64xf32, #tpu.memory_space<vmem>>) attributes {dimension_semantics = [#tpu.dimension_semantics<parallel>], iteration_bounds = array<i64: 2>, scalar_prefetch = 0 : i64, scratch_operands = 2 : i64, tpu.core_type = #tpu.core_type<tc>, window_params = [{transform_indices = @transform_0, window_bounds = array<i64: 1, 784, 32>}, {pipeline_mode = #tpu.pipeline_mode<synchronous>, transform_indices = @transform_1, window_bounds = array<i64: 436, 1>}, {pipeline_mode = #tpu.pipeline_mode<synchronous>, transform_indices = @transform_2, window_bounds = array<i64: 32, 32>}, {pipeline_mode = #tpu.pipeline_mode<synchronous>, transform_indices = @transform_3, window_bounds = array<i64: 1, 32>}, {pipeline_mode = #tpu.pipeline_mode<synchronous>, transform_indices = @transform_4, window_bounds = array<i64: 3, 96, 64>}, {pipeline_mode = #tpu.pipeline_mode<synchronous>, transform_indices = @transform_5, window_bounds = array<i64: 1, 64>}, {pipeline_mode = #tpu.pipeline_mode<synchronous>, transform_indices = @transform_6, window_bounds = array<i64: 3, 192, 32>}, {pipeline_mode = #tpu.pipeline_mode<synchronous>, transform_indices = @transform_7, window_bounds = array<i64: 1, 32>}, {pipeline_mode = #tpu.pipeline_mode<synchronous>, transform_indices = @transform_8, window_bounds = array<i64: 128, 256>}, {pipeline_mode = #tpu.pipeline_mode<synchronous>, transform_indices = @transform_9, window_bounds = array<i64: 1, 256>}, {transform_indices = @transform_10, window_bounds = array<i64: 1, 1, 256>}]} {
    %c0 = arith.constant 0 : index
    %c0_0 = arith.constant 0 : index
    %0 = vector.load %arg2[%c0, %c0_0] : memref<436x1xf32, #tpu.memory_space<vmem>>, vector<436x1xf32>
    %c0_1 = arith.constant 0 : index
    %c116 = arith.constant 116 : index
    %c0_2 = arith.constant 0 : index
    %1 = vector.load %arg1[%c0_1, %c116, %c0_2] : memref<1x784x32xf32, #tpu.memory_space<vmem>>, vector<1x465x32xf32>
    %2 = vector.shape_cast %1 : vector<1x465x32xf32> to vector<465x32xf32>
    %c0_3 = arith.constant 0 : index
    %c0_4 = arith.constant 0 : index
    %3 = vector.load %arg3[%c0_3, %c0_4] : memref<32x32xf32, #tpu.memory_space<vmem>>, vector<32x32xf32>
    %cst = arith.constant dense<0.000000e+00> : vector<465x32xf32>
    %4 = tpu.matmul %2, %3, %cst {dimension_numbers = #tpu.dot_dimension_numbers<[1], [0], [0], [1], [0, 0, 1, 1], [], []>} : vector<465x32xf32>, vector<32x32xf32>, vector<465x32xf32> -> vector<465x32xf32>
    %c0_5 = arith.constant 0 : index
    %c0_6 = arith.constant 0 : index
    %5 = vector.load %arg4[%c0_5, %c0_6] : memref<1x32xf32, #tpu.memory_space<vmem>>, vector<1x32xf32>
    %6 = vector.broadcast %5 : vector<1x32xf32> to vector<465x32xf32>
    %7 = arith.addf %4, %6 : vector<465x32xf32>
    %cst_7 = arith.constant 0.000000e+00 : f32
    %8 = vector.broadcast %cst_7 : f32 to vector<465x32xf32>
    %9 = arith.maximumf %7, %8 : vector<465x32xf32>
    %10 = vector.extract_strided_slice %9 {offsets = [0, 0], sizes = [436, 32], strides = [1, 1]} : vector<465x32xf32> to vector<436x32xf32>
    %11 = vector.extract_strided_slice %9 {offsets = [1, 0], sizes = [436, 32], strides = [1, 1]} : vector<465x32xf32> to vector<436x32xf32>
    %12 = arith.maximumf %10, %11 : vector<436x32xf32>
    %13 = vector.extract_strided_slice %9 {offsets = [28, 0], sizes = [436, 32], strides = [1, 1]} : vector<465x32xf32> to vector<436x32xf32>
    %14 = vector.extract_strided_slice %9 {offsets = [29, 0], sizes = [436, 32], strides = [1, 1]} : vector<465x32xf32> to vector<436x32xf32>
    %15 = arith.maximumf %13, %14 : vector<436x32xf32>
    %16 = arith.maximumf %12, %15 : vector<436x32xf32>
    %cst_8 = arith.constant 0.000000e+00 : f32
    %17 = vector.broadcast %cst_8 : f32 to vector<116x32xf32>
    %c0_9 = arith.constant 0 : index
    %c0_10 = arith.constant 0 : index
    %18 = vector.load %arg12[%c0_9, %c0_10] : memref<784x32xf32, #tpu.memory_space<vmem>>, vector<116x32xf32>
    tpu.vector_store %arg12[%c0_9, %c0_10], %17 {strides = array<i32>} : memref<784x32xf32, #tpu.memory_space<vmem>>, vector<116x32xf32>,
    %cst_11 = arith.constant 0.000000e+00 : f32
    %19 = vector.broadcast %cst_11 : f32 to vector<232x32xf32>
    %c552 = arith.constant 552 : index
    %c0_12 = arith.constant 0 : index
    %20 = vector.load %arg12[%c552, %c0_12] : memref<784x32xf32, #tpu.memory_space<vmem>>, vector<232x32xf32>
    tpu.vector_store %arg12[%c552, %c0_12], %19 {strides = array<i32>} : memref<784x32xf32, #tpu.memory_space<vmem>>, vector<232x32xf32>,
    %21 = vector.broadcast %0 : vector<436x1xf32> to vector<436x32xf32>
    %22 = arith.mulf %16, %21 : vector<436x32xf32>
    %c116_13 = arith.constant 116 : index
    %c0_14 = arith.constant 0 : index
    %23 = vector.load %arg12[%c116_13, %c0_14] : memref<784x32xf32, #tpu.memory_space<vmem>>, vector<436x32xf32>
    tpu.vector_store %arg12[%c116_13, %c0_14], %22 {strides = array<i32>} : memref<784x32xf32, #tpu.memory_space<vmem>>, vector<436x32xf32>,
    %c58 = arith.constant 58 : index
    %c0_15 = arith.constant 0 : index
    %24 = vector.load %arg12[%c58, %c0_15] : memref<784x32xf32, #tpu.memory_space<vmem>>, vector<494x32xf32>
    %c60 = arith.constant 60 : index
    %c0_16 = arith.constant 0 : index
    %25 = vector.load %arg12[%c60, %c0_16] : memref<784x32xf32, #tpu.memory_space<vmem>>, vector<494x32xf32>
    %c62 = arith.constant 62 : index
    %c0_17 = arith.constant 0 : index
    %26 = vector.load %arg12[%c62, %c0_17] : memref<784x32xf32, #tpu.memory_space<vmem>>, vector<494x32xf32>
    %27 = tpu.concatenate %24, %25, %26 in 1 : vector<494x32xf32>, vector<494x32xf32>, vector<494x32xf32> -> vector<494x96xf32>
    %c0_18 = arith.constant 0 : index
    %c0_19 = arith.constant 0 : index
    %c0_20 = arith.constant 0 : index
    %28 = vector.load %arg5[%c0_18, %c0_19, %c0_20] : memref<3x96x64xf32, #tpu.memory_space<vmem>>, vector<1x96x64xf32>
    %29 = vector.shape_cast %28 : vector<1x96x64xf32> to vector<96x64xf32>
    %cst_21 = arith.constant dense<0.000000e+00> : vector<494x64xf32>
    %30 = tpu.matmul %27, %29, %cst_21 {dimension_numbers = #tpu.dot_dimension_numbers<[1], [0], [0], [1], [0, 0, 1, 1], [], []>} : vector<494x96xf32>, vector<96x64xf32>, vector<494x64xf32> -> vector<494x64xf32>
    %c114 = arith.constant 114 : index
    %c0_22 = arith.constant 0 : index
    %31 = vector.load %arg12[%c114, %c0_22] : memref<784x32xf32, #tpu.memory_space<vmem>>, vector<494x32xf32>
    %c116_23 = arith.constant 116 : index
    %c0_24 = arith.constant 0 : index
    %32 = vector.load %arg12[%c116_23, %c0_24] : memref<784x32xf32, #tpu.memory_space<vmem>>, vector<494x32xf32>
    %c118 = arith.constant 118 : index
    %c0_25 = arith.constant 0 : index
    %33 = vector.load %arg12[%c118, %c0_25] : memref<784x32xf32, #tpu.memory_space<vmem>>, vector<494x32xf32>
    %34 = tpu.concatenate %31, %32, %33 in 1 : vector<494x32xf32>, vector<494x32xf32>, vector<494x32xf32> -> vector<494x96xf32>
    %c1 = arith.constant 1 : index
    %c0_26 = arith.constant 0 : index
    %c0_27 = arith.constant 0 : index
    %35 = vector.load %arg5[%c1, %c0_26, %c0_27] : memref<3x96x64xf32, #tpu.memory_space<vmem>>, vector<1x96x64xf32>
    %36 = vector.shape_cast %35 : vector<1x96x64xf32> to vector<96x64xf32>
    %cst_28 = arith.constant dense<0.000000e+00> : vector<494x64xf32>
    %37 = tpu.matmul %34, %36, %cst_28 {dimension_numbers = #tpu.dot_dimension_numbers<[1], [0], [0], [1], [0, 0, 1, 1], [], []>} : vector<494x96xf32>, vector<96x64xf32>, vector<494x64xf32> -> vector<494x64xf32>
    %38 = arith.addf %30, %37 : vector<494x64xf32>
    %c170 = arith.constant 170 : index
    %c0_29 = arith.constant 0 : index
    %39 = vector.load %arg12[%c170, %c0_29] : memref<784x32xf32, #tpu.memory_space<vmem>>, vector<494x32xf32>
    %c172 = arith.constant 172 : index
    %c0_30 = arith.constant 0 : index
    %40 = vector.load %arg12[%c172, %c0_30] : memref<784x32xf32, #tpu.memory_space<vmem>>, vector<494x32xf32>
    %c174 = arith.constant 174 : index
    %c0_31 = arith.constant 0 : index
    %41 = vector.load %arg12[%c174, %c0_31] : memref<784x32xf32, #tpu.memory_space<vmem>>, vector<494x32xf32>
    %42 = tpu.concatenate %39, %40, %41 in 1 : vector<494x32xf32>, vector<494x32xf32>, vector<494x32xf32> -> vector<494x96xf32>
    %c2 = arith.constant 2 : index
    %c0_32 = arith.constant 0 : index
    %c0_33 = arith.constant 0 : index
    %43 = vector.load %arg5[%c2, %c0_32, %c0_33] : memref<3x96x64xf32, #tpu.memory_space<vmem>>, vector<1x96x64xf32>
    %44 = vector.shape_cast %43 : vector<1x96x64xf32> to vector<96x64xf32>
    %cst_34 = arith.constant dense<0.000000e+00> : vector<494x64xf32>
    %45 = tpu.matmul %42, %44, %cst_34 {dimension_numbers = #tpu.dot_dimension_numbers<[1], [0], [0], [1], [0, 0, 1, 1], [], []>} : vector<494x96xf32>, vector<96x64xf32>, vector<494x64xf32> -> vector<494x64xf32>
    %46 = arith.addf %38, %45 : vector<494x64xf32>
    %c0_35 = arith.constant 0 : index
    %c0_36 = arith.constant 0 : index
    %47 = vector.load %arg6[%c0_35, %c0_36] : memref<1x64xf32, #tpu.memory_space<vmem>>, vector<1x64xf32>
    %48 = vector.broadcast %47 : vector<1x64xf32> to vector<494x64xf32>
    %49 = arith.addf %46, %48 : vector<494x64xf32>
    %cst_37 = arith.constant 0.000000e+00 : f32
    %50 = vector.broadcast %cst_37 : f32 to vector<494x64xf32>
    %51 = arith.maximumf %49, %50 : vector<494x64xf32>
    %52 = vector.extract_strided_slice %51 {offsets = [0, 0], sizes = [436, 64], strides = [1, 1]} : vector<494x64xf32> to vector<436x64xf32>
    %53 = vector.extract_strided_slice %51 {offsets = [2, 0], sizes = [436, 64], strides = [1, 1]} : vector<494x64xf32> to vector<436x64xf32>
    %54 = arith.maximumf %52, %53 : vector<436x64xf32>
    %55 = vector.extract_strided_slice %51 {offsets = [56, 0], sizes = [436, 64], strides = [1, 1]} : vector<494x64xf32> to vector<436x64xf32>
    %56 = vector.extract_strided_slice %51 {offsets = [58, 0], sizes = [436, 64], strides = [1, 1]} : vector<494x64xf32> to vector<436x64xf32>
    %57 = arith.maximumf %55, %56 : vector<436x64xf32>
    %58 = arith.maximumf %54, %57 : vector<436x64xf32>
    %cst_38 = arith.constant 0.000000e+00 : f32
    %59 = vector.broadcast %cst_38 : f32 to vector<116x64xf32>
    %c0_39 = arith.constant 0 : index
    %c0_40 = arith.constant 0 : index
    %60 = vector.load %arg13[%c0_39, %c0_40] : memref<784x64xf32, #tpu.memory_space<vmem>>, vector<116x64xf32>
    tpu.vector_store %arg13[%c0_39, %c0_40], %59 {strides = array<i32>} : memref<784x64xf32, #tpu.memory_space<vmem>>, vector<116x64xf32>,
    %cst_41 = arith.constant 0.000000e+00 : f32
    %61 = vector.broadcast %cst_41 : f32 to vector<232x64xf32>
    %c552_42 = arith.constant 552 : index
    %c0_43 = arith.constant 0 : index
    %62 = vector.load %arg13[%c552_42, %c0_43] : memref<784x64xf32, #tpu.memory_space<vmem>>, vector<232x64xf32>
    tpu.vector_store %arg13[%c552_42, %c0_43], %61 {strides = array<i32>} : memref<784x64xf32, #tpu.memory_space<vmem>>, vector<232x64xf32>,
    %63 = vector.broadcast %0 : vector<436x1xf32> to vector<436x64xf32>
    %64 = arith.mulf %58, %63 : vector<436x64xf32>
    %c116_44 = arith.constant 116 : index
    %c0_45 = arith.constant 0 : index
    %65 = vector.load %arg13[%c116_44, %c0_45] : memref<784x64xf32, #tpu.memory_space<vmem>>, vector<436x64xf32>
    tpu.vector_store %arg13[%c116_44, %c0_45], %64 {strides = array<i32>} : memref<784x64xf32, #tpu.memory_space<vmem>>, vector<436x64xf32>,
    %c0_46 = arith.constant 0 : index
    %c0_47 = arith.constant 0 : index
    %66 = vector.load %arg13[%c0_46, %c0_47] : memref<784x64xf32, #tpu.memory_space<vmem>>, vector<552x64xf32>
    %c4 = arith.constant 4 : index
    %c0_48 = arith.constant 0 : index
    %67 = vector.load %arg13[%c4, %c0_48] : memref<784x64xf32, #tpu.memory_space<vmem>>, vector<552x64xf32>
    %c8 = arith.constant 8 : index
    %c0_49 = arith.constant 0 : index
    %68 = vector.load %arg13[%c8, %c0_49] : memref<784x64xf32, #tpu.memory_space<vmem>>, vector<552x64xf32>
    %69 = tpu.concatenate %66, %67, %68 in 1 : vector<552x64xf32>, vector<552x64xf32>, vector<552x64xf32> -> vector<552x192xf32>
    %c0_50 = arith.constant 0 : index
    %c0_51 = arith.constant 0 : index
    %c0_52 = arith.constant 0 : index
    %70 = vector.load %arg7[%c0_50, %c0_51, %c0_52] : memref<3x192x32xf32, #tpu.memory_space<vmem>>, vector<1x192x32xf32>
    %71 = vector.shape_cast %70 : vector<1x192x32xf32> to vector<192x32xf32>
    %cst_53 = arith.constant dense<0.000000e+00> : vector<552x32xf32>
    %72 = tpu.matmul %69, %71, %cst_53 {dimension_numbers = #tpu.dot_dimension_numbers<[1], [0], [0], [1], [0, 0, 1, 1], [], []>} : vector<552x192xf32>, vector<192x32xf32>, vector<552x32xf32> -> vector<552x32xf32>
    %c112 = arith.constant 112 : index
    %c0_54 = arith.constant 0 : index
    %73 = vector.load %arg13[%c112, %c0_54] : memref<784x64xf32, #tpu.memory_space<vmem>>, vector<552x64xf32>
    %c116_55 = arith.constant 116 : index
    %c0_56 = arith.constant 0 : index
    %74 = vector.load %arg13[%c116_55, %c0_56] : memref<784x64xf32, #tpu.memory_space<vmem>>, vector<552x64xf32>
    %c120 = arith.constant 120 : index
    %c0_57 = arith.constant 0 : index
    %75 = vector.load %arg13[%c120, %c0_57] : memref<784x64xf32, #tpu.memory_space<vmem>>, vector<552x64xf32>
    %76 = tpu.concatenate %73, %74, %75 in 1 : vector<552x64xf32>, vector<552x64xf32>, vector<552x64xf32> -> vector<552x192xf32>
    %c1_58 = arith.constant 1 : index
    %c0_59 = arith.constant 0 : index
    %c0_60 = arith.constant 0 : index
    %77 = vector.load %arg7[%c1_58, %c0_59, %c0_60] : memref<3x192x32xf32, #tpu.memory_space<vmem>>, vector<1x192x32xf32>
    %78 = vector.shape_cast %77 : vector<1x192x32xf32> to vector<192x32xf32>
    %cst_61 = arith.constant dense<0.000000e+00> : vector<552x32xf32>
    %79 = tpu.matmul %76, %78, %cst_61 {dimension_numbers = #tpu.dot_dimension_numbers<[1], [0], [0], [1], [0, 0, 1, 1], [], []>} : vector<552x192xf32>, vector<192x32xf32>, vector<552x32xf32> -> vector<552x32xf32>
    %80 = arith.addf %72, %79 : vector<552x32xf32>
    %c224 = arith.constant 224 : index
    %c0_62 = arith.constant 0 : index
    %81 = vector.load %arg13[%c224, %c0_62] : memref<784x64xf32, #tpu.memory_space<vmem>>, vector<552x64xf32>
    %c228 = arith.constant 228 : index
    %c0_63 = arith.constant 0 : index
    %82 = vector.load %arg13[%c228, %c0_63] : memref<784x64xf32, #tpu.memory_space<vmem>>, vector<552x64xf32>
    %c232 = arith.constant 232 : index
    %c0_64 = arith.constant 0 : index
    %83 = vector.load %arg13[%c232, %c0_64] : memref<784x64xf32, #tpu.memory_space<vmem>>, vector<552x64xf32>
    %84 = tpu.concatenate %81, %82, %83 in 1 : vector<552x64xf32>, vector<552x64xf32>, vector<552x64xf32> -> vector<552x192xf32>
    %c2_65 = arith.constant 2 : index
    %c0_66 = arith.constant 0 : index
    %c0_67 = arith.constant 0 : index
    %85 = vector.load %arg7[%c2_65, %c0_66, %c0_67] : memref<3x192x32xf32, #tpu.memory_space<vmem>>, vector<1x192x32xf32>
    %86 = vector.shape_cast %85 : vector<1x192x32xf32> to vector<192x32xf32>
    %cst_68 = arith.constant dense<0.000000e+00> : vector<552x32xf32>
    %87 = tpu.matmul %84, %86, %cst_68 {dimension_numbers = #tpu.dot_dimension_numbers<[1], [0], [0], [1], [0, 0, 1, 1], [], []>} : vector<552x192xf32>, vector<192x32xf32>, vector<552x32xf32> -> vector<552x32xf32>
    %88 = arith.addf %80, %87 : vector<552x32xf32>
    %c0_69 = arith.constant 0 : index
    %c0_70 = arith.constant 0 : index
    %89 = vector.load %arg8[%c0_69, %c0_70] : memref<1x32xf32, #tpu.memory_space<vmem>>, vector<1x32xf32>
    %90 = vector.broadcast %89 : vector<1x32xf32> to vector<552x32xf32>
    %91 = arith.addf %88, %90 : vector<552x32xf32>
    %cst_71 = arith.constant 0.000000e+00 : f32
    %92 = vector.broadcast %cst_71 : f32 to vector<552x32xf32>
    %93 = arith.maximumf %91, %92 : vector<552x32xf32>
    %94 = vector.extract_strided_slice %93 {offsets = [0, 0], sizes = [436, 32], strides = [1, 1]} : vector<552x32xf32> to vector<436x32xf32>
    %95 = vector.extract_strided_slice %93 {offsets = [4, 0], sizes = [436, 32], strides = [1, 1]} : vector<552x32xf32> to vector<436x32xf32>
    %96 = arith.maximumf %94, %95 : vector<436x32xf32>
    %97 = vector.extract_strided_slice %93 {offsets = [112, 0], sizes = [436, 32], strides = [1, 1]} : vector<552x32xf32> to vector<436x32xf32>
    %98 = vector.extract_strided_slice %93 {offsets = [116, 0], sizes = [436, 32], strides = [1, 1]} : vector<552x32xf32> to vector<436x32xf32>
    %99 = arith.maximumf %97, %98 : vector<436x32xf32>
    %100 = arith.maximumf %96, %99 : vector<436x32xf32>
    %101 = vector.extract_strided_slice %100 {offsets = [0, 0], sizes = [1, 32], strides = [1, 1]} : vector<436x32xf32> to vector<1x32xf32>
    %102 = vector.extract_strided_slice %100 {offsets = [8, 0], sizes = [1, 32], strides = [1, 1]} : vector<436x32xf32> to vector<1x32xf32>
    %103 = vector.extract_strided_slice %100 {offsets = [224, 0], sizes = [1, 32], strides = [1, 1]} : vector<436x32xf32> to vector<1x32xf32>
    %104 = vector.extract_strided_slice %100 {offsets = [232, 0], sizes = [1, 32], strides = [1, 1]} : vector<436x32xf32> to vector<1x32xf32>
    %105 = tpu.concatenate %101, %102, %103, %104 in 1 : vector<1x32xf32>, vector<1x32xf32>, vector<1x32xf32>, vector<1x32xf32> -> vector<1x128xf32>
    %c0_72 = arith.constant 0 : index
    %c0_73 = arith.constant 0 : index
    %106 = vector.load %arg9[%c0_72, %c0_73] : memref<128x256xf32, #tpu.memory_space<vmem>>, vector<128x256xf32>
    %cst_74 = arith.constant dense<0.000000e+00> : vector<1x256xf32>
    %107 = tpu.matmul %105, %106, %cst_74 {dimension_numbers = #tpu.dot_dimension_numbers<[1], [0], [0], [1], [0, 0, 1, 1], [], []>} : vector<1x128xf32>, vector<128x256xf32>, vector<1x256xf32> -> vector<1x256xf32>
    %c0_75 = arith.constant 0 : index
    %c0_76 = arith.constant 0 : index
    %108 = vector.load %arg10[%c0_75, %c0_76] : memref<1x256xf32, #tpu.memory_space<vmem>>, vector<1x256xf32>
    %109 = arith.addf %107, %108 : vector<1x256xf32>
    %cst_77 = arith.constant 0.000000e+00 : f32
    %110 = vector.broadcast %cst_77 : f32 to vector<1x256xf32>
    %111 = arith.subf %110, %109 : vector<1x256xf32>
    %112 = math.exp %111 : vector<1x256xf32>
    %cst_78 = arith.constant 1.000000e+00 : f32
    %113 = vector.broadcast %cst_78 : f32 to vector<1x256xf32>
    %114 = arith.addf %113, %112 : vector<1x256xf32>
    %cst_79 = arith.constant 1.000000e+00 : f32
    %115 = vector.broadcast %cst_79 : f32 to vector<1x256xf32>
    %116 = arith.divf %115, %114 : vector<1x256xf32>
    %c0_80 = arith.constant 0 : index
    %c0_81 = arith.constant 0 : index
    %c0_82 = arith.constant 0 : index
    %117 = vector.load %arg11[%c0_80, %c0_81, %c0_82] : memref<1x1x256xf32, #tpu.memory_space<vmem>>, vector<1x1x256xf32>
    %118 = vector.shape_cast %117 : vector<1x1x256xf32> to vector<1x256xf32>
    %119 = vector.shape_cast %116 : vector<1x256xf32> to vector<1x1x256xf32>
    tpu.vector_store %arg11[%c0_80, %c0_81, %c0_82], %119 {strides = array<i32>} : memref<1x1x256xf32, #tpu.memory_space<vmem>>, vector<1x1x256xf32>,
    return
  }
  func.func @transform_0(%arg0: i32) -> (i32, i32, i32) {
    %c0_i32 = arith.constant 0 : i32
    %c0_i32_0 = arith.constant 0 : i32
    %c0_i32_1 = arith.constant 0 : i32
    return %arg0, %c0_i32, %c0_i32_0 : i32, i32, i32
  }
  func.func @transform_1(%arg0: i32) -> (i32, i32) {
    %c0_i32 = arith.constant 0 : i32
    %c0_i32_0 = arith.constant 0 : i32
    %c0_i32_1 = arith.constant 0 : i32
    return %c0_i32, %c0_i32_0 : i32, i32
  }
  func.func @transform_2(%arg0: i32) -> (i32, i32) {
    %c0_i32 = arith.constant 0 : i32
    %c0_i32_0 = arith.constant 0 : i32
    %c0_i32_1 = arith.constant 0 : i32
    return %c0_i32, %c0_i32_0 : i32, i32
  }
  func.func @transform_3(%arg0: i32) -> (i32, i32) {
    %c0_i32 = arith.constant 0 : i32
    %c0_i32_0 = arith.constant 0 : i32
    %c0_i32_1 = arith.constant 0 : i32
    return %c0_i32, %c0_i32_0 : i32, i32
  }
  func.func @transform_4(%arg0: i32) -> (i32, i32, i32) {
    %c0_i32 = arith.constant 0 : i32
    %c0_i32_0 = arith.constant 0 : i32
    %c0_i32_1 = arith.constant 0 : i32
    %c0_i32_2 = arith.constant 0 : i32
    return %c0_i32, %c0_i32_0, %c0_i32_1 : i32, i32, i32
  }
  func.func @transform_5(%arg0: i32) -> (i32, i32) {
    %c0_i32 = arith.constant 0 : i32
    %c0_i32_0 = arith.constant 0 : i32
    %c0_i32_1 = arith.constant 0 : i32
    return %c0_i32, %c0_i32_0 : i32, i32
  }
  func.func @transform_6(%arg0: i32) -> (i32, i32, i32) {
    %c0_i32 = arith.constant 0 : i32
    %c0_i32_0 = arith.constant 0 : i32
    %c0_i32_1 = arith.constant 0 : i32
    %c0_i32_2 = arith.constant 0 : i32
    return %c0_i32, %c0_i32_0, %c0_i32_1 : i32, i32, i32
  }
  func.func @transform_7(%arg0: i32) -> (i32, i32) {
    %c0_i32 = arith.constant 0 : i32
    %c0_i32_0 = arith.constant 0 : i32
    %c0_i32_1 = arith.constant 0 : i32
    return %c0_i32, %c0_i32_0 : i32, i32
  }
  func.func @transform_8(%arg0: i32) -> (i32, i32) {
    %c0_i32 = arith.constant 0 : i32
    %c0_i32_0 = arith.constant 0 : i32
    %c0_i32_1 = arith.constant 0 : i32
    return %c0_i32, %c0_i32_0 : i32, i32
  }
  func.func @transform_9(%arg0: i32) -> (i32, i32) {
    %c0_i32 = arith.constant 0 : i32
    %c0_i32_0 = arith.constant 0 : i32
    %c0_i32_1 = arith.constant 0 : i32
    return %c0_i32, %c0_i32_0 : i32, i32
  }
  func.func @transform_10(%arg0: i32) -> (i32, i32, i32) {
    %c0_i32 = arith.constant 0 : i32
    %c0_i32_0 = arith.constant 0 : i32
    %c0_i32_1 = arith.constant 0 : i32
    return %arg0, %c0_i32, %c0_i32_0 : i32, i32, i32
  }
}

</mosaic_0001>

<bundles_post_ra>
// kernel: simple_cnn_forward.1
= control target key start
LH: loop header
LB: loop body
LE: loop exit
PB: predicated region body
PF: predicated region fallthrough
CT: control target
= control target key end

     0   :  { %s9140_s13 = smov 0   ;;  %s14494_s0 = inlined_call_operand.vmem [shape: f32[2,784,32], index: 0, kind: input, shape index: {}]   ;;  %s14495_s1 = inlined_call_operand.vmem [shape: f32[436,1], index: 1, kind: input, shape index: {}]   ;;  %s14496_s2 = inlined_call_operand.vmem [shape: f32[32,32], index: 2, kind: input, shape index: {}]   ;;  %s14497_s3 = inlined_call_operand.vmem [shape: f32[1,32], index: 3, kind: input, shape index: {}]   ;;  %s14498_s4 = inlined_call_operand.vmem [shape: f32[3,96,64], index: 4, kind: input, shape index: {}]   ;;  %s14499_s5 = inlined_call_operand.vmem [shape: f32[1,64], index: 5, kind: input, shape index: {}]   ;;  %s14500_s6 = inlined_call_operand.vmem [shape: f32[3,192,32], index: 6, kind: input, shape index: {}]   ;;  %s14501_s7 = inlined_call_operand.vmem [shape: f32[1,32], index: 7, kind: input, shape index: {}]   ;;  %s14502_s8 = inlined_call_operand.vmem [shape: f32[128,256], index: 8, kind: input, shape index: {}]   ;;  %s14503_s9 = inlined_call_operand.vmem [shape: f32[1,256], index: 9, kind: input, shape index: {}]   ;;  %s14504_s10 = inlined_call_operand.vmem [shape: f32[2,1,256], index: 10, kind: output, shape index: {}]  }
   0x1 LB: > { %s8269_s14 = sadd.s32 4294967295, %s9078_s13   ;;  %p8273_p0 = scmp.ge.s32.totalorder %s9078_s13, 1  ;;  %s9078_s13 = sphi %s9140_s13, %s20_s13  }
   0x2   : > { %p312_p1 = scmp.lt.s32.totalorder %s9078_s13, 3 }
   0x4   : > { %p313_p2 = pnand %p8273_p0, %p312_p1 }
   0x6   : > { %316 = sbr.rel (%p313_p2) target bundleno = 2693 (0xa85), region = 60 }
   0xb   : > { %v475_v0 = vld [vmem:[%s14496_s2 + $0x18] sm:$0xff]  ;;  %v474_v2 = vld [vmem:[%s14496_s2 + $0x10] sm:$0xff]  ;;  %p349_p3 = scmp.lt.s32.totalorder %s8269_s14, 1  ;;  %v9080_v3 = vmov 0   ;;  %v473_v4 = vld [vmem:[%s14496_s2 + $0x8] sm:$0xff]  ;;  %vm480_vm0 = vcmask 261120  }
   0xc   : > { %v389_v1 = vld [vmem:[%s14495_s1 + $0xf8] sm:$0xff]  ;;  %8850 = vset.pattern.permute.xlu2 %v9080_v3  ;;  %670 = vmatpush.msra.mxu0 %v475_v0  ;;  %v472_v5 = vld [vmem:[%s14496_s2] sm:$0xff]  ;;  %v392_v11 = vld [vmem:[%s14495_s1 + $0x110] sm:$0xff]  ;;  %vm966_vm1 = vcmask 1046528   ;;  %vm1261_vm2 = vcmask 1043456   ;;  %s9081_s18 = smov 32  }
   0xd   : > { %8802 = vmatpush.msra.mxu3 %v475_v0  ;;  %1683 = vperm.xlu2 %8850, %v389_v1   ;;  %s15143_s14 = smov (!%p349_p3, %s8269_s14), 1  ;;  %v390_v8 = vld [vmem:[%s14495_s1 + $0x100] sm:$0xff]  ;;  %v393_v14 = vld [vmem:[%s14495_s1 + $0x118] sm:$0xff]  ;;  %v395_v20 = vld [vmem:[%s14495_s1 + $0x128] sm:$0xff]  ;;  %s9082_s19 = smov 64   ;;  %vm1495_vm3 = vcmask 257024  }
   0xe   : > { %671 = vmatpush.msra.mxu0 %v474_v2  ;;  %8849 = vset.pattern.permute.xlu1 %v9080_v3  ;;  %s8834_s25 = smul.u32 784, %s15143_s14  ;;  %v394_v17 = vld [vmem:[%s14495_s1 + $0x120] sm:$0xff]  ;;  %v387_v21 = vld [vmem:[%s14495_s1 + $0xe8] sm:$0xff]  ;;  %v396_v24 = vld [vmem:[%s14495_s1 + $0x130] sm:$0xff]  ;;  %vm2655_vm4 = vcmask 523264   ;;  %vm2847_vm5 = vcmask 785408  }
   0xf   : > { %8803 = vmatpush.msra.mxu3 %v474_v2  ;;  %8848 = vset.pattern.permute.xlu0 %v9080_v3  ;;  %v388_v25 = vld [vmem:[%s14495_s1 + $0xf0] sm:$0xff]  ;;  %v397_v28 = vld [vmem:[%s14495_s1 + $0x138] sm:$0xff]  ;;  %v398_v31 = vld [vmem:[%s14495_s1 + $0x140] sm:$0xff]  ;;  %vm5243_vm6 = vcmask 519168   ;;  %vm4917_vm7 = vcmask 1045504   ;;  %s9084_s21 = smov 96  }
  0x10   : > { %672 = vmatpush.msra.mxu0 %v473_v4  ;;  %s9169_s28 = scalar_lea.vmem %s14494_s0, %s8834_s25  ;;  %1673 = vperm.xlu1 %8849, %v387_v21   ;;  %v399_v34 = vld [vmem:[%s14495_s1 + $0x148] sm:$0xff]  ;;  %v400_v38 = vld [vmem:[%s14495_s1 + $0x150] sm:$0xff]  ;;  %v401_v41 = vld [vmem:[%s14495_s1 + $0x158] sm:$0xff]  ;;  %s8275_s11 = sshll.u32 %s15143_s14, 1  ;;  %vm8208_vm15 = vcmask 1040384  }
  0x11   : > { %8804 = vmatpush.msra.mxu3 %v473_v4  ;;  %v413_v6 = vld [vmem:[%s9169_s28 + $0x74] sm:$0xff]  ;;  %v442_v7 = vld [vmem:[%s9169_s28 + $0x15c] sm:$0xff]  ;;  %v443_v10 = vld [vmem:[%s9169_s28 + $0x164] sm:$0xff]  ;;  %s357_s16 = scalar_lea.vmem %s14504_s10, %s8275_s11 }
  0x12   : > { %673 = vmatpush.msra.mxu0 %v472_v5  ;;  %v414_v9 = vld [vmem:[%s9169_s28 + $0x7c] sm:$0xff]  ;;  %v415_v12 = vld [vmem:[%s9169_s28 + $0x84] sm:$0xff]  ;;  %v444_v13 = vld [vmem:[%s9169_s28 + $0x16c] sm:$0xff] }
  0x13   : > { %8805 = vmatpush.msra.mxu3 %v472_v5  ;;  %8276 = vmatmul.msk.f32.vlgmr.msra.gmra.mxu0 %vm480_vm0, %v413_v6  ;;  %v416_v15 = vld [vmem:[%s9169_s28 + $0x8c] sm:$0xff]  ;;  %v445_v16 = vld [vmem:[%s9169_s28 + $0x174] sm:$0xff]  ;;  %v446_v19 = vld [vmem:[%s9169_s28 + $0x17c] sm:$0xff] }
  0x14   : > { %8305 = vmatmul.msk.f32.vlgmr.msra.gmra.mxu3 %vm480_vm0, %v442_v7  ;;  %v417_v18 = vld [vmem:[%s9169_s28 + $0x94] sm:$0xff]  ;;  %v418_v22 = vld [vmem:[%s9169_s28 + $0x9c] sm:$0xff]  ;;  %v447_v23 = vld [vmem:[%s9169_s28 + $0x184] sm:$0xff] }
  0x15   : > { %1688 = vperm.xlu2 %8850, %v390_v8   ;;  %v419_v26 = vld [vmem:[%s9169_s28 + $0xa4] sm:$0xff]  ;;  %v448_v27 = vld [vmem:[%s9169_s28 + $0x18c] sm:$0xff]  ;;  %v449_v30 = vld [vmem:[%s9169_s28 + $0x194] sm:$0xff] }
  0x16   : > { %v420_v29 = vld [vmem:[%s9169_s28 + $0xac] sm:$0xff]  ;;  %v421_v32 = vld [vmem:[%s9169_s28 + $0xb4] sm:$0xff]  ;;  %v450_v33 = vld [vmem:[%s9169_s28 + $0x19c] sm:$0xff] }
  0x17   : > { %v391_v35 = vld [vmem:[%s14495_s1 + $0x108] sm:$0xff]  ;;  %v422_v36 = vld [vmem:[%s9169_s28 + $0xbc] sm:$0xff]  ;;  %v453_v43 = vld [vmem:[%s9169_s28 + $0x1b4] sm:$0xff] }
  0x18   : > { %1678 = vperm.xlu1 %8849, %v388_v25   ;;  %v451_v37 = vld [vmem:[%s9169_s28 + $0x1a4] sm:$0xff]  ;;  %v452_v40 = vld [vmem:[%s9169_s28 + $0x1ac] sm:$0xff]  ;;  %v425_v45 = vld [vmem:[%s9169_s28 + $0xd4] sm:$0xff] }
  0x19   : > { %v423_v39 = vld [vmem:[%s9169_s28 + $0xc4] sm:$0xff]  ;;  %v424_v42 = vld [vmem:[%s9169_s28 + $0xcc] sm:$0xff]  ;;  %v454_v46 = vld [vmem:[%s9169_s28 + $0x1bc] sm:$0xff] }
  0x1a   : > { %v402_v44 = vld [vmem:[%s14495_s1 + $0x160] sm:$0xff]  ;;  %v403_v47 = vld [vmem:[%s14495_s1 + $0x168] sm:$0xff]  ;;  %v404_v50 = vld [vmem:[%s14495_s1 + $0x170] sm:$0xff] }
  0x1b   : > { %8277 = vmatmul.msk.f32.gmra.mxu0 %vm480_vm0, %v414_v9  ;;  %v426_v48 = vld [vmem:[%s9169_s28 + $0xdc] sm:$0xff]  ;;  %v455_v49 = vld [vmem:[%s9169_s28 + $0x1c4] sm:$0xff]  ;;  %v456_v52 = vld [vmem:[%s9169_s28 + $0x1cc] sm:$0xff] }
  0x1c   : > { %8306 = vmatmul.msk.f32.gmra.mxu3 %vm480_vm0, %v443_v10  ;;  %v427_v51 = vld [vmem:[%s9169_s28 + $0xe4] sm:$0xff]  ;;  %v405_v53 = vld [vmem:[%s14495_s1 + $0x178] sm:$0xff]  ;;  %v428_v54 = vld [vmem:[%s9169_s28 + $0xec] sm:$0xff] }
  0x1d   : > { %1698 = vperm.xlu2 %8850, %v392_v11   ;;  %v457_v55 = vld [vmem:[%s9169_s28 + $0x1d4] sm:$0xff]  ;;  %v406_v56 = vld [vmem:[%s14495_s1 + $0x180] sm:$0xff]  ;;  %v407_v60 = vld [vmem:[%s14495_s1 + $0x188] sm:$0xff] }
  0x1e   : > { %v429_v58 = vld [vmem:[%s9169_s28 + $0xf4] sm:$0xff]  ;;  %v458_v59 = vld [vmem:[%s9169_s28 + $0x1dc] sm:$0xff]  ;;  %v459_v0 = vld [vmem:[%s9169_s28 + $0x1e4] sm:$0xff] }
  0x1f   : > { %v430_v63 = vld [vmem:[%s9169_s28 + $0xfc] sm:$0xff]  ;;  %v408_v1 = vld [vmem:[%s14495_s1 + $0x190] sm:$0xff]  ;;  %v431_v5 = vld [vmem:[%s9169_s28 + $0x104] sm:$0xff] }
  0x20   : > { %1693 = vperm.xlu1 %8849, %v391_v35   ;;  %v385_v3 = vld [vmem:[%s14495_s1 + $0xd8] sm:$0xff]  ;;  %v460_v6 = vld [vmem:[%s9169_s28 + $0x1ec] sm:$0xff]  ;;  %v9321_v8 = vld [vmem:[%s14497_s3] ss:$0 sm:$0xff] }
  0x21   : > { %1663 = vperm.xlu0 %8848, %v385_v3   ;;  %v409_v7 = vld [vmem:[%s14495_s1 + $0x198] sm:$0xff]  ;;  %v410_v21 = vld [vmem:[%s14495_s1 + $0x1a0] sm:$0xff] }
  0x23   : > { %8278 = vmatmul.msk.f32.gmra.mxu0 %vm480_vm0, %v415_v12  ;;  %v386_v12 = vld [vmem:[%s14495_s1 + $0xe0] sm:$0xff] }
  0x24   : > { %8307 = vmatmul.msk.f32.gmra.mxu3 %vm480_vm0, %v444_v13 }
  0x25   : > { %1703 = vperm.xlu2 %8850, %v393_v14  }
  0x29   : > { %1668 = vperm.xlu0 %8848, %v386_v12  }
  0x2b   : > { %8279 = vmatmul.msk.f32.gmra.mxu0 %vm480_vm0, %v416_v15  ;;  %v432_v15 = vld [vmem:[%s9169_s28 + $0x10c] sm:$0xff] }
  0x2c   : > { %8308 = vmatmul.msk.f32.gmra.mxu3 %vm480_vm0, %v445_v16 }
  0x2d   : > { %1708 = vperm.xlu2 %8850, %v394_v17  }
  0x33   : > { %8280 = vmatmul.msk.f32.gmra.mxu0 %vm480_vm0, %v417_v18  ;;  %v461_v18 = vld [vmem:[%s9169_s28 + $0x1f4] sm:$0xff] }
  0x34   : > { %8309 = vmatmul.msk.f32.gmra.mxu3 %vm480_vm0, %v446_v19 }
  0x35   : > { %1713 = vperm.xlu2 %8850, %v395_v20  }
  0x3b   : > { %8281 = vmatmul.msk.f32.gmra.mxu0 %vm480_vm0, %v418_v22 }
  0x3c   : > { %8310 = vmatmul.msk.f32.gmra.mxu3 %vm480_vm0, %v447_v23 }
  0x3d   : > { %1718 = vperm.xlu2 %8850, %v396_v24  }
  0x43   : > { %8282 = vmatmul.msk.f32.gmra.mxu0 %vm480_vm0, %v419_v26 }
  0x44   : > { %8311 = vmatmul.msk.f32.gmra.mxu3 %vm480_vm0, %v448_v27 }
  0x45   : > { %1723 = vperm.xlu2 %8850, %v397_v28  }
  0x4b   : > { %8283 = vmatmul.msk.f32.gmra.mxu0 %vm480_vm0, %v420_v29  ;;  %v384_v29 = vld [vmem:[%s14495_s1 + $0xd0] sm:$0xff] }
  0x4c   : > { %8312 = vmatmul.msk.f32.gmra.mxu3 %vm480_vm0, %v449_v30  ;;  %1658 = vperm.xlu0 %8848, %v384_v29  }
  0x4d   : > { %1728 = vperm.xlu2 %8850, %v398_v31  }
  0x53   : > { %8284 = vmatmul.msk.f32.gmra.mxu0 %vm480_vm0, %v421_v32 }
  0x54   : > { %8313 = vmatmul.msk.f32.gmra.mxu3 %vm480_vm0, %v450_v33  ;;  %v433_v33 = vld [vmem:[%s9169_s28 + $0x114] sm:$0xff] }
  0x55   : > { %1733 = vperm.xlu2 %8850, %v399_v34  }
  0x5b   : > { %8285 = vmatmul.msk.f32.gmra.mxu0 %vm480_vm0, %v422_v36  ;;  %v462_v36 = vld [vmem:[%s9169_s28 + $0x1fc] sm:$0xff] }
  0x5c   : > { %8314 = vmatmul.msk.f32.gmra.mxu3 %vm480_vm0, %v451_v37 }
  0x5d   : > { %1738 = vperm.xlu2 %8850, %v400_v38   ;;  %v411_v38 = vld [vmem:[%s14495_s1 + $0x1a8] sm:$0xff] }
  0x63   : > { %8286 = vmatmul.msk.f32.gmra.mxu0 %vm480_vm0, %v423_v39 }
  0x64   : > { %8315 = vmatmul.msk.f32.gmra.mxu3 %vm480_vm0, %v452_v40 }
  0x65   : > { %1743 = vperm.xlu2 %8850, %v401_v41  }
  0x67   : > { %v9346_v27 = vpop.permute.xlu2 %1683 }
  0x68   : > { %14688 = vst [vmem:[#allocation4_spill] sm:$0xff] %v9346_v27 }
  0x6b   : > { %8287 = vmatmul.msk.f32.gmra.mxu0 %vm480_vm0, %v424_v42 }
  0x6c   : > { %8316 = vmatmul.msk.f32.gmra.mxu3 %vm480_vm0, %v453_v43 }
  0x6d   : > { %1748 = vperm.xlu2 %8850, %v402_v44  }
  0x73   : > { %8288 = vmatmul.msk.f32.gmra.mxu0 %vm480_vm0, %v425_v45 }
  0x74   : > { %8317 = vmatmul.msk.f32.gmra.mxu3 %vm480_vm0, %v454_v46 }
  0x75   : > { %1753 = vperm.xlu2 %8850, %v403_v47  }
  0x7b   : > { %8289 = vmatmul.msk.f32.gmra.mxu0 %vm480_vm0, %v426_v48 }
  0x7c   : > { %8318 = vmatmul.msk.f32.gmra.mxu3 %vm480_vm0, %v455_v49 }
  0x7d   : > { %1758 = vperm.xlu2 %8850, %v404_v50  }
  0x83   : > { %8290 = vmatmul.msk.f32.gmra.mxu0 %vm480_vm0, %v427_v51 }
  0x84   : > { %8319 = vmatmul.msk.f32.gmra.mxu3 %vm480_vm0, %v456_v52  ;;  %v434_v52 = vld [vmem:[%s9169_s28 + $0x11c] sm:$0xff] }
  0x85   : > { %1763 = vperm.xlu2 %8850, %v405_v53   ;;  %v9379_v53 = vpop.permute.xlu2 %1688 }
  0x86   : > { %14690 = vst [vmem:[#allocation6_spill] sm:$0xff] %v9379_v53 }
  0x8b   : > { %8291 = vmatmul.msk.f32.gmra.mxu0 %vm480_vm0, %v428_v54 }
  0x8c   : > { %8320 = vmatmul.msk.f32.gmra.mxu3 %vm480_vm0, %v457_v55  ;;  %v463_v55 = vld [vmem:[%s9169_s28 + $0x204] sm:$0xff] }
  0x8d   : > { %1768 = vperm.xlu2 %8850, %v406_v56  }
  0x90   : > { %v9292_v57 = vpop.f32.mrf.mxu0 }
  0x91   : > { %v676_v44 = vadd.f32 %v9321_v8, %v9292_v57 }
  0x93   : > { %8292 = vmatmul.msk.f32.gmra.mxu0 %vm480_vm0, %v429_v58  ;;  %v852_v58 = vmax.f32 %v676_v44, 0.0  ;;  %v436_v44 = vld [vmem:[%s9169_s28 + $0x12c] sm:$0xff] }
  0x94   : > { %8321 = vmatmul.msk.f32.gmra.mxu3 %vm480_vm0, %v458_v59 }
  0x95   : > { %1773 = vperm.xlu2 %8850, %v407_v60   ;;  %v412_v60 = vld [vmem:[%s14495_s1 + $0x1b0] sm:$0xf] }
  0x97   : > { %v9301_v61 = vpop.f32.mrf.mxu3 }
  0x98   : > { %v678_v62 = vpop.f32.mrf.mxu0 }
  0x99   : > { %v9366_v41 = vadd.f32 %v9321_v8, %v678_v62  ;;  %v763_v62 = vadd.f32 %v9321_v8, %v9301_v61 }
  0x9b   : > { %8293 = vmatmul.msk.f32.gmra.mxu0 %vm480_vm0, %v430_v63  ;;  %v14509_v49 = vmax.f32 %v9366_v41, 0.0 }
  0x9c   : > { %8322 = vmatmul.msk.f32.gmra.mxu3 %vm480_vm0, %v459_v0 }
  0x9d   : > { %1778 = vperm.xlu2 %8850, %v408_v1  }
  0x9f   : > { %v765_v2 = vpop.f32.mrf.mxu3 }
  0xa0   : > { %v681_v4 = vpop.f32.mrf.mxu0  ;;  %v766_v10 = vadd.f32 %v9321_v8, %v765_v2  ;;  %v9402_v2 = vrot.slane %v14509_v49, 1 }
  0xa1   : > { %v682_v9 = vadd.f32 %v9321_v8, %v681_v4  ;;  %v967_v4 = vrot.slane %v852_v58, 1 }
  0xa2   : > { %v882_v19 = vmax.f32 %v766_v10, 0.0 }
  0xa3   : > { %8294 = vmatmul.msk.f32.gmra.mxu0 %vm480_vm0, %v431_v5  ;;  %v854_v16 = vmax.f32 %v682_v9, 0.0 }
  0xa4   : > { %8323 = vmatmul.msk.f32.gmra.mxu3 %vm480_vm0, %v460_v6  ;;  %v9344_v25 = vrot.slane %v882_v19, 1 }
  0xa5   : > { %1783 = vperm.xlu2 %8850, %v409_v7   ;;  %v9342_v23 = vrot.slane %v854_v16, 1  ;;  %v881_v7 = vmax.f32 %v763_v62, 0.0 }
  0xa7   : > { %v768_v11 = vpop.f32.mrf.mxu3 }
  0xa8   : > { %v769_v13 = vadd.f32 %v9321_v8, %v768_v11  ;;  %v684_v14 = vpop.f32.mrf.mxu0 }
  0xa9   : > { %v9333_v17 = vadd.f32 %v9321_v8, %v684_v14 }
  0xaa   : > { %v883_v20 = vmax.f32 %v769_v13, 0.0 }
  0xab   : > { %v855_v22 = vmax.f32 %v9333_v17, 0.0  ;;  %8295 = vmatmul.msk.f32.gmra.mxu0 %vm480_vm0, %v432_v15  ;;  %v435_v15 = vld [vmem:[%s9169_s28 + $0x124] sm:$0xff] }
  0xac   : > { %8324 = vmatmul.msk.f32.gmra.mxu3 %vm480_vm0, %v461_v18  ;;  %v1028_v26 = vrot.slane %v883_v20, 1  ;;  %v464_v18 = vld [vmem:[%s9169_s28 + $0x20c] sm:$0xff] }
  0xad   : > { %v972_v24 = vrot.slane %v855_v22, 1  ;;  %1788 = vperm.xlu2 %8850, %v410_v21  }
  0xae   : > { %v1029_v39 = vsel %vm966_vm1, %v9344_v25, %v1028_v26 }
  0xaf   : > { %v771_v28 = vpop.f32.mrf.mxu3  ;;  %v973_v30 = vsel %vm966_vm1, %v9342_v23, %v972_v24  ;;  %v9369_v43 = vmax.f32 %v882_v19, %v1029_v39 }
  0xb0   : > { %v772_v31 = vadd.f32 %v9321_v8, %v771_v28  ;;  %v687_v32 = vpop.f32.mrf.mxu0  ;;  %v9355_v34 = vmax.f32 %v854_v16, %v973_v30  ;;  %v969_v16 = vsel %vm966_vm1, %v967_v4, %v9402_v2 }
  0xb1   : > { %v688_v35 = vadd.f32 %v9321_v8, %v687_v32  ;;  %v14512_v56 = vrot.slane %v9369_v43, 4  ;;  %v9430_v30 = vmax.f32 %v852_v58, %v969_v16 }
  0xb2   : > { %14689 = vst [vmem:[#allocation5_spill] sm:$0xff] %v9355_v34  ;;  %v884_v37 = vmax.f32 %v772_v31, 0.0 }
  0xb3   : > { %v856_v40 = vmax.f32 %v688_v35, 0.0  ;;  %8296 = vmatmul.msk.f32.gmra.mxu0 %vm480_vm0, %v433_v33  ;;  %14693 = vst [vmem:[#allocation9_spill] sm:$0xff] %v9430_v30 }
  0xb4   : > { %v1030_v42 = vrot.slane %v884_v37, 1  ;;  %8325 = vmatmul.msk.f32.gmra.mxu3 %vm480_vm0, %v462_v36 }
  0xb5   : > { %1793 = vperm.xlu2 %8850, %v411_v38   ;;  %v974_v47 = vrot.slane %v856_v40, 1 }
  0xb6   : > { %v1031_v45 = vsel %vm966_vm1, %v1028_v26, %v1030_v42  ;;  %v9424_v26 = vrot.slane %v881_v7, 1 }
  0xb7   : > { %v9374_v46 = vmax.f32 %v883_v20, %v1031_v45  ;;  %v774_v48 = vpop.f32.mrf.mxu3  ;;  %v975_v63 = vsel %vm966_vm1, %v972_v24, %v974_v47  ;;  %v9422_v24 = vpop.permute.xlu2 %1698 }
  0xb8   : > { %v775_v50 = vadd.f32 %v9321_v8, %v774_v48  ;;  %v690_v51 = vpop.f32.mrf.mxu0  ;;  %v9405_v5 = vmax.f32 %v855_v22, %v975_v63  ;;  %14692 = vst [vmem:[#allocation8_spill] sm:$0xff] %v9422_v24  ;;  %v1027_v39 = vsel %vm966_vm1, %v9424_v26, %v9344_v25  ;;  %v9450_v48 = vpop.permute.xlu1 %1673 }
  0xb9   : > { %v9382_v54 = vadd.f32 %v9321_v8, %v690_v51  ;;  %v1317_v57 = vrot.slane %v9374_v46, 4  ;;  %14695 = vst [vmem:[#allocation11_spill] sm:$0xff] %v9450_v48 }
  0xba   : > { %v885_v59 = vmax.f32 %v775_v50, 0.0  ;;  %14691 = vst [vmem:[#allocation7_spill] sm:$0xff] %v9405_v5  ;;  %v1262_v22 = vrot.slane %v9405_v5, 4 }
  0xbb   : > { %v857_v0 = vmax.f32 %v9382_v54, 0.0  ;;  %8297 = vmatmul.msk.f32.gmra.mxu0 %vm480_vm0, %v434_v52  ;;  %v9398_v1 = vsel %vm1261_vm2, %v14512_v56, %v1317_v57  ;;  %v9453_v52 = vmax.f32 %v881_v7, %v1027_v39 }
  0xbc   : > { %v1032_v3 = vrot.slane %v885_v59, 1  ;;  %8326 = vmatmul.msk.f32.gmra.mxu3 %vm480_vm0, %v463_v55 }
  0xbd   : > { %v976_v61 = vrot.slane %v857_v0, 1  ;;  %1798 = vperm.xlu2 %8850, %v412_v60  }
  0xbe   : > { %v1033_v6 = vsel %vm966_vm1, %v1030_v42, %v1032_v3 }
  0xbf   : > { %v9408_v9 = vmax.f32 %v884_v37, %v1033_v6  ;;  %v977_v10 = vsel %vm966_vm1, %v974_v47, %v976_v61  ;;  %v777_v11 = vpop.f32.mrf.mxu3  ;;  %v465_v47 = vld [vmem:[%s9169_s28 + $0x214] sm:$0xff] }
  0xc0   : > { %v9411_v12 = vmax.f32 %v856_v40, %v977_v10  ;;  %v778_v13 = vadd.f32 %v9321_v8, %v777_v11  ;;  %v693_v14 = vpop.f32.mrf.mxu0 }
  0xc1   : > { %v694_v17 = vadd.f32 %v9321_v8, %v693_v14  ;;  %v1319_v19 = vrot.slane %v9408_v9, 4  ;;  %v466_v14 = vld [vmem:[%s9169_s28 + $0x21c] sm:$0xff] }
  0xc2   : > { %v886_v20 = vmax.f32 %v778_v13, 0.0  ;;  %v14510_v21 = vrot.slane %v9411_v12, 4  ;;  %v437_v13 = vld [vmem:[%s9169_s28 + $0x134] sm:$0xff] }
  0xc3   : > { %v858_v28 = vmax.f32 %v694_v17, 0.0  ;;  %8298 = vmatmul.msk.f32.gmra.mxu0 %vm480_vm0, %v435_v15  ;;  %v9428_v29 = vsel %vm1261_vm2, %v1317_v57, %v1319_v19 }
  0xc4   : > { %v1034_v31 = vrot.slane %v886_v20, 1  ;;  %8327 = vmatmul.msk.f32.gmra.mxu3 %vm480_vm0, %v464_v18  ;;  %v9436_v32 = vsel %vm1261_vm2, %v1262_v22, %v14510_v21 }
  0xc5   : > { %14694 = vst [vmem:[#allocation10_spill] sm:$0xff] %v9436_v32  ;;  %v978_v37 = vrot.slane %v858_v28, 1 }
  0xc6   : > { %v1035_v35 = vsel %vm966_vm1, %v1032_v3, %v1034_v31 }
  0xc7   : > { %v9441_v36 = vmax.f32 %v885_v59, %v1035_v35  ;;  %v780_v38 = vpop.f32.mrf.mxu3  ;;  %v979_v54 = vsel %vm966_vm1, %v976_v61, %v978_v37  ;;  %v9460_v59 = vpop.permute.xlu2 %1703 }
  0xc8   : > { %v781_v40 = vadd.f32 %v9321_v8, %v780_v38  ;;  %v696_v42 = vpop.f32.mrf.mxu0  ;;  %14696 = vst [vmem:[#allocation12_spill] sm:$0xff] %v9460_v59  ;;  %v9462_v62 = vmax.f32 %v857_v0, %v979_v54 }
  0xc9   : > { %v697_v45 = vadd.f32 %v9321_v8, %v696_v42  ;;  %v1321_v50 = vrot.slane %v9441_v36, 4 }
  0xca   : > { %v887_v51 = vmax.f32 %v781_v40, 0.0  ;;  %v14511_v17 = vrot.slane %v9462_v62, 4 }
  0xcb   : > { %v859_v55 = vmax.f32 %v697_v45, 0.0  ;;  %8299 = vmatmul.msk.f32.gmra.mxu0 %vm480_vm0, %v436_v44  ;;  %v1322_v25 = vsel %vm1261_vm2, %v1319_v19, %v1321_v50 }
  0xcc   : > { %v1036_v57 = vrot.slane %v887_v51, 1  ;;  %8328 = vmatmul.msk.f32.gmra.mxu3 %vm480_vm0, %v465_v47  ;;  %v1455_v58 = vmax.f32 %v9453_v52, %v1322_v25 }
  0xcd   : > { %v980_v60 = vrot.slane %v859_v55, 1 }
  0xce   : > { %v1037_v63 = vsel %vm966_vm1, %v1034_v31, %v1036_v57  ;;  %v1830_v3 = vmul.f32 %v9450_v48, %v1455_v58  ;;  %v438_v58 = vld [vmem:[%s9169_s28 + $0x13c] sm:$0xff] }
  0xcf   : > { %v9466_v61 = vmax.f32 %v886_v20, %v1037_v63  ;;  %v981_v4 = vsel %vm966_vm1, %v978_v37, %v980_v60  ;;  %v783_v6 = vpop.f32.mrf.mxu3  ;;  %v9483_v20 = vpop.permute.xlu1 %1678 }
  0xd0   : > { %v9469_v7 = vmax.f32 %v858_v28, %v981_v4  ;;  %1885 = vst.msk [vmem:[#allocation2 + $0x15c] sm:$0xff] %vm480_vm0, %v1830_v3  ;;  %v784_v10 = vadd.f32 %v9321_v8, %v783_v6  ;;  %v699_v11 = vpop.f32.mrf.mxu0  ;;  %v9499_v42 = vpop.permute.xlu2 %1708  ;;  %v467_v3 = vld [vmem:[%s9169_s28 + $0x224] sm:$0xff] }
  0xd1   : > { %v9475_v0 = vadd.f32 %v9321_v8, %v699_v11  ;;  %v1323_v15 = vrot.slane %v9466_v61, 4  ;;  %14698 = vst [vmem:[#allocation14_spill] sm:$0xff] %v9483_v20 }
  0xd2   : > { %14697 = vst [vmem:[#allocation13_spill] sm:$0xff] %v9469_v7  ;;  %v888_v16 = vmax.f32 %v784_v10, 0.0  ;;  %v1267_v18 = vrot.slane %v9469_v7, 4 }
  0xd3   : > { %v860_v19 = vmax.f32 %v9475_v0, 0.0  ;;  %8300 = vmatmul.msk.f32.gmra.mxu0 %vm480_vm0, %v437_v13  ;;  %v1324_v22 = vsel %vm1261_vm2, %v1321_v50, %v1323_v15  ;;  %14700 = vst [vmem:[#allocation16_spill] sm:$0xff] %v9499_v42  ;;  %v440_v0 = vld [vmem:[%s9169_s28 + $0x14c] sm:$0xff] }
  0xd4   : > { %v1038_v28 = vrot.slane %v888_v16, 1  ;;  %8329 = vmatmul.msk.f32.gmra.mxu3 %vm480_vm0, %v466_v14  ;;  %v1456_v31 = vmax.f32 %v9369_v43, %v1324_v22  ;;  %v9491_v35 = vsel %vm1261_vm2, %v14511_v17, %v1267_v18 }
  0xd5   : > { %14699 = vst [vmem:[#allocation15_spill] sm:$0xff] %v9491_v35  ;;  %v982_v37 = vrot.slane %v860_v19, 1 }
  0xd6   : > { %v1039_v39 = vsel %vm966_vm1, %v1036_v57, %v1038_v28  ;;  %v1831_v40 = vmul.f32 %v9483_v20, %v1456_v31 }
  0xd7   : > { %v9501_v44 = vmax.f32 %v887_v51, %v1039_v39  ;;  %v983_v45 = vsel %vm966_vm1, %v980_v60, %v982_v37  ;;  %v786_v47 = vpop.f32.mrf.mxu3  ;;  %v2009_v50 = vld [vmem:[#allocation2 + $0x15c] sm:$0xff] }
  0xd8   : > { %v9504_v54 = vmax.f32 %v859_v55, %v983_v45  ;;  %1886 = vst.msk [vmem:[#allocation2 + $0x164] sm:$0xff] %vm480_vm0, %v1831_v40  ;;  %v787_v25 = vadd.f32 %v9321_v8, %v786_v47  ;;  %2231 = vrot.lane.b32.xlu0 %v2009_v50, %s9081_s18  ;;  %v702_v57 = vpop.f32.mrf.mxu0  ;;  %v439_v50 = vld [vmem:[%s9169_s28 + $0x144] sm:$0xff] }
  0xd9   : > { %v1325_v63 = vrot.slane %v9501_v44, 4  ;;  %v703_v51 = vadd.f32 %v9321_v8, %v702_v57 }
  0xda   : > { %v889_v4 = vmax.f32 %v787_v25, 0.0  ;;  %v14507_v60 = vrot.slane %v9504_v54, 4  ;;  %v9534_v25 = vpop.permute.xlu2 %1713 }
  0xdb   : > { %v1326_v55 = vsel %vm1261_vm2, %v1323_v15, %v1325_v63  ;;  %v861_v6 = vmax.f32 %v703_v51, 0.0  ;;  %8301 = vmatmul.msk.f32.gmra.mxu0 %vm480_vm0, %v438_v58  ;;  %14702 = vst [vmem:[#allocation18_spill] sm:$0xff] %v9534_v25 }
  0xdc   : > { %v1457_v10 = vmax.f32 %v9374_v46, %v1326_v55  ;;  %v1040_v11 = vrot.slane %v889_v4, 1  ;;  %8330 = vmatmul.msk.f32.gmra.mxu3 %vm480_vm0, %v467_v3  ;;  %v9521_v13 = vsel %vm1261_vm2, %v1267_v18, %v14507_v60 }
  0xdd   : > { %14701 = vst [vmem:[#allocation17_spill] sm:$0xff] %v9521_v13  ;;  %v984_v46 = vrot.slane %v861_v6, 1 }
  0xde   : > { %v1832_v22 = vmul.f32 %v9346_v27, %v1457_v10  ;;  %v1041_v15 = vsel %vm966_vm1, %v1038_v28, %v1040_v11  ;;  %v468_v28 = vld [vmem:[%s9169_s28 + $0x22c] sm:$0xff] }
  0xdf   : > { %v9527_v31 = vmax.f32 %v888_v16, %v1041_v15  ;;  %v789_v39 = vpop.f32.mrf.mxu3  ;;  %v2071_v40 = vld [vmem:[#allocation2 + $0x15e] sm:$0xff]  ;;  %v985_v51 = vsel %vm966_vm1, %v982_v37, %v984_v46 }
  0xe0   : > { %v2010_v45 = vld [vmem:[#allocation2 + $0x164] sm:$0xff]  ;;  %1887 = vst.msk [vmem:[#allocation2 + $0x16c] sm:$0xff] %vm480_vm0, %v1832_v22  ;;  %v790_v47 = vadd.f32 %v9321_v8, %v789_v39  ;;  %2479 = vrot.lane.b32.xlu1 %v2071_v40, %s9082_s19  ;;  %v705_v18 = vpop.f32.mrf.mxu0  ;;  %v9546_v39 = vmax.f32 %v860_v19, %v985_v51 }
  0xe1   : > { %2233 = vrot.lane.b32.xlu0 %v2010_v45, %s9081_s18  ;;  %v706_v16 = vadd.f32 %v9321_v8, %v705_v18  ;;  %v1327_v57 = vrot.slane %v9527_v31, 4 }
  0xe2   : > { %v890_v58 = vmax.f32 %v790_v47, 0.0 }
  0xe3   : > { %v862_v3 = vmax.f32 %v706_v16, 0.0  ;;  %8302 = vmatmul.msk.f32.gmra.mxu0 %vm480_vm0, %v439_v50  ;;  %v1328_v55 = vsel %vm1261_vm2, %v1325_v63, %v1327_v57 }
  0xe4   : > { %v1042_v10 = vrot.slane %v890_v58, 1  ;;  %8331 = vmatmul.msk.f32.gmra.mxu3 %vm480_vm0, %v468_v28  ;;  %v1458_v22 = vmax.f32 %v9408_v9, %v1328_v55  ;;  %v14508_v55 = vrot.slane %v9546_v39, 4 }
  0xe5   : > { %v986_v15 = vrot.slane %v862_v3, 1 }
  0xe6   : > { %v1043_v40 = vsel %vm966_vm1, %v1040_v11, %v1042_v10  ;;  %v1833_v37 = vmul.f32 %v9379_v53, %v1458_v22  ;;  %v469_v11 = vld [vmem:[%s9169_s28 + $0x234] sm:$0xff]  ;;  %v9567_v22 = vpop.permute.xlu2 %1718 }
  0xe7   : > { %v9550_v45 = vmax.f32 %v889_v4, %v1043_v40  ;;  %v792_v47 = vpop.f32.mrf.mxu3  ;;  %v2072_v63 = vld [vmem:[#allocation2 + $0x166] sm:$0xff]  ;;  %v987_v50 = vsel %vm966_vm1, %v984_v46, %v986_v15  ;;  %14704 = vst [vmem:[#allocation20_spill] sm:$0xff] %v9567_v22 }
  0xe8   : > { %v2011_v18 = vld [vmem:[#allocation2 + $0x16c] sm:$0xff]  ;;  %v793_v16 = vadd.f32 %v9321_v8, %v792_v47  ;;  %2481 = vrot.lane.b32.xlu1 %v2072_v63, %s9082_s19  ;;  %v708_v9 = vpop.f32.mrf.mxu0  ;;  %1888 = vst.msk [vmem:[#allocation2 + $0x174] sm:$0xff] %vm480_vm0, %v1833_v37  ;;  %v9558_v19 = vmax.f32 %v861_v6, %v987_v50  ;;  %v9571_v37 = vpop.permute.xlu1 %1693 }
  0xe9   : > { %2235 = vrot.lane.b32.xlu0 %v2011_v18, %s9081_s18  ;;  %v9561_v4 = vadd.f32 %v9321_v8, %v708_v9  ;;  %v1329_v28 = vrot.slane %v9550_v45, 4  ;;  %14705 = vst [vmem:[#allocation21_spill] sm:$0xff] %v9571_v37 }
  0xea   : > { %v891_v51 = vmax.f32 %v793_v16, 0.0  ;;  %v1273_v46 = vrot.slane %v9558_v19, 4 }
  0xeb   : > { %14703 = vst [vmem:[#allocation19_spill] sm:$0xff] %v9561_v4  ;;  %v14505_v40 = vmax.f32 %v9561_v4, 0.0  ;;  %8303 = vmatmul.msk.f32.gmra.mxu0 %vm480_vm0, %v440_v0  ;;  %v1330_v6 = vsel %vm1261_vm2, %v1327_v57, %v1329_v28 }
  0xec   : > { %v1044_v47 = vrot.slane %v891_v51, 1  ;;  %8332 = vmatmul.msk.f32.gmra.mxu3 %vm480_vm0, %v469_v11  ;;  %v1459_v63 = vmax.f32 %v9441_v36, %v1330_v6  ;;  %v9579_v18 = vsel %vm1261_vm2, %v14508_v55, %v1273_v46 }
  0xed   : > { %14706 = vst [vmem:[#allocation22_spill] sm:$0xff] %v9579_v18  ;;  %v9583_v50 = vrot.slane %v14505_v40, 1 }
  0xee   : > { %v1045_v57 = vsel %vm966_vm1, %v1042_v10, %v1044_v47  ;;  %v1834_v9 = vmul.f32 %v9571_v37, %v1459_v63 }
  0xef   : > { %14707 = vst [vmem:[#allocation23_spill] sm:$0xff] %v9583_v50  ;;  %v9589_v0 = vmax.f32 %v890_v58, %v1045_v57  ;;  %v989_v36 = vsel %vm966_vm1, %v986_v15, %v9583_v50  ;;  %v795_v11 = vpop.f32.mrf.mxu3  ;;  %v2073_v6 = vld [vmem:[#allocation2 + $0x16e] sm:$0xff]  ;;  %v470_v57 = vld [vmem:[%s9169_s28 + $0x23c] sm:$0xff] }
  0xf0   : > { %v2012_v14 = vld [vmem:[#allocation2 + $0x174] sm:$0xff]  ;;  %v9593_v38 = vmax.f32 %v862_v3, %v989_v36  ;;  %1889 = vst.msk [vmem:[#allocation2 + $0x17c] sm:$0xff] %vm480_vm0, %v1834_v9  ;;  %v796_v33 = vadd.f32 %v9321_v8, %v795_v11  ;;  %2483 = vrot.lane.b32.xlu1 %v2073_v6, %s9082_s19  ;;  %v9599_v10 = vpop.f32.mrf.mxu0  ;;  %v9614_v11 = vpop.permute.xlu2 %1723 }
  0xf1   : > { %2237 = vrot.lane.b32.xlu0 %v2012_v14, %s9081_s18  ;;  %v441_v58 = vld [vmem:[%s9169_s28 + $0x154] sm:$0xff]  ;;  %v1331_v63 = vrot.slane %v9589_v0, 4  ;;  %14710 = vst [vmem:[#allocation26_spill] sm:$0xff] %v9614_v11 }
  0xf2   : > { %14708 = vst [vmem:[#allocation24_spill] sm:$0xff] %v9593_v38  ;;  %v892_v15 = vmax.f32 %v796_v33, 0.0  ;;  %v14506_v16 = vrot.slane %v9593_v38, 4 }
  0xf3   : > { %v1332_v3 = vsel %vm1261_vm2, %v1329_v28, %v1331_v63  ;;  %8304 = vmatmul.msk.f32.gmra.mxu0 %vm480_vm0, %v441_v58 }
  0xf4   : > { %v1460_v9 = vmax.f32 %v9466_v61, %v1332_v3  ;;  %v1046_v36 = vrot.slane %v892_v15, 1  ;;  %8333 = vmatmul.msk.f32.gmra.mxu3 %vm480_vm0, %v470_v57  ;;  %v9612_v14 = vsel %vm1261_vm2, %v1273_v46, %v14506_v16  ;;  %v471_v16 = vld [vmem:[%s9169_s28 + $0x244] sm:$0x1] }
  0xf5   : > { %14709 = vst [vmem:[#allocation25_spill] sm:$0xff] %v9612_v14 }
  0xf6   : > { %v1835_v28 = vmul.f32 %v9422_v24, %v1460_v9  ;;  %v1047_v6 = vsel %vm966_vm1, %v1044_v47, %v1046_v36 }
  0xf7   : > { %v9620_v58 = vmax.f32 %v891_v51, %v1047_v6  ;;  %v798_v61 = vpop.f32.mrf.mxu3  ;;  %v2074_v3 = vld [vmem:[#allocation2 + $0x176] sm:$0xff] }
  0xf8   : > { %v2013_v57 = vld [vmem:[#allocation2 + $0x17c] sm:$0xff]  ;;  %1890 = vst.msk [vmem:[#allocation2 + $0x184] sm:$0xff] %vm480_vm0, %v1835_v28  ;;  %v799_v40 = vadd.f32 %v9321_v8, %v798_v61  ;;  %2485 = vrot.lane.b32.xlu1 %v2074_v3, %s9082_s19  ;;  %v714_v46 = vpop.f32.mrf.mxu0  ;;  %v9633_v60 = vpop.permute.xlu2 %1728 }
  0xf9   : > { %2239 = vrot.lane.b32.xlu0 %v2013_v57, %s9081_s18  ;;  %v1333_v33 = vrot.slane %v9620_v58, 4  ;;  %14711 = vst [vmem:[#allocation27_spill] sm:$0xff] %v9633_v60 }
  0xfa   : > { %v893_v9 = vmax.f32 %v799_v40, 0.0 }
  0xfb   : > { %v1334_v47 = vsel %vm1261_vm2, %v1331_v63, %v1333_v33  ;;  %v715_v63 = vadd.f32 %v9321_v8, %v714_v46 }
  0xfc   : > { %v1461_v51 = vmax.f32 %v9501_v44, %v1334_v47  ;;  %v1048_v6 = vrot.slane %v893_v9, 1  ;;  %8334 = vmatmul.msk.f32.gmra.mxu3 %vm480_vm0, %v471_v16 }
  0xfd   : > { %v865_v21 = vmax.f32 %v715_v63, 0.0 }
  0xfe   : > { %v1836_v28 = vmul.f32 %v9460_v59, %v1461_v51  ;;  %v1049_v61 = vsel %vm966_vm1, %v1046_v36, %v1048_v6 }
  0xff   : > { %v9635_v3 = vmax.f32 %v892_v15, %v1049_v61  ;;  %v801_v57 = vpop.f32.mrf.mxu3  ;;  %v2075_v55 = vld [vmem:[#allocation2 + $0x17e] sm:$0xff] }
 0x100   : > { %v2014_v49 = vld [vmem:[#allocation2 + $0x184] sm:$0xff]  ;;  %1891 = vst.msk [vmem:[#allocation2 + $0x18c] sm:$0xff] %vm480_vm0, %v1836_v28  ;;  %v802_v40 = vadd.f32 %v9321_v8, %v801_v57  ;;  %2487 = vrot.lane.b32.xlu1 %v2075_v55, %s9082_s19  ;;  %v717_v44 = vpop.f32.mrf.mxu0 }
 0x101   : > { %2241 = vrot.lane.b32.xlu0 %v2014_v49, %s9081_s18  ;;  %v1335_v16 = vrot.slane %v9635_v3, 4  ;;  %v718_v36 = vadd.f32 %v9321_v8, %v717_v44  ;;  %v9656_v44 = vrot.slane %v865_v21, 1 }
 0x102   : > { %v894_v15 = vmax.f32 %v802_v40, 0.0 }
 0x103   : > { %v1336_v47 = vsel %vm1261_vm2, %v1333_v33, %v1335_v16  ;;  %v866_v51 = vmax.f32 %v718_v36, 0.0  ;;  %v9654_v33 = vpop.permute.xlu2 %1733 }
 0x104   : > { %v1462_v61 = vmax.f32 %v9527_v31, %v1336_v47  ;;  %v1050_v28 = vrot.slane %v894_v15, 1  ;;  %14712 = vst [vmem:[#allocation28_spill] sm:$0xff] %v9654_v33 }
 0x105   : > { %v994_v17 = vrot.slane %v866_v51, 1 }
 0x106   : > { %v1837_v57 = vmul.f32 %v9499_v42, %v1462_v61  ;;  %v1051_v55 = vsel %vm966_vm1, %v1048_v6, %v1050_v28 }
 0x107   : > { %v9648_v49 = vmax.f32 %v893_v9, %v1051_v55  ;;  %v804_v56 = vpop.f32.mrf.mxu3  ;;  %v2076_v59 = vld [vmem:[#allocation2 + $0x186] sm:$0xff]  ;;  %v995_v47 = vsel %vm966_vm1, %v9656_v44, %v994_v17 }
 0x108   : > { %v2015_v46 = vld [vmem:[#allocation2 + $0x18c] sm:$0xff]  ;;  %1892 = vst.msk [vmem:[#allocation2 + $0x194] sm:$0xff] %vm480_vm0, %v1837_v57  ;;  %v805_v40 = vadd.f32 %v9321_v8, %v804_v56  ;;  %2489 = vrot.lane.b32.xlu1 %v2076_v59, %s9082_s19  ;;  %v720_v31 = vpop.f32.mrf.mxu0 }
 0x109   : > { %2243 = vrot.lane.b32.xlu0 %v2015_v46, %s9081_s18  ;;  %v1337_v9 = vrot.slane %v9648_v49, 4  ;;  %v721_v6 = vadd.f32 %v9321_v8, %v720_v31  ;;  %v9665_v46 = vmax.f32 %v865_v21, %v995_v47 }
 0x10a   : > { %v895_v63 = vmax.f32 %v805_v40, 0.0 }
 0x10b   : > { %v1338_v36 = vsel %vm1261_vm2, %v1335_v16, %v1337_v9  ;;  %v867_v56 = vmax.f32 %v721_v6, 0.0  ;;  %v9681_v47 = vpop.permute.xlu2 %1738 }
 0x10c   : > { %v1463_v59 = vmax.f32 %v9550_v45, %v1338_v36  ;;  %v1052_v61 = vrot.slane %v895_v63, 1  ;;  %14714 = vst [vmem:[#allocation30_spill] sm:$0xff] %v9681_v47 }
 0x10d   : > { %v996_v57 = vrot.slane %v867_v56, 1 }
 0x10e   : > { %v1838_v55 = vmul.f32 %v9534_v25, %v1463_v59  ;;  %v1053_v42 = vsel %vm966_vm1, %v1050_v28, %v1052_v61 }
 0x10f   : > { %v9668_v24 = vmax.f32 %v894_v15, %v1053_v42  ;;  %v997_v40 = vsel %vm966_vm1, %v994_v17, %v996_v57  ;;  %v807_v31 = vpop.f32.mrf.mxu3  ;;  %v2077_v16 = vld [vmem:[#allocation2 + $0x18e] sm:$0xff]  ;;  %v14519_v17 = vrot.slane %v9665_v46, 4 }
 0x110   : > { %v2016_v37 = vld [vmem:[#allocation2 + $0x194] sm:$0xff]  ;;  %1893 = vst.msk [vmem:[#allocation2 + $0x19c] sm:$0xff] %vm480_vm0, %v1838_v55  ;;  %v9672_v6 = vmax.f32 %v866_v51, %v997_v40  ;;  %v808_v45 = vadd.f32 %v9321_v8, %v807_v31  ;;  %2491 = vrot.lane.b32.xlu1 %v2077_v16, %s9082_s19  ;;  %v723_v21 = vpop.f32.mrf.mxu0 }
 0x111   : > { %2245 = vrot.lane.b32.xlu0 %v2016_v37, %s9081_s18  ;;  %v1339_v28 = vrot.slane %v9668_v24, 4  ;;  %v724_v42 = vadd.f32 %v9321_v8, %v723_v21 }
 0x112   : > { %14713 = vst [vmem:[#allocation29_spill] sm:$0xff] %v9672_v6  ;;  %v896_v15 = vmax.f32 %v808_v45, 0.0  ;;  %v1283_v36 = vrot.slane %v9672_v6, 4 }
 0x113   : > { %v1340_v51 = vsel %vm1261_vm2, %v1337_v9, %v1339_v28  ;;  %v868_v59 = vmax.f32 %v724_v42, 0.0 }
 0x114   : > { %v1464_v55 = vmax.f32 %v9589_v0, %v1340_v51  ;;  %v1054_v40 = vrot.slane %v896_v15, 1  ;;  %v9688_v37 = vsel %vm1261_vm2, %v14519_v17, %v1283_v36 }
 0x115   : > { %14715 = vst [vmem:[#allocation31_spill] sm:$0xff] %v9688_v37  ;;  %v998_v31 = vrot.slane %v868_v59, 1 }
 0x116   : > { %v1839_v16 = vmul.f32 %v9567_v22, %v1464_v55  ;;  %v1055_v45 = vsel %vm966_vm1, %v1052_v61, %v1054_v40 }
 0x117   : > { %v9692_v21 = vmax.f32 %v895_v63, %v1055_v45  ;;  %v999_v25 = vsel %vm966_vm1, %v996_v57, %v998_v31  ;;  %v810_v53 = vpop.f32.mrf.mxu3  ;;  %v2078_v9 = vld [vmem:[#allocation2 + $0x196] sm:$0xff] }
 0x118   : > { %v2017_v42 = vld [vmem:[#allocation2 + $0x19c] sm:$0xff]  ;;  %1894 = vst.msk [vmem:[#allocation2 + $0x1a4] sm:$0xff] %vm480_vm0, %v1839_v16  ;;  %v9696_v0 = vmax.f32 %v867_v56, %v999_v25  ;;  %v811_v51 = vadd.f32 %v9321_v8, %v810_v53  ;;  %2493 = vrot.lane.b32.xlu1 %v2078_v9, %s9082_s19  ;;  %v726_v55 = vpop.f32.mrf.mxu0  ;;  %v9711_v16 = vpop.permute.xlu2 %1743 }
 0x119   : > { %2247 = vrot.lane.b32.xlu0 %v2017_v42, %s9081_s18  ;;  %v1341_v61 = vrot.slane %v9692_v21, 4  ;;  %v727_v63 = vadd.f32 %v9321_v8, %v726_v55  ;;  %14717 = vst [vmem:[#allocation33_spill] sm:$0xff] %v9711_v16 }
 0x11a   : > { %v897_v45 = vmax.f32 %v811_v51, 0.0  ;;  %v14522_v57 = vrot.slane %v9696_v0, 4 }
 0x11b   : > { %v1342_v17 = vsel %vm1261_vm2, %v1339_v28, %v1341_v61  ;;  %v869_v22 = vmax.f32 %v727_v63, 0.0 }
 0x11c   : > { %v1465_v25 = vmax.f32 %v9620_v58, %v1342_v17  ;;  %v1056_v56 = vrot.slane %v897_v45, 1  ;;  %v9709_v53 = vsel %vm1261_vm2, %v1283_v36, %v14522_v57 }
 0x11d   : > { %14716 = vst [vmem:[#allocation32_spill] sm:$0xff] %v9709_v53  ;;  %v1000_v55 = vrot.slane %v869_v22, 1 }
 0x11e   : > { %v1840_v9 = vmul.f32 %v9614_v11, %v1465_v25  ;;  %v1057_v42 = vsel %vm966_vm1, %v1054_v40, %v1056_v56 }
 0x11f   : > { %v9715_v51 = vmax.f32 %v896_v15, %v1057_v42  ;;  %v813_v27 = vpop.f32.mrf.mxu3  ;;  %v2079_v28 = vld [vmem:[#allocation2 + $0x19e] sm:$0xff]  ;;  %v1001_v42 = vsel %vm966_vm1, %v998_v31, %v1000_v55 }
 0x120   : > { %v2018_v63 = vld [vmem:[#allocation2 + $0x1a4] sm:$0xff]  ;;  %1895 = vst.msk [vmem:[#allocation2 + $0x1ac] sm:$0xff] %vm480_vm0, %v1840_v9  ;;  %v814_v58 = vadd.f32 %v9321_v8, %v813_v27  ;;  %2495 = vrot.lane.b32.xlu1 %v2079_v28, %s9082_s19  ;;  %v729_v17 = vpop.f32.mrf.mxu0  ;;  %v9727_v28 = vmax.f32 %v868_v59, %v1001_v42  ;;  %v9730_v48 = vpop.permute.xlu2 %1748 }
 0x121   : > { %2249 = vrot.lane.b32.xlu0 %v2018_v63, %s9081_s18  ;;  %v1343_v36 = vrot.slane %v9715_v51, 4  ;;  %v730_v25 = vadd.f32 %v9321_v8, %v729_v17  ;;  %14718 = vst [vmem:[#allocation34_spill] sm:$0xff] %v9730_v48 }
 0x122   : > { %v898_v40 = vmax.f32 %v814_v58, 0.0 }
 0x123   : > { %v1344_v15 = vsel %vm1261_vm2, %v1341_v61, %v1343_v36  ;;  %v870_v57 = vmax.f32 %v730_v25, 0.0 }
 0x124   : > { %v1466_v11 = vmax.f32 %v9635_v3, %v1344_v15  ;;  %v1058_v9 = vrot.slane %v898_v40, 1 }
 0x125   : > { %v1002_v20 = vrot.slane %v870_v57, 1 }
 0x126   : > { %v1841_v27 = vmul.f32 %v9633_v60, %v1466_v11  ;;  %v1059_v63 = vsel %vm966_vm1, %v1056_v56, %v1058_v9 }
 0x127   : > { %v9732_v14 = vmax.f32 %v897_v45, %v1059_v63  ;;  %v1003_v58 = vsel %vm966_vm1, %v1000_v55, %v1002_v20  ;;  %v816_v61 = vpop.f32.mrf.mxu3  ;;  %v2080_v17 = vld [vmem:[#allocation2 + $0x1a6] sm:$0xff]  ;;  %v14527_v55 = vrot.slane %v9727_v28, 4 }
 0x128   : > { %v2019_v31 = vld [vmem:[#allocation2 + $0x1ac] sm:$0xff]  ;;  %1896 = vst.msk [vmem:[#allocation2 + $0x1b4] sm:$0xff] %vm480_vm0, %v1841_v27  ;;  %v9736_v3 = vmax.f32 %v869_v22, %v1003_v58  ;;  %v817_v25 = vadd.f32 %v9321_v8, %v816_v61  ;;  %2497 = vrot.lane.b32.xlu1 %v2080_v17, %s9082_s19  ;;  %v732_v11 = vpop.f32.mrf.mxu0 }
 0x129   : > { %2251 = vrot.lane.b32.xlu0 %v2019_v31, %s9081_s18  ;;  %v1345_v59 = vrot.slane %v9732_v14, 4  ;;  %v9743_v45 = vadd.f32 %v9321_v8, %v732_v11 }
 0x12a   : > { %14719 = vst [vmem:[#allocation35_spill] sm:$0xff] %v9736_v3  ;;  %v899_v56 = vmax.f32 %v817_v25, 0.0  ;;  %v1289_v15 = vrot.slane %v9736_v3, 4 }
 0x12b   : > { %14720 = vst [vmem:[#allocation36_spill] sm:$0xff] %v9743_v45  ;;  %v1346_v22 = vsel %vm1261_vm2, %v1343_v36, %v1345_v59  ;;  %v14529_v42 = vmax.f32 %v9743_v45, 0.0 }
 0x12c   : > { %v1467_v27 = vmax.f32 %v9648_v49, %v1346_v22  ;;  %v1060_v63 = vrot.slane %v899_v56, 1  ;;  %v9753_v58 = vsel %vm1261_vm2, %v14527_v55, %v1289_v15 }
 0x12d   : > { %14721 = vst [vmem:[#allocation37_spill] sm:$0xff] %v9753_v58  ;;  %v9757_v61 = vrot.slane %v14529_v42, 1 }
 0x12e   : > { %v1842_v31 = vmul.f32 %v9654_v33, %v1467_v27  ;;  %v1061_v36 = vsel %vm966_vm1, %v1058_v9, %v1060_v63 }
 0x12f   : > { %14722 = vst [vmem:[#allocation38_spill] sm:$0xff] %v9757_v61  ;;  %v9763_v25 = vmax.f32 %v898_v40, %v1061_v36  ;;  %v1005_v49 = vsel %vm966_vm1, %v1002_v20, %v9757_v61  ;;  %v819_v11 = vpop.f32.mrf.mxu3  ;;  %v2081_v22 = vld [vmem:[#allocation2 + $0x1ae] sm:$0xff]  ;;  %v9775_v40 = vpop.permute.xlu2 %1753 }
 0x130   : > { %v2020_v55 = vld [vmem:[#allocation2 + $0x1b4] sm:$0xff]  ;;  %1897 = vst.msk [vmem:[#allocation2 + $0x1bc] sm:$0xff] %vm480_vm0, %v1842_v31  ;;  %v9768_v60 = vmax.f32 %v870_v57, %v1005_v49  ;;  %v820_v42 = vadd.f32 %v9321_v8, %v819_v11  ;;  %2499 = vrot.lane.b32.xlu1 %v2081_v22, %s9082_s19  ;;  %v9773_v27 = vpop.f32.mrf.mxu0  ;;  %v9778_v36 = vpop.permute.xlu0 %1663 }
 0x131   : > { %2253 = vrot.lane.b32.xlu0 %v2020_v55, %s9081_s18  ;;  %14724 = vst [vmem:[#allocation40_spill] sm:$0xff] %v9773_v27  ;;  %v1347_v9 = vrot.slane %v9763_v25, 4 }
 0x132   : > { %14723 = vst [vmem:[#allocation39_spill] sm:$0xff] %v9768_v60  ;;  %v900_v20 = vmax.f32 %v820_v42, 0.0  ;;  %v14533_v17 = vrot.slane %v9768_v60, 4 }
 0x133   : > { %14725 = vst [vmem:[#allocation41_spill] sm:$0xff] %v9775_v40  ;;  %v1348_v57 = vsel %vm1261_vm2, %v1345_v59, %v1347_v9 }
 0x134   : > { %14726 = vst [vmem:[#allocation42_spill] sm:$0xff] %v9778_v36  ;;  %v1468_v31 = vmax.f32 %v9668_v24, %v1348_v57  ;;  %v1062_v49 = vrot.slane %v900_v20, 1  ;;  %v9786_v55 = vsel %vm1261_vm2, %v1289_v15, %v14533_v17 }
 0x135   : > { %14727 = vst [vmem:[#allocation43_spill] sm:$0xff] %v9786_v55 }
 0x136   : > { %v1843_v22 = vmul.f32 %v9681_v47, %v1468_v31  ;;  %v1063_v42 = vsel %vm966_vm1, %v1060_v63, %v1062_v49 }
 0x137   : > { %v9792_v33 = vmax.f32 %v899_v56, %v1063_v42  ;;  %v822_v3 = vpop.f32.mrf.mxu3  ;;  %v2082_v45 = vld [vmem:[#allocation2 + $0x1b6] sm:$0xff]  ;;  %v9801_v17 = vpop.permute.xlu2 %1758 }
 0x138   : > { %v2021_v59 = vld [vmem:[#allocation2 + $0x1bc] sm:$0xff]  ;;  %1898 = vst.msk [vmem:[#allocation2 + $0x1c4] sm:$0xff] %vm480_vm0, %v1843_v22  ;;  %v823_v24 = vadd.f32 %v9321_v8, %v822_v3  ;;  %2501 = vrot.lane.b32.xlu1 %v2082_v45, %s9082_s19  ;;  %v9798_v15 = vpop.f32.mrf.mxu0  ;;  %v9805_v11 = vpop.permute.xlu0 %1668 }
 0x139   : > { %2255 = vrot.lane.b32.xlu0 %v2021_v59, %s9081_s18  ;;  %v1349_v57 = vrot.slane %v9792_v33, 4  ;;  %14728 = vst [vmem:[#allocation44_spill] sm:$0xff] %v9801_v17 }
 0x13a   : > { %v901_v31 = vmax.f32 %v823_v24, 0.0  ;;  %14729 = vst [vmem:[#allocation45_spill] sm:$0xff] %v9805_v11 }
 0x13b   : > { %v1350_v56 = vsel %vm1261_vm2, %v1347_v9, %v1349_v57 }
 0x13c   : > { %v1469_v63 = vmax.f32 %v9692_v21, %v1350_v56  ;;  %v1064_v42 = vrot.slane %v901_v31, 1 }
 0x13e   : > { %v1844_v3 = vmul.f32 %v9711_v16, %v1469_v63  ;;  %v1065_v45 = vsel %vm966_vm1, %v1062_v49, %v1064_v42 }
 0x13f   : > { %v9809_v22 = vmax.f32 %v900_v20, %v1065_v45  ;;  %v825_v59 = vpop.f32.mrf.mxu3  ;;  %v2083_v47 = vld [vmem:[#allocation2 + $0x1be] sm:$0xff]  ;;  %v9820_v45 = vpop.permute.xlu2 %1763 }
 0x140   : > { %v2022_v60 = vld [vmem:[#allocation2 + $0x1c4] sm:$0xff]  ;;  %1899 = vst.msk [vmem:[#allocation2 + $0x1cc] sm:$0xff] %vm480_vm0, %v1844_v3  ;;  %v826_v24 = vadd.f32 %v9321_v8, %v825_v59  ;;  %2503 = vrot.lane.b32.xlu1 %v2083_v47, %s9082_s19  ;;  %v9815_v21 = vpop.f32.mrf.mxu0  ;;  %v9824_v16 = vpop.permute.xlu0 %1658 }
 0x141   : > { %2257 = vrot.lane.b32.xlu0 %v2022_v60, %s9081_s18  ;;  %v1351_v9 = vrot.slane %v9809_v22, 4  ;;  %14730 = vst [vmem:[#allocation46_spill] sm:$0xff] %v9820_v45 }
 0x142   : > { %v902_v56 = vmax.f32 %v826_v24, 0.0  ;;  %14731 = vst [vmem:[#allocation47_spill] sm:$0xff] %v9824_v16 }
 0x143   : > { %v1352_v49 = vsel %vm1261_vm2, %v1349_v57, %v1351_v9 }
 0x144   : > { %v1470_v20 = vmax.f32 %v9715_v51, %v1352_v49  ;;  %v1066_v63 = vrot.slane %v902_v56, 1 }
 0x146   : > { %v1845_v3 = vmul.f32 %v9730_v48, %v1470_v20  ;;  %v1067_v59 = vsel %vm966_vm1, %v1064_v42, %v1066_v63 }
 0x147   : > { %v9826_v47 = vmax.f32 %v901_v31, %v1067_v59  ;;  %v828_v60 = vpop.f32.mrf.mxu3  ;;  %v2084_v61 = vld [vmem:[#allocation2 + $0x1c6] sm:$0xff]  ;;  %v9839_v48 = vpop.permute.xlu2 %1768 }
 0x148   : > { %v2023_v27 = vld [vmem:[#allocation2 + $0x1cc] sm:$0xff]  ;;  %1900 = vst.msk [vmem:[#allocation2 + $0x1d4] sm:$0xff] %vm480_vm0, %v1845_v3  ;;  %v829_v57 = vadd.f32 %v9321_v8, %v828_v60  ;;  %2505 = vrot.lane.b32.xlu1 %v2084_v61, %s9082_s19  ;;  %v9832_v51 = vpop.f32.mrf.mxu0 }
 0x149   : > { %2259 = vrot.lane.b32.xlu0 %v2023_v27, %s9081_s18  ;;  %v1353_v24 = vrot.slane %v9826_v47, 4  ;;  %14732 = vst [vmem:[#allocation48_spill] sm:$0xff] %v9839_v48 }
 0x14a   : > { %v903_v42 = vmax.f32 %v829_v57, 0.0  ;;  %v9844_v6 = vpop.permute.xlu0 %2231 }
 0x14b   : > { %v1354_v49 = vsel %vm1261_vm2, %v1351_v9, %v1353_v24 }
 0x14c   : > { %v1471_v31 = vmax.f32 %v9732_v14, %v1354_v49  ;;  %v1068_v20 = vrot.slane %v903_v42, 1 }
 0x14e   : > { %v1846_v59 = vmul.f32 %v9775_v40, %v1471_v31  ;;  %v1069_v3 = vsel %vm966_vm1, %v1066_v63, %v1068_v20 }
 0x14f   : > { %v9841_v60 = vmax.f32 %v902_v56, %v1069_v3  ;;  %v831_v61 = vpop.f32.mrf.mxu3  ;;  %v2085_v27 = vld [vmem:[#allocation2 + $0x1ce] sm:$0xff] }
 0x150   : > { %v2024_v55 = vld [vmem:[#allocation2 + $0x1d4] sm:$0xff]  ;;  %1901 = vst.msk [vmem:[#allocation2 + $0x1dc] sm:$0xff] %vm480_vm0, %v1846_v59  ;;  %v832_v9 = vadd.f32 %v9321_v8, %v831_v61  ;;  %2507 = vrot.lane.b32.xlu1 %v2085_v27, %s9082_s19  ;;  %v747_v14 = vpop.f32.mrf.mxu0 }
 0x151   : > { %2261 = vrot.lane.b32.xlu0 %v2024_v55, %s9081_s18  ;;  %v1355_v63 = vrot.slane %v9841_v60, 4  ;;  %v9860_v55 = vld [vmem:[%s14497_s3] ss:$0 sm:$0xff] }
 0x152   : > { %v904_v57 = vmax.f32 %v832_v9, 0.0 }
 0x153   : > { %v1356_v56 = vsel %vm1261_vm2, %v1353_v24, %v1355_v63 }
 0x154   : > { %v1472_v49 = vmax.f32 %v9763_v25, %v1356_v56  ;;  %v1070_v31 = vrot.slane %v904_v57, 1  ;;  %v9868_v56 = vpop.permute.xlu2 %1773 }
 0x155   : > { %14733 = vst [vmem:[#allocation49_spill] sm:$0xff] %v9868_v56 }
 0x156   : > { %v1847_v3 = vmul.f32 %v9801_v17, %v1472_v49  ;;  %v1071_v59 = vsel %vm966_vm1, %v1068_v20, %v1070_v31  ;;  %v748_v20 = vadd.f32 %v9860_v55, %v747_v14  ;;  %v9870_v49 = vpop.permute.xlu0 %2233  ;;  %v9873_v17 = vpop.permute.xlu1 %2479 }
 0x157   : > { %v9854_v40 = vmax.f32 %v903_v42, %v1071_v59  ;;  %v834_v8 = vpop.f32.mrf.mxu3  ;;  %v2086_v61 = vld [vmem:[#allocation2 + $0x1d6] sm:$0xff] }
 0x158   : > { %v2025_v27 = vld [vmem:[#allocation2 + $0x1dc] sm:$0xff]  ;;  %1902 = vst.msk [vmem:[#allocation2 + $0x1e4] sm:$0xff] %vm480_vm0, %v1847_v3  ;;  %v835_v24 = vadd.f32 %v9860_v55, %v834_v8  ;;  %2509 = vrot.lane.b32.xlu1 %v2086_v61, %s9082_s19  ;;  %v750_v25 = vpop.f32.mrf.mxu0  ;;  %v9877_v61 = vadd.f32 %v9860_v55, %v9815_v21  ;;  %v876_v14 = vmax.f32 %v748_v20, 0.0 }
 0x159   : > { %2263 = vrot.lane.b32.xlu0 %v2025_v27, %s9081_s18  ;;  %v1357_v42 = vrot.slane %v9854_v40, 4  ;;  %v751_v9 = vadd.f32 %v9860_v55, %v750_v25  ;;  %v739_v25 = vadd.f32 %v9860_v55, %v9798_v15 }
 0x15a   : > { %v905_v3 = vmax.f32 %v835_v24, 0.0 }
 0x15b   : > { %v1358_v59 = vsel %vm1261_vm2, %v1355_v63, %v1357_v42  ;;  %v877_v8 = vmax.f32 %v751_v9, 0.0 }
 0x15c   : > { %v1473_v27 = vmax.f32 %v9792_v33, %v1358_v59  ;;  %v1072_v58 = vrot.slane %v905_v3, 1  ;;  %v9889_v59 = vrot.slane %v876_v14, 1  ;;  %v9905_v9 = vpop.permute.xlu2 %1778 }
 0x15d   : > { %v1016_v63 = vrot.slane %v877_v8, 1  ;;  %14734 = vst [vmem:[#allocation50_spill] sm:$0xff] %v9905_v9 }
 0x15e   : > { %v1848_v7 = vmul.f32 %v9820_v45, %v1473_v27  ;;  %v1073_v24 = vsel %vm966_vm1, %v1070_v31, %v1072_v58  ;;  %v873_v27 = vmax.f32 %v739_v25, 0.0  ;;  %v14735_v45 = vmax.f32 %v9877_v61, 0.0 }
 0x15f   : > { %v9884_v18 = vmax.f32 %v904_v57, %v1073_v24  ;;  %v837_v53 = vpop.f32.mrf.mxu3  ;;  %v9899_v57 = vadd.f32 %v9860_v55, %v9832_v51  ;;  %v9915_v51 = vpop.permute.xlu1 %2481 }
 0x160   : > { %1903 = vst.msk [vmem:[#allocation2 + $0x1ec] sm:$0xff] %vm480_vm0, %v1848_v7  ;;  %v838_v21 = vadd.f32 %v9860_v55, %v837_v53  ;;  %v753_v33 = vpop.f32.mrf.mxu0  ;;  %v1017_v7 = vsel %vm966_vm1, %v9889_v59, %v1016_v63  ;;  %v9917_v5 = vrot.slane %v873_v27, 1 }
 0x161   : > { %v1359_v20 = vrot.slane %v9884_v18, 4  ;;  %v9893_v15 = vadd.f32 %v9860_v55, %v753_v33  ;;  %v1010_v33 = vrot.slane %v14735_v45, 1  ;;  %v14555_v45 = vmax.f32 %v9899_v57, 0.0 }
 0x162   : > { %v9895_v31 = vmax.f32 %v838_v21, 0.0  ;;  %v9910_v21 = vpop.permute.xlu0 %2235  ;;  %14736 = vst [vmem:[#allocation51_spill] sm:$0xff] %v9917_v5 }
 0x163   : > { %v1360_v24 = vsel %vm1261_vm2, %v1357_v42, %v1359_v20  ;;  %v878_v53 = vmax.f32 %v9893_v15, 0.0  ;;  %v9920_v15 = vmax.f32 %v876_v14, %v1017_v7  ;;  %v1011_v32 = vsel %vm966_vm1, %v9917_v5, %v1010_v33 }
 0x164   : > { %v1474_v25 = vmax.f32 %v9809_v22, %v1360_v24  ;;  %v9913_v13 = vrot.slane %v9895_v31, 1 }
 0x165   : > { %v1018_v42 = vrot.slane %v878_v53, 1 }
 0x166   : > { %v1849_v37 = vmul.f32 %v9839_v48, %v1474_v25  ;;  %v1075_v35 = vsel %vm966_vm1, %v1072_v58, %v9913_v13 }
 0x167   : > { %v9925_v22 = vmax.f32 %v905_v3, %v1075_v35  ;;  %v1019_v24 = vsel %vm966_vm1, %v1016_v63, %v1018_v42  ;;  %v840_v34 = vpop.f32.mrf.mxu3  ;;  %v14566_v35 = vmov 0.0   ;;  %v1012_v63 = vrot.slane %v14555_v45, 1 }
 0x168   : > { %1904 = vst.msk [vmem:[#allocation2 + $0x1f4] sm:$0xff] %vm480_vm0, %v1849_v37  ;;  %v9931_v30 = vmax.f32 %v877_v8, %v1019_v24  ;;  %v9934_v14 = vadd.f32 %v9860_v55, %v840_v34  ;;  %v756_v7 = vpop.f32.mrf.mxu0  ;;  %v14557_v34 = vrot.slane %v9920_v15, 4  ;;  %v9947_v8 = vmax.f32 %v873_v27, %v1011_v32 }
 0x169   : > { %v1361_v58 = vrot.slane %v9925_v22, 4  ;;  %v9938_v25 = vadd.f32 %v9860_v55, %v756_v7  ;;  %1488 = vst.msk [vmem:[#allocation2 + $0x38] sm:$0xff] %vm480_vm0, %v14566_v35 }
 0x16a   : > { %14737 = vst [vmem:[#allocation52_spill] sm:$0xff] %v9931_v30  ;;  %v907_v3 = vmax.f32 %v9934_v14, 0.0  ;;  %v1305_v37 = vrot.slane %v9931_v30, 4  ;;  %v9971_v45 = vpop.permute.xlu0 %2237 }
 0x16b   : > { %1489 = vst.msk [vmem:[#allocation2 + $0x40] sm:$0xff] %vm480_vm0, %v14566_v35  ;;  %v1362_v24 = vsel %vm1261_vm2, %v1359_v20, %v1361_v58  ;;  %v879_v7 = vmax.f32 %v9938_v25, 0.0 }
 0x16c   : > { %14738 = vst [vmem:[#allocation53_spill] sm:$0xff] %v9947_v8  ;;  %v1475_v14 = vmax.f32 %v9826_v47, %v1362_v24  ;;  %v1190_v48 = vrot.slane %v907_v3, 1  ;;  %v9961_v32 = vsel %vm1261_vm2, %v14557_v34, %v1305_v37  ;;  %v9968_v47 = vpop.permute.xlu2 %1783  ;;  %v9977_v34 = vpop.permute.xlu1 %2483 }
 0x16d   : > { %1490 = vst.msk [vmem:[#allocation2 + $0x48] sm:$0xff] %vm480_vm0, %v14566_v35  ;;  %v1020_v20 = vrot.slane %v879_v7, 1 }
 0x16e   : > { %1491 = vst.msk [vmem:[#allocation2 + $0x50] sm:$0xff] %vm480_vm0, %v14566_v35  ;;  %v1850_v24 = vmul.f32 %v9868_v56, %v1475_v14  ;;  %v1191_v5 = vsel %vm966_vm1, %v9913_v13, %v1190_v48  ;;  %v1013_v14 = vsel %vm966_vm1, %v1010_v33, %v1012_v63 }
 0x16f   : > { %14739 = vst [vmem:[#allocation54_spill] sm:$0xff] %v9961_v32  ;;  %v1202_v27 = vmax.f32 %v9895_v31, %v1191_v5  ;;  %v1021_v38 = vsel %vm966_vm1, %v1018_v42, %v1020_v20  ;;  %v843_v4 = vpop.f32.mrf.mxu3  ;;  %v2028_v25 = vld [vmem:[#allocation2 + $0x1f4] sm:$0xff]  ;;  %v14743_v5 = vrot.slane %v9369_v43, 4  ;;  %v14744_v42 = vrot.slane %v9453_v52, 4 }
 0x170   : > { %1496 = vst.msk [vmem:[#allocation2 + $0x70] sm:$0xf] %vm1495_vm3, %v14566_v35  ;;  %v1157_v56 = vmax.f32 %v878_v53, %v1021_v38  ;;  %v9986_v32 = vadd.f32 %v9860_v55, %v843_v4  ;;  %2269 = vrot.lane.b32.xlu2 %v2028_v25, %s9081_s18  ;;  %v759_v8 = vpop.f32.mrf.mxu0  ;;  %v14746_v53 = vmax.f32 %v9877_v61, 0.0 }
 0x171   : > { %14740 = vst [vmem:[#allocation55_spill] sm:$0xff] %v9968_v47  ;;  %v1363_v50 = vrot.slane %v1202_v27, 4 }
 0x172   : > { %14741 = vst [vmem:[#allocation56_spill] sm:$0xff] %v9971_v45  ;;  %v1316_v45 = vsel %vm1261_vm2, %v14744_v42, %v14743_v5  ;;  %v908_v38 = vmax.f32 %v9986_v32, 0.0  ;;  %v1307_v4 = vrot.slane %v1157_v56, 4  ;;  %v10002_v27 = vmax.f32 %v14746_v53, %v1013_v14  ;;  %v10031_v53 = vpop.permute.xlu0 %2239 }
 0x173   : > { %1492 = vst.msk [vmem:[#allocation2 + $0x58] sm:$0xff] %vm480_vm0, %v14566_v35  ;;  %v1452_v33 = vmax.f32 %v1157_v56, %v1316_v45  ;;  %v1364_v43 = vsel %vm1261_vm2, %v1361_v58, %v1363_v50 }
 0x174   : > { %14742 = vst [vmem:[#allocation57_spill] sm:$0xff] %v9977_v34  ;;  %v14745_v34 = vmov 0.0   ;;  %v10012_v56 = vsel %vm1261_vm2, %v1305_v37, %v1307_v4  ;;  %v10026_v42 = vpop.permute.xlu2 %1788 }
 0x175   : > { %1493 = vst.msk [vmem:[#allocation2 + $0x60] sm:$0xff] %vm480_vm0, %v14566_v35  ;;  %v760_v35 = vadd.f32 %v9860_v55, %v759_v8  ;;  %v1476_v8 = vmax.f32 %v9841_v60, %v1364_v43  ;;  %v1827_v45 = vmul.f32 %v9824_v16, %v1452_v33  ;;  %v1015_v33 = vsel %vm966_vm1, %v1012_v63, %v9889_v59  ;;  %v10034_v43 = vpop.permute.xlu1 %2485 }
 0x176   : > { %1905 = vst.msk [vmem:[#allocation2 + $0x1fc] sm:$0xff] %vm480_vm0, %v1850_v24  ;;  %v1192_v24 = vrot.slane %v908_v38, 1  ;;  %v14748_v63 = vmax.f32 %v9899_v57, 0.0  ;;  %v14757_v16 = vmax.f32 %v9366_v41, 0.0  ;;  %v14759_v41 = vrot.slane %v9665_v46, 4 }
 0x177   : > { %1494 = vst.msk [vmem:[#allocation2 + $0x68] sm:$0xff] %vm480_vm0, %v14745_v34  ;;  %v880_v25 = vmax.f32 %v760_v35, 0.0  ;;  %v1851_v35 = vmul.f32 %v9905_v9, %v1476_v8  ;;  %v846_v5 = vpop.f32.mrf.mxu3 }
 0x178   : > { %1497 = vst.msk [vmem:[#allocation2 + $0x228] sm:$0xff] %vm480_vm0, %v14745_v34  ;;  %v1193_v60 = vsel %vm966_vm1, %v1190_v48, %v1192_v24 }
 0x179   : > { %1498 = vst.msk [vmem:[#allocation2 + $0x230] sm:$0xff] %vm480_vm0, %v14745_v34  ;;  %v1022_v61 = vrot.slane %v880_v25, 1  ;;  %v1203_v32 = vmax.f32 %v907_v3, %v1193_v60 }
 0x17a   : > { %1499 = vst.msk [vmem:[#allocation2 + $0x238] sm:$0xff] %vm480_vm0, %v14745_v34 }
 0x17b   : > { %1500 = vst.msk [vmem:[#allocation2 + $0x240] sm:$0xff] %vm480_vm0, %v14745_v34  ;;  %v1023_v14 = vsel %vm966_vm1, %v1020_v20, %v1022_v61  ;;  %v1025_v37 = vsel %vm966_vm1, %v1022_v61, %v9424_v26  ;;  %v847_v20 = vadd.f32 %v9860_v55, %v846_v5  ;;  %v1365_v26 = vrot.slane %v1203_v32, 4 }
 0x17c   : > { %1882 = vst.msk [vmem:[#allocation2 + $0x144] sm:$0xff] %vm480_vm0, %v1827_v45  ;;  %v1158_v48 = vmax.f32 %v879_v7, %v1023_v14  ;;  %v1159_v3 = vmax.f32 %v880_v25, %v1025_v37  ;;  %v10044_v7 = vmax.f32 %v14748_v63, %v1015_v33  ;;  %v8336_v33 = vld [vmem:[%s14498_s4 + $0x68] sm:$0xff] }
 0x17d   : > { %1501 = vst.msk [vmem:[#allocation2 + $0x248] sm:$0xff] %vm480_vm0, %v14745_v34  ;;  %v909_v59 = vmax.f32 %v847_v20, 0.0  ;;  %v1366_v25 = vsel %vm1261_vm2, %v1363_v50, %v1365_v26  ;;  %v14750_v50 = vrot.slane %v9453_v52, 4  ;;  %v10088_v63 = vpop.permute.xlu1 %2487 }
 0x17e   : > { %14747 = vst [vmem:[#allocation58_spill] sm:$0xff] %v10026_v42  ;;  %v1311_v8 = vrot.slane %v1159_v3, 4  ;;  %v1453_v45 = vmax.f32 %v1158_v48, %v9398_v1  ;;  %v1454_v61 = vmax.f32 %v1159_v3, %v9428_v29  ;;  %v1477_v60 = vmax.f32 %v9854_v40, %v1366_v25 }
 0x17f   : > { %1906 = vst.msk [vmem:[#allocation2 + $0x204] sm:$0xff] %vm480_vm0, %v1851_v35  ;;  %v1309_v35 = vrot.slane %v1158_v48, 4  ;;  %v1194_v32 = vrot.slane %v909_v59, 1  ;;  %v849_v48 = vpop.f32.mrf.mxu3 }
 0x180   : > { %1502 = vst.msk [vmem:[#allocation2 + $0x250] sm:$0xff] %vm480_vm0, %v14745_v34  ;;  %v1828_v1 = vmul.f32 %v9778_v36, %v1453_v45  ;;  %v1829_v29 = vmul.f32 %v9805_v11, %v1454_v61  ;;  %v10062_v14 = vsel %vm1261_vm2, %v1311_v8, %v14750_v50  ;;  %v1852_v37 = vmul.f32 %v9968_v47, %v1477_v60  ;;  %v10082_v45 = vpop.permute.xlu2 %1793  ;;  %v10084_v61 = vpop.permute.xlu0 %2241 }
 0x181   : > { %1503 = vst.msk [vmem:[#allocation2 + $0x258] sm:$0xff] %vm480_vm0, %v14745_v34  ;;  %v10057_v57 = vsel %vm1261_vm2, %v1307_v4, %v1309_v35  ;;  %v10065_v40 = vsel %vm1261_vm2, %v1309_v35, %v1311_v8  ;;  %v1195_v5 = vsel %vm966_vm1, %v1192_v24, %v1194_v32  ;;  %v850_v8 = vadd.f32 %v9860_v55, %v849_v48 }
 0x182   : > { %1504 = vst.msk [vmem:[#allocation2 + $0x260] sm:$0xff] %vm480_vm0, %v14745_v34  ;;  %v1204_v52 = vmax.f32 %v908_v38, %v1195_v5 }
 0x183   : > { %1505 = vst.msk [vmem:[#allocation2 + $0x268] sm:$0xff] %vm480_vm0, %v14745_v34  ;;  %v910_v38 = vmax.f32 %v850_v8, 0.0 }
 0x184   : > { %1506 = vst.msk [vmem:[#allocation2 + $0x270] sm:$0xff] %vm480_vm0, %v14745_v34  ;;  %v1367_v24 = vrot.slane %v1204_v52, 4 }
 0x185   : > { %14749 = vst [vmem:[#allocation59_spill] sm:$0xff] %v10057_v57  ;;  %v1196_v60 = vrot.slane %v910_v38, 1 }
 0x186   : > { %14751 = vst [vmem:[#allocation60_spill] sm:$0xff] %v10062_v14  ;;  %v2091_v3 = vld [vmem:[#allocation2 + $0x1fe] sm:$0xff]  ;;  %v1368_v25 = vsel %vm1261_vm2, %v1365_v26, %v1367_v24  ;;  %v1185_v26 = vmax.f32 %v9895_v31, %v9913_v13 }
 0x187   : > { %14752 = vst [vmem:[#allocation61_spill] sm:$0xff] %v10065_v40  ;;  %2519 = vrot.lane.b32.xlu2 %v2091_v3, %s9082_s19  ;;  %v1478_v35 = vmax.f32 %v9884_v18, %v1368_v25  ;;  %v10112_v25 = vpop.permute.xlu1 %2489  ;;  %v2751_v58 = vld [vmem:[#allocation2 + $0x24e] sm:$0xff] }
 0x188   : > { %1883 = vst.msk [vmem:[#allocation2 + $0x14c] sm:$0xff] %vm480_vm0, %v1828_v1  ;;  %v10107_v8 = vpop.permute.xlu2 %1798 }
 0x189   : > { %1884 = vst.msk [vmem:[#allocation2 + $0x154] sm:$0xff] %vm480_vm0, %v1829_v29  ;;  %v2747_v29 = vld [vmem:[#allocation2 + $0x22e] sm:$0xff]  ;;  %v1853_v50 = vmul.f32 %v10026_v42, %v1478_v35 }
 0x18a   : > { %1907 = vst.msk [vmem:[#allocation2 + $0x20c] sm:$0xff] %vm480_vm0, %v1852_v37  ;;  %v1197_v37 = vsel %vm966_vm1, %v1194_v32, %v1196_v60  ;;  %v10109_v32 = vpop.permute.xlu0 %2243  ;;  %v2744_v42 = vld [vmem:[#allocation2 + $0x254] sm:$0xff] }
 0x18b   : > { %1507 = vst.msk [vmem:[#allocation2 + $0x278] sm:$0xff] %vm480_vm0, %v14745_v34  ;;  %v1205_v18 = vmax.f32 %v909_v59, %v1197_v37  ;;  %v2748_v59 = vld [vmem:[#allocation2 + $0x236] sm:$0xff]  ;;  %v2027_v37 = vld [vmem:[#allocation2 + $0x1ec] sm:$0xff] }
 0x18c   : > { %14753 = vst [vmem:[#allocation62_spill] sm:$0xff] %v10082_v45 }
 0x18d   : > { %1508 = vst.msk [vmem:[#allocation2 + $0x280] sm:$0xff] %vm480_vm0, %v14745_v34  ;;  %v1369_v52 = vrot.slane %v1205_v18, 4 }
 0x18e   : > { %1509 = vst.msk [vmem:[#allocation2 + $0x288] sm:$0xff] %vm480_vm0, %v14745_v34 }
 0x18f   : > { %1510 = vst.msk [vmem:[#allocation2 + $0x290] sm:$0xff] %vm480_vm0, %v14745_v34  ;;  %v2007_v1 = vld [vmem:[#allocation2 + $0x14c] sm:$0xff]  ;;  %2796 = vrot.lane.b32.xlu2 %v2747_v29, %s9082_s19  ;;  %v1370_v48 = vsel %vm1261_vm2, %v1367_v24, %v1369_v52  ;;  %v1480_v3 = vmax.f32 %v1185_v26, %v1369_v52  ;;  %v2087_v29 = vld [vmem:[#allocation2 + $0x1de] sm:$0xff] }
 0x190   : > { %1511 = vst.msk [vmem:[#allocation2 + $0x298] sm:$0xff] %vm480_vm0, %v14745_v34  ;;  %v2069_v5 = vld [vmem:[#allocation2 + $0x14e] sm:$0xff]  ;;  %2227 = vrot.lane.b32.xlu0 %v2007_v1, %s9081_s18  ;;  %v1479_v38 = vmax.f32 %v9925_v22, %v1370_v48  ;;  %v2070_v60 = vld [vmem:[#allocation2 + $0x156] sm:$0xff]  ;;  %v2026_v22 = vld [vmem:[#allocation2 + $0x1e4] sm:$0xff] }
 0x191   : > { %2475 = vrot.lane.b32.xlu1 %v2069_v5, %s9082_s19  ;;  %1908 = vst.msk [vmem:[#allocation2 + $0x214] sm:$0xff] %vm480_vm0, %v1853_v50  ;;  %v1855_v13 = vmul.f32 %v10107_v8, %v1480_v3  ;;  %v2008_v31 = vld [vmem:[#allocation2 + $0x154] sm:$0xff]  ;;  %v359_v24 = vld [vmem:[%s14495_s1 + $0x8] sm:$0xff]  ;;  %v10127_v50 = vpop.permute.xlu1 %2491 }
 0x192   : > { %14754 = vst [vmem:[#allocation63_spill] sm:$0xff] %v10107_v8  ;;  %v1854_v35 = vmul.f32 %v10082_v45, %v1479_v38  ;;  %v10124_v1 = vpop.permute.xlu0 %2245  ;;  %v367_v5 = vld [vmem:[%s14495_s1 + $0x48] sm:$0xff]  ;;  %v2090_v48 = vld [vmem:[#allocation2 + $0x1f6] sm:$0xff]  ;;  %v8335_v45 = vld [vmem:[%s14498_s4 + $0x60] sm:$0xff] }
 0x193   : > { %1910 = vst.msk [vmem:[#allocation2 + $0x224] sm:$0xf] %vm1495_vm3, %v1855_v13  ;;  %v2088_v26 = vld [vmem:[#allocation2 + $0x1e6] sm:$0xff]  ;;  %v2089_v38 = vld [vmem:[#allocation2 + $0x1ee] sm:$0xff] }
 0x194   : > { %1909 = vst.msk [vmem:[#allocation2 + $0x21c] sm:$0xff] %vm480_vm0, %v1854_v35  ;;  %v2750_v3 = vld [vmem:[#allocation2 + $0x246] sm:$0xff] }
 0x195   : > { %5229 = vst.msk [vmem:[#allocation3] sm:$0xff] %vm2655_vm4, %v14745_v34  ;;  %v2743_v35 = vld [vmem:[#allocation2 + $0x24c] sm:$0xff] }
 0x196   : > { %5230 = vst.msk [vmem:[#allocation3 + $0x8] sm:$0xff] %vm2655_vm4, %v14745_v34 }
 0x197   : > { %2798 = vrot.lane.b32.xlu2 %v2748_v59, %s9082_s19  ;;  %5231 = vst.msk [vmem:[#allocation3 + $0x10] sm:$0xff] %vm2655_vm4, %v14745_v34  ;;  %v2030_v59 = vld [vmem:[#allocation2 + $0x204] sm:$0xff] }
 0x198   : > { %2229 = vrot.lane.b32.xlu0 %v2008_v31, %s9081_s18  ;;  %5232 = vst.msk [vmem:[#allocation3 + $0x18] sm:$0xff] %vm2655_vm4, %v14745_v34 }
 0x199   : > { %2477 = vrot.lane.b32.xlu1 %v2070_v60, %s9082_s19  ;;  %5233 = vst.msk [vmem:[#allocation3 + $0x20] sm:$0xff] %vm2655_vm4, %v14745_v34  ;;  %v10157_v52 = vpop.permute.xlu1 %2493  ;;  %v2029_v60 = vld [vmem:[#allocation2 + $0x1fc] sm:$0xff] }
 0x19a   : > { %5234 = vst.msk [vmem:[#allocation3 + $0x28] sm:$0xff] %vm2655_vm4, %v14745_v34  ;;  %v10153_v18 = vpop.permute.xlu0 %2247 }
 0x19b   : > { %5235 = vst.msk [vmem:[#allocation3 + $0x30] sm:$0xff] %vm2655_vm4, %v14745_v34 }
 0x19c   : > { %5236 = vst.msk [vmem:[#allocation3 + $0x38] sm:$0xff] %vm2655_vm4, %v14745_v34 }
 0x19d   : > { %5237 = vst.msk [vmem:[#allocation3 + $0x40] sm:$0xff] %vm2655_vm4, %v14745_v34 }
 0x19e   : > { %5238 = vst.msk [vmem:[#allocation3 + $0x48] sm:$0xff] %vm2655_vm4, %v14745_v34 }
 0x19f   : > { %1533 = vperm.xlu2 %8850, %v359_v24   ;;  %5239 = vst.msk [vmem:[#allocation3 + $0x50] sm:$0xff] %vm2655_vm4, %v14745_v34 }
 0x1a0   : > { %2265 = vrot.lane.b32.xlu0 %v2026_v22, %s9081_s18  ;;  %5240 = vst.msk [vmem:[#allocation3 + $0x58] sm:$0xff] %vm2655_vm4, %v14745_v34  ;;  %v2740_v22 = vld [vmem:[#allocation2 + $0x234] sm:$0xff] }
 0x1a1   : > { %2511 = vrot.lane.b32.xlu1 %v2087_v29, %s9082_s19  ;;  %5241 = vst.msk [vmem:[#allocation3 + $0x60] sm:$0xff] %vm2655_vm4, %v14745_v34  ;;  %v10184_v31 = vpop.permute.xlu1 %2495  ;;  %v2739_v29 = vld [vmem:[#allocation2 + $0x22c] sm:$0xff] }
 0x1a2   : > { %5242 = vst.msk [vmem:[#allocation3 + $0x68] sm:$0xff] %vm2655_vm4, %v14745_v34  ;;  %v10180_v13 = vpop.permute.xlu0 %2249 }
 0x1a3   : > { %5245 = vst.msk [vmem:[#allocation3 + $0x228] sm:$0xff] %vm2655_vm4, %v14745_v34 }
 0x1a4   : > { %5246 = vst.msk [vmem:[#allocation3 + $0x230] sm:$0xff] %vm2655_vm4, %v14745_v34 }
 0x1a5   : > { %5247 = vst.msk [vmem:[#allocation3 + $0x238] sm:$0xff] %vm2655_vm4, %v14745_v34 }
 0x1a6   : > { %5248 = vst.msk [vmem:[#allocation3 + $0x240] sm:$0xff] %vm2655_vm4, %v14745_v34 }
 0x1a7   : > { %1573 = vperm.xlu2 %8850, %v367_v5   ;;  %5249 = vst.msk [vmem:[#allocation3 + $0x248] sm:$0xff] %vm2655_vm4, %v14745_v34  ;;  %v362_v5 = vld [vmem:[%s14495_s1 + $0x20] sm:$0xff] }
 0x1a8   : > { %2267 = vrot.lane.b32.xlu0 %v2027_v37, %s9081_s18  ;;  %5250 = vst.msk [vmem:[#allocation3 + $0x250] sm:$0xff] %vm2655_vm4, %v14745_v34 }
 0x1a9   : > { %2513 = vrot.lane.b32.xlu1 %v2088_v26, %s9082_s19  ;;  %5251 = vst.msk [vmem:[#allocation3 + $0x258] sm:$0xff] %vm2655_vm4, %v14745_v34  ;;  %v10211_v37 = vpop.permute.xlu1 %2497  ;;  %v366_v26 = vld [vmem:[%s14495_s1 + $0x40] sm:$0xff] }
 0x1aa   : > { %5252 = vst.msk [vmem:[#allocation3 + $0x260] sm:$0xff] %vm2655_vm4, %v14745_v34  ;;  %v10207_v24 = vpop.permute.xlu0 %2251 }
 0x1ab   : > { %5253 = vst.msk [vmem:[#allocation3 + $0x268] sm:$0xff] %vm2655_vm4, %v14745_v34 }
 0x1ac   : > { %5254 = vst.msk [vmem:[#allocation3 + $0x270] sm:$0xff] %vm2655_vm4, %v14745_v34 }
 0x1ad   : > { %5255 = vst.msk [vmem:[#allocation3 + $0x278] sm:$0xff] %vm2655_vm4, %v14745_v34 }
 0x1ae   : > { %5256 = vst.msk [vmem:[#allocation3 + $0x280] sm:$0xff] %vm2655_vm4, %v14745_v34 }
 0x1af   : > { %2802 = vrot.lane.b32.xlu2 %v2750_v3, %s9082_s19  ;;  %5257 = vst.msk [vmem:[#allocation3 + $0x288] sm:$0xff] %vm2655_vm4, %v14745_v34  ;;  %v370_v3 = vld [vmem:[%s14495_s1 + $0x60] sm:$0xff] }
 0x1b0   : > { %2517 = vrot.lane.b32.xlu0 %v2090_v48, %s9082_s19  ;;  %5258 = vst.msk [vmem:[#allocation3 + $0x290] sm:$0xff] %vm2655_vm4, %v14745_v34  ;;  %v365_v48 = vld [vmem:[%s14495_s1 + $0x38] sm:$0xff] }
 0x1b1   : > { %2515 = vrot.lane.b32.xlu1 %v2089_v38, %s9082_s19  ;;  %5259 = vst.msk [vmem:[#allocation3 + $0x298] sm:$0xff] %vm2655_vm4, %v14745_v34 }
 0x1b2   : > { %5260 = vst.msk [vmem:[#allocation3 + $0x2a0] sm:$0xff] %vm2655_vm4, %v14745_v34  ;;  %v10245_v38 = vpop.permute.xlu0 %2253 }
 0x1b3   : > { %5261 = vst.msk [vmem:[#allocation3 + $0x2a8] sm:$0xff] %vm2655_vm4, %v14745_v34 }
 0x1b4   : > { %5262 = vst.msk [vmem:[#allocation3 + $0x2b0] sm:$0xff] %vm2655_vm4, %v14745_v34 }
 0x1b5   : > { %5263 = vst.msk [vmem:[#allocation3 + $0x2b8] sm:$0xff] %vm2655_vm4, %v14745_v34 }
 0x1b6   : > { %5264 = vst.msk [vmem:[#allocation3 + $0x2c0] sm:$0xff] %vm2655_vm4, %v14745_v34 }
 0x1b7   : > { %2772 = vrot.lane.b32.xlu2 %v2743_v35, %s9081_s18  ;;  %5265 = vst.msk [vmem:[#allocation3 + $0x2c8] sm:$0xff] %vm2655_vm4, %v14745_v34  ;;  %v8346_v35 = vld [vmem:[%s14498_s4 + $0xb8] sm:$0xff] }
 0x1b8   : > { %2273 = vrot.lane.b32.xlu0 %v2030_v59, %s9081_s18  ;;  %5266 = vst.msk [vmem:[#allocation3 + $0x2d0] sm:$0xff] %vm2655_vm4, %v14745_v34  ;;  %v10249_v59 = vpop.permute.xlu1 %2499  ;;  %8806 = vmatpush.msra.mxu2 %v8346_v35 }
 0x1b9   : > { %2271 = vrot.lane.b32.xlu1 %v2029_v60, %s9081_s18  ;;  %5267 = vst.msk [vmem:[#allocation3 + $0x2d8] sm:$0xff] %vm2655_vm4, %v14745_v34  ;;  %v8345_v60 = vld [vmem:[%s14498_s4 + $0xb0] sm:$0xff]  ;;  %3038 = vmatpush.msra.mxu1 %v8346_v35  ;;  %v8342_v35 = vld [vmem:[%s14498_s4 + $0x98] sm:$0xff] }
 0x1ba   : > { %5268 = vst.msk [vmem:[#allocation3 + $0x2e0] sm:$0xff] %vm2655_vm4, %v14745_v34  ;;  %8807 = vmatpush.msra.mxu2 %v8345_v60 }
 0x1bb   : > { %5269 = vst.msk [vmem:[#allocation3 + $0x2e8] sm:$0xff] %vm2655_vm4, %v14745_v34  ;;  %3039 = vmatpush.msra.mxu1 %v8345_v60  ;;  %v360_v60 = vld [vmem:[%s14495_s1 + $0x10] sm:$0xff] }
 0x1bc   : > { %5270 = vst.msk [vmem:[#allocation3 + $0x2f0] sm:$0xff] %vm2655_vm4, %v14745_v34 }
 0x1bd   : > { %5271 = vst.msk [vmem:[#allocation3 + $0x2f8] sm:$0xff] %vm2655_vm4, %v14745_v34 }
 0x1be   : > { %5272 = vst.msk [vmem:[#allocation3 + $0x300] sm:$0xff] %vm2655_vm4, %v14745_v34 }
 0x1bf   : > { %1548 = vperm.xlu2 %8850, %v362_v5   ;;  %5273 = vst.msk [vmem:[#allocation3 + $0x308] sm:$0xff] %vm2655_vm4, %v14745_v34  ;;  %v8344_v5 = vld [vmem:[%s14498_s4 + $0xa8] sm:$0xff] }
 0x1c0   : > { %2766 = vrot.lane.b32.xlu0 %v2740_v22, %s9081_s18  ;;  %v2741_v22 = vld [vmem:[#allocation2 + $0x23c] sm:$0xff]  ;;  %8808 = vmatpush.msra.mxu2 %v8344_v5 }
 0x1c1   : > { %2764 = vrot.lane.b32.xlu1 %v2739_v29, %s9081_s18  ;;  %v358_v29 = vld [vmem:[%s14495_s1] sm:$0xff]  ;;  %3040 = vmatpush.msra.mxu1 %v8344_v5  ;;  %v8340_v5 = vld [vmem:[%s14498_s4 + $0x88] sm:$0xff] }
 0x1c7   : > { %1588 = vperm.xlu2 %8850, %v370_v3   ;;  %v8343_v3 = vld [vmem:[%s14498_s4 + $0xa0] sm:$0xff] }
 0x1c8   : > { %1568 = vperm.xlu0 %8848, %v366_v26   ;;  %v10270_v26 = vpop.permute.xlu0 %2255  ;;  %8809 = vmatpush.msra.mxu2 %v8343_v3 }
 0x1c9   : > { %1563 = vperm.xlu1 %8849, %v365_v48   ;;  %v10272_v48 = vpop.permute.xlu1 %2501  ;;  %3041 = vmatpush.msra.mxu1 %v8343_v3 }
 0x1ca   : > { %8810 = vmatpush.msra.mxu2 %v8342_v35  ;;  %v10292_v3 = vpop.permute.xlu2 %2269 }
 0x1cb   : > { %3042 = vmatpush.msra.mxu1 %v8342_v35  ;;  %v368_v35 = vld [vmem:[%s14495_s1 + $0x50] sm:$0xff] }
 0x1d0   : > { %2768 = vrot.lane.b32.xlu0 %v2741_v22, %s9081_s18  ;;  %v2749_v22 = vld [vmem:[#allocation2 + $0x23e] sm:$0xff]  ;;  %v10290_v20 = vpop.permute.xlu0 %2257 }
 0x1d1   : > { %1528 = vperm.xlu1 %8849, %v358_v29   ;;  %v8341_v29 = vld [vmem:[%s14498_s4 + $0x90] sm:$0xff]  ;;  %v10294_v4 = vpop.permute.xlu1 %2503 }
 0x1d2   : > { %8811 = vmatpush.msra.mxu2 %v8341_v29  ;;  %3043 = vmatpush.msra.mxu1 %v8341_v29  ;;  %v8338_v29 = vld [vmem:[%s14498_s4 + $0x78] sm:$0xff] }
 0x1d4   : > { %8812 = vmatpush.msra.mxu2 %v8340_v5  ;;  %3044 = vmatpush.msra.mxu1 %v8340_v5  ;;  %v8337_v5 = vld [vmem:[%s14498_s4 + $0x70] sm:$0xff] }
 0x1d8   : > { %1538 = vperm.xlu0 %8848, %v360_v60   ;;  %v8339_v60 = vld [vmem:[%s14498_s4 + $0x80] sm:$0xff] }
 0x1d9   : > { %2800 = vrot.lane.b32.xlu1 %v2749_v22, %s9082_s19  ;;  %v2742_v22 = vld [vmem:[#allocation2 + $0x244] sm:$0xff]  ;;  %8813 = vmatpush.msra.mxu2 %v8339_v60  ;;  %v10322_v8 = vpop.permute.xlu1 %2505 }
 0x1da   : > { %3045 = vmatpush.msra.mxu1 %v8339_v60 }
 0x1db   : > { %8814 = vmatpush.msra.mxu2 %v8338_v29 }
 0x1dc   : > { %3046 = vmatpush.msra.mxu1 %v8338_v29 }
 0x1dd   : > { %8815 = vmatpush.msra.mxu2 %v8337_v5 }
 0x1de   : > { %3047 = vmatpush.msra.mxu1 %v8337_v5  ;;  %v712_v5 = vadd.f32 %v9860_v55, %v9599_v10  ;;  %v363_v10 = vld [vmem:[%s14495_s1 + $0x28] sm:$0xff]  ;;  %v2752_v55 = vld [vmem:[#allocation2 + $0x256] sm:$0xff] }
 0x1df   : > { %8816 = vmatpush.msra.mxu2 %v8336_v33 }
 0x1e0   : > { %1578 = vperm.xlu0 %8848, %v368_v35   ;;  %3048 = vmatpush.msra.mxu1 %v8336_v33  ;;  %v10317_v35 = vpop.permute.xlu0 %2259  ;;  %v369_v33 = vld [vmem:[%s14495_s1 + $0x58] sm:$0xff]  ;;  %v864_v9 = vmax.f32 %v712_v5, 0.0  ;;  %v14755_v5 = vrot.slane %v9462_v62, 4 }
 0x1e1   : > { %2770 = vrot.lane.b32.xlu1 %v2742_v22, %s9081_s18  ;;  %v10312_v60 = vpop.permute.xlu2 %2519  ;;  %v361_v22 = vld [vmem:[%s14495_s1 + $0x18] sm:$0xff]  ;;  %8817 = vmatpush.msra.mxu2 %v8335_v45  ;;  %v10335_v11 = vpop.permute.xlu1 %2507 }
 0x1e2   : > { %3049 = vmatpush.msra.mxu1 %v8335_v45  ;;  %v10339_v45 = vrot.slane %v864_v9, 1 }
 0x1e8   : > { %2804 = vrot.lane.b32.xlu0 %v2751_v58, %s9082_s19  ;;  %v10332_v47 = vpop.permute.xlu0 %2261 }
 0x1e9   : > { %1543 = vperm.xlu1 %8849, %v361_v22   ;;  %v10325_v29 = vpop.permute.xlu2 %2796  ;;  %v971_v22 = vsel %vm966_vm1, %v9402_v2, %v9342_v23  ;;  %v10362_v23 = vpop.permute.xlu1 %2509 }
 0x1ea   : > { %v1132_v34 = vmax.f32 %v14757_v16, %v971_v22 }
 0x1f0   : > { %2774 = vrot.lane.b32.xlu0 %v2744_v42, %s9081_s18  ;;  %v993_v42 = vsel %vm966_vm1, %v10339_v45, %v9656_v44  ;;  %v10360_v14 = vpop.permute.xlu0 %2263 }
 0x1f1   : > { %1583 = vperm.xlu1 %8849, %v369_v33   ;;  %v10337_v58 = vpop.permute.xlu2 %2798  ;;  %v14756_v33 = vrot.slane %v9411_v12, 4  ;;  %v10358_v40 = vmax.f32 %v864_v9, %v993_v42  ;;  %v1945_v9 = vld [vmem:[#allocation2 + $0x14a] sm:$0xff] }
 0x1f3   : > { %v1266_v36 = vsel %vm1261_vm2, %v14756_v33, %v14755_v5  ;;  %v364_v5 = vld [vmem:[%s14495_s1 + $0x30] sm:$0xff] }
 0x1f4   : > { %v1427_v2 = vmax.f32 %v1132_v34, %v1266_v36 }
 0x1f8   : > { %1553 = vperm.xlu0 %8848, %v363_v10  }
 0x1f9   : > { %2806 = vrot.lane.b32.xlu1 %v2752_v55, %s9082_s19  ;;  %v10364_v44 = vpop.permute.xlu2 %1533  ;;  %v14579_v55 = vrot.slane %v10358_v40, 4 }
 0x1fa   : > { %14758 = vst [vmem:[#allocation64_spill] sm:$0xff] %v10364_v44  ;;  %v1802_v10 = vmul.f32 %v10364_v44, %v1427_v2  ;;  %v14774_v44 = vld [vmem:[#allocation23_spill] sm:$0xff] }
 0x1fb   : > { %v1282_v16 = vsel %vm1261_vm2, %v14579_v55, %v14759_v41  ;;  %v2753_v55 = vld [vmem:[#allocation2 + $0x25e] sm:$0x3f] }
 0x1fc   : > { %1857 = vst.msk [vmem:[#allocation2 + $0x7c] sm:$0xff] %vm480_vm0, %v1802_v10  ;;  %v1435_v42 = vmax.f32 %v9558_v19, %v1282_v16 }
 0x200   : > { %2808 = vrot.lane.b32.xlu0 %v2753_v55, %s9082_s19 }
 0x201   : > { %1558 = vperm.xlu1 %8849, %v364_v5   ;;  %v10379_v33 = vpop.permute.xlu2 %1573  ;;  %v371_v5 = vld [vmem:[%s14495_s1 + $0x68] sm:$0xff] }
 0x202   : > { %v2228_v36 = vpop.permute.xlu0 %2227  ;;  %14760 = vst [vmem:[#allocation65_spill] sm:$0xff] %v10379_v33  ;;  %v1810_v10 = vmul.f32 %v10379_v33, %v1435_v42  ;;  %v1947_v42 = vld [vmem:[#allocation2 + $0x15a] sm:$0xff] }
 0x203   : > { %v2476_v34 = vpop.permute.xlu1 %2475  ;;  %v2627_v22 = vsel %vm480_vm0, %v1945_v9, %v2228_v36  ;;  %v1946_v36 = vld [vmem:[#allocation2 + $0x152] sm:$0xff] }
 0x204   : > { %v10382_v2 = vsel %vm2655_vm4, %v2627_v22, %v2476_v34  ;;  %1865 = vst.msk [vmem:[#allocation2 + $0xbc] sm:$0xff] %vm480_vm0, %v1810_v10  ;;  %v372_v22 = vld [vmem:[%s14495_s1 + $0x70] sm:$0xff]  ;;  %v2629_v10 = vsel %vm480_vm0, %v1947_v42, %v9844_v6  ;;  %v2729_v6 = vld [vmem:[%s14498_s4 + $0x58] sm:$0xff]  ;;  %v14765_v42 = vrot.slane %v9504_v54, 4 }
 0x205   : > { %14761 = vst [vmem:[#allocation66_spill] sm:$0xff] %v10382_v2  ;;  %8374 = vmatmul.msk.f32.vlgmr.msra.gmra.mxu2 %vm2847_vm5, %v10382_v2 }
 0x206   : > { %3265 = vmatpush.msrb.mxu2 %v2729_v6 }
 0x209   : > { %1593 = vperm.xlu1 %8849, %v371_v5   ;;  %v10392_v9 = vpop.permute.xlu2 %2802 }
 0x20a   : > { %v2230_v41 = vpop.permute.xlu0 %2229 }
 0x20b   : > { %v2478_v19 = vpop.permute.xlu1 %2477  ;;  %v2628_v16 = vsel %vm480_vm0, %v1946_v36, %v2230_v41 }
 0x20c   : > { %v10395_v34 = vsel %vm2655_vm4, %v2628_v16, %v2478_v19  ;;  %v10412_v19 = vsel %vm2655_vm4, %v2629_v10, %v9873_v17  ;;  %v2745_v16 = vld [vmem:[#allocation2 + $0x25c] sm:$0x3f]  ;;  %v1948_v10 = vld [vmem:[#allocation2 + $0x162] sm:$0xff] }
 0x20d   : > { %14762 = vst [vmem:[#allocation67_spill] sm:$0xff] %v10395_v34  ;;  %8375 = vmatmul.msk.f32.gmra.mxu2 %vm2847_vm5, %v10395_v34  ;;  %2776 = vrot.lane.b32.xlu2 %v2745_v16, %s9081_s18 }
 0x20e   : > { %14763 = vst [vmem:[#allocation68_spill] sm:$0xff] %v10412_v19 }
 0x211   : > { %1598 = vperm.xlu1 %8849, %v372_v22   ;;  %v10408_v36 = vpop.permute.xlu2 %2772  ;;  %v14764_v22 = vrot.slane %v9546_v39, 4 }
 0x212   : > { %v10404_v5 = vpop.permute.xlu0 %2265 }
 0x213   : > { %v10406_v41 = vpop.permute.xlu1 %2511  ;;  %v1272_v17 = vsel %vm1261_vm2, %v14765_v42, %v14764_v22  ;;  %v1973_v22 = vld [vmem:[#allocation2 + $0x3c] sm:$0xff] }
 0x214   : > { %v1430_v34 = vmax.f32 %v9411_v12, %v1272_v17  ;;  %v2035_v42 = vld [vmem:[#allocation2 + $0x3e] sm:$0xff]  ;;  %v14768_v12 = vrot.slane %v9727_v28, 4 }
 0x215   : > { %8376 = vmatmul.msk.f32.gmra.mxu2 %vm2847_vm5, %v10412_v19  ;;  %v2630_v19 = vsel %vm480_vm0, %v1948_v10, %v9870_v49  ;;  %2159 = vrot.lane.b32.xlu2 %v1973_v22, %s9081_s18  ;;  %v14769_v49 = vrot.slane %v9696_v0, 4  ;;  %v14771_v22 = vld [vmem:[#allocation57_spill] sm:$0xff] }
 0x216   : > { %v10437_v55 = vsel %vm2655_vm4, %v2630_v19, %v9915_v51  ;;  %2407 = vrot.lane.b32.xlu0 %v2035_v42, %s9082_s19  ;;  %v1949_v19 = vld [vmem:[#allocation2 + $0x16a] sm:$0xff] }
 0x217   : > { %14767 = vst [vmem:[#allocation70_spill] sm:$0xff] %v10437_v55  ;;  %v1288_v51 = vsel %vm1261_vm2, %v14769_v49, %v14768_v12  ;;  %v1950_v12 = vld [vmem:[#allocation2 + $0x172] sm:$0xff] }
 0x219   : > { %v10433_v2 = vpop.permute.xlu2 %1548 }
 0x21a   : > { %v10426_v33 = vpop.permute.xlu0 %2267  ;;  %14766 = vst [vmem:[#allocation69_spill] sm:$0xff] %v10433_v2  ;;  %v1805_v6 = vmul.f32 %v10433_v2, %v1430_v34  ;;  %v2631_v34 = vsel %vm480_vm0, %v1949_v19, %v9910_v21  ;;  %v14773_v21 = vld [vmem:[#allocation56_spill] sm:$0xff] }
 0x21b   : > { %v10430_v16 = vpop.permute.xlu1 %2513  ;;  %v10461_v42 = vsel %vm2655_vm4, %v2631_v34, %v14771_v22  ;;  %v2632_v19 = vsel %vm480_vm0, %v1950_v12, %v14773_v21  ;;  %v991_v34 = vsel %vm966_vm1, %v14774_v44, %v10339_v45  ;;  %v2728_v12 = vld [vmem:[%s14498_s4 + $0x50] sm:$0xff]  ;;  %v1951_v21 = vld [vmem:[#allocation2 + $0x17a] sm:$0xff] }
 0x21c   : > { %1860 = vst.msk [vmem:[#allocation2 + $0x94] sm:$0xff] %vm480_vm0, %v1805_v6  ;;  %v1438_v6 = vmax.f32 %v10358_v40, %v1288_v51  ;;  %3266 = vmatpush.msrb.mxu2 %v2728_v12  ;;  %v2633_v45 = vsel %vm480_vm0, %v1951_v21, %v10031_v53  ;;  %v1952_v21 = vld [vmem:[#allocation2 + $0x182] sm:$0xff] }
 0x21d   : > { %8377 = vmatmul.msk.f32.gmra.mxu2 %vm2847_vm5, %v10437_v55  ;;  %14772 = vst [vmem:[#allocation57_spill] sm:$0xff] %v10461_v42 }
 0x221   : > { %v10457_v55 = vpop.permute.xlu2 %1588 }
 0x222   : > { %v10450_v17 = vpop.permute.xlu0 %2517  ;;  %14770 = vst [vmem:[#allocation71_spill] sm:$0xff] %v10457_v55  ;;  %v1813_v2 = vmul.f32 %v10457_v55, %v1438_v6  ;;  %v10478_v6 = vsel %vm2655_vm4, %v2632_v19, %v10034_v43  ;;  %v10498_v19 = vsel %vm2655_vm4, %v2633_v45, %v10088_v63  ;;  %v2634_v63 = vsel %vm480_vm0, %v1952_v21, %v10084_v61 }
 0x223   : > { %v10454_v10 = vpop.permute.xlu1 %2515  ;;  %14775 = vst [vmem:[#allocation56_spill] sm:$0xff] %v10478_v6 }
 0x224   : > { %1868 = vst.msk [vmem:[#allocation2 + $0xd4] sm:$0xff] %vm480_vm0, %v1813_v2  ;;  %v14776_v2 = vld [vmem:[#allocation19_spill] sm:$0xff] }
 0x225   : > { %8378 = vmatmul.msk.f32.gmra.mxu2 %vm2847_vm5, %v10461_v42  ;;  %v14777_v22 = vmax.f32 %v14776_v2, 0.0  ;;  %14778 = vst [vmem:[#allocation23_spill] sm:$0xff] %v10498_v19 }
 0x227   : > { %v10484_v55 = vmax.f32 %v14777_v22, %v991_v34  ;;  %v14779_v34 = vrot.slane %v10358_v40, 4  ;;  %v14780_v22 = vld [vmem:[#allocation24_spill] sm:$0xff] }
 0x228   : > { %v14781_v12 = vrot.slane %v14780_v22, 4 }
 0x229   : > { %v1277_v44 = vrot.slane %v10484_v55, 4 }
 0x22a   : > { %v10467_v49 = vpop.permute.xlu0 %2273 }
 0x22b   : > { %v10471_v51 = vpop.permute.xlu1 %2271  ;;  %v1280_v2 = vsel %vm1261_vm2, %v1277_v44, %v14779_v34 }
 0x22c   : > { %v1434_v53 = vmax.f32 %v9546_v39, %v1280_v2 }
 0x22d   : > { %8379 = vmatmul.msk.f32.gmra.mxu2 %vm2847_vm5, %v10478_v6  ;;  %v1278_v6 = vsel %vm1261_vm2, %v14781_v12, %v1277_v44  ;;  %v14787_v44 = vld [vmem:[#allocation10_spill] sm:$0xff] }
 0x22e   : > { %v1433_v30 = vmax.f32 %v9504_v54, %v1278_v6  ;;  %v1953_v54 = vld [vmem:[#allocation2 + $0x18a] sm:$0xff] }
 0x22f   : > { %v2635_v61 = vsel %vm480_vm0, %v1953_v54, %v10109_v32  ;;  %v8482_v32 = vld [vmem:[%s14498_s4 + $0x118] sm:$0xff] }
 0x230   : > { %v10538_v12 = vsel %vm2655_vm4, %v2635_v61, %v10127_v50  ;;  %4473 = vmatpush.msrb.mxu3 %v8482_v32  ;;  %v2727_v50 = vld [vmem:[%s14498_s4 + $0x48] sm:$0xff] }
 0x231   : > { %3267 = vmatpush.msrb.mxu2 %v2727_v50  ;;  %v14791_v61 = vld [vmem:[#allocation5_spill] sm:$0xff] }
 0x232   : > { %v10489_v42 = vpop.permute.xlu0 %2766 }
 0x233   : > { %v10493_v43 = vpop.permute.xlu1 %2764 }
 0x235   : > { %8380 = vmatmul.msk.f32.gmra.mxu2 %vm2847_vm5, %v10498_v19  ;;  %v10520_v19 = vsel %vm2655_vm4, %v2634_v63, %v10112_v25  ;;  %v1954_v63 = vld [vmem:[#allocation2 + $0x192] sm:$0xff] }
 0x236   : > { %14784 = vst [vmem:[#allocation72_spill] sm:$0xff] %v10520_v19 }
 0x23a   : > { %v10510_v57 = vpop.permute.xlu0 %1568 }
 0x23b   : > { %14782 = vst [vmem:[#allocation19_spill] sm:$0xff] %v10510_v57  ;;  %v10514_v45 = vpop.permute.xlu1 %1563  ;;  %v1809_v40 = vmul.f32 %v10510_v57, %v1434_v53 }
 0x23c   : > { %14783 = vst [vmem:[#allocation24_spill] sm:$0xff] %v10514_v45  ;;  %v1808_v34 = vmul.f32 %v10514_v45, %v1433_v30  ;;  %v14786_v30 = vld [vmem:[#allocation9_spill] sm:$0xff] }
 0x23d   : > { %1864 = vst.msk [vmem:[#allocation2 + $0xb4] sm:$0xff] %vm480_vm0, %v1809_v40  ;;  %8381 = vmatmul.msk.f32.gmra.mxu2 %vm2847_vm5, %v10520_v19  ;;  %v14788_v2 = vmax.f32 %v14786_v30, %v14787_v44  ;;  %v14792_v30 = vld [vmem:[#allocation15_spill] sm:$0xff] }
 0x23e   : > { %1863 = vst.msk [vmem:[#allocation2 + $0xac] sm:$0xff] %vm480_vm0, %v1808_v34  ;;  %v2636_v34 = vsel %vm480_vm0, %v1954_v63, %v10124_v1  ;;  %v14793_v44 = vmax.f32 %v14791_v61, %v14792_v30  ;;  %v14795_v1 = vld [vmem:[#allocation31_spill] sm:$0xff] }
 0x23f   : > { %14789 = vst [vmem:[#allocation9_spill] sm:$0xff] %v10538_v12  ;;  %v10569_v32 = vsel %vm2655_vm4, %v2636_v34, %v10157_v52  ;;  %v1436_v63 = vmax.f32 %v14780_v22, %v14795_v1  ;;  %v1955_v61 = vld [vmem:[#allocation2 + $0x19a] sm:$0xff] }
 0x240   : > { %14794 = vst [vmem:[#allocation5_spill] sm:$0xff] %v10569_v32  ;;  %v2637_v52 = vsel %vm480_vm0, %v1955_v61, %v10153_v18  ;;  %v8481_v18 = vld [vmem:[%s14498_s4 + $0x110] sm:$0xff]  ;;  %v14799_v61 = vld [vmem:[#allocation7_spill] sm:$0xff] }
 0x241   : > { %4474 = vmatpush.msrb.mxu3 %v8481_v18 }
 0x242   : > { %v10526_v39 = vpop.permute.xlu0 %2768 }
 0x243   : > { %v10530_v6 = vpop.permute.xlu1 %1528 }
 0x244   : > { %14785 = vst [vmem:[#allocation73_spill] sm:$0xff] %v10530_v6  ;;  %v1801_v25 = vmul.f32 %v10530_v6, %v14788_v2  ;;  %v10596_v22 = vld [vmem:[#allocation2 + $0xb4] sm:$0xff] }
 0x245   : > { %8382 = vmatmul.msk.f32.gmra.mxu2 %vm2847_vm5, %v10538_v12  ;;  %v10542_v53 = vld [vmem:[#allocation2 + $0xae] sm:$0xff] }
 0x246   : > { %v10544_v21 = vld [vmem:[#allocation2 + $0xac] sm:$0xff]  ;;  %1856 = vst.msk [vmem:[#allocation2 + $0x74] sm:$0xff] %vm480_vm0, %v1801_v25  ;;  %3960 = vrot.lane.b32.xlu0 %v10542_v53, %s9082_s19  ;;  %v1974_v25 = vld [vmem:[#allocation2 + $0x44] sm:$0xff] }
 0x247   : > { %3712 = vrot.lane.b32.xlu2 %v10544_v21, %s9081_s18 }
 0x24a   : > { %v10557_v40 = vpop.permute.xlu0 %1538 }
 0x24b   : > { %14790 = vst [vmem:[#allocation10_spill] sm:$0xff] %v10557_v40  ;;  %v10561_v54 = vpop.permute.xlu1 %2800  ;;  %v1803_v2 = vmul.f32 %v10557_v40, %v14793_v44 }
 0x24d   : > { %1858 = vst.msk [vmem:[#allocation2 + $0x84] sm:$0xff] %vm480_vm0, %v1803_v2  ;;  %8383 = vmatmul.msk.f32.gmra.mxu2 %vm2847_vm5, %v10569_v32  ;;  %v2042_v50 = vld [vmem:[#allocation2 + $0x76] sm:$0xff]  ;;  %v1975_v32 = vld [vmem:[#allocation2 + $0x4c] sm:$0xff] }
 0x24e   : > { %v1980_v12 = vld [vmem:[#allocation2 + $0x74] sm:$0xff]  ;;  %2161 = vrot.lane.b32.xlu0 %v1974_v25, %s9081_s18  ;;  %v2036_v25 = vld [vmem:[#allocation2 + $0x46] sm:$0xff] }
 0x24f   : > { %2421 = vrot.lane.b32.xlu2 %v2042_v50, %s9082_s19  ;;  %2173 = vrot.lane.b32.xlu1 %v1980_v12, %s9081_s18  ;;  %v373_v2 = vld [vmem:[%s14495_s1 + $0x78] sm:$0xff]  ;;  %v10591_v12 = vsel %vm2655_vm4, %v2637_v52, %v10184_v31  ;;  %v1956_v31 = vld [vmem:[#allocation2 + $0x1a2] sm:$0xff] }
 0x250   : > { %14797 = vst [vmem:[#allocation31_spill] sm:$0xff] %v10591_v12  ;;  %v2638_v1 = vsel %vm480_vm0, %v1956_v31, %v10180_v13  ;;  %v14800_v52 = vld [vmem:[#allocation17_spill] sm:$0xff]  ;;  %v10623_v13 = vld [vmem:[#allocation2 + $0xb6] sm:$0xff] }
 0x251   : > { %v1957_v31 = vld [vmem:[#allocation2 + $0x1aa] sm:$0xff] }
 0x252   : > { %v10579_v30 = vpop.permute.xlu0 %1578 }
 0x253   : > { %14796 = vst [vmem:[#allocation15_spill] sm:$0xff] %v10579_v30  ;;  %v10583_v34 = vpop.permute.xlu1 %2770  ;;  %v1811_v44 = vmul.f32 %v10579_v30, %v1436_v63 }
 0x254   : > { %v2043_v18 = vld [vmem:[#allocation2 + $0x7e] sm:$0xff] }
 0x255   : > { %1866 = vst.msk [vmem:[#allocation2 + $0xc4] sm:$0xff] %vm480_vm0, %v1811_v44  ;;  %8384 = vmatmul.msk.f32.gmra.mxu2 %vm2847_vm5, %v10591_v12  ;;  %v14801_v44 = vmax.f32 %v14799_v61, %v14800_v52  ;;  %v1981_v12 = vld [vmem:[#allocation2 + $0x7c] sm:$0xff] }
 0x256   : > { %3714 = vrot.lane.b32.xlu0 %v10596_v22, %s9081_s18 }
 0x257   : > { %1603 = vperm.xlu2 %8850, %v373_v2   ;;  %2409 = vrot.lane.b32.xlu1 %v2036_v25, %s9082_s19  ;;  %v10616_v25 = vsel %vm2655_vm4, %v2638_v1, %v10211_v37  ;;  %v2726_v37 = vld [vmem:[%s14498_s4 + $0x40] sm:$0xff] }
 0x258   : > { %14802 = vst [vmem:[#allocation7_spill] sm:$0xff] %v10616_v25  ;;  %3268 = vmatpush.msrb.mxu2 %v2726_v37  ;;  %v14803_v1 = vld [vmem:[#allocation32_spill] sm:$0xff] }
 0x259   : > { %v1437_v61 = vmax.f32 %v10484_v55, %v14803_v1  ;;  %v1958_v55 = vld [vmem:[#allocation2 + $0x1b2] sm:$0xff] }
 0x25a   : > { %v10604_v50 = vpop.permute.xlu0 %2804 }
 0x25b   : > { %v10608_v63 = vpop.permute.xlu1 %1543 }
 0x25c   : > { %14798 = vst [vmem:[#allocation74_spill] sm:$0xff] %v10608_v63  ;;  %v1804_v2 = vmul.f32 %v10608_v63, %v14801_v44  ;;  %v2639_v44 = vsel %vm480_vm0, %v1957_v31, %v10207_v24  ;;  %v8480_v24 = vld [vmem:[%s14498_s4 + $0x108] sm:$0xff] }
 0x25d   : > { %8385 = vmatmul.msk.f32.gmra.mxu2 %vm2847_vm5, %v10616_v25  ;;  %v10644_v37 = vsel %vm2655_vm4, %v2639_v44, %v10249_v59  ;;  %4475 = vmatpush.msrb.mxu3 %v8480_v24  ;;  %v2640_v59 = vsel %vm480_vm0, %v1958_v55, %v10245_v38  ;;  %v1959_v38 = vld [vmem:[#allocation2 + $0x1ba] sm:$0xff]  ;;  %v14856_v63 = vld [vmem:[#allocation53_spill] sm:$0xff] }
 0x25e   : > { %1859 = vst.msk [vmem:[#allocation2 + $0x8c] sm:$0xff] %vm480_vm0, %v1804_v2  ;;  %2423 = vrot.lane.b32.xlu0 %v2043_v18, %s9082_s19  ;;  %v374_v2 = vld [vmem:[%s14495_s1 + $0x80] sm:$0xff]  ;;  %v2037_v18 = vld [vmem:[#allocation2 + $0x4e] sm:$0xff]  ;;  %v2038_v55 = vld [vmem:[#allocation2 + $0x56] sm:$0xff] }
 0x25f   : > { %2175 = vrot.lane.b32.xlu2 %v1981_v12, %s9081_s18  ;;  %3962 = vrot.lane.b32.xlu1 %v10623_v13, %s9082_s19  ;;  %14805 = vst [vmem:[#allocation32_spill] sm:$0xff] %v10644_v37 }
 0x262   : > { %v10632_v52 = vpop.permute.xlu0 %2774 }
 0x263   : > { %v10636_v12 = vpop.permute.xlu1 %1583 }
 0x264   : > { %14804 = vst [vmem:[#allocation17_spill] sm:$0xff] %v10636_v12  ;;  %v1812_v25 = vmul.f32 %v10636_v12, %v1437_v61 }
 0x265   : > { %8386 = vmatmul.msk.f32.gmra.mxu2 %vm2847_vm5, %v10644_v37 }
 0x266   : > { %1867 = vst.msk [vmem:[#allocation2 + $0xcc] sm:$0xff] %vm480_vm0, %v1812_v25  ;;  %1608 = vperm.xlu0 %8848, %v374_v2   ;;  %v14807_v25 = vld [vmem:[#allocation22_spill] sm:$0xff]  ;;  %v1982_v2 = vld [vmem:[#allocation2 + $0x84] sm:$0xff] }
 0x267   : > { %2411 = vrot.lane.b32.xlu2 %v2037_v18, %s9082_s19  ;;  %2163 = vrot.lane.b32.xlu1 %v1975_v32, %s9081_s18  ;;  %v14808_v61 = vmax.f32 %v9462_v62, %v14807_v25  ;;  %v10666_v32 = vsel %vm2655_vm4, %v2640_v59, %v10272_v48  ;;  %v10671_v18 = vld [vmem:[#allocation2 + $0xbe] sm:$0xff]  ;;  %v2641_v48 = vsel %vm480_vm0, %v1959_v38, %v10270_v26  ;;  %v1976_v59 = vld [vmem:[#allocation2 + $0x54] sm:$0xff]  ;;  %v14811_v25 = vld [vmem:[#allocation13_spill] sm:$0xff] }
 0x268   : > { %14809 = vst [vmem:[#allocation22_spill] sm:$0xff] %v10666_v32  ;;  %v10676_v62 = vld [vmem:[#allocation2 + $0xbc] sm:$0xff]  ;;  %v2044_v26 = vld [vmem:[#allocation2 + $0x86] sm:$0xff] }
 0x269   : > { %v2725_v38 = vld [vmem:[%s14498_s4 + $0x38] sm:$0xff] }
 0x26a   : > { %v10654_v31 = vpop.permute.xlu0 %1553  ;;  %3269 = vmatpush.msrb.mxu2 %v2725_v38 }
 0x26b   : > { %14806 = vst [vmem:[#allocation75_spill] sm:$0xff] %v10654_v31  ;;  %v10658_v1 = vpop.permute.xlu1 %2806  ;;  %v1806_v44 = vmul.f32 %v10654_v31, %v14808_v61  ;;  %v14812_v61 = vld [vmem:[#allocation25_spill] sm:$0xff] }
 0x26d   : > { %1861 = vst.msk [vmem:[#allocation2 + $0x9c] sm:$0xff] %vm480_vm0, %v1806_v44  ;;  %8387 = vmatmul.msk.f32.gmra.mxu2 %vm2847_vm5, %v10666_v32  ;;  %v14813_v44 = vmax.f32 %v14811_v25, %v14812_v61  ;;  %v10690_v32 = vsel %vm2655_vm4, %v2641_v48, %v10294_v4  ;;  %v1960_v25 = vld [vmem:[#allocation2 + $0x1c2] sm:$0xff] }
 0x26e   : > { %2177 = vrot.lane.b32.xlu0 %v1982_v2, %s9081_s18  ;;  %14814 = vst [vmem:[#allocation13_spill] sm:$0xff] %v10690_v32  ;;  %v2642_v4 = vsel %vm480_vm0, %v1960_v25, %v10290_v20  ;;  %v14816_v61 = vld [vmem:[#allocation37_spill] sm:$0xff] }
 0x26f   : > { %3964 = vrot.lane.b32.xlu2 %v10671_v18, %s9082_s19  ;;  %3716 = vrot.lane.b32.xlu1 %v10676_v62, %s9081_s18  ;;  %v2092_v20 = vld [vmem:[#allocation2 + $0x206] sm:$0xff] }
 0x273   : > { %v10682_v24 = vpop.permute.xlu1 %1558 }
 0x274   : > { %14810 = vst [vmem:[#allocation76_spill] sm:$0xff] %v10682_v24  ;;  %v1807_v2 = vmul.f32 %v10682_v24, %v14813_v44  ;;  %v14817_v44 = vmax.f32 %v9665_v46, %v14816_v61  ;;  %v8479_v46 = vld [vmem:[%s14498_s4 + $0x100] sm:$0xff]  ;;  %v14821_v61 = vld [vmem:[#allocation43_spill] sm:$0xff] }
 0x275   : > { %8388 = vmatmul.msk.f32.gmra.mxu2 %vm2847_vm5, %v10690_v32  ;;  %4476 = vmatpush.msrb.mxu3 %v8479_v46  ;;  %v8477_v46 = vld [vmem:[%s14498_s4 + $0xf0] sm:$0xff] }
 0x276   : > { %1862 = vst.msk [vmem:[#allocation2 + $0xa4] sm:$0xff] %vm480_vm0, %v1807_v2  ;;  %2413 = vrot.lane.b32.xlu0 %v2038_v55, %s9082_s19  ;;  %v2093_v2 = vld [vmem:[#allocation2 + $0x20e] sm:$0xff] }
 0x277   : > { %2165 = vrot.lane.b32.xlu2 %v1976_v59, %s9081_s18  ;;  %2425 = vrot.lane.b32.xlu1 %v2044_v26, %s9082_s19  ;;  %v10711_v59 = vsel %vm2655_vm4, %v2642_v4, %v10322_v8  ;;  %v2031_v26 = vld [vmem:[#allocation2 + $0x20c] sm:$0xff] }
 0x278   : > { %14818 = vst [vmem:[#allocation37_spill] sm:$0xff] %v10711_v59  ;;  %v1961_v8 = vld [vmem:[#allocation2 + $0x1ca] sm:$0xff] }
 0x279   : > { %v2643_v38 = vsel %vm480_vm0, %v1961_v8, %v10317_v35  ;;  %v14820_v4 = vld [vmem:[#allocation29_spill] sm:$0xff]  ;;  %v1962_v8 = vld [vmem:[#allocation2 + $0x1d2] sm:$0xff] }
 0x27a   : > { %v2738_v35 = vld [vmem:[#allocation2 + $0x224] sm:$0xff]  ;;  %v1979_v32 = vld [vmem:[#allocation2 + $0x6c] sm:$0xff] }
 0x27b   : > { %v10703_v48 = vpop.permute.xlu1 %1593 }
 0x27c   : > { %14815 = vst [vmem:[#allocation25_spill] sm:$0xff] %v10703_v48  ;;  %v1814_v55 = vmul.f32 %v10703_v48, %v14817_v44  ;;  %v14822_v44 = vmax.f32 %v14820_v4, %v14821_v61  ;;  %v10754_v61 = vpop.permute.xlu2 %2776 }
 0x27d   : > { %8389 = vmatmul.msk.f32.gmra.mxu2 %vm2847_vm5, %v10711_v59  ;;  %v1984_v59 = vld [vmem:[#allocation2 + $0x94] sm:$0xff]  ;;  %v2047_v37 = vld [vmem:[#allocation2 + $0x9e] sm:$0xff] }
 0x27e   : > { %1869 = vst.msk [vmem:[#allocation2 + $0xdc] sm:$0xff] %vm480_vm0, %v1814_v55  ;;  %2523 = vrot.lane.b32.xlu0 %v2093_v2, %s9082_s19  ;;  %v10732_v2 = vsel %vm2655_vm4, %v2643_v38, %v10335_v11  ;;  %v8478_v11 = vld [vmem:[%s14498_s4 + $0xf8] sm:$0xff]  ;;  %v2644_v38 = vsel %vm480_vm0, %v1962_v8, %v10332_v47  ;;  %v8476_v47 = vld [vmem:[%s14498_s4 + $0xe8] sm:$0xff] }
 0x27f   : > { %2275 = vrot.lane.b32.xlu2 %v2031_v26, %s9081_s18  ;;  %2521 = vrot.lane.b32.xlu1 %v2092_v20, %s9082_s19  ;;  %14823 = vst [vmem:[#allocation29_spill] sm:$0xff] %v10732_v2  ;;  %v375_v26 = vld [vmem:[%s14495_s1 + $0x88] sm:$0xff]  ;;  %v10752_v4 = vsel %vm2655_vm4, %v2644_v38, %v10362_v23  ;;  %v2724_v23 = vld [vmem:[%s14498_s4 + $0x30] sm:$0xff] }
 0x280   : > { %v2746_v20 = vld [vmem:[#allocation2 + $0x226] sm:$0xff]  ;;  %4477 = vmatpush.msrb.mxu3 %v8478_v11  ;;  %14824 = vst [vmem:[#allocation43_spill] sm:$0xff] %v10752_v4  ;;  %3270 = vmatpush.msrb.mxu2 %v2724_v23  ;;  %v1963_v11 = vld [vmem:[#allocation2 + $0x1da] sm:$0xff] }
 0x281   : > { %v8474_v8 = vld [vmem:[%s14498_s4 + $0xd8] sm:$0xff] }
 0x282   : > { %4478 = vmatpush.msrb.mxu3 %v8477_v46  ;;  %v2645_v46 = vsel %vm480_vm0, %v1963_v11, %v10360_v14  ;;  %v2033_v14 = vld [vmem:[#allocation2 + $0x21c] sm:$0xff] }
 0x283   : > { %v10724_v25 = vpop.permute.xlu1 %1598  ;;  %v10782_v38 = vsel %vm2655_vm4, %v2645_v46, %v10406_v41  ;;  %v2095_v41 = vld [vmem:[#allocation2 + $0x21e] sm:$0xff]  ;;  %v8472_v46 = vld [vmem:[%s14498_s4 + $0xc8] sm:$0xff] }
 0x284   : > { %14819 = vst [vmem:[#allocation77_spill] sm:$0xff] %v10724_v25  ;;  %v1815_v55 = vmul.f32 %v10724_v25, %v14822_v44  ;;  %v10758_v44 = vld [vmem:[#allocation2 + $0xc6] sm:$0xff]  ;;  %4479 = vmatpush.msrb.mxu3 %v8476_v47  ;;  %v10800_v11 = vpop.permute.xlu2 %2159 }
 0x285   : > { %8390 = vmatmul.msk.f32.gmra.mxu2 %vm2847_vm5, %v10732_v2  ;;  %14826 = vst [vmem:[#allocation79_spill] sm:$0xff] %v10782_v38  ;;  %v14827_v47 = vld [vmem:[#allocation40_spill] sm:$0xff] }
 0x286   : > { %1870 = vst.msk [vmem:[#allocation2 + $0xe4] sm:$0xff] %vm480_vm0, %v1815_v55  ;;  %2794 = vrot.lane.b32.xlu0 %v2746_v20, %s9082_s19  ;;  %v2094_v55 = vld [vmem:[#allocation2 + $0x216] sm:$0xff] }
 0x287   : > { %2762 = vrot.lane.b32.xlu2 %v2738_v35, %s9081_s18  ;;  %1613 = vperm.xlu1 %8849, %v375_v26   ;;  %v2032_v26 = vld [vmem:[#allocation2 + $0x214] sm:$0xff]  ;;  %v8475_v35 = vld [vmem:[%s14498_s4 + $0xe0] sm:$0xff] }
 0x288   : > { %v10770_v20 = vpop.f32.mrf.mxu2  ;;  %4480 = vmatpush.msrb.mxu3 %v8475_v35  ;;  %v10795_v35 = vld [vmem:[#allocation2 + $0xc4] sm:$0xff]  ;;  %v10948_v48 = vld [vmem:[#allocation2 + $0xdc] sm:$0xff] }
 0x289   : > { %14825 = vst [vmem:[#allocation78_spill] sm:$0xff] %v10770_v20  ;;  %v10843_v20 = vpop.permute.xlu0 %2808 }
 0x28a   : > { %4481 = vmatpush.msrb.mxu3 %v8474_v8 }
 0x28d   : > { %8391 = vmatmul.msk.f32.gmra.mxu2 %vm2847_vm5, %v10752_v4  ;;  %v1977_v4 = vld [vmem:[#allocation2 + $0x5c] sm:$0xff] }
 0x28e   : > { %3966 = vrot.lane.b32.xlu0 %v10758_v44, %s9082_s19 }
 0x28f   : > { %2525 = vrot.lane.b32.xlu2 %v2094_v55, %s9082_s19  ;;  %2277 = vrot.lane.b32.xlu1 %v2032_v26, %s9081_s18  ;;  %v8473_v55 = vld [vmem:[%s14498_s4 + $0xd0] sm:$0xff]  ;;  %v9008_v26 = vld [vmem:[%s14497_s3] ss:$0 sm:$0xff] }
 0x290   : > { %v10791_v23 = vadd.f32 %v9008_v26, %v14827_v47  ;;  %4482 = vmatpush.msrb.mxu3 %v8473_v55  ;;  %v8471_v26 = vld [vmem:[%s14498_s4 + $0xc0] sm:$0xff] }
 0x291   : > { %v1964_v47 = vld [vmem:[#allocation2 + $0x1e2] sm:$0xff] }
 0x292   : > { %v14600_v8 = vmax.f32 %v10791_v23, 0.0  ;;  %4483 = vmatpush.msrb.mxu3 %v8472_v46  ;;  %v2045_v46 = vld [vmem:[#allocation2 + $0x8e] sm:$0xff] }
 0x294   : > { %4484 = vmatpush.msrb.mxu3 %v8471_v26 }
 0x295   : > { %8392 = vmatmul.msk.f32.gmra.mxu2 %vm2847_vm5, %v10782_v38  ;;  %v10812_v38 = vpop.f32.mrf.mxu2 }
 0x296   : > { %2279 = vrot.lane.b32.xlu0 %v2033_v14, %s9081_s18  ;;  %v2646_v14 = vsel %vm480_vm0, %v1964_v47, %v10404_v5  ;;  %14828 = vst [vmem:[#allocation40_spill] sm:$0xff] %v10812_v38  ;;  %v1983_v5 = vld [vmem:[#allocation2 + $0x8c] sm:$0xff]  ;;  %v14831_v38 = vld [vmem:[#allocation36_spill] sm:$0xff] }
 0x297   : > { %3718 = vrot.lane.b32.xlu2 %v10795_v35, %s9081_s18  ;;  %2527 = vrot.lane.b32.xlu1 %v2095_v41, %s9082_s19  ;;  %v10816_v55 = vsel %vm2655_vm4, %v2646_v14, %v10430_v16  ;;  %v10820_v41 = vrot.slane %v14600_v8, 1  ;;  %v14830_v47 = vld [vmem:[#allocation38_spill] sm:$0xff] }
 0x298   : > { %14829 = vst [vmem:[#allocation80_spill] sm:$0xff] %v10816_v55  ;;  %v1965_v14 = vld [vmem:[#allocation2 + $0x1ea] sm:$0xff] }
 0x299   : > { %v1007_v16 = vsel %vm966_vm1, %v14830_v47, %v10820_v41  ;;  %v2647_v8 = vsel %vm480_vm0, %v1965_v14, %v10426_v33  ;;  %v10849_v33 = vld [vmem:[#allocation2 + $0xcc] sm:$0xff] }
 0x29d   : > { %8393 = vmatmul.msk.f32.gmra.mxu2 %vm2847_vm5, %v10816_v55  ;;  %v376_v55 = vld [vmem:[%s14495_s1 + $0x90] sm:$0xff]  ;;  %v10845_v47 = vpop.f32.mrf.mxu2 }
 0x29e   : > { %2167 = vrot.lane.b32.xlu0 %v1977_v4, %s9081_s18  ;;  %v14832_v4 = vmax.f32 %v14831_v38, 0.0  ;;  %14834 = vst [vmem:[#allocation36_spill] sm:$0xff] %v10845_v47  ;;  %v2046_v47 = vld [vmem:[#allocation2 + $0x96] sm:$0xff] }
 0x29f   : > { %2427 = vrot.lane.b32.xlu2 %v2045_v46, %s9082_s19  ;;  %2179 = vrot.lane.b32.xlu1 %v1983_v5, %s9081_s18  ;;  %v10841_v46 = vsel %vm2655_vm4, %v2647_v8, %v10454_v10  ;;  %v2039_v5 = vld [vmem:[#allocation2 + $0x5e] sm:$0xff]  ;;  %v2723_v10 = vld [vmem:[%s14498_s4 + $0x28] sm:$0xff] }
 0x2a0   : > { %v10837_v2 = vmax.f32 %v14832_v4, %v1007_v16  ;;  %14833 = vst [vmem:[#allocation38_spill] sm:$0xff] %v10841_v46  ;;  %3271 = vmatpush.msrb.mxu2 %v2723_v10  ;;  %v1966_v16 = vld [vmem:[#allocation2 + $0x1f2] sm:$0xff]  ;;  %v10875_v10 = vpop.permute.xlu0 %2407 }
 0x2a1   : > { %v3713_v26 = vpop.permute.xlu2 %3712  ;;  %v2648_v14 = vsel %vm480_vm0, %v1966_v16, %v10292_v3  ;;  %v10873_v3 = vld [vmem:[#allocation2 + $0xce] sm:$0xff] }
 0x2a2   : > { %v14605_v8 = vrot.slane %v10837_v2, 4  ;;  %v10862_v4 = vsel %vm2655_vm4, %v2648_v14, %v10450_v17  ;;  %v1967_v14 = vld [vmem:[#allocation2 + $0x1fa] sm:$0xff] }
 0x2a3   : > { %14835 = vst [vmem:[#allocation81_spill] sm:$0xff] %v10862_v4 }
 0x2a5   : > { %8394 = vmatmul.msk.f32.gmra.mxu2 %vm2847_vm5, %v10841_v46  ;;  %v10877_v17 = vpop.f32.mrf.mxu2 }
 0x2a6   : > { %3720 = vrot.lane.b32.xlu0 %v10849_v33, %s9081_s18 }
 0x2a7   : > { %1618 = vperm.xlu2 %8850, %v376_v55   ;;  %2415 = vrot.lane.b32.xlu1 %v2039_v5, %s9082_s19  ;;  %v14836_v55 = vld [vmem:[#allocation39_spill] sm:$0xff] }
 0x2a8   : > { %v14837_v5 = vrot.slane %v14836_v55, 4  ;;  %14838 = vst [vmem:[#allocation39_spill] sm:$0xff] %v10877_v17 }
 0x2a9   : > { %v2422_v38 = vpop.permute.xlu2 %2421 }
 0x2aa   : > { %v1294_v46 = vsel %vm1261_vm2, %v14837_v5, %v14605_v8  ;;  %v2649_v8 = vsel %vm480_vm0, %v1967_v14, %v10471_v51  ;;  %v10898_v51 = vld [vmem:[#allocation2 + $0xaa] sm:$0xff] }
 0x2ab   : > { %v1441_v16 = vmax.f32 %v9696_v0, %v1294_v46  ;;  %v10893_v17 = vsel %vm2655_vm4, %v2649_v8, %v10312_v60  ;;  %v1978_v0 = vld [vmem:[#allocation2 + $0x64] sm:$0xff]  ;;  %v4146_v46 = vsel %vm480_vm0, %v10898_v51, %v3713_v26  ;;  %v1985_v8 = vld [vmem:[#allocation2 + $0x9c] sm:$0xff] }
 0x2ac   : > { %14840 = vst [vmem:[#allocation83_spill] sm:$0xff] %v10893_v17  ;;  %v2722_v26 = vld [vmem:[%s14498_s4 + $0x20] sm:$0xff] }
 0x2ad   : > { %8395 = vmatmul.msk.f32.gmra.mxu2 %vm2847_vm5, %v10862_v4  ;;  %v2040_v4 = vld [vmem:[#allocation2 + $0x66] sm:$0xff] }
 0x2ae   : > { %2429 = vrot.lane.b32.xlu0 %v2046_v47, %s9082_s19  ;;  %3272 = vmatpush.msrb.mxu2 %v2722_v26 }
 0x2af   : > { %2181 = vrot.lane.b32.xlu2 %v1984_v59, %s9081_s18  ;;  %3968 = vrot.lane.b32.xlu1 %v10873_v3, %s9082_s19  ;;  %v377_v59 = vld [vmem:[%s14495_s1 + $0x98] sm:$0xff] }
 0x2b1   : > { %v10882_v5 = vpop.permute.xlu2 %1603 }
 0x2b2   : > { %14839 = vst [vmem:[#allocation82_spill] sm:$0xff] %v10882_v5  ;;  %v1816_v47 = vmul.f32 %v10882_v5, %v1441_v16  ;;  %v2041_v5 = vld [vmem:[#allocation2 + $0x6e] sm:$0xff] }
 0x2b4   : > { %1871 = vst.msk [vmem:[#allocation2 + $0xec] sm:$0xff] %vm480_vm0, %v1816_v47  ;;  %v10903_v47 = vpop.f32.mrf.mxu2 }
 0x2b5   : > { %8396 = vmatmul.msk.f32.gmra.mxu2 %vm2847_vm5, %v10893_v17  ;;  %14841 = vst [vmem:[#allocation84_spill] sm:$0xff] %v10903_v47  ;;  %v10907_v17 = vld [vmem:[#allocation2 + $0xd6] sm:$0xff] }
 0x2b6   : > { %1623 = vperm.xlu0 %8848, %v377_v59  }
 0x2b7   : > { %2417 = vrot.lane.b32.xlu2 %v2040_v4, %s9082_s19  ;;  %2169 = vrot.lane.b32.xlu1 %v1978_v0, %s9081_s18  ;;  %v10912_v4 = vld [vmem:[#allocation2 + $0xd4] sm:$0xff] }
 0x2b8   : > { %v3961_v16 = vpop.permute.xlu0 %3960 }
 0x2b9   : > { %v2176_v14 = vpop.permute.xlu2 %2175  ;;  %v4208_v60 = vsel %vm2655_vm4, %v4146_v46, %v3961_v16  ;;  %v1918_v16 = vld [vmem:[#allocation2 + $0x72] sm:$0xff] }
 0x2ba   : > { %8483 = vmatmul.msk.f32.vlgmr.msrb.gmra.mxu3 %vm2847_vm5, %v4208_v60 }
 0x2be   : > { %2183 = vrot.lane.b32.xlu0 %v1985_v8, %s9081_s18  ;;  %v10924_v8 = vpop.f32.mrf.mxu2 }
 0x2bf   : > { %3970 = vrot.lane.b32.xlu2 %v10907_v17, %s9082_s19  ;;  %3722 = vrot.lane.b32.xlu1 %v10912_v4, %s9081_s18  ;;  %14842 = vst [vmem:[#allocation85_spill] sm:$0xff] %v10924_v8 }
 0x2c0   : > { %v10919_v59 = vpop.permute.xlu0 %2161 }
 0x2c1   : > { %v10921_v0 = vpop.permute.xlu2 %2411  ;;  %v2174_v46 = vpop.permute.xlu1 %2173 }
 0x2c2   : > { %v2600_v60 = vsel %vm480_vm0, %v1918_v16, %v2174_v46  ;;  %v14844_v46 = vld [vmem:[#allocation51_spill] sm:$0xff] }
 0x2c3   : > { %v10927_v47 = vsel %vm2655_vm4, %v2600_v60, %v2422_v38  ;;  %v1009_v16 = vsel %vm966_vm1, %v10820_v41, %v14844_v46  ;;  %v14845_v60 = vmax.f32 %v10791_v23, 0.0  ;;  %v1919_v41 = vld [vmem:[#allocation2 + $0x7a] sm:$0xff]  ;;  %v10957_v46 = vld [vmem:[#allocation2 + $0xb2] sm:$0xff] }
 0x2c4   : > { %14843 = vst [vmem:[#allocation86_spill] sm:$0xff] %v10927_v47  ;;  %8347 = vmatmul.msk.f32.vlgmr.msra.gmra.mxu1 %vm2847_vm5, %v10927_v47  ;;  %v2601_v23 = vsel %vm480_vm0, %v1919_v41, %v2176_v14  ;;  %v379_v14 = vld [vmem:[%s14495_s1 + $0xa8] sm:$0xff]  ;;  %v14631_v47 = vrot.slane %v10002_v27, 4 }
 0x2c5   : > { %v10941_v8 = vmax.f32 %v14845_v60, %v1009_v16 }
 0x2c6   : > { %2419 = vrot.lane.b32.xlu0 %v2041_v5, %s9082_s19  ;;  %v10946_v5 = vpop.f32.mrf.mxu2 }
 0x2c7   : > { %2171 = vrot.lane.b32.xlu2 %v1979_v32, %s9081_s18  ;;  %2431 = vrot.lane.b32.xlu1 %v2047_v37, %s9082_s19  ;;  %v378_v32 = vld [vmem:[%s14495_s1 + $0xa0] sm:$0xff]  ;;  %14846 = vst [vmem:[#allocation51_spill] sm:$0xff] %v10946_v5  ;;  %v14620_v5 = vrot.slane %v10941_v8, 4 }
 0x2c8   : > { %v3715_v26 = vpop.permute.xlu0 %3714  ;;  %v10950_v37 = vld [vmem:[#allocation2 + $0xde] sm:$0xff] }
 0x2c9   : > { %v3965_v25 = vpop.permute.xlu2 %3964  ;;  %v10937_v38 = vpop.permute.xlu1 %2409  ;;  %v4147_v12 = vsel %vm480_vm0, %v10957_v46, %v3715_v26  ;;  %v14848_v26 = vrot.slane %v10837_v2, 4 }
 0x2cb   : > { %v1296_v41 = vsel %vm1261_vm2, %v14848_v26, %v14620_v5  ;;  %v11016_v5 = vld [vmem:[#allocation2 + $0xec] sm:$0xff] }
 0x2cc   : > { %14853 = vst [vmem:[#allocation92_spill] sm:$0xff] %v11016_v5 }
 0x2ce   : > { %3972 = vrot.lane.b32.xlu0 %v10950_v37, %s9082_s19 }
 0x2cf   : > { %3724 = vrot.lane.b32.xlu2 %v10948_v48, %s9081_s18  ;;  %1628 = vperm.xlu1 %8849, %v378_v32   ;;  %v2721_v32 = vld [vmem:[%s14498_s4 + $0x18] sm:$0xff] }
 0x2d0   : > { %v2424_v16 = vpop.permute.xlu0 %2423  ;;  %3273 = vmatpush.msrb.mxu2 %v2721_v32  ;;  %v10993_v32 = vld [vmem:[#allocation2 + $0xe6] sm:$0xff] }
 0x2d1   : > { %v10959_v60 = vpop.permute.xlu2 %2165  ;;  %v3963_v19 = vpop.permute.xlu1 %3962  ;;  %v10965_v30 = vsel %vm2655_vm4, %v2601_v23, %v2424_v16  ;;  %v1442_v23 = vmax.f32 %v9727_v28, %v1296_v41 }
 0x2d2   : > { %14847 = vst [vmem:[#allocation87_spill] sm:$0xff] %v10965_v30  ;;  %v4209_v57 = vsel %vm2655_vm4, %v4147_v12, %v3963_v19  ;;  %8348 = vmatmul.msk.f32.gmra.mxu1 %vm2847_vm5, %v10965_v30  ;;  %v2048_v19 = vld [vmem:[#allocation2 + $0xa6] sm:$0xff]  ;;  %v10983_v12 = vpop.f32.mrf.mxu2 }
 0x2d3   : > { %8484 = vmatmul.msk.f32.gmra.mxu3 %vm2847_vm5, %v4209_v57  ;;  %v1986_v57 = vld [vmem:[#allocation2 + $0xa4] sm:$0xff]  ;;  %14849 = vst [vmem:[#allocation88_spill] sm:$0xff] %v10983_v12 }
 0x2d6   : > { %1633 = vperm.xlu0 %8848, %v379_v14   ;;  %v10999_v14 = vld [vmem:[#allocation2 + $0xe4] sm:$0xff] }
 0x2d7   : > { %2433 = vrot.lane.b32.xlu2 %v2048_v19, %s9082_s19  ;;  %2185 = vrot.lane.b32.xlu1 %v1986_v57, %s9081_s18  ;;  %v11007_v19 = vld [vmem:[#allocation2 + $0xba] sm:$0xff] }
 0x2d8   : > { %v10987_v16 = vpop.permute.xlu0 %1608  ;;  %14852 = vst [vmem:[#allocation91_spill] sm:$0xff] %v11007_v19 }
 0x2d9   : > { %14850 = vst [vmem:[#allocation89_spill] sm:$0xff] %v10987_v16  ;;  %v2276_v45 = vpop.permute.xlu2 %2275  ;;  %v1817_v24 = vmul.f32 %v10987_v16, %v1442_v23  ;;  %v10990_v31 = vpop.permute.xlu1 %2163 }
 0x2da   : > { %v11005_v41 = vpop.f32.mrf.mxu2 }
 0x2db   : > { %1872 = vst.msk [vmem:[#allocation2 + $0xf4] sm:$0xff] %vm480_vm0, %v1817_v24 }
 0x2dc   : > { %14851 = vst [vmem:[#allocation90_spill] sm:$0xff] %v11005_v41  ;;  %v1920_v41 = vld [vmem:[#allocation2 + $0x82] sm:$0xff] }
 0x2de   : > { %2187 = vrot.lane.b32.xlu0 %v10544_v21, %s9081_s18  ;;  %v380_v21 = vld [vmem:[%s14495_s1 + $0xb0] sm:$0xff] }
 0x2df   : > { %3974 = vrot.lane.b32.xlu2 %v10993_v32, %s9082_s19  ;;  %3726 = vrot.lane.b32.xlu1 %v10999_v14, %s9081_s18 }
 0x2e0   : > { %v2178_v28 = vpop.permute.xlu0 %2177 }
 0x2e1   : > { %v11003_v26 = vpop.permute.xlu2 %2762  ;;  %v3717_v24 = vpop.permute.xlu1 %3716 }
 0x2e2   : > { %v4148_v57 = vsel %vm480_vm0, %v11007_v19, %v3717_v24  ;;  %v11056_v6 = vld [vmem:[#allocation2 + $0xf4] sm:$0xff] }
 0x2e3   : > { %v4210_v23 = vsel %vm2655_vm4, %v4148_v57, %v3965_v25  ;;  %v2602_v25 = vsel %vm480_vm0, %v1920_v41, %v2178_v28  ;;  %v1968_v28 = vld [vmem:[#allocation2 + $0x202] sm:$0xff] }
 0x2e4   : > { %8485 = vmatmul.msk.f32.gmra.mxu3 %vm2847_vm5, %v4210_v23  ;;  %v11028_v23 = vpop.f32.mrf.mxu2 }
 0x2e5   : > { %14855 = vst [vmem:[#allocation94_spill] sm:$0xff] %v11028_v23 }
 0x2e6   : > { %3728 = vrot.lane.b32.xlu0 %v11016_v5, %s9081_s18 }
 0x2e7   : > { %1638 = vperm.xlu2 %8850, %v380_v21   ;;  %2435 = vrot.lane.b32.xlu1 %v10542_v53, %s9082_s19  ;;  %v2720_v21 = vld [vmem:[%s14498_s4 + $0x10] sm:$0xff] }
 0x2e8   : > { %v11022_v12 = vpop.permute.xlu0 %2413  ;;  %3274 = vmatpush.msrb.mxu2 %v2720_v21  ;;  %v11039_v53 = vld [vmem:[#allocation2 + $0xee] sm:$0xff]  ;;  %v1297_v21 = vrot.slane %v14856_v63, 4 }
 0x2e9   : > { %v2526_v24 = vpop.permute.xlu2 %2525  ;;  %v2426_v57 = vpop.permute.xlu1 %2425 }
 0x2ea   : > { %v11026_v16 = vsel %vm2655_vm4, %v2602_v25, %v2426_v57  ;;  %v2650_v57 = vsel %vm480_vm0, %v1968_v28, %v10467_v49 }
 0x2eb   : > { %14854 = vst [vmem:[#allocation93_spill] sm:$0xff] %v11026_v16  ;;  %8349 = vmatmul.msk.f32.gmra.mxu1 %vm2847_vm5, %v11026_v16  ;;  %v14859_v16 = vrot.slane %v10941_v8, 4 }
 0x2ed   : > { %v1298_v49 = vsel %vm1261_vm2, %v14859_v16, %v1297_v21 }
 0x2ee   : > { %2437 = vrot.lane.b32.xlu0 %v10623_v13, %s9082_s19  ;;  %v11054_v13 = vpop.f32.mrf.mxu2 }
 0x2ef   : > { %2189 = vrot.lane.b32.xlu2 %v10596_v22, %s9081_s18  ;;  %3976 = vrot.lane.b32.xlu1 %v11039_v53, %s9082_s19  ;;  %v381_v22 = vld [vmem:[%s14495_s1 + $0xb8] sm:$0xff]  ;;  %14858 = vst [vmem:[#allocation95_spill] sm:$0xff] %v11054_v13 }
 0x2f0   : > { %v2524_v41 = vpop.permute.xlu0 %2523 }
 0x2f1   : > { %v3719_v25 = vpop.permute.xlu2 %3718  ;;  %v2522_v23 = vpop.permute.xlu1 %2521 }
 0x2f2   : > { %v11047_v40 = vsel %vm2655_vm4, %v2650_v57, %v2522_v23  ;;  %v1969_v23 = vld [vmem:[#allocation2 + $0x20a] sm:$0xff] }
 0x2f3   : > { %14857 = vst [vmem:[#allocation53_spill] sm:$0xff] %v11047_v40  ;;  %8397 = vmatmul.msk.f32.gmra.mxu2 %vm2847_vm5, %v11047_v40  ;;  %v14860_v40 = vld [vmem:[#allocation35_spill] sm:$0xff]  ;;  %v2651_v19 = vsel %vm480_vm0, %v1969_v23, %v2276_v45 }
 0x2f4   : > { %v1443_v30 = vmax.f32 %v14860_v40, %v1298_v49  ;;  %v11069_v5 = vsel %vm2655_vm4, %v2651_v19, %v2524_v41  ;;  %v1300_v40 = vsel %vm1261_vm2, %v1297_v21, %v14631_v47 }
 0x2f5   : > { %14861 = vst [vmem:[#allocation35_spill] sm:$0xff] %v11069_v5 }
 0x2f6   : > { %v11080_v45 = vpop.f32.mrf.mxu2 }
 0x2f7   : > { %3730 = vrot.lane.b32.xlu2 %v11056_v6, %s9081_s18  ;;  %1643 = vperm.xlu1 %8849, %v381_v22   ;;  %14862 = vst [vmem:[#allocation96_spill] sm:$0xff] %v11080_v45  ;;  %v11082_v22 = vld [vmem:[#allocation2 + $0xc2] sm:$0xff] }
 0x2f8   : > { %v2795_v28 = vpop.permute.xlu0 %2794  ;;  %v4149_v19 = vsel %vm480_vm0, %v11082_v22, %v3719_v25  ;;  %v2719_v25 = vld [vmem:[%s14498_s4 + $0x8] sm:$0xff] }
 0x2f9   : > { %v2428_v57 = vpop.permute.xlu2 %2427  ;;  %v11066_v13 = vpop.permute.xlu1 %1613  ;;  %3275 = vmatpush.msrb.mxu2 %v2719_v25 }
 0x2fa   : > { %v1818_v16 = vmul.f32 %v11066_v13, %v1443_v30  ;;  %v1444_v30 = vmax.f32 %v14836_v55, %v1300_v40 }
 0x2fb   : > { %8398 = vmatmul.msk.f32.gmra.mxu2 %vm2847_vm5, %v11069_v5 }
 0x2fc   : > { %1873 = vst.msk [vmem:[#allocation2 + $0xfc] sm:$0xff] %vm480_vm0, %v1818_v16 }
 0x2ff   : > { %2439 = vrot.lane.b32.xlu2 %v10671_v18, %s9082_s19  ;;  %2191 = vrot.lane.b32.xlu1 %v10676_v62, %s9081_s18  ;;  %v1970_v18 = vld [vmem:[#allocation2 + $0x212] sm:$0xff] }
 0x300   : > { %v3967_v41 = vpop.permute.xlu0 %3966 }
 0x301   : > { %v11089_v49 = vpop.permute.xlu2 %1618  ;;  %v4211_v21 = vsel %vm2655_vm4, %v4149_v19, %v3967_v41  ;;  %v2278_v16 = vpop.permute.xlu1 %2277 }
 0x302   : > { %v1819_v23 = vmul.f32 %v11089_v49, %v1444_v30  ;;  %v2652_v47 = vsel %vm480_vm0, %v1970_v18, %v2278_v16  ;;  %8486 = vmatmul.msk.f32.gmra.mxu3 %vm2847_vm5, %v4211_v21  ;;  %v1971_v30 = vld [vmem:[#allocation2 + $0x21a] sm:$0xff] }
 0x303   : > { %v11096_v62 = vld [vmem:[#allocation2 + $0xf6] sm:$0xff]  ;;  %v11099_v55 = vsel %vm2655_vm4, %v2652_v47, %v2526_v24  ;;  %v11112_v24 = vpop.f32.mrf.mxu2 }
 0x304   : > { %1874 = vst.msk [vmem:[#allocation2 + $0x104] sm:$0xff] %vm480_vm0, %v1819_v23  ;;  %3978 = vrot.lane.b32.xlu0 %v11096_v62, %s9082_s19  ;;  %8399 = vmatmul.msk.f32.gmra.mxu2 %vm2847_vm5, %v11099_v55  ;;  %v11108_v40 = vld [vmem:[#allocation2 + $0xfc] sm:$0xff] }
 0x305   : > { %14863 = vst [vmem:[#allocation97_spill] sm:$0xff] %v11099_v55  ;;  %v382_v23 = vld [vmem:[%s14495_s1 + $0xc0] sm:$0xff] }
 0x306   : > { %14864 = vst [vmem:[#allocation98_spill] sm:$0xff] %v11112_v24  ;;  %v2730_v24 = vld [vmem:[#allocation2 + $0x222] sm:$0xff] }
 0x307   : > { %3732 = vrot.lane.b32.xlu1 %v11108_v40, %s9081_s18 }
 0x308   : > { %v2280_v19 = vpop.permute.xlu0 %2279 }
 0x309   : > { %v2182_v47 = vpop.permute.xlu2 %2181  ;;  %v2653_v41 = vsel %vm480_vm0, %v1971_v30, %v2280_v19  ;;  %v2528_v21 = vpop.permute.xlu1 %2527  ;;  %v383_v19 = vld [vmem:[%s14495_s1 + $0xc8] sm:$0xff] }
 0x30a   : > { %v11119_v18 = vsel %vm2655_vm4, %v2653_v41, %v2528_v21  ;;  %v1921_v41 = vld [vmem:[#allocation2 + $0x8a] sm:$0xff] }
 0x30b   : > { %14865 = vst [vmem:[#allocation99_spill] sm:$0xff] %v11119_v18  ;;  %v11121_v16 = vld [vmem:[#allocation2 + $0xfe] sm:$0xff] }
 0x30c   : > { %3980 = vrot.lane.b32.xlu2 %v11121_v16, %s9082_s19  ;;  %1648 = vperm.xlu0 %8848, %v382_v23   ;;  %v2818_v23 = vsel %vm480_vm0, %v2730_v24, %v11003_v26 }
 0x30d   : > { %8400 = vmatmul.msk.f32.gmra.mxu2 %vm2847_vm5, %v11119_v18  ;;  %v11139_v18 = vpop.f32.mrf.mxu2  ;;  %v2826_v55 = vsel %vm2655_vm4, %v2818_v23, %v2795_v28  ;;  %v11156_v28 = vld [vmem:[#allocation2 + $0x104] sm:$0xff] }
 0x30e   : > { %14866 = vst [vmem:[#allocation100_spill] sm:$0xff] %v11139_v18 }
 0x30f   : > { %2441 = vrot.lane.b32.xlu1 %v10758_v44, %s9082_s19 }
 0x310   : > { %v11129_v25 = vpop.permute.xlu0 %2167 }
 0x311   : > { %v11131_v30 = vpop.permute.xlu2 %2417  ;;  %v2180_v21 = vpop.permute.xlu1 %2179 }
 0x312   : > { %v2603_v45 = vsel %vm480_vm0, %v1921_v41, %v2180_v21  ;;  %v2731_v41 = vld [vmem:[#allocation2 + $0x22a] sm:$0xff] }
 0x313   : > { %v11142_v44 = vsel %vm2655_vm4, %v2603_v45, %v2428_v57  ;;  %v2819_v26 = vsel %vm480_vm0, %v2731_v41, %v10493_v43  ;;  %v2718_v43 = vld [vmem:[%s14498_s4] sm:$0xff]  ;;  %v2732_v45 = vld [vmem:[#allocation2 + $0x232] sm:$0xff] }
 0x314   : > { %1653 = vperm.xlu2 %8850, %v383_v19   ;;  %2193 = vrot.lane.b32.xlu0 %v10795_v35, %s9081_s18  ;;  %v2827_v35 = vsel %vm2655_vm4, %v2819_v26, %v10325_v29  ;;  %v11169_v19 = vld [vmem:[#allocation2 + $0xca] sm:$0xff]  ;;  %v1301_v29 = vrot.slane %v10044_v7, 4  ;;  %v2820_v26 = vsel %vm480_vm0, %v2732_v45, %v10489_v42  ;;  %v2733_v45 = vld [vmem:[#allocation2 + $0x23a] sm:$0xff] }
 0x315   : > { %8350 = vmatmul.msk.f32.gmra.mxu1 %vm2847_vm5, %v11142_v44  ;;  %8401 = vmatmul.msk.f32.gmra.mxu2 %vm2847_vm5, %v2826_v55  ;;  %v11162_v57 = vpop.f32.mrf.mxu2  ;;  %v1922_v55 = vld [vmem:[#allocation2 + $0x92] sm:$0xff]  ;;  %v2828_v42 = vsel %vm2655_vm4, %v2820_v26, %v10337_v58 }
 0x316   : > { %14867 = vst [vmem:[#allocation101_spill] sm:$0xff] %v11162_v57  ;;  %3276 = vmatpush.msrb.mxu2 %v2718_v43 }
 0x318   : > { %v3721_v21 = vpop.permute.xlu0 %3720 }
 0x319   : > { %v3971_v5 = vpop.permute.xlu2 %3970  ;;  %v11152_v24 = vpop.permute.xlu1 %2415 }
 0x31c   : > { %2195 = vrot.lane.b32.xlu2 %v10849_v33, %s9081_s18  ;;  %3734 = vrot.lane.b32.xlu0 %v11156_v28, %s9081_s18  ;;  %v2604_v33 = vsel %vm480_vm0, %v1922_v55, %v2182_v47  ;;  %v14868_v47 = vrot.slane %v10002_v27, 4 }
 0x31d   : > { %8402 = vmatmul.msk.f32.gmra.mxu2 %vm2847_vm5, %v2827_v35  ;;  %v4150_v35 = vsel %vm480_vm0, %v11169_v19, %v3721_v21  ;;  %v11193_v55 = vpop.f32.mrf.mxu2 }
 0x31e   : > { %v1302_v21 = vsel %vm1261_vm2, %v14868_v47, %v1301_v29  ;;  %14869 = vst [vmem:[#allocation102_spill] sm:$0xff] %v11193_v55  ;;  %v11211_v47 = vld [vmem:[#allocation2 + $0xd2] sm:$0xff] }
 0x320   : > { %v2430_v23 = vpop.permute.xlu0 %2429 }
 0x321   : > { %v11171_v41 = vpop.permute.xlu2 %2171  ;;  %v3969_v57 = vpop.permute.xlu1 %3968  ;;  %v11179_v18 = vsel %vm2655_vm4, %v2604_v33, %v2430_v23 }
 0x322   : > { %v4212_v43 = vsel %vm2655_vm4, %v4150_v35, %v3969_v57  ;;  %8351 = vmatmul.msk.f32.gmra.mxu1 %vm2847_vm5, %v11179_v18  ;;  %v1445_v57 = vmax.f32 %v10837_v2, %v1302_v21  ;;  %v2734_v2 = vld [vmem:[#allocation2 + $0x242] sm:$0xff] }
 0x323   : > { %8487 = vmatmul.msk.f32.gmra.mxu3 %vm2847_vm5, %v4212_v43 }
 0x324   : > { %2443 = vrot.lane.b32.xlu0 %v10873_v3, %s9082_s19  ;;  %v2821_v3 = vsel %vm480_vm0, %v2733_v45, %v10526_v39  ;;  %v2822_v39 = vsel %vm480_vm0, %v2734_v2, %v10583_v34  ;;  %v2735_v34 = vld [vmem:[#allocation2 + $0x24a] sm:$0xff] }
 0x325   : > { %8403 = vmatmul.msk.f32.gmra.mxu2 %vm2847_vm5, %v2828_v42  ;;  %v2829_v26 = vsel %vm2655_vm4, %v2821_v3, %v10561_v54  ;;  %v11213_v45 = vpop.f32.mrf.mxu2  ;;  %v2830_v3 = vsel %vm2655_vm4, %v2822_v39, %v10392_v9 }
 0x326   : > { %14870 = vst [vmem:[#allocation103_spill] sm:$0xff] %v11213_v45 }
 0x328   : > { %v11196_v33 = vpop.permute.xlu0 %1623 }
 0x329   : > { %v3725_v23 = vpop.permute.xlu2 %3724  ;;  %v1820_v35 = vmul.f32 %v11196_v33, %v1445_v57  ;;  %v11201_v58 = vpop.permute.xlu1 %2169 }
 0x32b   : > { %1875 = vst.msk [vmem:[#allocation2 + $0x10c] sm:$0xff] %vm480_vm0, %v1820_v35  ;;  %v1923_v35 = vld [vmem:[#allocation2 + $0x9a] sm:$0xff] }
 0x32c   : > { %2197 = vrot.lane.b32.xlu0 %v10912_v4, %s9081_s18 }
 0x32d   : > { %8404 = vmatmul.msk.f32.gmra.mxu2 %vm2847_vm5, %v2829_v26  ;;  %v11242_v39 = vpop.f32.mrf.mxu2 }
 0x32e   : > { %14871 = vst [vmem:[#allocation104_spill] sm:$0xff] %v11242_v39 }
 0x330   : > { %v2184_v43 = vpop.permute.xlu0 %2183 }
 0x331   : > { %v2434_v42 = vpop.permute.xlu2 %2433  ;;  %v3723_v21 = vpop.permute.xlu1 %3722  ;;  %v2605_v45 = vsel %vm480_vm0, %v1923_v35, %v2184_v43  ;;  %v2736_v43 = vld [vmem:[#allocation2 + $0x252] sm:$0xff] }
 0x332   : > { %v4151_v57 = vsel %vm480_vm0, %v11211_v47, %v3723_v21  ;;  %v11217_v54 = vld [vmem:[#allocation2 + $0x106] sm:$0xff]  ;;  %v2823_v21 = vsel %vm480_vm0, %v2735_v34, %v10408_v36  ;;  %v14872_v36 = vrot.slane %v9920_v15, 4 }
 0x333   : > { %3982 = vrot.lane.b32.xlu1 %v11217_v54, %s9082_s19  ;;  %v4213_v4 = vsel %vm2655_vm4, %v4151_v57, %v3971_v5  ;;  %v11234_v57 = vld [vmem:[#allocation2 + $0x10c] sm:$0xff]  ;;  %v2831_v9 = vsel %vm2655_vm4, %v2823_v21, %v10604_v50  ;;  %v2824_v50 = vsel %vm480_vm0, %v2736_v43, %v10632_v52  ;;  %v14873_v21 = vmax.f32 %v10002_v27, %v10012_v56  ;;  %v2737_v27 = vld [vmem:[#allocation2 + $0x25a] sm:$0x3f] }
 0x334   : > { %8488 = vmatmul.msk.f32.gmra.mxu3 %vm2847_vm5, %v4213_v4  ;;  %v2832_v52 = vsel %vm2655_vm4, %v2824_v50, %v10658_v1  ;;  %v14874_v43 = vld [vmem:[#allocation54_spill] sm:$0xff] }
 0x335   : > { %8405 = vmatmul.msk.f32.gmra.mxu2 %vm2847_vm5, %v2830_v3  ;;  %v11273_v56 = vpop.f32.mrf.mxu2 }
 0x338   : > { %v11226_v2 = vpop.permute.xlu0 %2419 }
 0x339   : > { %v3975_v26 = vpop.permute.xlu2 %3974  ;;  %v2432_v55 = vpop.permute.xlu1 %2431 }
 0x33a   : > { %v11232_v5 = vsel %vm2655_vm4, %v2605_v45, %v2432_v55  ;;  %v1304_v55 = vsel %vm1261_vm2, %v1301_v29, %v14872_v36  ;;  %v11248_v45 = vld [vmem:[#allocation2 + $0xda] sm:$0xff] }
 0x33b   : > { %8352 = vmatmul.msk.f32.gmra.mxu1 %vm2847_vm5, %v11232_v5  ;;  %3736 = vrot.lane.b32.xlu1 %v11234_v57, %s9081_s18  ;;  %v4152_v4 = vsel %vm480_vm0, %v11248_v45, %v3725_v23  ;;  %v1446_v35 = vmax.f32 %v10941_v8, %v1304_v55  ;;  %v2825_v23 = vsel %vm480_vm0, %v2737_v27, %v10754_v61 }
 0x33c   : > { %v2833_v61 = vsel %vm2655_vm4, %v2825_v23, %v10843_v20 }
 0x33d   : > { %8406 = vmatmul.msk.f32.gmra.mxu2 %vm2847_vm5, %v2831_v9 }
 0x340   : > { %v3973_v34 = vpop.permute.xlu0 %3972 }
 0x341   : > { %v11252_v3 = vpop.permute.xlu2 %1638  ;;  %v4214_v29 = vsel %vm2655_vm4, %v4152_v4, %v3973_v34  ;;  %v11262_v36 = vpop.permute.xlu1 %1628  ;;  %v14875_v4 = vmax.f32 %v14856_v63, %v14874_v43  ;;  %v1924_v34 = vld [vmem:[#allocation2 + $0xa2] sm:$0xff]  ;;  %v1911_v63 = vld [vmem:[#allocation2 + $0x3a] sm:$0xff] }
 0x342   : > { %v1823_v9 = vmul.f32 %v11252_v3, %v14873_v21  ;;  %v1821_v39 = vmul.f32 %v11262_v36, %v1446_v35  ;;  %8489 = vmatmul.msk.f32.gmra.mxu3 %vm2847_vm5, %v4214_v29  ;;  %v11299_v21 = vpop.f32.mrf.mxu2 }
 0x343   : > { %2445 = vrot.lane.b32.xlu1 %v10907_v17, %s9082_s19 }
 0x344   : > { %1878 = vst.msk [vmem:[#allocation2 + $0x124] sm:$0xff] %vm480_vm0, %v1823_v9  ;;  %v2593_v9 = vsel %vm480_vm0, %v1911_v63, %v10800_v11 }
 0x345   : > { %1876 = vst.msk [vmem:[#allocation2 + $0x114] sm:$0xff] %vm480_vm0, %v1821_v39  ;;  %8407 = vmatmul.msk.f32.gmra.mxu2 %vm2847_vm5, %v2832_v52 }
 0x348   : > { %v11275_v8 = vpop.permute.xlu0 %1633 }
 0x349   : > { %v2190_v55 = vpop.permute.xlu2 %2189  ;;  %v1822_v17 = vmul.f32 %v11275_v8, %v14875_v4  ;;  %v2186_v1 = vpop.permute.xlu1 %2185  ;;  %v2656_v4 = vsel %vm2655_vm4, %v2593_v9, %v10875_v10 }
 0x34a   : > { %v2606_v39 = vsel %vm480_vm0, %v1924_v34, %v2186_v1 }
 0x34b   : > { %1877 = vst.msk [vmem:[#allocation2 + $0x11c] sm:$0xff] %vm480_vm0, %v1822_v17  ;;  %2199 = vrot.lane.b32.xlu1 %v10948_v48, %s9081_s18  ;;  %v11290_v50 = vsel %vm2655_vm4, %v2606_v39, %v2434_v42  ;;  %v11303_v42 = vld [vmem:[#allocation2 + $0xe2] sm:$0xff] }
 0x34c   : > { %v11287_v35 = vld [vmem:[#allocation2 + $0x10e] sm:$0xff]  ;;  %8353 = vmatmul.msk.f32.gmra.mxu1 %vm2847_vm5, %v11290_v50  ;;  %v1912_v17 = vld [vmem:[#allocation2 + $0x42] sm:$0xff] }
 0x34d   : > { %3984 = vrot.lane.b32.xlu2 %v11287_v35, %s9082_s19  ;;  %8408 = vmatmul.msk.f32.gmra.mxu2 %vm2847_vm5, %v2833_v61  ;;  %v11317_v43 = vld [vmem:[#allocation2 + $0x114] sm:$0xff]  ;;  %v11328_v61 = vpop.f32.mrf.mxu2  ;;  %v11333_v63 = vld [vmem:[#allocation2 + $0x124] sm:$0xff]  ;;  %v2594_v10 = vsel %vm480_vm0, %v1912_v17, %v10919_v59 }
 0x34e   : > { %v1913_v59 = vld [vmem:[#allocation2 + $0x4a] sm:$0xff] }
 0x350   : > { %v2188_v48 = vpop.permute.xlu0 %2187 }
 0x351   : > { %v3727_v29 = vpop.permute.xlu1 %3726  ;;  %v11311_v23 = vpop.permute.xlu2 %3730  ;;  %v2607_v1 = vsel %vm480_vm0, %v10898_v51, %v2188_v48  ;;  %v2657_v51 = vsel %vm2655_vm4, %v2594_v10, %v10937_v38 }
 0x352   : > { %v4153_v20 = vsel %vm480_vm0, %v11303_v42, %v3727_v29  ;;  %v11307_v52 = vld [vmem:[#allocation2 + $0x11e] sm:$0xff]  ;;  %v11309_v27 = vld [vmem:[#allocation2 + $0x116] sm:$0xff]  ;;  %v2608_v29 = vsel %vm480_vm0, %v10957_v46, %v2190_v55 }
 0x353   : > { %3988 = vrot.lane.b32.xlu1 %v11307_v52, %s9082_s19  ;;  %3986 = vrot.lane.b32.xlu0 %v11309_v27, %s9082_s19  ;;  %v4215_v11 = vsel %vm2655_vm4, %v4153_v20, %v3975_v26  ;;  %v11341_v9 = vld [vmem:[#allocation2 + $0x11c] sm:$0xff]  ;;  %v11352_v20 = vld [vmem:[#allocation2 + $0xea] sm:$0xff] }
 0x354   : > { %8490 = vmatmul.msk.f32.gmra.mxu3 %vm2847_vm5, %v4215_v11 }
 0x355   : > { %3738 = vrot.lane.b32.xlu2 %v11317_v43, %s9081_s18  ;;  %8409 = vmatmul.msk.f32.vlgmr.msrb.gmra.mxu2 %vm2847_vm5, %v2656_v4  ;;  %v2595_v4 = vsel %vm480_vm0, %v1913_v59, %v10990_v31  ;;  %v11365_v46 = vpop.f32.mrf.mxu2  ;;  %v1915_v59 = vld [vmem:[#allocation2 + $0x5a] sm:$0xff] }
 0x356   : > { %v2658_v31 = vsel %vm2655_vm4, %v2595_v4, %v10921_v0 }
 0x358   : > { %v3729_v34 = vpop.permute.xlu0 %3728 }
 0x359   : > { %v2436_v39 = vpop.permute.xlu1 %2435  ;;  %v2440_v48 = vpop.permute.xlu2 %2439  ;;  %v4154_v38 = vsel %vm480_vm0, %v11352_v20, %v3729_v34  ;;  %v1914_v34 = vld [vmem:[#allocation2 + $0x52] sm:$0xff] }
 0x35a   : > { %v11331_v26 = vsel %vm2655_vm4, %v2607_v1, %v2436_v39  ;;  %v2596_v39 = vsel %vm480_vm0, %v1914_v34, %v10959_v60 }
 0x35b   : > { %8354 = vmatmul.msk.f32.gmra.mxu1 %vm2847_vm5, %v11331_v26  ;;  %3742 = vrot.lane.b32.xlu1 %v11333_v63, %s9081_s18 }
 0x35c   : > { %3740 = vrot.lane.b32.xlu0 %v11341_v9, %s9081_s18 }
 0x35d   : > { %2447 = vrot.lane.b32.xlu2 %v10950_v37, %s9082_s19  ;;  %8410 = vmatmul.msk.f32.gmra.mxu2 %vm2847_vm5, %v2657_v51 }
 0x360   : > { %v2438_v11 = vpop.permute.xlu0 %2437 }
 0x361   : > { %v3977_v17 = vpop.permute.xlu1 %3976  ;;  %v11359_v1 = vsel %vm2655_vm4, %v2608_v29, %v2438_v11  ;;  %v11394_v29 = vpop.f32.mrf.mxu2  ;;  %v14880_v11 = vld [vmem:[#allocation60_spill] sm:$0xff] }
 0x362   : > { %v4216_v37 = vsel %vm2655_vm4, %v4154_v38, %v3977_v17  ;;  %v14882_v17 = vld [vmem:[#allocation91_spill] sm:$0xff] }
 0x363   : > { %8355 = vmatmul.msk.f32.gmra.mxu1 %vm2847_vm5, %v11359_v1  ;;  %8491 = vmatmul.msk.f32.gmra.mxu3 %vm2847_vm5, %v4216_v37 }
 0x364   : > { %2451 = vrot.lane.b32.xlu1 %v11039_v53, %s9082_s19  ;;  %2449 = vrot.lane.b32.xlu0 %v10993_v32, %s9082_s19  ;;  %v14876_v53 = vld [vmem:[#allocation59_spill] sm:$0xff]  ;;  %v2659_v32 = vsel %vm2655_vm4, %v2596_v39, %v11022_v12 }
 0x365   : > { %8411 = vmatmul.msk.f32.gmra.mxu2 %vm2847_vm5, %v2658_v31  ;;  %2201 = vrot.lane.b32.xlu2 %v10999_v14, %s9081_s18  ;;  %v14877_v51 = vmax.f32 %v10044_v7, %v14876_v53  ;;  %v14878_v14 = vld [vmem:[#allocation92_spill] sm:$0xff]  ;;  %v11416_v53 = vld [vmem:[#allocation2 + $0xf2] sm:$0xff] }
 0x366   : > { %v3981_v55 = vpop.permute.xlu2 %3980  ;;  %v14879_v7 = vld [vmem:[#allocation52_spill] sm:$0xff] }
 0x367   : > { %v14881_v4 = vmax.f32 %v14879_v7, %v14880_v11 }
 0x369   : > { %v11378_v10 = vpop.permute.xlu1 %1643 }
 0x36a   : > { %v1824_v0 = vmul.f32 %v11378_v10, %v14877_v51  ;;  %v4155_v51 = vsel %vm480_vm0, %v11416_v53, %v11311_v23 }
 0x36c   : > { %1879 = vst.msk [vmem:[#allocation2 + $0x12c] sm:$0xff] %vm480_vm0, %v1824_v0  ;;  %2205 = vrot.lane.b32.xlu1 %v11056_v6, %s9081_s18  ;;  %2203 = vrot.lane.b32.xlu0 %v14878_v14, %s9081_s18  ;;  %v2597_v6 = vsel %vm480_vm0, %v1915_v59, %v11129_v25  ;;  %v1916_v25 = vld [vmem:[#allocation2 + $0x62] sm:$0xff]  ;;  %v11428_v59 = vld [vmem:[#allocation2 + $0xfa] sm:$0xff] }
 0x36d   : > { %8412 = vmatmul.msk.f32.gmra.mxu2 %vm2847_vm5, %v2659_v32  ;;  %v2660_v39 = vsel %vm2655_vm4, %v2597_v6, %v11152_v24  ;;  %v2598_v32 = vsel %vm480_vm0, %v1916_v25, %v11201_v58  ;;  %v14883_v6 = vld [vmem:[#allocation61_spill] sm:$0xff] }
 0x36e   : > { %v11392_v60 = vpop.permute.xlu2 %1653  ;;  %v2661_v23 = vsel %vm2655_vm4, %v2598_v32, %v11131_v30 }
 0x36f   : > { %v1826_v12 = vmul.f32 %v11392_v60, %v14881_v4  ;;  %v1917_v4 = vld [vmem:[#allocation2 + $0x6a] sm:$0xff] }
 0x370   : > { %v2599_v30 = vsel %vm480_vm0, %v1917_v4, %v11171_v41 }
 0x371   : > { %1881 = vst.msk [vmem:[#allocation2 + $0x13c] sm:$0xff] %vm480_vm0, %v1826_v12  ;;  %v2192_v38 = vpop.permute.xlu1 %2191 }
 0x372   : > { %v2609_v37 = vsel %vm480_vm0, %v14882_v17, %v2192_v38  ;;  %v14884_v38 = vmax.f32 %v9920_v15, %v14883_v6 }
 0x373   : > { %v11405_v31 = vld [vmem:[#allocation2 + $0x126] sm:$0xff]  ;;  %v11408_v34 = vsel %vm2655_vm4, %v2609_v37, %v2440_v48 }
 0x374   : > { %3990 = vrot.lane.b32.xlu2 %v11405_v31, %s9082_s19  ;;  %8356 = vmatmul.msk.f32.gmra.mxu1 %vm2847_vm5, %v11408_v34  ;;  %v11430_v7 = vld [vmem:[#allocation2 + $0x12c] sm:$0xff] }
 0x375   : > { %8413 = vmatmul.msk.f32.gmra.mxu2 %vm2847_vm5, %v2660_v39  ;;  %v2662_v39 = vsel %vm2655_vm4, %v2599_v30, %v11226_v2 }
 0x376   : > { %v11422_v48 = vpop.f32.mrf.mxu2  ;;  %v3979_v0 = vpop.permute.xlu0 %3978 }
 0x377   : > { %v4217_v24 = vsel %vm2655_vm4, %v4155_v51, %v3979_v0 }
 0x378   : > { %8492 = vmatmul.msk.f32.gmra.mxu3 %vm2847_vm5, %v4217_v24  ;;  %v11480_v32 = vld [vmem:[#allocation2 + $0x13c] sm:$0xff] }
 0x379   : > { %v3733_v14 = vpop.permute.xlu1 %3732 }
 0x37a   : > { %v4156_v11 = vsel %vm480_vm0, %v11428_v59, %v3733_v14 }
 0x37b   : > { %v4218_v37 = vsel %vm2655_vm4, %v4156_v11, %v3981_v55  ;;  %v2196_v11 = vpop.permute.xlu2 %2195 }
 0x37c   : > { %3744 = vrot.lane.b32.xlu2 %v11430_v7, %s9081_s18  ;;  %v2611_v4 = vsel %vm480_vm0, %v11169_v19, %v2196_v11  ;;  %v14889_v19 = vld [vmem:[#allocation93_spill] sm:$0xff] }
 0x37d   : > { %8414 = vmatmul.msk.f32.gmra.mxu2 %vm2847_vm5, %v2661_v23  ;;  %v11488_v23 = vld [vmem:[#allocation2 + $0x13e] sm:$0xff] }
 0x37e   : > { %v11439_v12 = vpop.f32.mrf.mxu2  ;;  %v11441_v58 = vpop.permute.xlu0 %1648 }
 0x37f   : > { %v1825_v17 = vmul.f32 %v11441_v58, %v14884_v38 }
 0x380   : > { %8493 = vmatmul.msk.f32.gmra.mxu3 %vm2847_vm5, %v4218_v37  ;;  %v11507_v37 = vld [vmem:[#allocation2 + $0x144] sm:$0xff] }
 0x381   : > { %1880 = vst.msk [vmem:[#allocation2 + $0x134] sm:$0xff] %vm480_vm0, %v1825_v17  ;;  %v2442_v25 = vpop.permute.xlu1 %2441 }
 0x384   : > { %2453 = vrot.lane.b32.xlu2 %v11096_v62, %s9082_s19 }
 0x385   : > { %8415 = vmatmul.msk.f32.gmra.mxu2 %vm2847_vm5, %v2662_v39 }
 0x386   : > { %v2194_v15 = vpop.permute.xlu0 %2193 }
 0x387   : > { %v2610_v55 = vsel %vm480_vm0, %v11082_v22, %v2194_v15  ;;  %v11459_v51 = vpop.f32.mrf.mxu2  ;;  %v14885_v22 = vld [vmem:[#allocation86_spill] sm:$0xff] }
 0x388   : > { %v11461_v0 = vld [vmem:[#allocation2 + $0x136] sm:$0xff]  ;;  %v11463_v41 = vld [vmem:[#allocation2 + $0x12e] sm:$0xff]  ;;  %v11466_v24 = vsel %vm2655_vm4, %v2610_v55, %v2442_v25  ;;  %v11531_v55 = vld [vmem:[#allocation2 + $0x146] sm:$0xff] }
 0x389   : > { %3994 = vrot.lane.b32.xlu1 %v11461_v0, %s9082_s19  ;;  %3992 = vrot.lane.b32.xlu0 %v11463_v41, %s9082_s19  ;;  %v11482_v14 = vld [vmem:[#allocation2 + $0x134] sm:$0xff] }
 0x38a   : > { %8357 = vmatmul.msk.f32.gmra.mxu1 %vm2847_vm5, %v11466_v24 }
 0x38c   : > { %2207 = vrot.lane.b32.xlu2 %v11108_v40, %s9081_s18  ;;  %v14887_v40 = vld [vmem:[#allocation87_spill] sm:$0xff] }
 0x38d   : > { %8416 = vmatmul.msk.f32.gmra.mxu2 %vm2847_vm5, %v14885_v22 }
 0x38e   : > { %v3735_v62 = vpop.permute.xlu0 %3734 }
 0x390   : > { %v11478_v2 = vpop.f32.mrf.mxu2 }
 0x391   : > { %14886 = vst [vmem:[#allocation54_spill] sm:$0xff] %v11478_v2  ;;  %3748 = vrot.lane.b32.xlu1 %v11480_v32, %s9081_s18  ;;  %3746 = vrot.lane.b32.xlu0 %v11482_v14, %s9081_s18 }
 0x394   : > { %3996 = vrot.lane.b32.xlu2 %v11488_v23, %s9082_s19 }
 0x395   : > { %8417 = vmatmul.msk.f32.gmra.mxu2 %vm2847_vm5, %v14887_v40  ;;  %v3547_v40 = vld [vmem:[#allocation2 + $0x154] sm:$0xff] }
 0x396   : > { %v2444_v6 = vpop.permute.xlu0 %2443 }
 0x397   : > { %v11497_v38 = vsel %vm2655_vm4, %v2611_v4, %v2444_v6  ;;  %v3546_v4 = vld [vmem:[#allocation2 + $0x14c] sm:$0xff]  ;;  %v3609_v6 = vld [vmem:[#allocation2 + $0x156] sm:$0xff] }
 0x398   : > { %v11499_v17 = vpop.f32.mrf.mxu2  ;;  %8358 = vmatmul.msk.f32.gmra.mxu1 %vm2847_vm5, %v11497_v38 }
 0x399   : > { %14888 = vst [vmem:[#allocation59_spill] sm:$0xff] %v11499_v17  ;;  %2457 = vrot.lane.b32.xlu1 %v11217_v54, %s9082_s19  ;;  %2455 = vrot.lane.b32.xlu0 %v11121_v16, %s9082_s19  ;;  %v11519_v54 = vld [vmem:[#allocation2 + $0x102] sm:$0xff] }
 0x39a   : > { %v4157_v16 = vsel %vm480_vm0, %v11519_v54, %v3735_v62  ;;  %v3623_v17 = vld [vmem:[#allocation2 + $0x1c6] sm:$0xff] }
 0x39c   : > { %3750 = vrot.lane.b32.xlu2 %v11507_v37, %s9081_s18 }
 0x39d   : > { %8418 = vmatmul.msk.f32.gmra.mxu2 %vm2847_vm5, %v14889_v19 }
 0x3a0   : > { %v11513_v30 = vpop.f32.mrf.mxu2 }
 0x3a1   : > { %14890 = vst [vmem:[#allocation92_spill] sm:$0xff] %v11513_v30  ;;  %2211 = vrot.lane.b32.xlu1 %v11234_v57, %s9081_s18  ;;  %2209 = vrot.lane.b32.xlu0 %v11156_v28, %s9081_s18  ;;  %v3608_v28 = vld [vmem:[#allocation2 + $0x14e] sm:$0xff] }
 0x3a4   : > { %2459 = vrot.lane.b32.xlu2 %v11287_v35, %s9082_s19 }
 0x3a5   : > { %8419 = vmatmul.msk.f32.gmra.mxu2 %vm2847_vm5, %v11142_v44  ;;  %v3983_v39 = vpop.permute.xlu1 %3982  ;;  %v11540_v44 = vld [vmem:[#allocation2 + $0x10a] sm:$0xff] }
 0x3a6   : > { %v4219_v15 = vsel %vm2655_vm4, %v4157_v16, %v3983_v39 }
 0x3a7   : > { %8494 = vmatmul.msk.f32.gmra.mxu3 %vm2847_vm5, %v4219_v15  ;;  %v3985_v57 = vpop.permute.xlu2 %3984 }
 0x3a8   : > { %v11529_v25 = vpop.f32.mrf.mxu2 }
 0x3a9   : > { %14891 = vst [vmem:[#allocation52_spill] sm:$0xff] %v11529_v25  ;;  %4000 = vrot.lane.b32.xlu1 %v3608_v28, %s9082_s19  ;;  %3998 = vrot.lane.b32.xlu0 %v11531_v55, %s9082_s19 }
 0x3ac   : > { %2213 = vrot.lane.b32.xlu2 %v11317_v43, %s9081_s18  ;;  %v2198_v43 = vpop.permute.xlu0 %2197 }
 0x3ad   : > { %8420 = vmatmul.msk.f32.gmra.mxu2 %vm2847_vm5, %v11179_v18  ;;  %v3737_v35 = vpop.permute.xlu1 %3736  ;;  %v2612_v19 = vsel %vm480_vm0, %v11211_v47, %v2198_v43 }
 0x3ae   : > { %v4158_v22 = vsel %vm480_vm0, %v11540_v44, %v3737_v35 }
 0x3af   : > { %v4220_v62 = vsel %vm2655_vm4, %v4158_v22, %v3985_v57  ;;  %v3739_v18 = vpop.permute.xlu2 %3738  ;;  %v3548_v57 = vld [vmem:[#allocation2 + $0x15c] sm:$0xff] }
 0x3b0   : > { %v11545_v11 = vpop.f32.mrf.mxu2  ;;  %8495 = vmatmul.msk.f32.gmra.mxu3 %vm2847_vm5, %v4220_v62 }
 0x3b1   : > { %14892 = vst [vmem:[#allocation60_spill] sm:$0xff] %v11545_v11  ;;  %3754 = vrot.lane.b32.xlu1 %v3547_v40, %s9081_s18  ;;  %3752 = vrot.lane.b32.xlu0 %v3546_v4, %s9081_s18  ;;  %v3610_v4 = vld [vmem:[#allocation2 + $0x15e] sm:$0xff]  ;;  %v3617_v11 = vld [vmem:[#allocation2 + $0x196] sm:$0xff] }
 0x3b4   : > { %4002 = vrot.lane.b32.xlu2 %v3609_v6, %s9082_s19 }
 0x3b5   : > { %8421 = vmatmul.msk.f32.gmra.mxu2 %vm2847_vm5, %v11232_v5  ;;  %v2446_v16 = vpop.permute.xlu1 %2445 }
 0x3b6   : > { %v11556_v39 = vsel %vm2655_vm4, %v2612_v19, %v2446_v16  ;;  %v3550_v16 = vld [vmem:[#allocation2 + $0x16c] sm:$0xff] }
 0x3b7   : > { %8359 = vmatmul.msk.f32.gmra.mxu1 %vm2847_vm5, %v11556_v39  ;;  %v2448_v47 = vpop.permute.xlu2 %2447 }
 0x3b8   : > { %v11560_v15 = vpop.f32.mrf.mxu2 }
 0x3b9   : > { %14893 = vst [vmem:[#allocation91_spill] sm:$0xff] %v11560_v15  ;;  %2463 = vrot.lane.b32.xlu1 %v11307_v52, %s9082_s19  ;;  %2461 = vrot.lane.b32.xlu0 %v11309_v27, %s9082_s19  ;;  %v11582_v52 = vld [vmem:[#allocation2 + $0x112] sm:$0xff]  ;;  %v3619_v15 = vld [vmem:[#allocation2 + $0x1a6] sm:$0xff] }
 0x3bc   : > { %3756 = vrot.lane.b32.xlu2 %v3548_v57, %s9081_s18  ;;  %v3549_v57 = vld [vmem:[#allocation2 + $0x164] sm:$0xff] }
 0x3bd   : > { %8422 = vmatmul.msk.f32.gmra.mxu2 %vm2847_vm5, %v11290_v50  ;;  %v2200_v5 = vpop.permute.xlu1 %2199 }
 0x3be   : > { %v2613_v28 = vsel %vm480_vm0, %v11248_v45, %v2200_v5  ;;  %v4159_v45 = vsel %vm480_vm0, %v11582_v52, %v3739_v18  ;;  %v11613_v5 = vpop.f32.mrf.mxu1 }
 0x3bf   : > { %v11572_v35 = vsel %vm2655_vm4, %v2613_v28, %v2448_v47  ;;  %v2202_v27 = vpop.permute.xlu2 %2201  ;;  %v11615_v28 = vld [vmem:[#allocation2 + $0x122] sm:$0xff] }
 0x3c0   : > { %v11574_v22 = vpop.f32.mrf.mxu2  ;;  %8360 = vmatmul.msk.f32.gmra.mxu1 %vm2847_vm5, %v11572_v35 }
 0x3c1   : > { %14894 = vst [vmem:[#allocation61_spill] sm:$0xff] %v11574_v22  ;;  %2217 = vrot.lane.b32.xlu1 %v11333_v63, %s9081_s18  ;;  %2215 = vrot.lane.b32.xlu0 %v11341_v9, %s9081_s18  ;;  %v3611_v9 = vld [vmem:[#allocation2 + $0x166] sm:$0xff] }
 0x3c4   : > { %2465 = vrot.lane.b32.xlu2 %v11405_v31, %s9082_s19  ;;  %v11600_v31 = vld [vmem:[#allocation2 + $0x11a] sm:$0xff] }
 0x3c5   : > { %8423 = vmatmul.msk.f32.gmra.mxu2 %vm2847_vm5, %v11331_v26  ;;  %v3987_v50 = vpop.permute.xlu0 %3986  ;;  %v3989_v40 = vpop.permute.xlu1 %3988 }
 0x3c6   : > { %v4221_v62 = vsel %vm2655_vm4, %v4159_v45, %v3987_v50  ;;  %v2614_v45 = vsel %vm480_vm0, %v11303_v42, %v2202_v27  ;;  %v11637_v27 = vpop.f32.mrf.mxu1 }
 0x3c7   : > { %8496 = vmatmul.msk.f32.gmra.mxu3 %vm2847_vm5, %v4221_v62 }
 0x3c8   : > { %v11592_v63 = vpop.f32.mrf.mxu2 }
 0x3c9   : > { %14895 = vst [vmem:[#allocation86_spill] sm:$0xff] %v11592_v63  ;;  %4006 = vrot.lane.b32.xlu1 %v3611_v9, %s9082_s19  ;;  %4004 = vrot.lane.b32.xlu0 %v3610_v4, %s9082_s19 }
 0x3cc   : > { %2219 = vrot.lane.b32.xlu2 %v11430_v7, %s9081_s18  ;;  %v11611_v7 = vpop.f32.mrf.mxu3 }
 0x3cd   : > { %8424 = vmatmul.msk.f32.gmra.mxu2 %vm2847_vm5, %v11359_v1  ;;  %v3743_v6 = vpop.permute.xlu1 %3742  ;;  %v3612_v1 = vld [vmem:[#allocation2 + $0x16e] sm:$0xff] }
 0x3ce   : > { %v3741_v26 = vpop.permute.xlu0 %3740  ;;  %v3991_v43 = vpop.permute.xlu2 %3990  ;;  %v4161_v50 = vsel %vm480_vm0, %v11615_v28, %v3743_v6 }
 0x3cf   : > { %v4160_v18 = vsel %vm480_vm0, %v11600_v31, %v3741_v26  ;;  %v4223_v42 = vsel %vm2655_vm4, %v4161_v50, %v3991_v43 }
 0x3d0   : > { %v11604_v19 = vpop.f32.mrf.mxu2  ;;  %v4222_v47 = vsel %vm2655_vm4, %v4160_v18, %v3989_v40 }
 0x3d1   : > { %14896 = vst [vmem:[#allocation87_spill] sm:$0xff] %v11604_v19  ;;  %3760 = vrot.lane.b32.xlu1 %v3550_v16, %s9081_s18  ;;  %3758 = vrot.lane.b32.xlu0 %v3549_v57, %s9081_s18  ;;  %v11655_v57 = vpop.f32.mrf.mxu1 }
 0x3d2   : > { %8497 = vmatmul.msk.f32.gmra.mxu3 %vm2847_vm5, %v4222_v47 }
 0x3d4   : > { %4008 = vrot.lane.b32.xlu2 %v3612_v1, %s9082_s19  ;;  %v11641_v18 = vpop.f32.mrf.mxu3  ;;  %v3614_v1 = vld [vmem:[#allocation2 + $0x17e] sm:$0xff] }
 0x3d5   : > { %8425 = vmatmul.msk.f32.gmra.mxu2 %vm2847_vm5, %v11408_v34  ;;  %v3551_v34 = vld [vmem:[#allocation2 + $0x174] sm:$0xff] }
 0x3d6   : > { %v2450_v62 = vpop.permute.xlu0 %2449  ;;  %v3745_v40 = vpop.permute.xlu2 %3744 }
 0x3d7   : > { %v11624_v9 = vsel %vm2655_vm4, %v2614_v45, %v2450_v62  ;;  %v2452_v26 = vpop.permute.xlu1 %2451  ;;  %v3553_v62 = vld [vmem:[#allocation2 + $0x184] sm:$0xff] }
 0x3d8   : > { %v11626_v4 = vpop.f32.mrf.mxu2  ;;  %8361 = vmatmul.msk.f32.gmra.mxu1 %vm2847_vm5, %v11624_v9 }
 0x3d9   : > { %2469 = vrot.lane.b32.xlu1 %v11461_v0, %s9082_s19  ;;  %2467 = vrot.lane.b32.xlu0 %v11463_v41, %s9082_s19 }
 0x3da   : > { %8498 = vmatmul.msk.f32.gmra.mxu3 %vm2847_vm5, %v4223_v42 }
 0x3dc   : > { %3762 = vrot.lane.b32.xlu2 %v3551_v34, %s9081_s18  ;;  %v3615_v34 = vld [vmem:[#allocation2 + $0x186] sm:$0xff] }
 0x3dd   : > { %8426 = vmatmul.msk.f32.gmra.mxu2 %vm2847_vm5, %v11466_v24 }
 0x3de   : > { %v2204_v6 = vpop.permute.xlu0 %2203  ;;  %v2454_v16 = vpop.permute.xlu2 %2453 }
 0x3df   : > { %v2615_v0 = vsel %vm480_vm0, %v11352_v20, %v2204_v6  ;;  %v2206_v24 = vpop.permute.xlu1 %2205  ;;  %v11659_v20 = vpop.f32.mrf.mxu3 }
 0x3e0   : > { %v11645_v41 = vpop.f32.mrf.mxu2  ;;  %v2678_v43 = vsel %vm2655_vm4, %v2615_v0, %v2452_v26  ;;  %v2616_v47 = vsel %vm480_vm0, %v11416_v53, %v2206_v24  ;;  %v3552_v26 = vld [vmem:[#allocation2 + $0x17c] sm:$0xff]  ;;  %v3616_v0 = vld [vmem:[#allocation2 + $0x18e] sm:$0xff] }
 0x3e1   : > { %2223 = vrot.lane.b32.xlu1 %v11480_v32, %s9081_s18  ;;  %2221 = vrot.lane.b32.xlu0 %v11482_v14, %s9081_s18  ;;  %v3613_v14 = vld [vmem:[#allocation2 + $0x176] sm:$0xff] }
 0x3e2   : > { %8362 = vmatmul.msk.f32.gmra.mxu1 %vm2847_vm5, %v2678_v43 }
 0x3e4   : > { %2471 = vrot.lane.b32.xlu2 %v11488_v23, %s9082_s19  ;;  %v11668_v23 = vsel %vm2655_vm4, %v2616_v47, %v2454_v16  ;;  %v11696_v16 = vld [vmem:[#allocation2 + $0x12a] sm:$0xff] }
 0x3e5   : > { %8427 = vmatmul.msk.f32.gmra.mxu2 %vm2847_vm5, %v11497_v38  ;;  %v11674_v38 = vpop.f32.mrf.mxu1  ;;  %v4162_v24 = vsel %vm480_vm0, %v11696_v16, %v3745_v40  ;;  %v3556_v40 = vld [vmem:[#allocation2 + $0x19c] sm:$0xff] }
 0x3e6   : > { %v2208_v45 = vpop.permute.xlu2 %2207 }
 0x3e7   : > { %v11678_v53 = vpop.f32.mrf.mxu3 }
 0x3e8   : > { %v11663_v32 = vpop.f32.mrf.mxu2 }
 0x3e9   : > { %4012 = vrot.lane.b32.xlu1 %v3614_v1, %s9082_s19  ;;  %4010 = vrot.lane.b32.xlu0 %v3613_v14, %s9082_s19  ;;  %v3555_v1 = vld [vmem:[#allocation2 + $0x194] sm:$0xff] }
 0x3ea   : > { %8363 = vmatmul.msk.f32.gmra.mxu1 %vm2847_vm5, %v11668_v23 }
 0x3ec   : > { %2225 = vrot.lane.b32.xlu2 %v11507_v37, %s9081_s18 }
 0x3ed   : > { %8428 = vmatmul.msk.f32.gmra.mxu2 %vm2847_vm5, %v11556_v39  ;;  %v11685_v37 = vpop.f32.mrf.mxu1 }
 0x3ee   : > { %v3997_v42 = vpop.permute.xlu2 %3996 }
 0x3ef   : > { %v11689_v39 = vpop.f32.mrf.mxu3 }
 0x3f0   : > { %v11680_v50 = vpop.f32.mrf.mxu2 }
 0x3f1   : > { %3766 = vrot.lane.b32.xlu1 %v3553_v62, %s9081_s18  ;;  %3764 = vrot.lane.b32.xlu0 %v3552_v26, %s9081_s18 }
 0x3f4   : > { %4014 = vrot.lane.b32.xlu2 %v3615_v34, %s9082_s19 }
 0x3f5   : > { %8429 = vmatmul.msk.f32.gmra.mxu2 %vm2847_vm5, %v11572_v35  ;;  %v11702_v62 = vpop.f32.mrf.mxu1 }
 0x3f6   : > { %v11704_v26 = vpop.permute.xlu2 %3750 }
 0x3f8   : > { %v11691_v6 = vpop.f32.mrf.mxu2 }
 0x3f9   : > { %4016 = vrot.lane.b32.xlu1 %v3616_v0, %s9082_s19  ;;  %2473 = vrot.lane.b32.xlu0 %v11531_v55, %s9082_s19  ;;  %v11709_v55 = vpop.f32.mrf.mxu3  ;;  %v3554_v0 = vld [vmem:[#allocation2 + $0x18c] sm:$0xff] }
 0x3fb   : > { %v3993_v47 = vpop.permute.xlu0 %3992  ;;  %v3995_v35 = vpop.permute.xlu1 %3994 }
 0x3fc   : > { %v4224_v14 = vsel %vm2655_vm4, %v4162_v24, %v3993_v47  ;;  %3770 = vrot.lane.b32.xlu2 %v3555_v1, %s9081_s18  ;;  %v11715_v47 = vld [vmem:[#allocation2 + $0x132] sm:$0xff]  ;;  %v3618_v1 = vld [vmem:[#allocation2 + $0x19e] sm:$0xff] }
 0x3fd   : > { %8430 = vmatmul.msk.f32.gmra.mxu2 %vm2847_vm5, %v11624_v9  ;;  %8499 = vmatmul.msk.f32.gmra.mxu3 %vm2847_vm5, %v4224_v14  ;;  %v11720_v14 = vpop.f32.mrf.mxu1 }
 0x400   : > { %v11711_v34 = vpop.f32.mrf.mxu2 }
 0x401   : > { %3772 = vrot.lane.b32.xlu1 %v3556_v40, %s9081_s18  ;;  %3768 = vrot.lane.b32.xlu0 %v3554_v0, %s9081_s18  ;;  %v11724_v22 = vpop.f32.mrf.mxu3  ;;  %v11727_v40 = vpop.permute.xlu2 %2459 }
 0x403   : > { %v3747_v24 = vpop.permute.xlu0 %3746  ;;  %v3749_v9 = vpop.permute.xlu1 %3748 }
 0x404   : > { %v4163_v19 = vsel %vm480_vm0, %v11715_v47, %v3747_v24  ;;  %4020 = vrot.lane.b32.xlu2 %v3618_v1, %s9082_s19  ;;  %v11731_v24 = vld [vmem:[#allocation2 + $0x13a] sm:$0xff]  ;;  %v3282_v1 = vadd.f32 %v11645_v41, %v11637_v27  ;;  %v3279_v27 = vadd.f32 %v11626_v4, %v11613_v5  ;;  %v3285_v5 = vadd.f32 %v11663_v32, %v11655_v57 }
 0x405   : > { %8431 = vmatmul.msk.f32.gmra.mxu2 %vm2847_vm5, %v2678_v43  ;;  %v4225_v63 = vsel %vm2655_vm4, %v4163_v19, %v3995_v35  ;;  %v4164_v43 = vsel %vm480_vm0, %v11731_v24, %v3749_v9  ;;  %v2617_v19 = vsel %vm480_vm0, %v11428_v59, %v2208_v45  ;;  %v14897_v59 = vmov 0.0  }
 0x406   : > { %8500 = vmatmul.msk.f32.gmra.mxu3 %vm2847_vm5, %v4225_v63  ;;  %v3558_v63 = vld [vmem:[#allocation2 + $0x1ac] sm:$0xff]  ;;  %5244 = vst.msk [vmem:[#allocation3 + $0x70] sm:$0xf] %vm5243_vm6, %v14897_v59  ;;  %v4673_v45 = vadd.f32 %v11641_v18, %v3282_v1  ;;  %v4674_v32 = vadd.f32 %v11659_v20, %v3285_v5 }
 0x408   : > { %v11729_v0 = vpop.f32.mrf.mxu2 }
 0x409   : > { %4022 = vrot.lane.b32.xlu1 %v3619_v15, %s9082_s19  ;;  %4018 = vrot.lane.b32.xlu0 %v3617_v11, %s9082_s19  ;;  %v3072_v15 = vpop.f32.mrf.mxu1  ;;  %v4226_v11 = vsel %vm2655_vm4, %v4164_v43, %v3997_v42  ;;  %v4507_v41 = vpop.f32.mrf.mxu3  ;;  %v4672_v42 = vadd.f32 %v11611_v7, %v3279_v27  ;;  %v11760_v43 = vld [vmem:[%s14499_s5] ss:$0 sm:$0xff] }
 0x40a   : > { %v11765_v18 = vadd.f32 %v11760_v43, %v4673_v45 }
 0x40b   : > { %v2456_v35 = vpop.permute.xlu0 %2455  ;;  %v2458_v25 = vpop.permute.xlu1 %2457  ;;  %v4738_v59 = vadd.f32 %v11760_v43, %v4672_v42 }
 0x40c   : > { %3776 = vrot.lane.b32.xlu2 %v3558_v63, %s9081_s18  ;;  %v2680_v30 = vsel %vm2655_vm4, %v2617_v19, %v2456_v35  ;;  %v3557_v19 = vld [vmem:[#allocation2 + $0x1a4] sm:$0xff]  ;;  %v11753_v35 = vpop.permute.xlu2 %2213  ;;  %v3559_v63 = vld [vmem:[#allocation2 + $0x1b4] sm:$0xff]  ;;  %v14635_v45 = vmax.f32 %v11765_v18, 0.0 }
 0x40d   : > { %8432 = vmatmul.msk.f32.gmra.mxu2 %vm2847_vm5, %v11668_v23  ;;  %8364 = vmatmul.msk.f32.gmra.mxu1 %vm2847_vm5, %v2680_v30 }
 0x40e   : > { %8501 = vmatmul.msk.f32.gmra.mxu3 %vm2847_vm5, %v4226_v11 }
 0x410   : > { %v3299_v9 = vpop.f32.mrf.mxu2 }
 0x411   : > { %v3300_v23 = vadd.f32 %v3299_v9, %v3072_v15  ;;  %3774 = vrot.lane.b32.xlu0 %v3557_v19, %s9081_s18  ;;  %v4510_v27 = vpop.f32.mrf.mxu3  ;;  %v3075_v57 = vpop.f32.mrf.mxu1 }
 0x413   : > { %v2210_v4 = vpop.permute.xlu0 %2209  ;;  %v2212_v15 = vpop.permute.xlu1 %2211  ;;  %v4679_v7 = vadd.f32 %v4507_v41, %v3300_v23  ;;  %v11778_v41 = vld [vmem:[#allocation2 + $0x142] sm:$0xff]  ;;  %v11783_v23 = vadd.f32 %v11760_v43, %v4674_v32 }
 0x414   : > { %v2618_v1 = vsel %vm480_vm0, %v11519_v54, %v2210_v4  ;;  %3778 = vrot.lane.b32.xlu2 %v3559_v63, %s9081_s18  ;;  %v3620_v54 = vld [vmem:[#allocation2 + $0x1ae] sm:$0xff]  ;;  %v4165_v20 = vsel %vm480_vm0, %v11778_v41, %v11704_v26  ;;  %v11788_v42 = vpop.permute.xlu2 %4002 }
 0x415   : > { %8433 = vmatmul.msk.f32.gmra.mxu2 %vm2847_vm5, %v2680_v30  ;;  %v2681_v11 = vsel %vm2655_vm4, %v2618_v1, %v2458_v25  ;;  %v4745_v19 = vadd.f32 %v11760_v43, %v4679_v7  ;;  %v4800_v30 = vmax.f32 %v4738_v59, 0.0  ;;  %v2619_v25 = vsel %vm480_vm0, %v11540_v44, %v2212_v15  ;;  %v3622_v1 = vld [vmem:[#allocation2 + $0x1be] sm:$0xff] }
 0x416   : > { %8365 = vmatmul.msk.f32.gmra.mxu1 %vm2847_vm5, %v2681_v11  ;;  %v4919_v7 = vrot.slane %v14635_v45, 2  ;;  %v3288_v59 = vadd.f32 %v11680_v50, %v11674_v38  ;;  %v14636_v38 = vmax.f32 %v11783_v23, 0.0  ;;  %v3484_v45 = vld [vmem:[#allocation2 + $0x14a] sm:$0xff] }
 0x417   : > { %v4918_v32 = vrot.slane %v4800_v30, 2 }
 0x418   : > { %v3302_v9 = vpop.f32.mrf.mxu2 }
 0x419   : > { %v3303_v4 = vadd.f32 %v3302_v9, %v3075_v57  ;;  %4024 = vrot.lane.b32.xlu0 %v3620_v54, %s9082_s19  ;;  %v4807_v57 = vmax.f32 %v4745_v19, 0.0  ;;  %v4513_v9 = vpop.f32.mrf.mxu3  ;;  %v3078_v50 = vpop.f32.mrf.mxu1  ;;  %v4675_v19 = vadd.f32 %v11678_v53, %v3288_v59  ;;  %v3291_v59 = vadd.f32 %v11691_v6, %v11685_v37 }
 0x41b   : > { %v4680_v5 = vadd.f32 %v4510_v27, %v3303_v4  ;;  %v3999_v63 = vpop.permute.xlu0 %3998  ;;  %v4001_v15 = vpop.permute.xlu1 %4000  ;;  %v2682_v27 = vsel %vm2655_vm4, %v2619_v25, %v11727_v40  ;;  %v4920_v4 = vsel %vm4917_vm7, %v4918_v32, %v4919_v7  ;;  %v4921_v25 = vrot.slane %v14636_v38, 2 }
 0x41c   : > { %v4227_v44 = vsel %vm2655_vm4, %v4165_v20, %v3999_v63  ;;  %4028 = vrot.lane.b32.xlu2 %v3622_v1, %s9082_s19  ;;  %v5082_v40 = vmax.f32 %v4800_v30, %v4920_v4  ;;  %v11813_v53 = vadd.f32 %v11760_v43, %v4675_v19 }
 0x41d   : > { %v4746_v26 = vadd.f32 %v11760_v43, %v4680_v5  ;;  %8434 = vmatmul.msk.f32.gmra.mxu2 %vm2847_vm5, %v2681_v11  ;;  %8502 = vmatmul.msk.f32.gmra.mxu3 %vm2847_vm5, %v4227_v44  ;;  %v3621_v5 = vld [vmem:[#allocation2 + $0x1b6] sm:$0xff]  ;;  %v11805_v11 = vrot.slane %v4807_v57, 2 }
 0x41e   : > { %8366 = vmatmul.msk.f32.gmra.mxu1 %vm2847_vm5, %v2682_v27 }
 0x41f   : > { %v4808_v54 = vmax.f32 %v4746_v26, 0.0 }
 0x420   : > { %v3305_v20 = vpop.f32.mrf.mxu2 }
 0x421   : > { %v4933_v63 = vrot.slane %v4808_v54, 2  ;;  %v3306_v1 = vadd.f32 %v3305_v20, %v3078_v50  ;;  %4026 = vrot.lane.b32.xlu0 %v3621_v5, %s9082_s19  ;;  %v11821_v20 = vpop.permute.xlu2 %3756  ;;  %v3081_v37 = vpop.f32.mrf.mxu1 }
 0x423   : > { %v4934_v44 = vsel %vm4917_vm7, %v11805_v11, %v4933_v63  ;;  %v4681_v26 = vadd.f32 %v4513_v9, %v3306_v1  ;;  %v3753_v32 = vpop.permute.xlu0 %3752  ;;  %v3755_v4 = vpop.permute.xlu1 %3754 }
 0x424   : > { %v11817_v50 = vmax.f32 %v4807_v57, %v4934_v44  ;;  %v4166_v30 = vsel %vm480_vm0, %v3484_v45, %v3753_v32  ;;  %4030 = vrot.lane.b32.xlu2 %v3623_v17, %s9082_s19  ;;  %v4922_v57 = vsel %vm4917_vm7, %v4919_v7, %v4921_v25  ;;  %v4803_v45 = vmax.f32 %v11813_v53, 0.0  ;;  %v4516_v1 = vpop.f32.mrf.mxu3  ;;  %v14898_v44 = vld [vmem:[#allocation73_spill] sm:$0xff] }
 0x425   : > { %v4747_v9 = vadd.f32 %v11760_v43, %v4681_v26  ;;  %8435 = vmatmul.msk.f32.gmra.mxu2 %vm2847_vm5, %v2682_v27  ;;  %v4228_v5 = vsel %vm2655_vm4, %v4166_v30, %v4001_v15  ;;  %v4676_v17 = vadd.f32 %v11689_v39, %v3291_v59  ;;  %v3485_v27 = vld [vmem:[#allocation2 + $0x152] sm:$0xff]  ;;  %v2620_v7 = vsel %vm480_vm0, %v11582_v52, %v11753_v35 }
 0x426   : > { %v5174_v19 = vmax.f32 %v5082_v40, %v11817_v50  ;;  %8503 = vmatmul.msk.f32.gmra.mxu3 %vm2847_vm5, %v4228_v5  ;;  %v4167_v15 = vsel %vm480_vm0, %v3485_v27, %v3755_v4  ;;  %v14899_v40 = vmax.f32 %v11765_v18, 0.0  ;;  %v4923_v5 = vrot.slane %v4803_v45, 2 }
 0x427   : > { %v4809_v6 = vmax.f32 %v4747_v9, 0.0 }
 0x428   : > { %v5274_v32 = vmul.f32 %v5174_v19, %v14898_v44  ;;  %v3308_v26 = vpop.f32.mrf.mxu2  ;;  %v5083_v30 = vmax.f32 %v14899_v40, %v4922_v57  ;;  %v11843_v19 = vadd.f32 %v11760_v43, %v4676_v17  ;;  %v3294_v57 = vadd.f32 %v11711_v34, %v11702_v62  ;;  %v14900_v44 = vld [vmem:[#allocation64_spill] sm:$0xff] }
 0x429   : > { %v4935_v38 = vrot.slane %v4809_v6, 2  ;;  %v3309_v2 = vadd.f32 %v3308_v26, %v3081_v37 }
 0x42a   : > { %5329 = vst.msk [vmem:[#allocation3 + $0x74] sm:$0xff] %vm2655_vm4, %v5274_v32  ;;  %v4804_v26 = vmax.f32 %v11843_v19, 0.0  ;;  %v4677_v27 = vadd.f32 %v11709_v55, %v3294_v57 }
 0x42b   : > { %v4936_v39 = vsel %vm4917_vm7, %v4933_v63, %v4935_v38  ;;  %v4682_v59 = vadd.f32 %v4516_v1, %v3309_v2  ;;  %v2462_v9 = vpop.permute.xlu0 %2461  ;;  %v2464_v4 = vpop.permute.xlu1 %2463  ;;  %v4229_v2 = vsel %vm2655_vm4, %v4167_v15, %v11788_v42  ;;  %v4924_v1 = vsel %vm4917_vm7, %v4921_v25, %v4923_v5 }
 0x42c   : > { %v11845_v37 = vmax.f32 %v4808_v54, %v4936_v39  ;;  %v2683_v18 = vsel %vm2655_vm4, %v2620_v7, %v2462_v9  ;;  %v3084_v54 = vpop.f32.mrf.mxu1  ;;  %v2466_v63 = vpop.permute.xlu2 %2465  ;;  %v14901_v39 = vmax.f32 %v11783_v23, 0.0  ;;  %v4925_v19 = vrot.slane %v4804_v26, 2 }
 0x42d   : > { %v4748_v52 = vadd.f32 %v11760_v43, %v4682_v59  ;;  %8367 = vmatmul.msk.f32.gmra.mxu1 %vm2847_vm5, %v2683_v18  ;;  %8436 = vmatmul.msk.f32.gmra.mxu2 %vm2847_vm5, %v2683_v18  ;;  %v4519_v34 = vpop.f32.mrf.mxu3  ;;  %v11870_v55 = vadd.f32 %v11760_v43, %v4677_v27 }
 0x42e   : > { %v5175_v35 = vmax.f32 %v5083_v30, %v11845_v37  ;;  %8504 = vmatmul.msk.f32.gmra.mxu3 %vm2847_vm5, %v4229_v2  ;;  %v5084_v59 = vmax.f32 %v14901_v39, %v4924_v1 }
 0x42f   : > { %v4810_v17 = vmax.f32 %v4748_v52, 0.0  ;;  %v4805_v1 = vmax.f32 %v11870_v55, 0.0 }
 0x430   : > { %v5275_v62 = vmul.f32 %v5175_v35, %v14900_v44  ;;  %v3311_v32 = vpop.f32.mrf.mxu2 }
 0x431   : > { %v4937_v40 = vrot.slane %v4810_v17, 2  ;;  %v3312_v7 = vadd.f32 %v3311_v32, %v3084_v54  ;;  %v4926_v54 = vsel %vm4917_vm7, %v4923_v5, %v4925_v19 }
 0x432   : > { %5330 = vst.msk [vmem:[#allocation3 + $0x7c] sm:$0xff] %vm2655_vm4, %v5275_v62 }
 0x433   : > { %v4938_v42 = vsel %vm4917_vm7, %v4935_v38, %v4937_v40  ;;  %v4683_v15 = vadd.f32 %v4519_v34, %v3312_v7  ;;  %v2216_v30 = vpop.permute.xlu0 %2215  ;;  %v2218_v18 = vpop.permute.xlu1 %2217  ;;  %v5467_v34 = vld [vmem:[#allocation3 + $0x74] sm:$0xff] }
 0x434   : > { %v11865_v25 = vmax.f32 %v4809_v6, %v4938_v42  ;;  %v2621_v9 = vsel %vm480_vm0, %v11600_v31, %v2216_v30  ;;  %v14902_v6 = vld [vmem:[#allocation10_spill] sm:$0xff]  ;;  %v3087_v35 = vpop.f32.mrf.mxu1  ;;  %v2220_v27 = vpop.permute.xlu2 %2219  ;;  %v2622_v7 = vsel %vm480_vm0, %v11615_v28, %v2218_v18  ;;  %v11894_v28 = vrot.slane %v4805_v1, 2 }
 0x435   : > { %v4749_v57 = vadd.f32 %v11760_v43, %v4683_v15  ;;  %v2684_v52 = vsel %vm2655_vm4, %v2621_v9, %v2464_v4  ;;  %v3486_v4 = vld [vmem:[#allocation2 + $0x15a] sm:$0xff]  ;;  %v4522_v42 = vpop.f32.mrf.mxu3  ;;  %v5085_v9 = vmax.f32 %v4803_v45, %v4926_v54  ;;  %v2685_v53 = vsel %vm2655_vm4, %v2622_v7, %v2466_v63  ;;  %v14903_v18 = vld [vmem:[#allocation74_spill] sm:$0xff] }
 0x436   : > { %v5176_v38 = vmax.f32 %v5084_v59, %v11865_v25  ;;  %8368 = vmatmul.msk.f32.gmra.mxu1 %vm2847_vm5, %v2684_v52  ;;  %8437 = vmatmul.msk.f32.gmra.mxu2 %vm2847_vm5, %v2684_v52  ;;  %v4168_v30 = vsel %vm480_vm0, %v3486_v4, %v11821_v20  ;;  %v3297_v20 = vadd.f32 %v11729_v0, %v11720_v14  ;;  %v3560_v54 = vld [vmem:[#allocation2 + $0x1bc] sm:$0xff] }
 0x437   : > { %v4811_v23 = vmax.f32 %v4749_v57, 0.0  ;;  %v4928_v14 = vsel %vm4917_vm7, %v4925_v19, %v11894_v28 }
 0x438   : > { %v5276_v2 = vmul.f32 %v5176_v38, %v14902_v6  ;;  %v3314_v31 = vpop.f32.mrf.mxu2  ;;  %v4678_v0 = vadd.f32 %v11724_v22, %v3297_v20 }
 0x439   : > { %v4939_v44 = vrot.slane %v4811_v23, 2  ;;  %v3315_v62 = vadd.f32 %v3314_v31, %v3087_v35  ;;  %v5468_v32 = vld [vmem:[#allocation3 + $0x7c] sm:$0xff]  ;;  %v3487_v35 = vld [vmem:[#allocation2 + $0x162] sm:$0xff] }
 0x43a   : > { %5331 = vst.msk [vmem:[#allocation3 + $0x84] sm:$0xff] %vm2655_vm4, %v5276_v2  ;;  %v8851_v15 = vpack.i.bf16 %v5468_v32, %v5467_v34  ;;  %v11920_v22 = vadd.f32 %v11760_v43, %v4678_v0  ;;  %v8567_v0 = vld [vmem:[%s14500_s6 + $0x170] sm:$0xff] }
 0x43b   : > { %v4940_v5 = vsel %vm4917_vm7, %v4937_v40, %v4939_v44  ;;  %v4684_v39 = vadd.f32 %v4522_v42, %v3315_v62  ;;  %v4005_v59 = vpop.permute.xlu0 %4004  ;;  %v4007_v38 = vpop.permute.xlu1 %4006  ;;  %v5086_v62 = vmax.f32 %v4804_v26, %v4928_v14  ;;  %v14904_v26 = vld [vmem:[#allocation69_spill] sm:$0xff] }
 0x43c   : > { %v11888_v57 = vmax.f32 %v4810_v17, %v4940_v5  ;;  %v4230_v52 = vsel %vm2655_vm4, %v4168_v30, %v4005_v59  ;;  %8852 = vrot.lane.b32.xlu1 %v8851_v15, %s9082_s19  ;;  %v4009_v34 = vpop.permute.xlu2 %4008  ;;  %v4806_v5 = vmax.f32 %v11920_v22, 0.0  ;;  %v3561_v14 = vld [vmem:[#allocation2 + $0x1c4] sm:$0xff] }
 0x43d   : > { %v11899_v40 = vadd.f32 %v11760_v43, %v4684_v39  ;;  %8505 = vmatmul.msk.f32.gmra.mxu3 %vm2847_vm5, %v4230_v52  ;;  %v8568_v52 = vld [vmem:[%s14500_s6 + $0x178] sm:$0xff] }
 0x43e   : > { %v5177_v45 = vmax.f32 %v5085_v9, %v11888_v57  ;;  %8369 = vmatmul.msk.f32.gmra.mxu1 %vm2847_vm5, %v2685_v53  ;;  %8438 = vmatmul.msk.f32.gmra.mxu2 %vm2847_vm5, %v2685_v53 }
 0x43f   : > { %v4812_v17 = vmax.f32 %v11899_v40, 0.0  ;;  %6397 = vmatpush.msrb.mxu1 %v8568_v52 }
 0x440   : > { %v5277_v6 = vmul.f32 %v5177_v45, %v14903_v18  ;;  %v3317_v15 = vpop.f32.mrf.mxu2  ;;  %v2623_v45 = vsel %vm480_vm0, %v11696_v16, %v2220_v27 }
 0x441   : > { %v4941_v2 = vrot.slane %v4812_v17, 2  ;;  %v5469_v59 = vld [vmem:[#allocation3 + $0x84] sm:$0xff]  ;;  %6398 = vmatpush.msrb.mxu1 %v8567_v0 }
 0x442   : > { %5332 = vst.msk [vmem:[#allocation3 + $0x8c] sm:$0xff] %vm2655_vm4, %v5277_v6  ;;  %v3489_v0 = vld [vmem:[#allocation2 + $0x172] sm:$0xff] }
 0x443   : > { %v4942_v63 = vsel %vm4917_vm7, %v4939_v44, %v4941_v2  ;;  %v3759_v31 = vpop.permute.xlu0 %3758  ;;  %v3761_v7 = vpop.permute.xlu1 %3760 }
 0x444   : > { %v11915_v32 = vmax.f32 %v4811_v23, %v4942_v63  ;;  %v4169_v4 = vsel %vm480_vm0, %v3487_v35, %v3759_v31  ;;  %3780 = vrot.lane.b32.xlu1 %v3560_v54, %s9081_s18  ;;  %v3090_v44 = vpop.f32.mrf.mxu1  ;;  %v3488_v23 = vld [vmem:[#allocation2 + $0x16a] sm:$0xff]  ;;  %v11942_v31 = vrot.slane %v4806_v5, 2 }
 0x445   : > { %v4231_v19 = vsel %vm2655_vm4, %v4169_v4, %v4007_v38  ;;  %v3318_v39 = vadd.f32 %v3317_v15, %v3090_v44  ;;  %v4170_v38 = vsel %vm480_vm0, %v3488_v23, %v3761_v7  ;;  %v8566_v54 = vld [vmem:[%s14500_s6 + $0x168] sm:$0xff]  ;;  %v8565_v7 = vld [vmem:[%s14500_s6 + $0x160] sm:$0xff]  ;;  %v8564_v44 = vld [vmem:[%s14500_s6 + $0x158] sm:$0xff] }
 0x446   : > { %v5178_v42 = vmax.f32 %v5086_v62, %v11915_v32  ;;  %8506 = vmatmul.msk.f32.gmra.mxu3 %vm2847_vm5, %v4231_v19  ;;  %v4232_v27 = vsel %vm2655_vm4, %v4170_v38, %v4009_v34  ;;  %v3763_v62 = vpop.permute.xlu2 %3762  ;;  %6399 = vmatpush.msrb.mxu1 %v8566_v54  ;;  %v4930_v19 = vsel %vm4917_vm7, %v11894_v28, %v11942_v31  ;;  %v3562_v23 = vld [vmem:[#allocation2 + $0x1cc] sm:$0xff] }
 0x447   : > { %v5087_v28 = vmax.f32 %v4805_v1, %v4930_v19  ;;  %v3563_v19 = vld [vmem:[#allocation2 + $0x1d4] sm:$0xff] }
 0x448   : > { %v5278_v30 = vmul.f32 %v5178_v42, %v14904_v26  ;;  %v8560_v42 = vld [vmem:[%s14500_s6 + $0x138] sm:$0xff]  ;;  %6400 = vmatpush.msrb.mxu1 %v8565_v7  ;;  %v3320_v52 = vpop.f32.mrf.mxu2 }
 0x449   : > { %v5470_v9 = vld [vmem:[#allocation3 + $0x8c] sm:$0xff]  ;;  %6222 = vmatpush.msrb.mxu0 %v8560_v42 }
 0x44a   : > { %5333 = vst.msk [vmem:[#allocation3 + $0x94] sm:$0xff] %vm2655_vm4, %v5278_v30  ;;  %v4525_v20 = vpop.f32.mrf.mxu3  ;;  %v8856_v53 = vpack.i.bf16 %v5470_v9, %v5469_v59  ;;  %v3624_v30 = vld [vmem:[#allocation2 + $0x1ce] sm:$0xff]  ;;  %6401 = vmatpush.msrb.mxu1 %v8564_v44  ;;  %v3625_v7 = vld [vmem:[#allocation2 + $0x1d6] sm:$0xff] }
 0x44b   : > { %v2468_v18 = vpop.permute.xlu0 %2467  ;;  %v4685_v6 = vadd.f32 %v4525_v20, %v3318_v39  ;;  %v2470_v63 = vpop.permute.xlu1 %2469 }
 0x44c   : > { %3782 = vrot.lane.b32.xlu1 %v3561_v14, %s9081_s18  ;;  %8857 = vrot.lane.b32.xlu0 %v8856_v53, %s9082_s19  ;;  %v2686_v35 = vsel %vm2655_vm4, %v2623_v45, %v2468_v18  ;;  %v14905_v53 = vld [vmem:[#allocation75_spill] sm:$0xff]  ;;  %v8559_v14 = vld [vmem:[%s14500_s6 + $0x130] sm:$0xff] }
 0x44d   : > { %v11945_v16 = vadd.f32 %v11760_v43, %v4685_v6  ;;  %8370 = vmatmul.msk.f32.gmra.mxu1 %vm2847_vm5, %v2686_v35  ;;  %8439 = vmatmul.msk.f32.gmra.mxu2 %vm2847_vm5, %v2686_v35  ;;  %v8561_v6 = vld [vmem:[%s14500_s6 + $0x140] sm:$0xff] }
 0x44e   : > { %8507 = vmatmul.msk.f32.gmra.mxu3 %vm2847_vm5, %v4232_v27  ;;  %v2472_v20 = vpop.permute.xlu2 %2471  ;;  %6223 = vmatpush.msrb.mxu0 %v8559_v14  ;;  %v4171_v27 = vsel %vm480_vm0, %v3489_v0, %v3763_v62  ;;  %v4932_v62 = vsel %vm4917_vm7, %v11942_v31, %v11805_v11 }
 0x44f   : > { %v4813_v4 = vmax.f32 %v11945_v16, 0.0 }
 0x451   : > { %v4943_v34 = vrot.slane %v4813_v4, 2 }
 0x453   : > { %v4944_v15 = vsel %vm4917_vm7, %v4941_v2, %v4943_v34  ;;  %v2222_v26 = vpop.permute.xlu0 %2221  ;;  %v2224_v9 = vpop.permute.xlu1 %2223  ;;  %v8563_v2 = vld [vmem:[%s14500_s6 + $0x150] sm:$0xff] }
 0x454   : > { %v11974_v39 = vmax.f32 %v4812_v17, %v4944_v15  ;;  %v2624_v59 = vsel %vm480_vm0, %v11715_v47, %v2222_v26  ;;  %4032 = vrot.lane.b32.xlu1 %v3624_v30, %s9082_s19  ;;  %3784 = vrot.lane.b32.xlu0 %v3562_v23, %s9081_s18  ;;  %v8562_v47 = vld [vmem:[%s14500_s6 + $0x148] sm:$0xff]  ;;  %v3323_v30 = vpop.f32.mrf.mxu2 }
 0x455   : > { %v3093_v38 = vpop.f32.mrf.mxu1  ;;  %v2687_v55 = vsel %vm2655_vm4, %v2624_v59, %v2470_v63  ;;  %v4528_v17 = vpop.f32.mrf.mxu3  ;;  %6402 = vmatpush.msrb.mxu1 %v8563_v2  ;;  %v2625_v63 = vsel %vm480_vm0, %v11731_v24, %v2224_v9  ;;  %v5088_v9 = vmax.f32 %v4806_v5, %v4932_v62  ;;  %v14906_v5 = vld [vmem:[#allocation76_spill] sm:$0xff]  ;;  %v8558_v62 = vld [vmem:[%s14500_s6 + $0x128] sm:$0xff] }
 0x456   : > { %v5179_v1 = vmax.f32 %v5087_v28, %v11974_v39  ;;  %v3321_v40 = vadd.f32 %v3320_v52, %v3093_v38  ;;  %8371 = vmatmul.msk.f32.gmra.mxu1 %vm2847_vm5, %v2687_v55  ;;  %8440 = vmatmul.msk.f32.gmra.mxu2 %vm2847_vm5, %v2687_v55  ;;  %v2688_v24 = vsel %vm2655_vm4, %v2625_v63, %v2472_v20  ;;  %v5471_v38 = vld [vmem:[#allocation3 + $0x94] sm:$0xff]  ;;  %v2226_v31 = vpop.permute.xlu2 %2225 }
 0x457   : > { %6403 = vmatpush.msrb.mxu1 %v8562_v47  ;;  %v3490_v47 = vld [vmem:[#allocation2 + $0x17a] sm:$0xff]  ;;  %v2626_v63 = vsel %vm480_vm0, %v11778_v41, %v2226_v31  ;;  %6224 = vmatpush.msrb.mxu0 %v8558_v62 }
 0x458   : > { %v5279_v45 = vmul.f32 %v5179_v1, %v14905_v53  ;;  %v4686_v18 = vadd.f32 %v4528_v17, %v3321_v40  ;;  %v3626_v20 = vld [vmem:[#allocation2 + $0x1de] sm:$0xff] }
 0x459   : > { %6404 = vmatpush.msrb.mxu1 %v8561_v6  ;;  %v3491_v6 = vld [vmem:[#allocation2 + $0x182] sm:$0xff] }
 0x45a   : > { %5334 = vst.msk [vmem:[#allocation3 + $0x9c] sm:$0xff] %vm2655_vm4, %v5279_v45  ;;  %v4752_v35 = vadd.f32 %v11760_v43, %v4686_v18  ;;  %v8553_v62 = vld [vmem:[%s14500_s6 + $0x100] sm:$0xff] }
 0x45b   : > { %v4011_v54 = vpop.permute.xlu0 %4010  ;;  %v4013_v15 = vpop.permute.xlu1 %4012 }
 0x45c   : > { %v4814_v42 = vmax.f32 %v4752_v35, 0.0  ;;  %v4233_v44 = vsel %vm2655_vm4, %v4171_v27, %v4011_v54  ;;  %4034 = vrot.lane.b32.xlu1 %v3625_v7, %s9082_s19  ;;  %3786 = vrot.lane.b32.xlu0 %v3563_v19, %s9081_s18  ;;  %v3627_v54 = vld [vmem:[#allocation2 + $0x1e6] sm:$0xff]  ;;  %v3564_v7 = vld [vmem:[#allocation2 + $0x1dc] sm:$0xff] }
 0x45d   : > { %8508 = vmatmul.msk.f32.gmra.mxu3 %vm2847_vm5, %v4233_v44  ;;  %v4531_v52 = vpop.f32.mrf.mxu3 }
 0x45e   : > { %v4945_v26 = vrot.slane %v4814_v42, 2  ;;  %8372 = vmatmul.msk.f32.gmra.mxu1 %vm2847_vm5, %v2688_v24  ;;  %8441 = vmatmul.msk.f32.gmra.mxu2 %vm2847_vm5, %v2688_v24  ;;  %v4015_v19 = vpop.permute.xlu2 %4014 }
 0x45f   : > { %v3096_v23 = vpop.f32.mrf.mxu1 }
 0x460   : > { %v4946_v28 = vsel %vm4917_vm7, %v4943_v34, %v4945_v26  ;;  %v3324_v59 = vadd.f32 %v3323_v30, %v3096_v23 }
 0x461   : > { %v12017_v2 = vmax.f32 %v4813_v4, %v4946_v28  ;;  %v5472_v11 = vld [vmem:[#allocation3 + $0x9c] sm:$0xff] }
 0x462   : > { %v4687_v55 = vadd.f32 %v4531_v52, %v3324_v59  ;;  %v8861_v1 = vpack.i.bf16 %v5472_v11, %v5471_v38  ;;  %v12057_v59 = vld [vmem:[#allocation3 + $0x78] sm:$0xff]  ;;  %v3326_v38 = vpop.f32.mrf.mxu2 }
 0x463   : > { %v5180_v40 = vmax.f32 %v5088_v9, %v12017_v2  ;;  %v3765_v17 = vpop.permute.xlu0 %3764  ;;  %v3767_v45 = vpop.permute.xlu1 %3766  ;;  %v14908_v9 = vld [vmem:[#allocation66_spill] sm:$0xff] }
 0x464   : > { %v12021_v34 = vadd.f32 %v11760_v43, %v4687_v55  ;;  %v4172_v22 = vsel %vm480_vm0, %v3490_v47, %v3765_v17  ;;  %4036 = vrot.lane.b32.xlu0 %v3626_v20, %s9082_s19  ;;  %8862 = vrot.lane.b32.xlu2 %v8861_v1, %s9082_s19  ;;  %v4173_v0 = vsel %vm480_vm0, %v3491_v6, %v3767_v45  ;;  %v3628_v20 = vld [vmem:[#allocation2 + $0x1ee] sm:$0xff]  ;;  %v14909_v45 = vld [vmem:[#allocation67_spill] sm:$0xff] }
 0x465   : > { %v5280_v16 = vmul.f32 %v5180_v40, %v14906_v5  ;;  %v4234_v4 = vsel %vm2655_vm4, %v4172_v22, %v4013_v15  ;;  %v4235_v41 = vsel %vm2655_vm4, %v4173_v0, %v4015_v19  ;;  %v3493_v40 = vld [vmem:[#allocation2 + $0x192] sm:$0xff]  ;;  %v8557_v22 = vld [vmem:[%s14500_s6 + $0x120] sm:$0xff] }
 0x466   : > { %v4815_v53 = vmax.f32 %v12021_v34, 0.0  ;;  %8509 = vmatmul.msk.f32.gmra.mxu3 %vm2847_vm5, %v4234_v4  ;;  %v3771_v11 = vpop.permute.xlu2 %3770  ;;  %v12072_v4 = vld [vmem:[#allocation3 + $0x80] sm:$0xff]  ;;  %6225 = vmatpush.msrb.mxu0 %v8557_v22  ;;  %v8556_v6 = vld [vmem:[%s14500_s6 + $0x118] sm:$0xff] }
 0x467   : > { %5335 = vst.msk [vmem:[#allocation3 + $0xa4] sm:$0xff] %vm2655_vm4, %v5280_v16  ;;  %v4175_v47 = vsel %vm480_vm0, %v3493_v40, %v3771_v11  ;;  %v3099_v5 = vpop.f32.mrf.mxu1  ;;  %v8551_v11 = vld [vmem:[%s14500_s6 + $0xf0] sm:$0xff] }
 0x468   : > { %v12033_v18 = vrot.slane %v4815_v53, 2  ;;  %6226 = vmatpush.msrb.mxu0 %v8556_v6 }
 0x46a   : > { %v4948_v14 = vsel %vm4917_vm7, %v4945_v26, %v12033_v18  ;;  %v3492_v26 = vld [vmem:[#allocation2 + $0x18a] sm:$0xff] }
 0x46b   : > { %v12040_v35 = vmax.f32 %v4814_v42, %v4948_v14  ;;  %v2474_v27 = vpop.permute.xlu0 %2473  ;;  %v14907_v42 = vld [vmem:[#allocation24_spill] sm:$0xff]  ;;  %v4017_v23 = vpop.permute.xlu1 %4016  ;;  %v3327_v14 = vadd.f32 %v3326_v38, %v3099_v5 }
 0x46c   : > { %v2689_v44 = vsel %vm2655_vm4, %v2626_v63, %v2474_v27  ;;  %4038 = vrot.lane.b32.xlu0 %v3627_v54, %s9082_s19  ;;  %3788 = vrot.lane.b32.xlu2 %v3564_v7, %s9081_s18  ;;  %v8555_v63 = vld [vmem:[%s14500_s6 + $0x110] sm:$0xff]  ;;  %v3329_v54 = vpop.f32.mrf.mxu2  ;;  %v3494_v7 = vld [vmem:[#allocation2 + $0x19a] sm:$0xff] }
 0x46d   : > { %v5181_v15 = vmax.f32 %v11817_v50, %v12040_v35  ;;  %8373 = vmatmul.msk.f32.gmra.mxu1 %vm2847_vm5, %v2689_v44  ;;  %8442 = vmatmul.msk.f32.gmra.mxu2 %vm2847_vm5, %v2689_v44  ;;  %v3565_v50 = vld [vmem:[#allocation2 + $0x1e4] sm:$0xff] }
 0x46e   : > { %8510 = vmatmul.msk.f32.gmra.mxu3 %vm2847_vm5, %v4235_v41  ;;  %v5473_v31 = vld [vmem:[#allocation3 + $0xa4] sm:$0xff]  ;;  %6227 = vmatpush.msrb.mxu0 %v8555_v63  ;;  %v8554_v44 = vld [vmem:[%s14500_s6 + $0x108] sm:$0xff] }
 0x46f   : > { %v5281_v24 = vmul.f32 %v5181_v15, %v14907_v42  ;;  %v3566_v41 = vld [vmem:[#allocation2 + $0x1ec] sm:$0xff]  ;;  %v8548_v63 = vld [vmem:[%s14500_s6 + $0xd8] sm:$0xff] }
 0x470   : > { %6228 = vmatpush.msrb.mxu0 %v8554_v44 }
 0x471   : > { %5336 = vst.msk [vmem:[#allocation3 + $0xac] sm:$0xff] %vm2655_vm4, %v5281_v24  ;;  %v3629_v24 = vld [vmem:[#allocation2 + $0x1f6] sm:$0xff] }
 0x472   : > { %6229 = vmatpush.msrb.mxu0 %v8553_v62 }
 0x473   : > { %v3769_v30 = vpop.permute.xlu0 %3768  ;;  %v3773_v0 = vpop.permute.xlu1 %3772 }
 0x474   : > { %v4174_v28 = vsel %vm480_vm0, %v3492_v26, %v3769_v30  ;;  %3790 = vrot.lane.b32.xlu2 %v3565_v50, %s9081_s18  ;;  %v4176_v15 = vsel %vm480_vm0, %v3494_v7, %v3773_v0  ;;  %v4021_v26 = vpop.permute.xlu2 %4020  ;;  %v12097_v30 = vld [vmem:[#allocation3 + $0x88] sm:$0xff]  ;;  %v3332_v22 = vpop.f32.mrf.mxu2 }
 0x475   : > { %8443 = vmatmul.msk.f32.gmra.mxu2 %vm2847_vm5, %v14908_v9  ;;  %8569 = vmatmul.msk.f32.vlgmr.msrb.gmra.mxu1 %vm2655_vm4, %v12057_v59  ;;  %v4236_v52 = vsel %vm2655_vm4, %v4174_v28, %v4017_v23  ;;  %v14910_v23 = vld [vmem:[#allocation68_spill] sm:$0xff]  ;;  %v4238_v28 = vsel %vm2655_vm4, %v4176_v15, %v4021_v26  ;;  %v8552_v9 = vld [vmem:[%s14500_s6 + $0xf8] sm:$0xff] }
 0x476   : > { %8511 = vmatmul.msk.f32.gmra.mxu3 %vm2847_vm5, %v4236_v52  ;;  %6230 = vmatpush.msrb.mxu0 %v8552_v9 }
 0x478   : > { %v5474_v55 = vld [vmem:[#allocation3 + $0xac] sm:$0xff]  ;;  %6231 = vmatpush.msrb.mxu0 %v8551_v11 }
 0x479   : > { %v8866_v1 = vpack.i.bf16 %v5474_v55, %v5473_v31  ;;  %v3495_v55 = vld [vmem:[#allocation2 + $0x1a2] sm:$0xff] }
 0x47b   : > { %8867 = vrot.lane.b32.xlu1 %v8866_v1, %s9082_s19  ;;  %v4019_v17 = vpop.permute.xlu0 %4018  ;;  %v8550_v1 = vld [vmem:[%s14500_s6 + $0xe8] sm:$0xff] }
 0x47c   : > { %v4237_v16 = vsel %vm2655_vm4, %v4175_v47, %v4019_v17  ;;  %4040 = vrot.lane.b32.xlu2 %v3628_v20, %s9082_s19  ;;  %v3567_v17 = vld [vmem:[#allocation2 + $0x1f4] sm:$0xff]  ;;  %6232 = vmatpush.msrb.mxu0 %v8550_v1  ;;  %v3335_v11 = vpop.f32.mrf.mxu2 }
 0x47d   : > { %8444 = vmatmul.msk.f32.gmra.mxu2 %vm2847_vm5, %v14909_v45  ;;  %8570 = vmatmul.msk.f32.gmra.mxu1 %vm2655_vm4, %v12072_v4  ;;  %v4023_v45 = vpop.permute.xlu1 %4022 }
 0x47e   : > { %8512 = vmatmul.msk.f32.gmra.mxu3 %vm2847_vm5, %v4237_v16 }
 0x480   : > { %v4534_v27 = vpop.f32.mrf.mxu3 }
 0x481   : > { %v4688_v19 = vadd.f32 %v4534_v27, %v3327_v14  ;;  %v14911_v14 = vld [vmem:[#allocation70_spill] sm:$0xff]  ;;  %v14912_v27 = vld [vmem:[#allocation19_spill] sm:$0xff] }
 0x483   : > { %v12091_v42 = vadd.f32 %v11760_v43, %v4688_v19  ;;  %3792 = vrot.lane.b32.xlu1 %v3566_v41, %s9081_s18  ;;  %v3775_v52 = vpop.permute.xlu0 %3774  ;;  %v8547_v19 = vld [vmem:[%s14500_s6 + $0xd0] sm:$0xff]  ;;  %v8546_v41 = vld [vmem:[%s14500_s6 + $0xc8] sm:$0xff] }
 0x484   : > { %4042 = vrot.lane.b32.xlu2 %v3629_v24, %s9082_s19  ;;  %v4177_v47 = vsel %vm480_vm0, %v3495_v55, %v3775_v52  ;;  %v3496_v24 = vld [vmem:[#allocation2 + $0x1aa] sm:$0xff] }
 0x485   : > { %v4816_v50 = vmax.f32 %v12091_v42, 0.0  ;;  %8445 = vmatmul.msk.f32.gmra.mxu2 %vm2847_vm5, %v14910_v23  ;;  %8571 = vmatmul.msk.f32.gmra.mxu1 %vm2655_vm4, %v12097_v30  ;;  %v4239_v0 = vsel %vm2655_vm4, %v4177_v47, %v4023_v45  ;;  %v3630_v42 = vld [vmem:[#allocation2 + $0x1fe] sm:$0xff]  ;;  %v12154_v52 = vld [vmem:[#allocation3 + $0x98] sm:$0xff] }
 0x486   : > { %8513 = vmatmul.msk.f32.gmra.mxu3 %vm2847_vm5, %v4238_v28  ;;  %v8545_v23 = vld [vmem:[%s14500_s6 + $0xc0] sm:$0xff]  ;;  %v14913_v47 = vld [vmem:[#allocation57_spill] sm:$0xff] }
 0x487   : > { %v4949_v38 = vrot.slane %v4816_v50, 2 }
 0x489   : > { %v4950_v31 = vsel %vm4917_vm7, %v12033_v18, %v4949_v38  ;;  %v4537_v5 = vpop.f32.mrf.mxu3  ;;  %v8549_v18 = vld [vmem:[%s14500_s6 + $0xe0] sm:$0xff] }
 0x48a   : > { %v12120_v40 = vmax.f32 %v4815_v53, %v4950_v31  ;;  %v3102_v20 = vpop.f32.mrf.mxu1  ;;  %v12129_v53 = vld [vmem:[#allocation3 + $0x90] sm:$0xff]  ;;  %6233 = vmatpush.msrb.mxu0 %v8549_v18 }
 0x48b   : > { %3794 = vrot.lane.b32.xlu1 %v3567_v17, %s9081_s18  ;;  %v3330_v16 = vadd.f32 %v3329_v54, %v3102_v20  ;;  %v4025_v44 = vpop.permute.xlu0 %4024 }
 0x48c   : > { %v5182_v34 = vmax.f32 %v11845_v37, %v12120_v40  ;;  %6234 = vmatpush.msrb.mxu0 %v8548_v63  ;;  %v3777_v37 = vpop.permute.xlu2 %3776 }
 0x48d   : > { %v4689_v6 = vadd.f32 %v4537_v5, %v3330_v16  ;;  %8446 = vmatmul.msk.f32.gmra.mxu2 %vm2847_vm5, %v14911_v14  ;;  %8572 = vmatmul.msk.f32.gmra.mxu1 %vm2655_vm4, %v12129_v53  ;;  %v4178_v28 = vsel %vm480_vm0, %v3496_v24, %v3777_v37  ;;  %v14914_v16 = vld [vmem:[#allocation65_spill] sm:$0xff]  ;;  %v3497_v14 = vld [vmem:[#allocation2 + $0x1b2] sm:$0xff] }
 0x48e   : > { %v5282_v54 = vmul.f32 %v5182_v34, %v14912_v27  ;;  %8514 = vmatmul.msk.f32.gmra.mxu3 %vm2847_vm5, %v4239_v0  ;;  %6235 = vmatpush.msrb.mxu0 %v8547_v19  ;;  %v4240_v55 = vsel %vm2655_vm4, %v4178_v28, %v4025_v44  ;;  %v12172_v27 = vld [vmem:[#allocation3 + $0xa0] sm:$0xff] }
 0x48f   : > { %v4755_v7 = vadd.f32 %v11760_v43, %v4689_v6  ;;  %v3631_v6 = vld [vmem:[#allocation2 + $0x206] sm:$0xff] }
 0x490   : > { %5337 = vst.msk [vmem:[#allocation3 + $0xb4] sm:$0xff] %vm2655_vm4, %v5282_v54  ;;  %6236 = vmatpush.msrb.mxu0 %v8546_v41  ;;  %v14915_v54 = vld [vmem:[#allocation56_spill] sm:$0xff] }
 0x491   : > { %v4817_v15 = vmax.f32 %v4755_v7, 0.0  ;;  %v4540_v1 = vpop.f32.mrf.mxu3  ;;  %v3338_v7 = vpop.f32.mrf.mxu2 }
 0x492   : > { %6237 = vmatpush.msrb.mxu0 %v8545_v23 }
 0x493   : > { %v4951_v62 = vrot.slane %v4817_v15, 2  ;;  %4044 = vrot.lane.b32.xlu1 %v3630_v42, %s9082_s19  ;;  %v3105_v26 = vpop.f32.mrf.mxu1  ;;  %v4027_v45 = vpop.permute.xlu0 %4026 }
 0x494   : > { %v3333_v9 = vadd.f32 %v3332_v22, %v3105_v26  ;;  %v14916_v26 = vld [vmem:[#allocation15_spill] sm:$0xff] }
 0x495   : > { %v4952_v31 = vsel %vm4917_vm7, %v4949_v38, %v4951_v62  ;;  %8447 = vmatmul.msk.f32.gmra.mxu2 %vm2847_vm5, %v14913_v47  ;;  %8573 = vmatmul.msk.f32.gmra.mxu1 %vm2655_vm4, %v12154_v52  ;;  %v3779_v38 = vpop.permute.xlu2 %3778 }
 0x496   : > { %v12162_v17 = vmax.f32 %v4816_v50, %v4952_v31  ;;  %v4690_v20 = vadd.f32 %v4540_v1, %v3333_v9  ;;  %8515 = vmatmul.msk.f32.gmra.mxu3 %vm2847_vm5, %v4240_v55  ;;  %v4179_v50 = vsel %vm480_vm0, %v3497_v14, %v3779_v38  ;;  %v12187_v55 = vld [vmem:[#allocation3 + $0xa8] sm:$0xff] }
 0x497   : > { %v5475_v9 = vld [vmem:[#allocation3 + $0xb4] sm:$0xff]  ;;  %v3568_v14 = vld [vmem:[#allocation2 + $0x1fc] sm:$0xff] }
 0x498   : > { %v5183_v22 = vmax.f32 %v11865_v25, %v12162_v17  ;;  %v4756_v5 = vadd.f32 %v11760_v43, %v4690_v20  ;;  %v4241_v25 = vsel %vm2655_vm4, %v4179_v50, %v4027_v45  ;;  %v14919_v50 = vld [vmem:[#allocation17_spill] sm:$0xff] }
 0x49a   : > { %v5283_v18 = vmul.f32 %v5183_v22, %v14914_v16  ;;  %v4818_v34 = vmax.f32 %v4756_v5, 0.0 }
 0x49b   : > { %4046 = vrot.lane.b32.xlu1 %v3631_v6, %s9082_s19  ;;  %v3108_v63 = vpop.f32.mrf.mxu1  ;;  %v14918_v6 = vld [vmem:[#allocation72_spill] sm:$0xff] }
 0x49c   : > { %5338 = vst.msk [vmem:[#allocation3 + $0xbc] sm:$0xff] %vm2655_vm4, %v5283_v18  ;;  %v4953_v0 = vrot.slane %v4818_v34, 2  ;;  %v3336_v44 = vadd.f32 %v3335_v11, %v3108_v63  ;;  %v3341_v11 = vpop.f32.mrf.mxu2  ;;  %v12200_v18 = vld [vmem:[#allocation3 + $0xb0] sm:$0xff] }
 0x49d   : > { %8448 = vmatmul.msk.f32.gmra.mxu2 %vm2847_vm5, %v14915_v54  ;;  %8574 = vmatmul.msk.f32.gmra.mxu1 %vm2655_vm4, %v12172_v27 }
 0x49e   : > { %v4954_v37 = vsel %vm4917_vm7, %v4951_v62, %v4953_v0  ;;  %8516 = vmatmul.msk.f32.gmra.mxu3 %vm2847_vm5, %v4241_v25 }
 0x49f   : > { %v12181_v19 = vmax.f32 %v4817_v15, %v4954_v37  ;;  %v14917_v15 = vld [vmem:[#allocation23_spill] sm:$0xff] }
 0x4a0   : > { %v4543_v41 = vpop.f32.mrf.mxu3 }
 0x4a1   : > { %v5184_v42 = vmax.f32 %v11888_v57, %v12181_v19  ;;  %v4691_v24 = vadd.f32 %v4543_v41, %v3336_v44 }
 0x4a3   : > { %v5284_v23 = vmul.f32 %v5184_v42, %v14916_v26  ;;  %v4757_v28 = vadd.f32 %v11760_v43, %v4691_v24  ;;  %v5476_v31 = vld [vmem:[#allocation3 + $0xbc] sm:$0xff]  ;;  %v4029_v26 = vpop.permute.xlu2 %4028 }
 0x4a4   : > { %v8871_v62 = vpack.i.bf16 %v5476_v31, %v5475_v9  ;;  %v12214_v24 = vld [vmem:[#allocation3 + $0xb8] sm:$0xff] }
 0x4a5   : > { %5339 = vst.msk [vmem:[#allocation3 + $0xc4] sm:$0xff] %vm2655_vm4, %v5284_v23  ;;  %v4819_v1 = vmax.f32 %v4757_v28, 0.0  ;;  %8449 = vmatmul.msk.f32.gmra.mxu2 %vm2847_vm5, %v14917_v15  ;;  %8575 = vmatmul.msk.f32.gmra.mxu1 %vm2655_vm4, %v12187_v55  ;;  %v14920_v9 = vld [vmem:[#allocation9_spill] sm:$0xff] }
 0x4a6   : > { %8872 = vrot.lane.b32.xlu0 %v8871_v62, %s9082_s19  ;;  %v3569_v31 = vld [vmem:[#allocation2 + $0x204] sm:$0xff] }
 0x4a7   : > { %v4955_v57 = vrot.slane %v4819_v1, 2 }
 0x4a9   : > { %v4956_v47 = vsel %vm4917_vm7, %v4953_v0, %v4955_v57  ;;  %v4546_v5 = vpop.f32.mrf.mxu3 }
 0x4aa   : > { %v12196_v20 = vmax.f32 %v4818_v34, %v4956_v47  ;;  %v3111_v22 = vpop.f32.mrf.mxu1  ;;  %v3498_v47 = vld [vmem:[#allocation2 + $0x1ba] sm:$0xff] }
 0x4ab   : > { %v3339_v38 = vadd.f32 %v3338_v7, %v3111_v22  ;;  %v3344_v7 = vpop.f32.mrf.mxu2 }
 0x4ac   : > { %v5185_v16 = vmax.f32 %v11915_v32, %v12196_v20  ;;  %v5398_v32 = vld [vmem:[#allocation3 + $0x70] sm:$0xff] }
 0x4ad   : > { %v4692_v45 = vadd.f32 %v4546_v5, %v3339_v38  ;;  %8450 = vmatmul.msk.f32.gmra.mxu2 %vm2847_vm5, %v14918_v6  ;;  %8576 = vmatmul.msk.f32.gmra.mxu1 %vm2655_vm4, %v12200_v18  ;;  %v5477_v5 = vld [vmem:[#allocation3 + $0xc4] sm:$0xff] }
 0x4ae   : > { %v5285_v0 = vmul.f32 %v5185_v16, %v14919_v50  ;;  %v8853_v34 = vpop.permute.xlu1 %8852  ;;  %3796 = vrot.lane.b32.xlu0 %v3568_v14, %s9081_s18  ;;  %v12230_v16 = vld [vmem:[%s14499_s5] ss:$0 sm:$0xff]  ;;  %v14921_v50 = vld [vmem:[#allocation71_spill] sm:$0xff] }
 0x4af   : > { %v4758_v63 = vadd.f32 %v11760_v43, %v4692_v45  ;;  %v8854_v25 = vunpack.i.l.bf16 %v8853_v34  ;;  %v8855_v43 = vunpack.i.h.bf16 %v8853_v34 }
 0x4b0   : > { %5340 = vst.msk [vmem:[#allocation3 + $0xcc] sm:$0xff] %vm2655_vm4, %v5285_v0 }
 0x4b1   : > { %v4820_v54 = vmax.f32 %v4758_v63, 0.0  ;;  %v12211_v37 = vsel %vm2655_vm4, %v5398_v32, %v8854_v25  ;;  %v4549_v28 = vpop.f32.mrf.mxu3  ;;  %v12237_v14 = vsel %vm2655_vm4, %v12057_v59, %v8855_v43  ;;  %v12243_v25 = vld [vmem:[#allocation3 + $0xc0] sm:$0xff] }
 0x4b2   : > { %6238 = vmatmul.f32.vlgmr.msrb.gmra.mxu0 %v12211_v37  ;;  %v3632_v59 = vld [vmem:[#allocation2 + $0x20e] sm:$0xff] }
 0x4b3   : > { %v4957_v44 = vrot.slane %v4820_v54, 2  ;;  %v3114_v41 = vpop.f32.mrf.mxu1  ;;  %v3347_v32 = vpop.f32.mrf.mxu2 }
 0x4b4   : > { %v3342_v42 = vadd.f32 %v3341_v11, %v3114_v41  ;;  %v14922_v41 = vld [vmem:[#allocation5_spill] sm:$0xff] }
 0x4b5   : > { %v4958_v23 = vsel %vm4917_vm7, %v4955_v57, %v4957_v44  ;;  %8451 = vmatmul.msk.f32.gmra.mxu2 %vm2847_vm5, %v14920_v9  ;;  %8577 = vmatmul.msk.f32.gmra.mxu1 %vm2655_vm4, %v12214_v24 }
 0x4b6   : > { %v12221_v62 = vmax.f32 %v4819_v1, %v4958_v23  ;;  %v4693_v15 = vadd.f32 %v4549_v28, %v3342_v42  ;;  %v3781_v22 = vpop.permute.xlu1 %3780  ;;  %3798 = vrot.lane.b32.xlu0 %v3569_v31, %s9081_s18  ;;  %v4031_v28 = vpop.permute.xlu2 %4030 }
 0x4b7   : > { %v4180_v11 = vsel %vm480_vm0, %v3498_v47, %v3781_v22  ;;  %v5478_v57 = vld [vmem:[#allocation3 + $0xcc] sm:$0xff] }
 0x4b8   : > { %v5186_v38 = vmax.f32 %v11974_v39, %v12221_v62  ;;  %v4759_v1 = vadd.f32 %v12230_v16, %v4693_v15  ;;  %v4242_v45 = vsel %vm2655_vm4, %v4180_v11, %v4029_v26  ;;  %v8876_v6 = vpack.i.bf16 %v5478_v57, %v5477_v5  ;;  %v3499_v26 = vld [vmem:[#allocation2 + $0x1c2] sm:$0xff] }
 0x4b9   : > { %8517 = vmatmul.msk.f32.gmra.mxu3 %vm2847_vm5, %v4242_v45  ;;  %v12268_v45 = vld [vmem:[#allocation3 + $0xc8] sm:$0xff] }
 0x4ba   : > { %v5286_v0 = vmul.f32 %v5186_v38, %v14921_v50  ;;  %v4821_v34 = vmax.f32 %v4759_v1, 0.0  ;;  %6241 = vmatmul.f32.gmra.mxu0 %v12237_v14  ;;  %8877 = vrot.lane.b32.xlu2 %v8876_v6, %s9082_s19  ;;  %v3570_v38 = vld [vmem:[#allocation2 + $0x20c] sm:$0xff]  ;;  %v14924_v50 = vld [vmem:[#allocation31_spill] sm:$0xff] }
 0x4bb   : > { %v3117_v63 = vpop.f32.mrf.mxu1 }
 0x4bc   : > { %5341 = vst.msk [vmem:[#allocation3 + $0xd4] sm:$0xff] %vm2655_vm4, %v5286_v0  ;;  %v4959_v39 = vrot.slane %v4821_v34, 2  ;;  %v3345_v31 = vadd.f32 %v3344_v7, %v3117_v63  ;;  %v3500_v63 = vld [vmem:[#allocation2 + $0x1ca] sm:$0xff] }
 0x4bd   : > { %8452 = vmatmul.msk.f32.gmra.mxu2 %vm2847_vm5, %v14922_v41  ;;  %8578 = vmatmul.msk.f32.gmra.mxu1 %vm2655_vm4, %v12243_v25 }
 0x4be   : > { %v4960_v42 = vsel %vm4917_vm7, %v4957_v44, %v4959_v39  ;;  %v3783_v23 = vpop.permute.xlu1 %3782  ;;  %v8858_v43 = vpop.permute.xlu0 %8857  ;;  %4048 = vrot.lane.b32.xlu0 %v3632_v59, %s9082_s19 }
 0x4bf   : > { %v12251_v9 = vmax.f32 %v4820_v54, %v4960_v42  ;;  %v4181_v15 = vsel %vm480_vm0, %v3499_v26, %v3783_v23  ;;  %v8859_v47 = vunpack.i.l.bf16 %v8858_v43  ;;  %v14923_v54 = vld [vmem:[#allocation25_spill] sm:$0xff]  ;;  %v3350_v59 = vpop.f32.mrf.mxu2  ;;  %v8863_v42 = vpop.permute.xlu2 %8862 }
 0x4c0   : > { %v4552_v22 = vpop.f32.mrf.mxu3  ;;  %v4243_v11 = vsel %vm2655_vm4, %v4181_v15, %v4031_v28  ;;  %v3571_v15 = vld [vmem:[#allocation2 + $0x214] sm:$0xff] }
 0x4c1   : > { %v5187_v5 = vmax.f32 %v12017_v2, %v12251_v9  ;;  %v4694_v57 = vadd.f32 %v4552_v22, %v3345_v31  ;;  %8518 = vmatmul.msk.f32.gmra.mxu3 %vm2847_vm5, %v4243_v11  ;;  %v12260_v44 = vsel %vm2655_vm4, %v12072_v4, %v8859_v47  ;;  %v8860_v2 = vunpack.i.h.bf16 %v8858_v43  ;;  %v3633_v4 = vld [vmem:[#allocation2 + $0x216] sm:$0xff] }
 0x4c2   : > { %6244 = vmatmul.f32.gmra.mxu0 %v12260_v44  ;;  %3800 = vrot.lane.b32.xlu2 %v3570_v38, %s9081_s18 }
 0x4c3   : > { %v5287_v7 = vmul.f32 %v5187_v5, %v14923_v54  ;;  %v12266_v1 = vadd.f32 %v12230_v16, %v4694_v57  ;;  %v12283_v31 = vsel %vm2655_vm4, %v12097_v30, %v8860_v2  ;;  %v5479_v38 = vld [vmem:[#allocation3 + $0xd4] sm:$0xff] }
 0x4c4   : > { %v14926_v2 = vld [vmem:[#allocation77_spill] sm:$0xff] }
 0x4c5   : > { %5342 = vst.msk [vmem:[#allocation3 + $0xdc] sm:$0xff] %vm2655_vm4, %v5287_v7  ;;  %v4822_v6 = vmax.f32 %v12266_v1, 0.0  ;;  %8453 = vmatmul.msk.f32.gmra.mxu2 %vm2847_vm5, %v14924_v50  ;;  %8579 = vmatmul.msk.f32.gmra.mxu1 %vm2655_vm4, %v12268_v45  ;;  %v8864_v7 = vunpack.i.l.bf16 %v8863_v42  ;;  %v14925_v1 = vld [vmem:[#allocation7_spill] sm:$0xff] }
 0x4c6   : > { %v4033_v0 = vpop.permute.xlu1 %4032  ;;  %v3785_v41 = vpop.permute.xlu0 %3784  ;;  %4050 = vrot.lane.b32.xlu0 %v3633_v4, %s9082_s19 }
 0x4c7   : > { %v4961_v26 = vrot.slane %v4822_v6, 2  ;;  %v4182_v23 = vsel %vm480_vm0, %v3500_v63, %v3785_v41 }
 0x4c8   : > { %v4244_v43 = vsel %vm2655_vm4, %v4182_v23, %v4033_v0  ;;  %v3353_v23 = vpop.f32.mrf.mxu2 }
 0x4c9   : > { %v4962_v28 = vsel %vm4917_vm7, %v4959_v39, %v4961_v26  ;;  %8519 = vmatmul.msk.f32.gmra.mxu3 %vm2847_vm5, %v4244_v43  ;;  %v4555_v11 = vpop.f32.mrf.mxu3  ;;  %v12291_v39 = vld [vmem:[#allocation3 + $0xd0] sm:$0xff]  ;;  %v3789_v43 = vpop.permute.xlu2 %3788 }
 0x4ca   : > { %v12285_v47 = vmax.f32 %v4821_v34, %v4962_v28  ;;  %6247 = vmatmul.f32.gmra.mxu0 %v12283_v31  ;;  %3802 = vrot.lane.b32.xlu2 %v3571_v15, %s9081_s18  ;;  %v3120_v22 = vpop.f32.mrf.mxu1  ;;  %v12306_v15 = vsel %vm2655_vm4, %v12129_v53, %v8864_v7 }
 0x4cb   : > { %v3348_v5 = vadd.f32 %v3347_v32, %v3120_v22  ;;  %v3501_v32 = vld [vmem:[#allocation2 + $0x1d2] sm:$0xff]  ;;  %v3634_v22 = vld [vmem:[#allocation2 + $0x21e] sm:$0xff] }
 0x4cc   : > { %v5188_v57 = vmax.f32 %v12040_v35, %v12285_v47  ;;  %v5480_v54 = vld [vmem:[#allocation3 + $0xdc] sm:$0xff] }
 0x4cd   : > { %v4695_v30 = vadd.f32 %v4555_v11, %v3348_v5  ;;  %8454 = vmatmul.msk.f32.gmra.mxu2 %vm2847_vm5, %v14925_v1  ;;  %8580 = vmatmul.msk.f32.gmra.mxu1 %vm2655_vm4, %v12291_v39  ;;  %v8881_v34 = vpack.i.bf16 %v5480_v54, %v5479_v38  ;;  %v12310_v38 = vld [vmem:[#allocation3 + $0xd8] sm:$0xff]  ;;  %v8865_v54 = vunpack.i.h.bf16 %v8863_v42 }
 0x4ce   : > { %v5288_v50 = vmul.f32 %v5188_v57, %v14926_v2  ;;  %v4035_v4 = vpop.permute.xlu1 %4034  ;;  %v3787_v0 = vpop.permute.xlu0 %3786  ;;  %v14927_v2 = vld [vmem:[#allocation32_spill] sm:$0xff] }
 0x4cf   : > { %v4761_v35 = vadd.f32 %v12230_v16, %v4695_v30  ;;  %v4183_v63 = vsel %vm480_vm0, %v3501_v32, %v3787_v0  ;;  %8882 = vrot.lane.b32.xlu1 %v8881_v34, %s9082_s19  ;;  %v3502_v30 = vld [vmem:[#allocation2 + $0x1da] sm:$0xff]  ;;  %v12328_v0 = vsel %vm2655_vm4, %v12154_v52, %v8865_v54 }
 0x4d0   : > { %5343 = vst.msk [vmem:[#allocation3 + $0xe4] sm:$0xff] %vm2655_vm4, %v5288_v50  ;;  %v4245_v41 = vsel %vm2655_vm4, %v4183_v63, %v4035_v4  ;;  %v4184_v53 = vsel %vm480_vm0, %v3502_v30, %v3789_v43  ;;  %v3356_v43 = vpop.f32.mrf.mxu2  ;;  %v3503_v30 = vld [vmem:[#allocation2 + $0x1e2] sm:$0xff] }
 0x4d1   : > { %v4823_v28 = vmax.f32 %v4761_v35, 0.0  ;;  %8520 = vmatmul.msk.f32.gmra.mxu3 %vm2847_vm5, %v4245_v41  ;;  %v4558_v34 = vpop.f32.mrf.mxu3  ;;  %14928 = vst [vmem:[#allocation93_spill] sm:$0xff] %v12328_v0  ;;  %v14929_v35 = vld [vmem:[#allocation82_spill] sm:$0xff] }
 0x4d2   : > { %6249 = vmatmul.f32.gmra.mxu0 %v12306_v15  ;;  %4052 = vrot.lane.b32.xlu2 %v3634_v22, %s9082_s19  ;;  %v3791_v22 = vpop.permute.xlu2 %3790 }
 0x4d3   : > { %v4963_v11 = vrot.slane %v4823_v28, 2  ;;  %v3123_v5 = vpop.f32.mrf.mxu1  ;;  %v4185_v52 = vsel %vm480_vm0, %v3503_v30, %v3791_v22  ;;  %v3636_v22 = vld [vmem:[#allocation2 + $0x22e] sm:$0xff] }
 0x4d4   : > { %v3351_v57 = vadd.f32 %v3350_v59, %v3123_v5  ;;  %v3572_v59 = vld [vmem:[#allocation2 + $0x21c] sm:$0xff] }
 0x4d5   : > { %v4964_v1 = vsel %vm4917_vm7, %v4961_v26, %v4963_v11  ;;  %8455 = vmatmul.msk.f32.gmra.mxu2 %vm2847_vm5, %v14927_v2  ;;  %8581 = vmatmul.msk.f32.gmra.mxu1 %vm2655_vm4, %v12310_v38  ;;  %v3573_v2 = vld [vmem:[#allocation2 + $0x224] sm:$0xff] }
 0x4d6   : > { %v12318_v7 = vmax.f32 %v4822_v6, %v4964_v1  ;;  %v4696_v50 = vadd.f32 %v4558_v34, %v3351_v57  ;;  %v4037_v4 = vpop.permute.xlu0 %4036  ;;  %v3635_v6 = vld [vmem:[#allocation2 + $0x226] sm:$0xff]  ;;  %v14930_v1 = vld [vmem:[#allocation22_spill] sm:$0xff] }
 0x4d7   : > { %v4246_v32 = vsel %vm2655_vm4, %v4184_v53, %v4037_v4  ;;  %3804 = vrot.lane.b32.xlu1 %v3572_v59, %s9081_s18  ;;  %v12334_v57 = vld [vmem:[#allocation3 + $0xe0] sm:$0xff] }
 0x4d8   : > { %v5189_v42 = vmax.f32 %v12120_v40, %v12318_v7  ;;  %v4762_v26 = vadd.f32 %v12230_v16, %v4696_v50 }
 0x4d9   : > { %8521 = vmatmul.msk.f32.gmra.mxu3 %vm2847_vm5, %v4246_v32 }
 0x4da   : > { %v5289_v63 = vmul.f32 %v5189_v42, %v14929_v35  ;;  %v4824_v41 = vmax.f32 %v4762_v26, 0.0  ;;  %6251 = vmatmul.f32.gmra.mxu0 %v12328_v0  ;;  %4054 = vrot.lane.b32.xlu2 %v3635_v6, %s9082_s19  ;;  %v14931_v26 = vld [vmem:[#allocation89_spill] sm:$0xff] }
 0x4db   : > { %v3126_v5 = vpop.f32.mrf.mxu1 }
 0x4dc   : > { %5344 = vst.msk [vmem:[#allocation3 + $0xec] sm:$0xff] %vm2655_vm4, %v5289_v63  ;;  %v4965_v40 = vrot.slane %v4824_v41, 2  ;;  %v3354_v50 = vadd.f32 %v3353_v23, %v3126_v5  ;;  %v3359_v5 = vpop.f32.mrf.mxu2 }
 0x4dd   : > { %8456 = vmatmul.msk.f32.gmra.mxu2 %vm2847_vm5, %v14930_v1  ;;  %8582 = vmatmul.msk.f32.gmra.mxu1 %vm2655_vm4, %v12334_v57  ;;  %v14932_v1 = vld [vmem:[#allocation13_spill] sm:$0xff] }
 0x4de   : > { %v4966_v54 = vsel %vm4917_vm7, %v4963_v11, %v4965_v40  ;;  %v4039_v34 = vpop.permute.xlu0 %4038 }
 0x4df   : > { %v12342_v53 = vmax.f32 %v4823_v28, %v4966_v54  ;;  %v4247_v4 = vsel %vm2655_vm4, %v4185_v52, %v4039_v34  ;;  %3806 = vrot.lane.b32.xlu1 %v3573_v2, %s9081_s18  ;;  %v5481_v28 = vld [vmem:[#allocation3 + $0xe4] sm:$0xff] }
 0x4e0   : > { %v4561_v59 = vpop.f32.mrf.mxu3 }
 0x4e1   : > { %v5190_v32 = vmax.f32 %v12162_v17, %v12342_v53  ;;  %v4697_v42 = vadd.f32 %v4561_v59, %v3354_v50  ;;  %8522 = vmatmul.msk.f32.gmra.mxu3 %vm2847_vm5, %v4247_v4  ;;  %v3574_v4 = vld [vmem:[#allocation2 + $0x22c] sm:$0xff] }
 0x4e3   : > { %v5290_v6 = vmul.f32 %v5190_v32, %v14931_v26  ;;  %v4763_v11 = vadd.f32 %v12230_v16, %v4697_v42  ;;  %v12351_v35 = vld [vmem:[#allocation3 + $0xe8] sm:$0xff] }
 0x4e4   : > { %v5482_v63 = vld [vmem:[#allocation3 + $0xec] sm:$0xff] }
 0x4e5   : > { %v8886_v23 = vpack.i.bf16 %v5482_v63, %v5481_v28  ;;  %5345 = vst.msk [vmem:[#allocation3 + $0xf4] sm:$0xff] %vm2655_vm4, %v5290_v6  ;;  %v4825_v30 = vmax.f32 %v4763_v11, 0.0  ;;  %8457 = vmatmul.msk.f32.gmra.mxu2 %vm2847_vm5, %v14932_v1  ;;  %8583 = vmatmul.msk.f32.gmra.mxu1 %vm2655_vm4, %v12351_v35  ;;  %v3637_v42 = vld [vmem:[#allocation2 + $0x236] sm:$0xff]  ;;  %v14933_v11 = vld [vmem:[#allocation37_spill] sm:$0xff] }
 0x4e7   : > { %8887 = vrot.lane.b32.xlu0 %v8886_v23, %s9082_s19  ;;  %v4967_v17 = vrot.slane %v4825_v30, 2  ;;  %4056 = vrot.lane.b32.xlu1 %v3636_v22, %s9082_s19 }
 0x4e9   : > { %v4968_v52 = vsel %vm4917_vm7, %v4965_v40, %v4967_v17  ;;  %v4564_v54 = vpop.f32.mrf.mxu3 }
 0x4ea   : > { %v12361_v34 = vmax.f32 %v4824_v41, %v4968_v52  ;;  %v3129_v2 = vpop.f32.mrf.mxu1 }
 0x4eb   : > { %v3357_v50 = vadd.f32 %v3356_v43, %v3129_v2  ;;  %v3362_v43 = vpop.f32.mrf.mxu2  ;;  %v3575_v2 = vld [vmem:[#allocation2 + $0x234] sm:$0xff] }
 0x4ec   : > { %v5191_v59 = vmax.f32 %v12181_v19, %v12361_v34  ;;  %v12365_v32 = vld [vmem:[#allocation3 + $0xf0] sm:$0xff]  ;;  %v14934_v19 = vld [vmem:[#allocation78_spill] sm:$0xff] }
 0x4ed   : > { %v4698_v26 = vadd.f32 %v4564_v54, %v3357_v50  ;;  %v8868_v6 = vpop.permute.xlu1 %8867  ;;  %8458 = vmatmul.msk.f32.gmra.mxu2 %vm2847_vm5, %v14933_v11  ;;  %8584 = vmatmul.msk.f32.gmra.mxu1 %vm2655_vm4, %v12365_v32  ;;  %v3360_v63 = vadd.f32 %v3359_v5, %v14934_v19  ;;  %v4041_v50 = vpop.permute.xlu2 %4040  ;;  %v14936_v11 = vld [vmem:[#allocation29_spill] sm:$0xff] }
 0x4ee   : > { %v5291_v41 = vmul.f32 %v5191_v59, %v11066_v13  ;;  %v8869_v40 = vunpack.i.l.bf16 %v8868_v6 }
 0x4ef   : > { %3808 = vrot.lane.b32.xlu0 %v3574_v4, %s9081_s18  ;;  %v4764_v28 = vadd.f32 %v12230_v16, %v4698_v26  ;;  %4058 = vrot.lane.b32.xlu1 %v3637_v42, %s9082_s19  ;;  %v8870_v4 = vunpack.i.h.bf16 %v8868_v6  ;;  %v3504_v42 = vld [vmem:[#allocation2 + $0x1ea] sm:$0xff] }
 0x4f0   : > { %5346 = vst.msk [vmem:[#allocation3 + $0xfc] sm:$0xff] %vm2655_vm4, %v5291_v41  ;;  %v12379_v23 = vsel %vm2655_vm4, %v12172_v27, %v8869_v40 }
 0x4f1   : > { %14935 = vst [vmem:[#allocation73_spill] sm:$0xff] %v12379_v23  ;;  %v4826_v22 = vmax.f32 %v4764_v28, 0.0  ;;  %6253 = vmatmul.f32.gmra.mxu0 %v12379_v23  ;;  %v4567_v13 = vpop.f32.mrf.mxu3  ;;  %v14937_v28 = vld [vmem:[#allocation40_spill] sm:$0xff] }
 0x4f2   : > { %v4699_v1 = vadd.f32 %v4567_v13, %v3360_v63  ;;  %v12382_v52 = vpop.f32.mrf.mxu1  ;;  %v3363_v19 = vadd.f32 %v3362_v43, %v14937_v28  ;;  %v5483_v13 = vld [vmem:[#allocation3 + $0xf4] sm:$0xff] }
 0x4f3   : > { %v4969_v54 = vrot.slane %v4826_v22, 2 }
 0x4f4   : > { %v4765_v59 = vadd.f32 %v12230_v16, %v4699_v1 }
 0x4f5   : > { %v4970_v5 = vsel %vm4917_vm7, %v4967_v17, %v4969_v54  ;;  %v3793_v26 = vpop.permute.xlu1 %3792  ;;  %8459 = vmatmul.msk.f32.gmra.mxu2 %vm2847_vm5, %v14936_v11 }
 0x4f6   : > { %v12388_v27 = vmax.f32 %v4825_v30, %v4970_v5  ;;  %v4827_v41 = vmax.f32 %v4765_v59, 0.0  ;;  %v4186_v40 = vsel %vm480_vm0, %v3504_v42, %v3793_v26  ;;  %v12401_v30 = vsel %vm2655_vm4, %v12187_v55, %v8870_v4  ;;  %v3638_v55 = vld [vmem:[#allocation2 + $0x23e] sm:$0xff] }
 0x4f7   : > { %3810 = vrot.lane.b32.xlu0 %v3575_v2, %s9081_s18  ;;  %v4248_v6 = vsel %vm2655_vm4, %v4186_v40, %v4041_v50  ;;  %v12394_v63 = vld [vmem:[#allocation3 + $0xf8] sm:$0xff]  ;;  %14938 = vst [vmem:[#allocation64_spill] sm:$0xff] %v12401_v30  ;;  %v3365_v2 = vpop.f32.mrf.mxu2  ;;  %v3505_v40 = vld [vmem:[#allocation2 + $0x1f2] sm:$0xff] }
 0x4f8   : > { %v5484_v17 = vld [vmem:[#allocation3 + $0xfc] sm:$0xff]  ;;  %v5192_v1 = vmax.f32 %v12196_v20, %v12388_v27  ;;  %v4971_v23 = vrot.slane %v4827_v41, 2  ;;  %8523 = vmatmul.msk.f32.gmra.mxu3 %vm2847_vm5, %v4248_v6  ;;  %8585 = vmatmul.msk.f32.gmra.mxu1 %vm2655_vm4, %v12394_v63 }
 0x4f9   : > { %v8891_v43 = vpack.i.bf16 %v5484_v17, %v5483_v13  ;;  %6255 = vmatmul.f32.gmra.mxu0 %v12401_v30  ;;  %v4570_v50 = vpop.f32.mrf.mxu3  ;;  %v3576_v17 = vld [vmem:[#allocation2 + $0x23c] sm:$0xff] }
 0x4fa   : > { %v5292_v59 = vmul.f32 %v5192_v1, %v11089_v49  ;;  %v4972_v5 = vsel %vm4917_vm7, %v4969_v54, %v4971_v23  ;;  %v4700_v20 = vadd.f32 %v4570_v50, %v3363_v19  ;;  %v12409_v42 = vpop.f32.mrf.mxu1  ;;  %v14939_v49 = vld [vmem:[#allocation43_spill] sm:$0xff]  ;;  %v4043_v54 = vpop.permute.xlu2 %4042  ;;  %v14940_v1 = vld [vmem:[#allocation36_spill] sm:$0xff] }
 0x4fb   : > { %8892 = vrot.lane.b32.xlu2 %v8891_v43, %s9082_s19  ;;  %v12411_v26 = vmax.f32 %v4826_v22, %v4972_v5  ;;  %v3366_v43 = vadd.f32 %v3365_v2, %v14940_v1 }
 0x4fc   : > { %5347 = vst.msk [vmem:[#allocation3 + $0x104] sm:$0xff] %vm2655_vm4, %v5292_v59  ;;  %v4766_v4 = vadd.f32 %v12230_v16, %v4700_v20 }
 0x4fd   : > { %v5193_v11 = vmax.f32 %v12221_v62, %v12411_v26  ;;  %v3795_v28 = vpop.permute.xlu1 %3794  ;;  %8460 = vmatmul.msk.f32.gmra.mxu2 %vm2847_vm5, %v14939_v49  ;;  %v3577_v49 = vld [vmem:[#allocation2 + $0x244] sm:$0xff] }
 0x4fe   : > { %v4828_v19 = vmax.f32 %v4766_v4, 0.0  ;;  %v4187_v6 = vsel %vm480_vm0, %v3505_v40, %v3795_v28  ;;  %v14941_v28 = vld [vmem:[#allocation79_spill] sm:$0xff] }
 0x4ff   : > { %4060 = vrot.lane.b32.xlu0 %v3638_v55, %s9082_s19  ;;  %v5293_v22 = vmul.f32 %v5193_v11, %v11196_v33  ;;  %v4249_v13 = vsel %vm2655_vm4, %v4187_v6, %v4043_v54  ;;  %v3368_v62 = vpop.f32.mrf.mxu2  ;;  %v3639_v11 = vld [vmem:[#allocation2 + $0x246] sm:$0xff]  ;;  %v14942_v54 = vld [vmem:[#allocation39_spill] sm:$0xff] }
 0x500   : > { %v4973_v50 = vrot.slane %v4828_v19, 2  ;;  %8524 = vmatmul.msk.f32.gmra.mxu3 %vm2847_vm5, %v4249_v13  ;;  %v3369_v6 = vadd.f32 %v3368_v62, %v14942_v54 }
 0x501   : > { %5348 = vst.msk [vmem:[#allocation3 + $0x10c] sm:$0xff] %vm2655_vm4, %v5293_v22  ;;  %v4573_v59 = vpop.f32.mrf.mxu3 }
 0x502   : > { %v4974_v5 = vsel %vm4917_vm7, %v4971_v23, %v4973_v50  ;;  %v4701_v20 = vadd.f32 %v4573_v59, %v3366_v43  ;;  %v12427_v4 = vpop.f32.mrf.mxu1 }
 0x503   : > { %3812 = vrot.lane.b32.xlu2 %v3576_v17, %s9081_s18  ;;  %v12430_v33 = vmax.f32 %v4827_v41, %v4974_v5  ;;  %v12432_v55 = vld [vmem:[#allocation3 + $0x100] sm:$0xff] }
 0x504   : > { %v4767_v2 = vadd.f32 %v12230_v16, %v4701_v20  ;;  %8586 = vmatmul.msk.f32.gmra.mxu1 %vm2655_vm4, %v12432_v55  ;;  %v5485_v13 = vld [vmem:[#allocation3 + $0x104] sm:$0xff] }
 0x505   : > { %v5194_v40 = vmax.f32 %v12251_v9, %v12430_v33  ;;  %8461 = vmatmul.msk.f32.gmra.mxu2 %vm2847_vm5, %v14941_v28 }
 0x506   : > { %v4829_v23 = vmax.f32 %v4767_v2, 0.0 }
 0x507   : > { %4062 = vrot.lane.b32.xlu0 %v3639_v11, %s9082_s19  ;;  %v5294_v41 = vmul.f32 %v5194_v40, %v11262_v36  ;;  %v3371_v20 = vpop.f32.mrf.mxu2 }
 0x508   : > { %v4975_v22 = vrot.slane %v4829_v23, 2  ;;  %v5486_v17 = vld [vmem:[#allocation3 + $0x10c] sm:$0xff] }
 0x509   : > { %5349 = vst.msk [vmem:[#allocation3 + $0x114] sm:$0xff] %vm2655_vm4, %v5294_v41  ;;  %v4576_v1 = vpop.f32.mrf.mxu3  ;;  %v8896_v43 = vpack.i.bf16 %v5486_v17, %v5485_v13  ;;  %v12450_v36 = vld [vmem:[#allocation3 + $0x108] sm:$0xff]  ;;  %v14944_v41 = vld [vmem:[#allocation84_spill] sm:$0xff] }
 0x50a   : > { %v4976_v9 = vsel %vm4917_vm7, %v4973_v50, %v4975_v22  ;;  %v4702_v59 = vadd.f32 %v4576_v1, %v3369_v6  ;;  %v6415_v5 = vpop.f32.mrf.mxu1  ;;  %v14943_v50 = vld [vmem:[#allocation80_spill] sm:$0xff]  ;;  %v3578_v6 = vld [vmem:[#allocation2 + $0x24c] sm:$0xff] }
 0x50b   : > { %3814 = vrot.lane.b32.xlu2 %v3577_v49, %s9081_s18  ;;  %v12447_v11 = vmax.f32 %v4828_v19, %v4976_v9  ;;  %8897 = vrot.lane.b32.xlu1 %v8896_v43, %s9082_s19  ;;  %v3640_v19 = vld [vmem:[#allocation2 + $0x24e] sm:$0xff]  ;;  %v3372_v49 = vadd.f32 %v3371_v20, %v14944_v41 }
 0x50c   : > { %v4768_v62 = vadd.f32 %v12230_v16, %v4702_v59  ;;  %8587 = vmatmul.msk.f32.gmra.mxu1 %vm2655_vm4, %v12450_v36 }
 0x50d   : > { %v5195_v2 = vmax.f32 %v12285_v47, %v12447_v11  ;;  %8462 = vmatmul.msk.f32.gmra.mxu2 %vm2847_vm5, %v14943_v50 }
 0x50e   : > { %v4830_v40 = vmax.f32 %v4768_v62, 0.0  ;;  %v3641_v62 = vld [vmem:[#allocation2 + $0x256] sm:$0xff] }
 0x50f   : > { %v5295_v28 = vmul.f32 %v5195_v2, %v11275_v8  ;;  %v3374_v59 = vpop.f32.mrf.mxu2  ;;  %v14946_v2 = vld [vmem:[#allocation85_spill] sm:$0xff] }
 0x510   : > { %v4977_v54 = vrot.slane %v4830_v40, 2  ;;  %v12467_v9 = vld [vmem:[#allocation3 + $0x110] sm:$0xff]  ;;  %v3375_v50 = vadd.f32 %v3374_v59, %v14946_v2  ;;  %v4045_v2 = vpop.permute.xlu1 %4044 }
 0x511   : > { %5350 = vst.msk [vmem:[#allocation3 + $0x11c] sm:$0xff] %vm2655_vm4, %v5295_v28  ;;  %v4579_v13 = vpop.f32.mrf.mxu3  ;;  %v5487_v41 = vld [vmem:[#allocation3 + $0x114] sm:$0xff] }
 0x512   : > { %v4978_v17 = vsel %vm4917_vm7, %v4975_v22, %v4977_v54  ;;  %v4703_v1 = vadd.f32 %v4579_v13, %v3372_v49  ;;  %v6417_v43 = vpop.f32.mrf.mxu1  ;;  %v14945_v22 = vld [vmem:[#allocation38_spill] sm:$0xff] }
 0x513   : > { %4064 = vrot.lane.b32.xlu2 %v3640_v19, %s9082_s19  ;;  %v12464_v47 = vmax.f32 %v4829_v23, %v4978_v17  ;;  %3816 = vrot.lane.b32.xlu1 %v3578_v6, %s9081_s18  ;;  %v3579_v6 = vld [vmem:[#allocation2 + $0x254] sm:$0xff] }
 0x514   : > { %v4769_v8 = vadd.f32 %v12230_v16, %v4703_v1  ;;  %8588 = vmatmul.msk.f32.gmra.mxu1 %vm2655_vm4, %v12467_v9 }
 0x515   : > { %v5196_v5 = vmax.f32 %v12318_v7, %v12464_v47  ;;  %8463 = vmatmul.msk.f32.gmra.mxu2 %vm2847_vm5, %v14945_v22 }
 0x516   : > { %v4831_v20 = vmax.f32 %v4769_v8, 0.0 }
 0x517   : > { %v5296_v23 = vmul.f32 %v5196_v5, %v11252_v3 }
 0x518   : > { %v4979_v28 = vrot.slane %v4831_v20, 2  ;;  %v8873_v19 = vpop.permute.xlu0 %8872  ;;  %v5488_v49 = vld [vmem:[#allocation3 + $0x11c] sm:$0xff] }
 0x519   : > { %5351 = vst.msk [vmem:[#allocation3 + $0x124] sm:$0xff] %vm2655_vm4, %v5296_v23  ;;  %v8874_v13 = vunpack.i.l.bf16 %v8873_v19  ;;  %v4582_v17 = vpop.f32.mrf.mxu3  ;;  %v8901_v1 = vpack.i.bf16 %v5488_v49, %v5487_v41  ;;  %v12489_v59 = vld [vmem:[#allocation3 + $0x118] sm:$0xff]  ;;  %v14949_v41 = vld [vmem:[#allocation51_spill] sm:$0xff] }
 0x51a   : > { %v4980_v7 = vsel %vm4917_vm7, %v4977_v54, %v4979_v28  ;;  %v4704_v43 = vadd.f32 %v4582_v17, %v3375_v50  ;;  %v6419_v22 = vpop.f32.mrf.mxu1  ;;  %v3377_v54 = vpop.f32.mrf.mxu2  ;;  %v14948_v23 = vld [vmem:[#allocation81_spill] sm:$0xff]  ;;  %v8875_v50 = vunpack.i.h.bf16 %v8873_v19 }
 0x51b   : > { %4066 = vrot.lane.b32.xlu2 %v3641_v62, %s9082_s19  ;;  %v12481_v3 = vmax.f32 %v4830_v40, %v4980_v7  ;;  %8902 = vrot.lane.b32.xlu0 %v8901_v1, %s9082_s19  ;;  %v12487_v8 = vsel %vm2655_vm4, %v12200_v18, %v8874_v13  ;;  %v3378_v49 = vadd.f32 %v3377_v54, %v14949_v41  ;;  %v3506_v13 = vld [vmem:[#allocation2 + $0x1fa] sm:$0xff]  ;;  %v12502_v7 = vpop.permute.xlu2 %8877 }
 0x51c   : > { %3818 = vrot.lane.b32.xlu1 %v3579_v6, %s9081_s18  ;;  %14947 = vst [vmem:[#allocation10_spill] sm:$0xff] %v12487_v8  ;;  %v4770_v5 = vadd.f32 %v12230_v16, %v4704_v43  ;;  %6257 = vmatmul.f32.gmra.mxu0 %v12487_v8  ;;  %v3580_v1 = vld [vmem:[#allocation2 + $0x25c] sm:$0xff]  ;;  %v12513_v54 = vsel %vm2655_vm4, %v12214_v24, %v8875_v50 }
 0x51d   : > { %8589 = vmatmul.msk.f32.gmra.mxu1 %vm2655_vm4, %v12489_v59  ;;  %v5197_v40 = vmax.f32 %v12342_v53, %v12481_v3  ;;  %8464 = vmatmul.msk.f32.gmra.mxu2 %vm2847_vm5, %v14948_v23  ;;  %v3642_v22 = vld [vmem:[#allocation2 + $0x25e] sm:$0xff]  ;;  %14950 = vst [vmem:[#allocation74_spill] sm:$0xff] %v12513_v54 }
 0x51e   : > { %v4832_v62 = vmax.f32 %v4770_v5, 0.0  ;;  %v3507_v50 = vld [vmem:[#allocation2 + $0x202] sm:$0xff] }
 0x51f   : > { %v5297_v18 = vmul.f32 %v5197_v40, %v11378_v10 }
 0x520   : > { %v4981_v6 = vrot.slane %v4832_v62, 2  ;;  %v3797_v17 = vpop.permute.xlu0 %3796 }
 0x521   : > { %5352 = vst.msk [vmem:[#allocation3 + $0x12c] sm:$0xff] %vm2655_vm4, %v5297_v18  ;;  %v4188_v53 = vsel %vm480_vm0, %v3506_v13, %v3797_v17  ;;  %v4585_v43 = vpop.f32.mrf.mxu3  ;;  %v3581_v13 = vld [vmem:[#allocation2 + $0x264] sm:$0xff] }
 0x522   : > { %v4982_v5 = vsel %vm4917_vm7, %v4979_v28, %v4981_v6  ;;  %v4705_v23 = vadd.f32 %v4585_v43, %v3378_v49  ;;  %v6421_v8 = vpop.f32.mrf.mxu1  ;;  %v4250_v10 = vsel %vm2655_vm4, %v4188_v53, %v4045_v2  ;;  %v12520_v28 = vld [vmem:[#allocation3 + $0x120] sm:$0xff]  ;;  %v8879_v2 = vunpack.i.l.bf16 %v12502_v7 }
 0x523   : > { %v12507_v19 = vmax.f32 %v4831_v20, %v4982_v5  ;;  %8525 = vmatmul.msk.f32.gmra.mxu3 %vm2847_vm5, %v4250_v10  ;;  %3820 = vrot.lane.b32.xlu0 %v3580_v1, %s9081_s18  ;;  %v14951_v8 = vld [vmem:[#allocation83_spill] sm:$0xff]  ;;  %v4047_v1 = vpop.permute.xlu1 %4046  ;;  %v3801_v10 = vpop.permute.xlu2 %3800 }
 0x524   : > { %v12516_v40 = vadd.f32 %v12230_v16, %v4705_v23  ;;  %6259 = vmatmul.f32.gmra.mxu0 %v12513_v54  ;;  %4068 = vrot.lane.b32.xlu1 %v3642_v22, %s9082_s19  ;;  %v3643_v23 = vld [vmem:[#allocation2 + $0x266] sm:$0xff]  ;;  %v14963_v54 = vld [vmem:[#allocation94_spill] sm:$0xff] }
 0x525   : > { %v5198_v20 = vmax.f32 %v12361_v34, %v12507_v19  ;;  %8590 = vmatmul.msk.f32.gmra.mxu1 %vm2655_vm4, %v12520_v28  ;;  %8465 = vmatmul.msk.f32.gmra.mxu2 %vm2847_vm5, %v14951_v8  ;;  %v5489_v34 = vld [vmem:[#allocation3 + $0x124] sm:$0xff]  ;;  %v12546_v8 = vsel %vm2655_vm4, %v12243_v25, %v8879_v2  ;;  %v8880_v25 = vunpack.i.h.bf16 %v12502_v7  ;;  %v3508_v2 = vld [vmem:[#allocation2 + $0x20a] sm:$0xff] }
 0x526   : > { %v14639_v24 = vmax.f32 %v12516_v40, 0.0  ;;  %14952 = vst [vmem:[#allocation69_spill] sm:$0xff] %v12546_v8 }
 0x527   : > { %v5298_v18 = vmul.f32 %v5198_v20, %v11441_v58  ;;  %v12569_v7 = vsel %vm2655_vm4, %v12268_v45, %v8880_v25 }
 0x528   : > { %v12533_v41 = vrot.slane %v14639_v24, 2  ;;  %v3799_v49 = vpop.permute.xlu0 %3798  ;;  %v5490_v17 = vld [vmem:[#allocation3 + $0x12c] sm:$0xff]  ;;  %14954 = vst [vmem:[#allocation75_spill] sm:$0xff] %v12569_v7 }
 0x529   : > { %5353 = vst.msk [vmem:[#allocation3 + $0x134] sm:$0xff] %vm2655_vm4, %v5298_v18  ;;  %v4189_v53 = vsel %vm480_vm0, %v3507_v50, %v3799_v49  ;;  %v8906_v43 = vpack.i.bf16 %v5490_v17, %v5489_v34  ;;  %v14953_v50 = vld [vmem:[#allocation53_spill] sm:$0xff]  ;;  %v4190_v34 = vsel %vm480_vm0, %v3508_v2, %v3801_v10 }
 0x52a   : > { %v4984_v22 = vsel %vm4917_vm7, %v4981_v6, %v12533_v41  ;;  %v6423_v5 = vpop.f32.mrf.mxu1  ;;  %v4251_v58 = vsel %vm2655_vm4, %v4189_v53, %v4047_v1  ;;  %v12550_v6 = vld [vmem:[#allocation3 + $0x128] sm:$0xff]  ;;  %v3582_v53 = vld [vmem:[#allocation2 + $0x26c] sm:$0xff] }
 0x52b   : > { %v12540_v20 = vmax.f32 %v4832_v62, %v4984_v22  ;;  %8526 = vmatmul.msk.f32.gmra.mxu3 %vm2847_vm5, %v4251_v58  ;;  %3822 = vrot.lane.b32.xlu0 %v3581_v13, %s9081_s18  ;;  %v3380_v62 = vpop.f32.mrf.mxu2  ;;  %v3803_v22 = vpop.permute.xlu2 %3802  ;;  %v14955_v5 = vld [vmem:[#allocation35_spill] sm:$0xff] }
 0x52c   : > { %8907 = vrot.lane.b32.xlu2 %v8906_v43, %s9082_s19  ;;  %6261 = vmatmul.f32.gmra.mxu0 %v12546_v8  ;;  %v3509_v58 = vld [vmem:[#allocation2 + $0x212] sm:$0xff] }
 0x52d   : > { %v5199_v18 = vmax.f32 %v12388_v27, %v12540_v20  ;;  %4070 = vrot.lane.b32.xlu1 %v3643_v23, %s9082_s19  ;;  %8591 = vmatmul.msk.f32.gmra.mxu1 %vm2655_vm4, %v12550_v6  ;;  %v3644_v27 = vld [vmem:[#allocation2 + $0x26e] sm:$0xff]  ;;  %v4191_v10 = vsel %vm480_vm0, %v3509_v58, %v3803_v22  ;;  %v8722_v22 = vld [vmem:[%s14500_s6 + $0x1f8] sm:$0xff] }
 0x52e   : > { %8466 = vmatmul.msk.f32.gmra.mxu2 %vm2847_vm5, %v14953_v50  ;;  %v8730_v58 = vld [vmem:[%s14500_s6 + $0x238] sm:$0xff]  ;;  %7648 = vmatpush.msra.mxu0 %v8722_v22 }
 0x52f   : > { %v5299_v49 = vmul.f32 %v5199_v18, %v11392_v60  ;;  %v12561_v13 = vpop.f32.mrf.mxu0  ;;  %7823 = vmatpush.msra.mxu1 %v8730_v58  ;;  %v14962_v8 = vld [vmem:[#allocation47_spill] sm:$0xff] }
 0x530   : > { %v4049_v17 = vpop.permute.xlu0 %4048  ;;  %v12573_v60 = vld [vmem:[#allocation3 + $0x130] sm:$0xff] }
 0x531   : > { %5354 = vst.msk [vmem:[#allocation3 + $0x13c] sm:$0xff] %vm2655_vm4, %v5299_v49  ;;  %v4252_v1 = vsel %vm2655_vm4, %v4190_v34, %v4049_v17  ;;  %v5491_v50 = vld [vmem:[#allocation3 + $0x134] sm:$0xff]  ;;  %v3645_v34 = vld [vmem:[#allocation2 + $0x276] sm:$0xff] }
 0x532   : > { %v6425_v43 = vpop.f32.mrf.mxu1  ;;  %v3583_v17 = vld [vmem:[#allocation2 + $0x274] sm:$0xff] }
 0x533   : > { %8527 = vmatmul.msk.f32.gmra.mxu3 %vm2847_vm5, %v4252_v1  ;;  %4072 = vrot.lane.b32.xlu0 %v3644_v27, %s9082_s19  ;;  %v3383_v45 = vpop.f32.mrf.mxu2  ;;  %v14956_v1 = vld [vmem:[#allocation88_spill] sm:$0xff] }
 0x534   : > { %6263 = vmatmul.f32.gmra.mxu0 %v12569_v7  ;;  %3824 = vrot.lane.b32.xlu2 %v3582_v53, %s9081_s18  ;;  %v3381_v53 = vadd.f32 %v3380_v62, %v14956_v1  ;;  %v3585_v7 = vld [vmem:[#allocation2 + $0x284] sm:$0xff] }
 0x535   : > { %8592 = vmatmul.msk.f32.gmra.mxu1 %vm2655_vm4, %v12573_v60 }
 0x536   : > { %8467 = vmatmul.msk.f32.gmra.mxu2 %vm2847_vm5, %v14955_v5 }
 0x537   : > { %v12580_v23 = vpop.f32.mrf.mxu0 }
 0x538   : > { %v4051_v18 = vpop.permute.xlu0 %4050  ;;  %v5492_v25 = vld [vmem:[#allocation3 + $0x13c] sm:$0xff] }
 0x539   : > { %v4253_v2 = vsel %vm2655_vm4, %v4191_v10, %v4051_v18  ;;  %v8911_v49 = vpack.i.bf16 %v5492_v25, %v5491_v50  ;;  %v12588_v5 = vld [vmem:[#allocation3 + $0x138] sm:$0xff]  ;;  %v3584_v25 = vld [vmem:[#allocation2 + $0x27c] sm:$0xff] }
 0x53a   : > { %v6427_v27 = vpop.f32.mrf.mxu1  ;;  %v14957_v10 = vld [vmem:[#allocation97_spill] sm:$0xff] }
 0x53b   : > { %8528 = vmatmul.msk.f32.gmra.mxu3 %vm2847_vm5, %v4253_v2  ;;  %8912 = vrot.lane.b32.xlu1 %v8911_v49, %s9082_s19 }
 0x53c   : > { %v4588_v43 = vpop.f32.mrf.mxu3  ;;  %4074 = vrot.lane.b32.xlu0 %v3645_v34, %s9082_s19  ;;  %3826 = vrot.lane.b32.xlu2 %v3583_v17, %s9081_s18  ;;  %v3646_v34 = vld [vmem:[#allocation2 + $0x27e] sm:$0xff]  ;;  %v3386_v17 = vpop.f32.mrf.mxu2 }
 0x53d   : > { %v4706_v62 = vadd.f32 %v4588_v43, %v3381_v53  ;;  %8593 = vmatmul.msk.f32.gmra.mxu1 %vm2655_vm4, %v12588_v5  ;;  %v14958_v53 = vld [vmem:[#allocation90_spill] sm:$0xff] }
 0x53e   : > { %8468 = vmatmul.msk.f32.gmra.mxu2 %vm2847_vm5, %v14957_v10  ;;  %v3384_v43 = vadd.f32 %v3383_v45, %v14958_v53  ;;  %v14961_v45 = vld [vmem:[#allocation99_spill] sm:$0xff] }
 0x53f   : > { %v4772_v18 = vadd.f32 %v12230_v16, %v4706_v62  ;;  %v12602_v50 = vpop.f32.mrf.mxu0 }
 0x541   : > { %v4834_v2 = vmax.f32 %v4772_v18, 0.0  ;;  %v8883_v49 = vpop.permute.xlu1 %8882  ;;  %v14960_v18 = vmax.f32 %v12516_v40, 0.0 }
 0x542   : > { %v8884_v27 = vunpack.i.l.bf16 %v8883_v49  ;;  %v6429_v1 = vpop.f32.mrf.mxu1 }
 0x543   : > { %v4985_v24 = vrot.slane %v4834_v2, 2  ;;  %3828 = vrot.lane.b32.xlu1 %v3584_v25, %s9081_s18 }
 0x544   : > { %v4591_v22 = vpop.f32.mrf.mxu3  ;;  %v12608_v58 = vsel %vm2655_vm4, %v12291_v39, %v8884_v27  ;;  %4076 = vrot.lane.b32.xlu2 %v3646_v34, %s9082_s19  ;;  %v4053_v39 = vpop.permute.xlu2 %4052  ;;  %v8885_v27 = vunpack.i.h.bf16 %v8883_v49 }
 0x545   : > { %14959 = vst [vmem:[#allocation76_spill] sm:$0xff] %v12608_v58  ;;  %v4986_v62 = vsel %vm4917_vm7, %v12533_v41, %v4985_v24  ;;  %v4707_v10 = vadd.f32 %v4591_v22, %v3384_v43  ;;  %6265 = vmatmul.f32.gmra.mxu0 %v12608_v58  ;;  %v3510_v43 = vld [vmem:[#allocation2 + $0x21a] sm:$0xff]  ;;  %v3647_v58 = vld [vmem:[#allocation2 + $0x286] sm:$0xff] }
 0x546   : > { %v12616_v1 = vmax.f32 %v14960_v18, %v4986_v62  ;;  %8469 = vmatmul.msk.f32.gmra.mxu2 %vm2847_vm5, %v14961_v45  ;;  %v3387_v45 = vadd.f32 %v3386_v17, %v14963_v54  ;;  %v12632_v49 = vsel %vm2655_vm4, %v12310_v38, %v8885_v27 }
 0x547   : > { %v4773_v25 = vadd.f32 %v12230_v16, %v4707_v10  ;;  %v6248_v53 = vpop.f32.mrf.mxu0  ;;  %14964 = vst [vmem:[#allocation24_spill] sm:$0xff] %v12632_v49 }
 0x548   : > { %v5200_v34 = vmax.f32 %v12411_v26, %v12616_v1  ;;  %v3389_v53 = vpop.f32.mrf.mxu2 }
 0x549   : > { %v4835_v41 = vmax.f32 %v4773_v25, 0.0  ;;  %v3805_v22 = vpop.permute.xlu1 %3804 }
 0x54a   : > { %v5300_v40 = vmul.f32 %v5200_v34, %v14962_v8  ;;  %v4192_v62 = vsel %vm480_vm0, %v3510_v43, %v3805_v22  ;;  %v6431_v18 = vpop.f32.mrf.mxu1  ;;  %v3648_v34 = vld [vmem:[#allocation2 + $0x28e] sm:$0xff]  ;;  %v3511_v22 = vld [vmem:[#allocation2 + $0x222] sm:$0xff] }
 0x54b   : > { %v4987_v30 = vrot.slane %v4835_v41, 2  ;;  %3830 = vrot.lane.b32.xlu1 %v3585_v7, %s9081_s18  ;;  %v4254_v10 = vsel %vm2655_vm4, %v4192_v62, %v4053_v39  ;;  %v14966_v18 = vld [vmem:[#allocation95_spill] sm:$0xff] }
 0x54c   : > { %5355 = vst.msk [vmem:[#allocation3 + $0x144] sm:$0xff] %vm2655_vm4, %v5300_v40  ;;  %v4594_v26 = vpop.f32.mrf.mxu3  ;;  %8529 = vmatmul.msk.f32.gmra.mxu3 %vm2847_vm5, %v4254_v10  ;;  %4078 = vrot.lane.b32.xlu2 %v3647_v58, %s9082_s19  ;;  %v4055_v27 = vpop.permute.xlu2 %4054  ;;  %v14965_v40 = vld [vmem:[#allocation42_spill] sm:$0xff] }
 0x54d   : > { %v4988_v8 = vsel %vm4917_vm7, %v4985_v24, %v4987_v30  ;;  %v4708_v54 = vadd.f32 %v4594_v26, %v3387_v45  ;;  %6267 = vmatmul.f32.gmra.mxu0 %v12632_v49  ;;  %v3390_v45 = vadd.f32 %v3389_v53, %v14966_v18  ;;  %v2096_v18 = vld [vmem:[#allocation2 + $0x226] sm:$0x3f]  ;;  %v3586_v49 = vld [vmem:[#allocation2 + $0x28c] sm:$0xff] }
 0x54e   : > { %v12637_v7 = vmax.f32 %v4834_v2, %v4988_v8  ;;  %v5883_v8 = vld [vmem:[%s14500_s6 + $0x78] sm:$0xff] }
 0x54f   : > { %v4774_v17 = vadd.f32 %v12230_v16, %v4708_v54  ;;  %v6250_v25 = vpop.f32.mrf.mxu0  ;;  %8818 = vmatpush.msra.mxu3 %v5883_v8  ;;  %6598 = vmatpush.msra.mxu2 %v5883_v8 }
 0x550   : > { %v5201_v39 = vmax.f32 %v12430_v33, %v12637_v7  ;;  %v3392_v25 = vpop.f32.mrf.mxu2 }
 0x551   : > { %v4836_v43 = vmax.f32 %v4774_v17, 0.0  ;;  %v3807_v38 = vpop.permute.xlu1 %3806  ;;  %v8721_v17 = vld [vmem:[%s14500_s6 + $0x1f0] sm:$0xff] }
 0x552   : > { %v5301_v58 = vmul.f32 %v5201_v39, %v14965_v40  ;;  %v4193_v24 = vsel %vm480_vm0, %v3511_v22, %v3807_v38  ;;  %v6433_v62 = vpop.f32.mrf.mxu1  ;;  %7649 = vmatpush.msra.mxu0 %v8721_v17 }
 0x553   : > { %v4989_v2 = vrot.slane %v4836_v43, 2  ;;  %4080 = vrot.lane.b32.xlu1 %v3648_v34, %s9082_s19  ;;  %v12646_v10 = vld [vmem:[#allocation3 + $0x140] sm:$0xff]  ;;  %v4255_v26 = vsel %vm2655_vm4, %v4193_v24, %v4055_v27 }
 0x554   : > { %5356 = vst.msk [vmem:[#allocation3 + $0x14c] sm:$0xff] %vm2655_vm4, %v5301_v58  ;;  %v4597_v33 = vpop.f32.mrf.mxu3  ;;  %8594 = vmatmul.msk.f32.gmra.mxu1 %vm2655_vm4, %v12646_v10  ;;  %8530 = vmatmul.msk.f32.gmra.mxu3 %vm2847_vm5, %v4255_v26  ;;  %v14967_v58 = vld [vmem:[#allocation45_spill] sm:$0xff]  ;;  %v5493_v8 = vld [vmem:[#allocation3 + $0x144] sm:$0xff] }
 0x555   : > { %v4990_v53 = vsel %vm4917_vm7, %v4987_v30, %v4989_v2  ;;  %v4709_v54 = vadd.f32 %v4597_v33, %v3390_v45  ;;  %v14968_v45 = vld [vmem:[#allocation96_spill] sm:$0xff] }
 0x556   : > { %v12660_v39 = vmax.f32 %v4835_v41, %v4990_v53  ;;  %v3393_v26 = vadd.f32 %v3392_v25, %v14968_v45  ;;  %v14970_v45 = vld [vmem:[#allocation11_spill] sm:$0xff] }
 0x557   : > { %v4775_v34 = vadd.f32 %v12230_v16, %v4709_v54  ;;  %v6252_v22 = vpop.f32.mrf.mxu0 }
 0x558   : > { %v5202_v38 = vmax.f32 %v12447_v11, %v12660_v39 }
 0x559   : > { %v8888_v27 = vpop.permute.xlu0 %8887  ;;  %v4837_v40 = vmax.f32 %v4775_v34, 0.0  ;;  %v4057_v34 = vpop.permute.xlu1 %4056 }
 0x55a   : > { %v8889_v30 = vunpack.i.l.bf16 %v8888_v27  ;;  %v5302_v24 = vmul.f32 %v5202_v38, %v14967_v58  ;;  %v6435_v62 = vpop.f32.mrf.mxu1  ;;  %v12685_v38 = vld [vmem:[%s14499_s5] ss:$0 sm:$0xff]  ;;  %v3395_v58 = vpop.f32.mrf.mxu2 }
 0x55b   : > { %v4991_v33 = vrot.slane %v4837_v40, 2  ;;  %2529 = vrot.lane.b32.xlu1 %v2096_v18, %s9082_s19  ;;  %v12668_v41 = vld [vmem:[#allocation3 + $0x148] sm:$0xff]  ;;  %v8890_v62 = vunpack.i.h.bf16 %v8888_v27 }
 0x55c   : > { %v12672_v16 = vsel %vm2655_vm4, %v12334_v57, %v8889_v30  ;;  %v5494_v11 = vld [vmem:[#allocation3 + $0x14c] sm:$0xff]  ;;  %5357 = vst.msk [vmem:[#allocation3 + $0x154] sm:$0xff] %vm2655_vm4, %v5302_v24  ;;  %v4600_v53 = vpop.f32.mrf.mxu3  ;;  %8595 = vmatmul.msk.f32.gmra.mxu1 %vm2655_vm4, %v12668_v41  ;;  %v3512_v57 = vld [vmem:[#allocation2 + $0x22a] sm:$0xff] }
 0x55d   : > { %14969 = vst [vmem:[#allocation66_spill] sm:$0xff] %v12672_v16  ;;  %6269 = vmatmul.f32.gmra.mxu0 %v12672_v16  ;;  %v8916_v54 = vpack.i.bf16 %v5494_v11, %v5493_v8  ;;  %v4992_v17 = vsel %vm4917_vm7, %v4989_v2, %v4991_v33  ;;  %v4710_v25 = vadd.f32 %v4600_v53, %v3393_v26  ;;  %v14971_v11 = vld [vmem:[#allocation98_spill] sm:$0xff] }
 0x55e   : > { %v12679_v22 = vmax.f32 %v4836_v43, %v4992_v17  ;;  %v3396_v53 = vadd.f32 %v3395_v58, %v14971_v11  ;;  %v12703_v27 = vsel %vm2655_vm4, %v12351_v35, %v8890_v62  ;;  %v3513_v58 = vld [vmem:[#allocation2 + $0x232] sm:$0xff] }
 0x55f   : > { %8917 = vrot.lane.b32.xlu0 %v8916_v54, %s9082_s19  ;;  %v4776_v30 = vadd.f32 %v12685_v38, %v4710_v25  ;;  %v8893_v54 = vpop.permute.xlu2 %8892  ;;  %14972 = vst [vmem:[#allocation67_spill] sm:$0xff] %v12703_v27 }
 0x560   : > { %v5203_v24 = vmax.f32 %v12464_v47, %v12679_v22 }
 0x561   : > { %v3809_v2 = vpop.permute.xlu0 %3808  ;;  %v4838_v18 = vmax.f32 %v4776_v30, 0.0 }
 0x562   : > { %v4194_v43 = vsel %vm480_vm0, %v3512_v57, %v3809_v2  ;;  %v5303_v26 = vmul.f32 %v5203_v24, %v14970_v45  ;;  %v12710_v24 = vpop.f32.mrf.mxu1  ;;  %v8894_v45 = vunpack.i.l.bf16 %v8893_v54 }
 0x563   : > { %v4256_v8 = vsel %vm2655_vm4, %v4194_v43, %v4057_v34  ;;  %v4993_v17 = vrot.slane %v4838_v18, 2  ;;  %v5495_v25 = vld [vmem:[#allocation3 + $0x154] sm:$0xff]  ;;  %14973 = vst [vmem:[#allocation68_spill] sm:$0xff] %v12710_v24  ;;  %v4059_v43 = vpop.permute.xlu1 %4058 }
 0x564   : > { %8531 = vmatmul.msk.f32.gmra.mxu3 %vm2847_vm5, %v4256_v8  ;;  %v12695_v16 = vld [vmem:[#allocation3 + $0x150] sm:$0xff]  ;;  %5358 = vst.msk [vmem:[#allocation3 + $0x15c] sm:$0xff] %vm2655_vm4, %v5303_v26  ;;  %v4603_v47 = vpop.f32.mrf.mxu3  ;;  %5676 = vrot.lane.b32.xlu2 %v5495_v25, %s9082_s19  ;;  %v14974_v8 = vld [vmem:[#allocation14_spill] sm:$0xff] }
 0x565   : > { %8596 = vmatmul.msk.f32.gmra.mxu1 %vm2655_vm4, %v12695_v16  ;;  %v4994_v34 = vsel %vm4917_vm7, %v4991_v33, %v4993_v17  ;;  %v4711_v57 = vadd.f32 %v4603_v47, %v3396_v53  ;;  %6272 = vmatmul.f32.gmra.mxu0 %v12703_v27  ;;  %v3514_v25 = vld [vmem:[#allocation2 + $0x23a] sm:$0xff] }
 0x566   : > { %v12707_v30 = vmax.f32 %v4837_v40, %v4994_v34  ;;  %v3587_v40 = vld [vmem:[#allocation2 + $0x294] sm:$0x3f] }
 0x567   : > { %3832 = vrot.lane.b32.xlu0 %v3586_v49, %s9081_s18  ;;  %v12713_v2 = vadd.f32 %v12685_v38, %v4711_v57  ;;  %v3813_v47 = vpop.permute.xlu2 %3812  ;;  %v12733_v57 = vsel %vm2655_vm4, %v12365_v32, %v8894_v45 }
 0x568   : > { %v5204_v35 = vmax.f32 %v12481_v3, %v12707_v30  ;;  %14975 = vst [vmem:[#allocation70_spill] sm:$0xff] %v12733_v57 }
 0x569   : > { %v3811_v62 = vpop.permute.xlu0 %3810  ;;  %v14647_v33 = vmax.f32 %v12713_v2, 0.0 }
 0x56a   : > { %v4195_v26 = vsel %vm480_vm0, %v3513_v58, %v3811_v62  ;;  %v5304_v11 = vmul.f32 %v5204_v35, %v14974_v8  ;;  %v4196_v62 = vsel %vm480_vm0, %v3514_v25, %v3813_v47  ;;  %v12746_v8 = vpop.f32.mrf.mxu1  ;;  %v8720_v47 = vld [vmem:[%s14500_s6 + $0x1e8] sm:$0xff] }
 0x56b   : > { %v4257_v49 = vsel %vm2655_vm4, %v4195_v26, %v4059_v43  ;;  %v12723_v53 = vrot.slane %v14647_v33, 2  ;;  %v5496_v34 = vld [vmem:[#allocation3 + $0x15c] sm:$0xff]  ;;  %v2034_v43 = vld [vmem:[#allocation2 + $0x224] sm:$0x3f]  ;;  %14976 = vst [vmem:[#allocation19_spill] sm:$0xff] %v12746_v8  ;;  %7650 = vmatpush.msra.mxu0 %v8720_v47 }
 0x56c   : > { %8532 = vmatmul.msk.f32.gmra.mxu3 %vm2847_vm5, %v4257_v49  ;;  %v12726_v3 = vld [vmem:[#allocation3 + $0x158] sm:$0xff]  ;;  %5359 = vst.msk [vmem:[#allocation3 + $0x164] sm:$0xff] %vm2655_vm4, %v5304_v11  ;;  %3834 = vrot.lane.b32.xlu2 %v3587_v40, %s9081_s18  ;;  %v8895_v40 = vunpack.i.h.bf16 %v8893_v54  ;;  %v14977_v11 = vld [vmem:[#allocation4_spill] sm:$0xff]  ;;  %v3649_v33 = vld [vmem:[#allocation2 + $0x296] sm:$0x3f] }
 0x56d   : > { %5678 = vrot.lane.b32.xlu1 %v5496_v34, %s9082_s19  ;;  %v4996_v58 = vsel %vm4917_vm7, %v4993_v17, %v12723_v53  ;;  %8597 = vmatmul.msk.f32.gmra.mxu1 %vm2655_vm4, %v12726_v3  ;;  %v3515_v34 = vld [vmem:[#allocation2 + $0x242] sm:$0xff]  ;;  %v5882_v54 = vld [vmem:[%s14500_s6 + $0x70] sm:$0xff] }
 0x56e   : > { %6275 = vmatmul.f32.gmra.mxu0 %v12733_v57  ;;  %v12740_v35 = vmax.f32 %v4838_v18, %v4996_v58  ;;  %v6254_v26 = vpop.f32.mrf.mxu0  ;;  %8819 = vmatpush.msra.mxu3 %v5882_v54  ;;  %v8729_v58 = vld [vmem:[%s14500_s6 + $0x230] sm:$0xff] }
 0x56f   : > { %2281 = vrot.lane.b32.xlu0 %v2034_v43, %s9081_s18  ;;  %v3398_v43 = vpop.f32.mrf.mxu2  ;;  %7824 = vmatpush.msra.mxu1 %v8729_v58 }
 0x570   : > { %v5205_v32 = vmax.f32 %v12507_v19, %v12740_v35  ;;  %v12760_v19 = vsel %vm2655_vm4, %v12394_v63, %v8895_v40  ;;  %6599 = vmatpush.msra.mxu2 %v5882_v54 }
 0x571   : > { %v4061_v45 = vpop.permute.xlu0 %4060  ;;  %14978 = vst [vmem:[#allocation57_spill] sm:$0xff] %v12760_v19 }
 0x572   : > { %v4258_v17 = vsel %vm2655_vm4, %v4196_v62, %v4061_v45  ;;  %v5305_v49 = vmul.f32 %v5205_v32, %v14977_v11  ;;  %v3815_v62 = vpop.permute.xlu2 %3814 }
 0x573   : > { %v5497_v18 = vld [vmem:[#allocation3 + $0x164] sm:$0xff]  ;;  %v4197_v26 = vsel %vm480_vm0, %v3515_v34, %v3815_v62 }
 0x574   : > { %8533 = vmatmul.msk.f32.gmra.mxu3 %vm2847_vm5, %v4258_v17  ;;  %v12751_v25 = vld [vmem:[#allocation3 + $0x160] sm:$0xff]  ;;  %5360 = vst.msk [vmem:[#allocation3 + $0x16c] sm:$0xff] %vm2655_vm4, %v5305_v49  ;;  %5680 = vrot.lane.b32.xlu2 %v5497_v18, %s9082_s19  ;;  %v14980_v17 = vld [vmem:[#allocation100_spill] sm:$0xff] }
 0x575   : > { %8598 = vmatmul.msk.f32.gmra.mxu1 %vm2655_vm4, %v12751_v25  ;;  %v12773_v32 = vpop.f32.mrf.mxu1  ;;  %v3399_v11 = vadd.f32 %v3398_v43, %v14980_v17 }
 0x576   : > { %6278 = vmatmul.f32.gmra.mxu0 %v12760_v19  ;;  %v6256_v63 = vpop.f32.mrf.mxu0  ;;  %14979 = vst [vmem:[#allocation65_spill] sm:$0xff] %v12773_v32 }
 0x577   : > { %4082 = vrot.lane.b32.xlu0 %v3649_v33, %s9082_s19  ;;  %v3401_v58 = vpop.f32.mrf.mxu2  ;;  %v14982_v63 = vld [vmem:[#allocation101_spill] sm:$0xff] }
 0x579   : > { %v4063_v40 = vpop.permute.xlu0 %4062 }
 0x57a   : > { %v4259_v45 = vsel %vm2655_vm4, %v4197_v26, %v4063_v40  ;;  %v3402_v40 = vadd.f32 %v3401_v58, %v14982_v63 }
 0x57b   : > { %v4606_v49 = vpop.f32.mrf.mxu3  ;;  %v12778_v18 = vld [vmem:[#allocation3 + $0x168] sm:$0xff] }
 0x57c   : > { %8534 = vmatmul.msk.f32.gmra.mxu3 %vm2847_vm5, %v4259_v45  ;;  %v4712_v8 = vadd.f32 %v4606_v49, %v3399_v11  ;;  %v5498_v33 = vld [vmem:[#allocation3 + $0x16c] sm:$0xff]  ;;  %v3516_v11 = vld [vmem:[#allocation2 + $0x24a] sm:$0xff]  ;;  %v4065_v49 = vpop.permute.xlu2 %4064 }
 0x57d   : > { %8599 = vmatmul.msk.f32.gmra.mxu1 %vm2655_vm4, %v12778_v18  ;;  %v8898_v34 = vpop.permute.xlu1 %8897 }
 0x57e   : > { %v4778_v54 = vadd.f32 %v12685_v38, %v4712_v8  ;;  %v8899_v47 = vunpack.i.l.bf16 %v8898_v34 }
 0x57f   : > { %5682 = vrot.lane.b32.xlu0 %v5498_v33, %s9082_s19  ;;  %v8900_v33 = vunpack.i.h.bf16 %v8898_v34 }
 0x580   : > { %v4840_v62 = vmax.f32 %v4778_v54, 0.0  ;;  %v12786_v43 = vsel %vm2655_vm4, %v12432_v55, %v8899_v47  ;;  %v14983_v54 = vmax.f32 %v12713_v2, 0.0 }
 0x581   : > { %14981 = vst [vmem:[#allocation56_spill] sm:$0xff] %v12786_v43  ;;  %6280 = vmatmul.f32.gmra.mxu0 %v12786_v43  ;;  %v6446_v26 = vpop.f32.mrf.mxu1  ;;  %v12807_v2 = vsel %vm2655_vm4, %v12450_v36, %v8900_v33 }
 0x582   : > { %v4997_v45 = vrot.slane %v4840_v62, 2  ;;  %14984 = vst [vmem:[#allocation15_spill] sm:$0xff] %v12807_v2 }
 0x583   : > { %v4609_v17 = vpop.f32.mrf.mxu3 }
 0x584   : > { %v4998_v8 = vsel %vm4917_vm7, %v12723_v53, %v4997_v45  ;;  %v4713_v32 = vadd.f32 %v4609_v17, %v3402_v40  ;;  %v14985_v53 = vld [vmem:[#allocation6_spill] sm:$0xff] }
 0x585   : > { %v12794_v19 = vmax.f32 %v14983_v54, %v4998_v8  ;;  %v3817_v55 = vpop.permute.xlu1 %3816  ;;  %v4067_v8 = vpop.permute.xlu2 %4066 }
 0x586   : > { %v12797_v47 = vadd.f32 %v12685_v38, %v4713_v32  ;;  %v4198_v26 = vsel %vm480_vm0, %v3516_v11, %v3817_v55 }
 0x587   : > { %v5206_v58 = vmax.f32 %v12540_v20, %v12794_v19  ;;  %v4260_v63 = vsel %vm2655_vm4, %v4198_v26, %v4065_v49  ;;  %v3517_v20 = vld [vmem:[#allocation2 + $0x252] sm:$0xff] }
 0x588   : > { %v14650_v43 = vmax.f32 %v12797_v47, 0.0  ;;  %8535 = vmatmul.msk.f32.gmra.mxu3 %vm2847_vm5, %v4260_v63 }
 0x589   : > { %v5306_v34 = vmul.f32 %v5206_v58, %v14985_v53  ;;  %6282 = vmatmul.f32.gmra.mxu0 %v12807_v2  ;;  %v6448_v32 = vpop.f32.mrf.mxu1 }
 0x58a   : > { %v12813_v40 = vrot.slane %v14650_v43, 2  ;;  %v14990_v43 = vld [vmem:[#allocation102_spill] sm:$0xff] }
 0x58b   : > { %5361 = vst.msk [vmem:[#allocation3 + $0x174] sm:$0xff] %vm2655_vm4, %v5306_v34 }
 0x58c   : > { %v5000_v17 = vsel %vm4917_vm7, %v4997_v45, %v12813_v40  ;;  %v14987_v45 = vld [vmem:[#allocation21_spill] sm:$0xff] }
 0x58d   : > { %v12818_v11 = vmax.f32 %v4840_v62, %v5000_v17  ;;  %v8903_v49 = vpop.permute.xlu0 %8902 }
 0x58e   : > { %v3819_v36 = vpop.permute.xlu1 %3818  ;;  %v8904_v33 = vunpack.i.l.bf16 %v8903_v49  ;;  %v8905_v32 = vunpack.i.h.bf16 %v8903_v49 }
 0x58f   : > { %v4199_v54 = vsel %vm480_vm0, %v3517_v20, %v3819_v36  ;;  %v5207_v55 = vmax.f32 %v12616_v1, %v12818_v11  ;;  %v3518_v1 = vld [vmem:[#allocation2 + $0x25a] sm:$0xff]  ;;  %v3404_v20 = vpop.f32.mrf.mxu2 }
 0x590   : > { %v4261_v26 = vsel %vm2655_vm4, %v4199_v54, %v4067_v8  ;;  %v12827_v58 = vsel %vm2655_vm4, %v12467_v9, %v8904_v33  ;;  %v8908_v33 = vpop.permute.xlu2 %8907  ;;  %v12842_v54 = vsel %vm2655_vm4, %v12489_v59, %v8905_v32  ;;  %v5881_v59 = vld [vmem:[%s14500_s6 + $0x68] sm:$0xff] }
 0x591   : > { %8536 = vmatmul.msk.f32.gmra.mxu3 %vm2847_vm5, %v4261_v26  ;;  %14986 = vst [vmem:[#allocation23_spill] sm:$0xff] %v12827_v58  ;;  %v5307_v62 = vmul.f32 %v5207_v55, %v14987_v45  ;;  %6284 = vmatmul.f32.gmra.mxu0 %v12827_v58  ;;  %v6450_v63 = vpop.f32.mrf.mxu1 }
 0x592   : > { %v5499_v53 = vld [vmem:[#allocation3 + $0x174] sm:$0xff]  ;;  %14988 = vst [vmem:[#allocation72_spill] sm:$0xff] %v12842_v54  ;;  %v8909_v63 = vunpack.i.l.bf16 %v8908_v33  ;;  %8820 = vmatpush.msra.mxu3 %v5881_v59  ;;  %6600 = vmatpush.msra.mxu2 %v5881_v59 }
 0x593   : > { %v12831_v34 = vld [vmem:[#allocation3 + $0x170] sm:$0xff]  ;;  %5362 = vst.msk [vmem:[#allocation3 + $0x17c] sm:$0xff] %vm2655_vm4, %v5307_v62  ;;  %5684 = vrot.lane.b32.xlu1 %v5499_v53, %s9082_s19 }
 0x594   : > { %8600 = vmatmul.msk.f32.gmra.mxu1 %vm2655_vm4, %v12831_v34  ;;  %v3519_v62 = vld [vmem:[#allocation2 + $0x262] sm:$0xff] }
 0x595   : > { %v3821_v9 = vpop.permute.xlu0 %3820 }
 0x596   : > { %v4200_v17 = vsel %vm480_vm0, %v3518_v1, %v3821_v9  ;;  %v4069_v36 = vpop.permute.xlu1 %4068 }
 0x597   : > { %v4262_v8 = vsel %vm2655_vm4, %v4200_v17, %v4069_v36  ;;  %v3407_v32 = vpop.f32.mrf.mxu2  ;;  %v3520_v17 = vld [vmem:[#allocation2 + $0x26a] sm:$0xff] }
 0x598   : > { %v3825_v36 = vpop.permute.xlu2 %3824 }
 0x599   : > { %8537 = vmatmul.msk.f32.gmra.mxu3 %vm2847_vm5, %v4262_v8  ;;  %v6258_v55 = vpop.f32.mrf.mxu0  ;;  %6286 = vmatmul.f32.gmra.mxu0 %v12842_v54  ;;  %v3405_v54 = vadd.f32 %v3404_v20, %v14990_v43 }
 0x59a   : > { %v6452_v26 = vpop.f32.mrf.mxu1  ;;  %v5500_v45 = vld [vmem:[#allocation3 + $0x17c] sm:$0xff]  ;;  %v12857_v55 = vsel %vm2655_vm4, %v12520_v28, %v8909_v63  ;;  %v8719_v28 = vld [vmem:[%s14500_s6 + $0x1e0] sm:$0xff] }
 0x59b   : > { %v12845_v49 = vld [vmem:[#allocation3 + $0x178] sm:$0xff]  ;;  %5686 = vrot.lane.b32.xlu2 %v5500_v45, %s9082_s19  ;;  %14989 = vst [vmem:[#allocation17_spill] sm:$0xff] %v12857_v55  ;;  %7651 = vmatpush.msra.mxu0 %v8719_v28 }
 0x59c   : > { %8601 = vmatmul.msk.f32.gmra.mxu1 %vm2655_vm4, %v12845_v49 }
 0x59d   : > { %v3823_v53 = vpop.permute.xlu0 %3822 }
 0x59e   : > { %v4201_v1 = vsel %vm480_vm0, %v3519_v62, %v3823_v53  ;;  %v4202_v62 = vsel %vm480_vm0, %v3520_v17, %v3825_v36  ;;  %v8910_v53 = vunpack.i.h.bf16 %v8908_v33 }
 0x59f   : > { %v4071_v9 = vpop.permute.xlu1 %4070 }
 0x5a0   : > { %v4263_v8 = vsel %vm2655_vm4, %v4201_v1, %v4071_v9  ;;  %v12869_v1 = vsel %vm2655_vm4, %v12550_v6, %v8910_v53  ;;  %v3410_v9 = vpop.f32.mrf.mxu2  ;;  %v3827_v20 = vpop.permute.xlu2 %3826 }
 0x5a1   : > { %8538 = vmatmul.msk.f32.gmra.mxu3 %vm2847_vm5, %v4263_v8  ;;  %v6260_v26 = vpop.f32.mrf.mxu0  ;;  %6288 = vmatmul.f32.gmra.mxu0 %v12857_v55  ;;  %14991 = vst [vmem:[#allocation9_spill] sm:$0xff] %v12869_v1  ;;  %v3521_v8 = vld [vmem:[#allocation2 + $0x272] sm:$0xff] }
 0x5a2   : > { %v6454_v45 = vpop.f32.mrf.mxu1  ;;  %v4203_v26 = vsel %vm480_vm0, %v3521_v8, %v3827_v20 }
 0x5a5   : > { %v4073_v59 = vpop.permute.xlu0 %4072 }
 0x5a6   : > { %v4612_v58 = vpop.f32.mrf.mxu3  ;;  %v4264_v2 = vsel %vm2655_vm4, %v4202_v62, %v4073_v59 }
 0x5a7   : > { %v4714_v63 = vadd.f32 %v4612_v58, %v3405_v54  ;;  %v14992_v58 = vld [vmem:[#allocation103_spill] sm:$0xff] }
 0x5a8   : > { %v3408_v54 = vadd.f32 %v3407_v32, %v14992_v58  ;;  %v14995_v58 = vld [vmem:[#allocation8_spill] sm:$0xff] }
 0x5a9   : > { %v4780_v33 = vadd.f32 %v12685_v38, %v4714_v63  ;;  %8539 = vmatmul.msk.f32.gmra.mxu3 %vm2847_vm5, %v4264_v2  ;;  %v6262_v43 = vpop.f32.mrf.mxu0  ;;  %6290 = vmatmul.f32.gmra.mxu0 %v12869_v1 }
 0x5aa   : > { %v6456_v17 = vpop.f32.mrf.mxu1  ;;  %v14993_v43 = vmax.f32 %v12797_v47, 0.0  ;;  %v3522_v47 = vld [vmem:[#allocation2 + $0x27a] sm:$0xff] }
 0x5ab   : > { %v4842_v36 = vmax.f32 %v4780_v33, 0.0  ;;  %v3413_v17 = vpop.f32.mrf.mxu2 }
 0x5ad   : > { %v5001_v45 = vrot.slane %v4842_v36, 2  ;;  %v8913_v62 = vpop.permute.xlu1 %8912 }
 0x5ae   : > { %v8914_v6 = vunpack.i.l.bf16 %v8913_v62  ;;  %v4615_v53 = vpop.f32.mrf.mxu3  ;;  %v4075_v59 = vpop.permute.xlu0 %4074 }
 0x5af   : > { %v5002_v28 = vsel %vm4917_vm7, %v12813_v40, %v5001_v45  ;;  %v4715_v63 = vadd.f32 %v4615_v53, %v3408_v54  ;;  %v4265_v2 = vsel %vm2655_vm4, %v4203_v26, %v4075_v59  ;;  %v4077_v53 = vpop.permute.xlu2 %4076  ;;  %v8915_v59 = vunpack.i.h.bf16 %v8913_v62 }
 0x5b0   : > { %v12881_v1 = vmax.f32 %v14993_v43, %v5002_v28  ;;  %v12885_v8 = vsel %vm2655_vm4, %v12573_v60, %v8914_v6  ;;  %v14996_v60 = vld [vmem:[#allocation104_spill] sm:$0xff] }
 0x5b1   : > { %14994 = vst [vmem:[#allocation71_spill] sm:$0xff] %v12885_v8  ;;  %v4781_v32 = vadd.f32 %v12685_v38, %v4715_v63  ;;  %8540 = vmatmul.msk.f32.gmra.mxu3 %vm2847_vm5, %v4265_v2  ;;  %v6264_v33 = vpop.f32.mrf.mxu0  ;;  %6292 = vmatmul.f32.gmra.mxu0 %v12885_v8  ;;  %v3411_v6 = vadd.f32 %v3410_v9, %v14996_v60  ;;  %v15032_v8 = vld [vmem:[#allocation48_spill] sm:$0xff] }
 0x5b2   : > { %v5208_v40 = vmax.f32 %v12637_v7, %v12881_v1  ;;  %v6458_v20 = vpop.f32.mrf.mxu1 }
 0x5b3   : > { %v4843_v26 = vmax.f32 %v4781_v32, 0.0  ;;  %v3416_v60 = vpop.f32.mrf.mxu2 }
 0x5b4   : > { %v5308_v54 = vmul.f32 %v5208_v40, %v14995_v58  ;;  %v12902_v40 = vsel %vm2655_vm4, %v12588_v5, %v8915_v59  ;;  %v3523_v58 = vld [vmem:[#allocation2 + $0x282] sm:$0xff] }
 0x5b5   : > { %v5003_v28 = vrot.slane %v4843_v26, 2  ;;  %v3829_v63 = vpop.permute.xlu1 %3828  ;;  %14997 = vst [vmem:[#allocation5_spill] sm:$0xff] %v12902_v40 }
 0x5b6   : > { %5363 = vst.msk [vmem:[#allocation3 + $0x184] sm:$0xff] %vm2655_vm4, %v5308_v54  ;;  %v4204_v2 = vsel %vm480_vm0, %v3522_v47, %v3829_v63  ;;  %v4618_v43 = vpop.f32.mrf.mxu3  ;;  %v14998_v54 = vld [vmem:[#allocation12_spill] sm:$0xff] }
 0x5b7   : > { %v5004_v33 = vsel %vm4917_vm7, %v5001_v45, %v5003_v28  ;;  %v4716_v7 = vadd.f32 %v4618_v43, %v3411_v6  ;;  %v4266_v20 = vsel %vm2655_vm4, %v4204_v2, %v4077_v53  ;;  %v4079_v2 = vpop.permute.xlu2 %4078 }
 0x5b8   : > { %v12898_v32 = vmax.f32 %v4842_v36, %v5004_v33  ;;  %v3414_v36 = vadd.f32 %v3413_v17, %v11273_v56 }
 0x5b9   : > { %v4782_v9 = vadd.f32 %v12685_v38, %v4716_v7  ;;  %8541 = vmatmul.msk.f32.gmra.mxu3 %vm2847_vm5, %v4266_v20  ;;  %6294 = vmatmul.f32.gmra.mxu0 %v12902_v40  ;;  %v5880_v7 = vld [vmem:[%s14500_s6 + $0x60] sm:$0xff] }
 0x5ba   : > { %v5209_v62 = vmax.f32 %v12660_v39, %v12898_v32  ;;  %v6460_v47 = vpop.f32.mrf.mxu1  ;;  %8821 = vmatpush.msra.mxu3 %v5880_v7  ;;  %6601 = vmatpush.msra.mxu2 %v5880_v7 }
 0x5bb   : > { %v4844_v45 = vmax.f32 %v4782_v9, 0.0 }
 0x5bc   : > { %v5309_v53 = vmul.f32 %v5209_v62, %v14998_v54 }
 0x5bd   : > { %v5005_v6 = vrot.slane %v4844_v45, 2  ;;  %v3831_v5 = vpop.permute.xlu1 %3830  ;;  %v5501_v59 = vld [vmem:[#allocation3 + $0x184] sm:$0xff] }
 0x5be   : > { %v12911_v63 = vld [vmem:[#allocation3 + $0x180] sm:$0xff]  ;;  %5364 = vst.msk [vmem:[#allocation3 + $0x18c] sm:$0xff] %vm2655_vm4, %v5309_v53  ;;  %v4205_v43 = vsel %vm480_vm0, %v3523_v58, %v3831_v5  ;;  %v4621_v33 = vpop.f32.mrf.mxu3  ;;  %5688 = vrot.lane.b32.xlu0 %v5501_v59, %s9082_s19  ;;  %v14999_v58 = vld [vmem:[#allocation16_spill] sm:$0xff]  ;;  %v8728_v59 = vld [vmem:[%s14500_s6 + $0x228] sm:$0xff] }
 0x5bf   : > { %8602 = vmatmul.msk.f32.gmra.mxu1 %vm2655_vm4, %v12911_v63  ;;  %v5006_v39 = vsel %vm4917_vm7, %v5003_v28, %v5005_v6  ;;  %v4717_v56 = vadd.f32 %v4621_v33, %v3414_v36  ;;  %v4267_v17 = vsel %vm2655_vm4, %v4205_v43, %v4079_v2  ;;  %v3419_v2 = vpop.f32.mrf.mxu2 }
 0x5c0   : > { %v12923_v20 = vmax.f32 %v4843_v26, %v5006_v39  ;;  %7825 = vmatpush.msra.mxu1 %v8728_v59  ;;  %v3420_v59 = vadd.f32 %v3419_v2, %v11328_v61 }
 0x5c1   : > { %v4783_v9 = vadd.f32 %v12685_v38, %v4717_v56  ;;  %8542 = vmatmul.msk.f32.gmra.mxu3 %vm2847_vm5, %v4267_v17  ;;  %v15000_v56 = vld [vmem:[#allocation18_spill] sm:$0xff] }
 0x5c2   : > { %v5210_v62 = vmax.f32 %v12679_v22, %v12923_v20  ;;  %v6266_v47 = vpop.f32.mrf.mxu0  ;;  %v8718_v22 = vld [vmem:[%s14500_s6 + $0x1d8] sm:$0xff] }
 0x5c3   : > { %v4845_v28 = vmax.f32 %v4783_v9, 0.0  ;;  %7652 = vmatpush.msra.mxu0 %v8718_v22  ;;  %v3417_v9 = vadd.f32 %v3416_v60, %v11299_v21 }
 0x5c4   : > { %v5310_v54 = vmul.f32 %v5210_v62, %v14999_v58 }
 0x5c5   : > { %v5007_v53 = vrot.slane %v4845_v28, 2  ;;  %v5502_v36 = vld [vmem:[#allocation3 + $0x18c] sm:$0xff] }
 0x5c6   : > { %v12930_v5 = vld [vmem:[#allocation3 + $0x188] sm:$0xff]  ;;  %5365 = vst.msk [vmem:[#allocation3 + $0x194] sm:$0xff] %vm2655_vm4, %v5310_v54  ;;  %5690 = vrot.lane.b32.xlu1 %v5502_v36, %s9082_s19 }
 0x5c7   : > { %8603 = vmatmul.msk.f32.gmra.mxu1 %vm2655_vm4, %v12930_v5  ;;  %v5008_v26 = vsel %vm4917_vm7, %v5005_v6, %v5007_v53  ;;  %v3422_v54 = vpop.f32.mrf.mxu2 }
 0x5c8   : > { %v12943_v43 = vmax.f32 %v4844_v45, %v5008_v26 }
 0x5ca   : > { %v5211_v33 = vmax.f32 %v12707_v30, %v12943_v43  ;;  %v6268_v39 = vpop.f32.mrf.mxu0 }
 0x5cc   : > { %v5311_v17 = vmul.f32 %v5211_v33, %v15000_v56  ;;  %v4081_v33 = vpop.permute.xlu1 %4080  ;;  %v3524_v56 = vld [vmem:[#allocation2 + $0x28a] sm:$0xff] }
 0x5cd   : > { %v5503_v6 = vld [vmem:[#allocation3 + $0x194] sm:$0xff] }
 0x5ce   : > { %v12948_v7 = vld [vmem:[#allocation3 + $0x190] sm:$0xff]  ;;  %5366 = vst.msk [vmem:[#allocation3 + $0x19c] sm:$0xff] %vm2655_vm4, %v5311_v17  ;;  %5692 = vrot.lane.b32.xlu2 %v5503_v6, %s9082_s19 }
 0x5cf   : > { %8604 = vmatmul.msk.f32.gmra.mxu1 %vm2655_vm4, %v12948_v7  ;;  %v4624_v45 = vpop.f32.mrf.mxu3 }
 0x5d0   : > { %v4718_v62 = vadd.f32 %v4624_v45, %v3417_v9 }
 0x5d1   : > { %v8918_v47 = vpop.permute.xlu0 %8917  ;;  %v6462_v30 = vpop.f32.mrf.mxu1 }
 0x5d2   : > { %v8919_v58 = vunpack.i.l.bf16 %v8918_v47  ;;  %v4784_v36 = vadd.f32 %v12685_v38, %v4718_v62  ;;  %v8920_v17 = vunpack.i.h.bf16 %v8918_v47 }
 0x5d4   : > { %v12958_v26 = vsel %vm2655_vm4, %v12646_v10, %v8919_v58  ;;  %v4846_v21 = vmax.f32 %v4784_v36, 0.0 }
 0x5d5   : > { %15001 = vst [vmem:[#allocation25_spill] sm:$0xff] %v12958_v26  ;;  %6296 = vmatmul.f32.gmra.mxu0 %v12958_v26  ;;  %v5504_v60 = vld [vmem:[#allocation3 + $0x19c] sm:$0xff] }
 0x5d6   : > { %v12961_v22 = vld [vmem:[#allocation3 + $0x198] sm:$0xff]  ;;  %v5009_v39 = vrot.slane %v4846_v21, 2  ;;  %5694 = vrot.lane.b32.xlu0 %v5504_v60, %s9082_s19  ;;  %v5677_v60 = vpop.permute.xlu2 %5676 }
 0x5d7   : > { %8605 = vmatmul.msk.f32.gmra.mxu1 %vm2655_vm4, %v12961_v22  ;;  %v4627_v6 = vpop.f32.mrf.mxu3 }
 0x5d8   : > { %v5010_v10 = vsel %vm4917_vm7, %v5007_v53, %v5009_v39  ;;  %v4719_v9 = vadd.f32 %v4627_v6, %v3420_v59  ;;  %v3425_v53 = vpop.f32.mrf.mxu2 }
 0x5d9   : > { %v3833_v45 = vpop.permute.xlu0 %3832  ;;  %v12968_v62 = vmax.f32 %v4845_v28, %v5010_v10  ;;  %v6464_v30 = vpop.f32.mrf.mxu1  ;;  %v12982_v28 = vsel %vm2655_vm4, %v12668_v41, %v8920_v17  ;;  %v1972_v17 = vld [vmem:[#allocation2 + $0x222] sm:$0x3f] }
 0x5da   : > { %v4206_v58 = vsel %vm480_vm0, %v3524_v56, %v3833_v45  ;;  %v12971_v61 = vpop.f32.mrf.mxu0  ;;  %v12974_v2 = vadd.f32 %v12685_v38, %v4719_v9  ;;  %15003 = vst [vmem:[#allocation7_spill] sm:$0xff] %v12982_v28  ;;  %v15004_v56 = vld [vmem:[#allocation20_spill] sm:$0xff] }
 0x5db   : > { %15002 = vst [vmem:[#allocation31_spill] sm:$0xff] %v12971_v61  ;;  %v4268_v36 = vsel %vm2655_vm4, %v4206_v58, %v4081_v33  ;;  %v5212_v47 = vmax.f32 %v12740_v35, %v12968_v62  ;;  %v5879_v33 = vld [vmem:[%s14500_s6 + $0x58] sm:$0xff]  ;;  %v2530_v35 = vpop.permute.xlu1 %2529  ;;  %v6939_v61 = vld [vmem:[#allocation3 + $0x118] sm:$0xff] }
 0x5dc   : > { %8543 = vmatmul.msk.f32.gmra.mxu3 %vm2847_vm5, %v4268_v36  ;;  %v4847_v59 = vmax.f32 %v12974_v2, 0.0  ;;  %6602 = vmatpush.msra.mxu2 %v5879_v33 }
 0x5dd   : > { %6298 = vmatmul.f32.gmra.mxu0 %v12982_v28  ;;  %v5312_v6 = vmul.f32 %v5212_v47, %v15004_v56  ;;  %8822 = vmatpush.msra.mxu3 %v5879_v33  ;;  %v3525_v47 = vld [vmem:[#allocation2 + $0x292] sm:$0x3f] }
 0x5de   : > { %v5011_v10 = vrot.slane %v4847_v59, 2  ;;  %v15007_v33 = vld [vmem:[#allocation26_spill] sm:$0xff] }
 0x5df   : > { %5367 = vst.msk [vmem:[#allocation3 + $0x1a4] sm:$0xff] %vm2655_vm4, %v5312_v6  ;;  %v3835_v6 = vpop.permute.xlu2 %3834 }
 0x5e0   : > { %v5012_v41 = vsel %vm4917_vm7, %v5009_v39, %v5011_v10  ;;  %v13003_v39 = vsel %vm2655_vm4, %v12695_v16, %v5677_v60 }
 0x5e1   : > { %v2282_v9 = vpop.permute.xlu0 %2281  ;;  %v12992_v45 = vmax.f32 %v4846_v21, %v5012_v41  ;;  %15006 = vst [vmem:[#allocation32_spill] sm:$0xff] %v13003_v39  ;;  %v3423_v21 = vadd.f32 %v3422_v54, %v11365_v46 }
 0x5e2   : > { %v2654_v58 = vsel %vm480_vm0, %v1972_v17, %v2282_v9  ;;  %v6466_v30 = vpop.f32.mrf.mxu1  ;;  %v12995_v2 = vpop.f32.mrf.mxu0 }
 0x5e3   : > { %15005 = vst [vmem:[#allocation77_spill] sm:$0xff] %v12995_v2  ;;  %v2717_v36 = vsel %vm2655_vm4, %v2654_v58, %v2530_v35  ;;  %v5213_v56 = vmax.f32 %v12794_v19, %v12992_v45  ;;  %v3428_v17 = vpop.f32.mrf.mxu2  ;;  %v4207_v35 = vsel %vm480_vm0, %v3525_v47, %v3835_v6  ;;  %v8717_v19 = vld [vmem:[%s14500_s6 + $0x1d0] sm:$0xff]  ;;  %v5679_v46 = vpop.permute.xlu1 %5678  ;;  %v3426_v6 = vadd.f32 %v3425_v53, %v11394_v29 }
 0x5e4   : > { %8470 = vmatmul.msk.f32.gmra.mxu2 %vm2847_vm5, %v2717_v36  ;;  %7653 = vmatpush.msra.mxu0 %v8717_v19 }
 0x5e5   : > { %6300 = vmatmul.f32.gmra.mxu0 %v13003_v39  ;;  %v5313_v41 = vmul.f32 %v5213_v56, %v15007_v33 }
 0x5e6   : > { %v5505_v58 = vld [vmem:[#allocation3 + $0x1a4] sm:$0xff] }
 0x5e7   : > { %v4630_v9 = vpop.f32.mrf.mxu3  ;;  %v13009_v30 = vld [vmem:[#allocation3 + $0x1a0] sm:$0xff]  ;;  %5368 = vst.msk [vmem:[#allocation3 + $0x1ac] sm:$0xff] %vm2655_vm4, %v5313_v41  ;;  %5696 = vrot.lane.b32.xlu1 %v5505_v58, %s9082_s19 }
 0x5e8   : > { %v4720_v16 = vadd.f32 %v4630_v9, %v3423_v21  ;;  %8606 = vmatmul.msk.f32.gmra.mxu1 %vm2655_vm4, %v13009_v30  ;;  %v13025_v21 = vsel %vm2655_vm4, %v12726_v3, %v5679_v46  ;;  %v5681_v3 = vpop.permute.xlu2 %5680 }
 0x5e9   : > { %v4083_v54 = vpop.permute.xlu0 %4082  ;;  %15009 = vst [vmem:[#allocation22_spill] sm:$0xff] %v13025_v21 }
 0x5ea   : > { %v4786_v60 = vadd.f32 %v12685_v38, %v4720_v16  ;;  %v4269_v36 = vsel %vm2655_vm4, %v4207_v35, %v4083_v54 }
 0x5eb   : > { %8544 = vmatmul.msk.f32.gmra.mxu3 %vm2847_vm5, %v4269_v36  ;;  %v13021_v47 = vpop.f32.mrf.mxu0  ;;  %v3431_v16 = vpop.f32.mrf.mxu2 }
 0x5ec   : > { %15008 = vst [vmem:[#allocation82_spill] sm:$0xff] %v13021_v47  ;;  %v4848_v56 = vmax.f32 %v4786_v60, 0.0  ;;  %v13040_v60 = vpop.f32.mrf.mxu1 }
 0x5ed   : > { %6303 = vmatmul.f32.gmra.mxu0 %v13025_v21  ;;  %15010 = vst [vmem:[#allocation89_spill] sm:$0xff] %v13040_v60 }
 0x5ee   : > { %v5013_v33 = vrot.slane %v4848_v56, 2  ;;  %v5506_v9 = vld [vmem:[#allocation3 + $0x1ac] sm:$0xff] }
 0x5ef   : > { %v4633_v41 = vpop.f32.mrf.mxu3  ;;  %v13029_v58 = vld [vmem:[#allocation3 + $0x1a8] sm:$0xff]  ;;  %5698 = vrot.lane.b32.xlu2 %v5506_v9, %s9082_s19 }
 0x5f0   : > { %v5014_v35 = vsel %vm4917_vm7, %v5011_v10, %v5013_v33  ;;  %v4721_v19 = vadd.f32 %v4633_v41, %v3426_v6  ;;  %8607 = vmatmul.msk.f32.gmra.mxu1 %vm2655_vm4, %v13029_v58  ;;  %v13044_v10 = vsel %vm2655_vm4, %v12751_v25, %v5681_v3  ;;  %v15012_v6 = vld [vmem:[#allocation27_spill] sm:$0xff] }
 0x5f1   : > { %v13035_v46 = vmax.f32 %v4847_v59, %v5014_v35  ;;  %15011 = vst [vmem:[#allocation13_spill] sm:$0xff] %v13044_v10  ;;  %v3429_v59 = vadd.f32 %v3428_v17, %v11422_v48  ;;  %v5878_v17 = vld [vmem:[%s14500_s6 + $0x50] sm:$0xff] }
 0x5f2   : > { %v4787_v54 = vadd.f32 %v12685_v38, %v4721_v19  ;;  %8823 = vmatpush.msra.mxu3 %v5878_v17  ;;  %6603 = vmatpush.msra.mxu2 %v5878_v17 }
 0x5f3   : > { %v5214_v29 = vmax.f32 %v12818_v11, %v13035_v46  ;;  %v6279_v53 = vpop.f32.mrf.mxu0  ;;  %v3434_v25 = vpop.f32.mrf.mxu2 }
 0x5f4   : > { %v4849_v36 = vmax.f32 %v4787_v54, 0.0  ;;  %v5683_v54 = vpop.permute.xlu0 %5682 }
 0x5f5   : > { %v5314_v41 = vmul.f32 %v5214_v29, %v15012_v6  ;;  %6306 = vmatmul.f32.gmra.mxu0 %v13044_v10  ;;  %v13058_v48 = vsel %vm2655_vm4, %v12778_v18, %v5683_v54  ;;  %v5877_v10 = vld [vmem:[%s14500_s6 + $0x48] sm:$0xff] }
 0x5f6   : > { %v5015_v9 = vrot.slane %v4849_v36, 2  ;;  %15013 = vst [vmem:[#allocation37_spill] sm:$0xff] %v13058_v48  ;;  %8824 = vmatpush.msra.mxu3 %v5877_v10  ;;  %6604 = vmatpush.msra.mxu2 %v5877_v10 }
 0x5f7   : > { %5369 = vst.msk [vmem:[#allocation3 + $0x1b4] sm:$0xff] %vm2655_vm4, %v5314_v41  ;;  %v4636_v35 = vpop.f32.mrf.mxu3  ;;  %v13066_v41 = vpop.f32.mrf.mxu1 }
 0x5f8   : > { %v5016_v11 = vsel %vm4917_vm7, %v5013_v33, %v5015_v9  ;;  %v4722_v19 = vadd.f32 %v4636_v35, %v3429_v59  ;;  %v15014_v33 = vld [vmem:[#allocation28_spill] sm:$0xff]  ;;  %15015 = vst [vmem:[#allocation78_spill] sm:$0xff] %v13066_v41 }
 0x5f9   : > { %v13051_v53 = vmax.f32 %v4848_v56, %v5016_v11  ;;  %v3432_v56 = vadd.f32 %v3431_v16, %v11439_v12 }
 0x5fa   : > { %v4788_v60 = vadd.f32 %v12685_v38, %v4722_v19 }
 0x5fb   : > { %v5215_v3 = vmax.f32 %v12881_v1, %v13051_v53  ;;  %v3437_v17 = vpop.f32.mrf.mxu2 }
 0x5fc   : > { %v4850_v29 = vmax.f32 %v4788_v60, 0.0 }
 0x5fd   : > { %v5315_v6 = vmul.f32 %v5215_v3, %v15014_v33  ;;  %6309 = vmatmul.f32.gmra.mxu0 %v13058_v48  ;;  %v15016_v33 = vld [vmem:[#allocation30_spill] sm:$0xff] }
 0x5fe   : > { %v5017_v59 = vrot.slane %v4850_v29, 2  ;;  %v5507_v1 = vld [vmem:[#allocation3 + $0x1b4] sm:$0xff]  ;;  %v6281_v35 = vpop.f32.mrf.mxu0 }
 0x5ff   : > { %v13068_v60 = vld [vmem:[#allocation3 + $0x1b0] sm:$0xff]  ;;  %5370 = vst.msk [vmem:[#allocation3 + $0x1bc] sm:$0xff] %vm2655_vm4, %v5315_v6  ;;  %v4639_v18 = vpop.f32.mrf.mxu3  ;;  %5700 = vrot.lane.b32.xlu0 %v5507_v1, %s9082_s19 }
 0x600   : > { %8608 = vmatmul.msk.f32.gmra.mxu1 %vm2655_vm4, %v13068_v60  ;;  %v5018_v11 = vsel %vm4917_vm7, %v5015_v9, %v5017_v59  ;;  %v4723_v19 = vadd.f32 %v4639_v18, %v3432_v56  ;;  %v13096_v56 = vpop.f32.mrf.mxu1 }
 0x601   : > { %v13075_v12 = vmax.f32 %v4849_v36, %v5018_v11  ;;  %15018 = vst [vmem:[#allocation40_spill] sm:$0xff] %v13096_v56  ;;  %v3435_v11 = vadd.f32 %v3434_v25, %v11459_v51 }
 0x602   : > { %v4789_v16 = vadd.f32 %v12685_v38, %v4723_v19 }
 0x603   : > { %v5216_v54 = vmax.f32 %v12898_v32, %v13075_v12 }
 0x604   : > { %v4851_v3 = vmax.f32 %v4789_v16, 0.0  ;;  %v5687_v16 = vpop.permute.xlu2 %5686 }
 0x605   : > { %v5316_v6 = vmul.f32 %v5216_v54, %v15016_v33  ;;  %v5685_v1 = vpop.permute.xlu1 %5684  ;;  %v15019_v33 = vld [vmem:[#allocation33_spill] sm:$0xff] }
 0x606   : > { %v5019_v41 = vrot.slane %v4851_v3, 2  ;;  %v13081_v35 = vld [vmem:[#allocation3 + $0x1bc] sm:$0xff]  ;;  %v6283_v36 = vpop.f32.mrf.mxu0  ;;  %v13090_v9 = vsel %vm2655_vm4, %v12831_v34, %v5685_v1 }
 0x607   : > { %v13083_v48 = vld [vmem:[#allocation3 + $0x1b8] sm:$0xff]  ;;  %5371 = vst.msk [vmem:[#allocation3 + $0x1c4] sm:$0xff] %vm2655_vm4, %v5316_v6  ;;  %5702 = vrot.lane.b32.xlu1 %v13081_v35, %s9082_s19  ;;  %6311 = vmatmul.f32.gmra.mxu0 %v13090_v9 }
 0x608   : > { %15017 = vst [vmem:[#allocation29_spill] sm:$0xff] %v13090_v9  ;;  %8609 = vmatmul.msk.f32.gmra.mxu1 %vm2655_vm4, %v13083_v48  ;;  %v5020_v32 = vsel %vm4917_vm7, %v5017_v59, %v5019_v41  ;;  %v8716_v34 = vld [vmem:[%s14500_s6 + $0x1c8] sm:$0xff]  ;;  %v8727_v59 = vld [vmem:[%s14500_s6 + $0x220] sm:$0xff] }
 0x609   : > { %v13098_v18 = vmax.f32 %v4850_v29, %v5020_v32  ;;  %7654 = vmatpush.msra.mxu0 %v8716_v34  ;;  %7826 = vmatpush.msra.mxu1 %v8727_v59  ;;  %v13120_v32 = vsel %vm2655_vm4, %v12845_v49, %v5687_v16 }
 0x60a   : > { %15020 = vst [vmem:[#allocation43_spill] sm:$0xff] %v13120_v32 }
 0x60b   : > { %v5217_v19 = vmax.f32 %v12923_v20, %v13098_v18  ;;  %v4642_v54 = vpop.f32.mrf.mxu3  ;;  %v3440_v20 = vpop.f32.mrf.mxu2 }
 0x60c   : > { %v4724_v1 = vadd.f32 %v4642_v54, %v3435_v11  ;;  %v15021_v54 = vld [vmem:[#allocation54_spill] sm:$0xff] }
 0x60d   : > { %v5317_v6 = vmul.f32 %v5217_v19, %v15019_v33  ;;  %v3438_v34 = vadd.f32 %v3437_v17, %v15021_v54  ;;  %v15022_v54 = vld [vmem:[#allocation34_spill] sm:$0xff] }
 0x60e   : > { %v13110_v29 = vld [vmem:[#allocation3 + $0x1c4] sm:$0xff]  ;;  %v4790_v25 = vadd.f32 %v12685_v38, %v4724_v1  ;;  %v6285_v36 = vpop.f32.mrf.mxu0 }
 0x60f   : > { %v13112_v51 = vld [vmem:[#allocation3 + $0x1c0] sm:$0xff]  ;;  %5372 = vst.msk [vmem:[#allocation3 + $0x1cc] sm:$0xff] %vm2655_vm4, %v5317_v6  ;;  %5704 = vrot.lane.b32.xlu2 %v13110_v29, %s9082_s19  ;;  %6313 = vmatmul.f32.gmra.mxu0 %v13120_v32 }
 0x610   : > { %8610 = vmatmul.msk.f32.gmra.mxu1 %vm2655_vm4, %v13112_v51  ;;  %v4852_v11 = vmax.f32 %v4790_v25, 0.0 }
 0x611   : > { %v6477_v19 = vpop.f32.mrf.mxu1 }
 0x612   : > { %v5021_v59 = vrot.slane %v4852_v11, 2 }
 0x614   : > { %v4645_v33 = vpop.f32.mrf.mxu3  ;;  %v5022_v6 = vsel %vm4917_vm7, %v5019_v41, %v5021_v59  ;;  %v3443_v41 = vpop.f32.mrf.mxu2 }
 0x615   : > { %v4725_v1 = vadd.f32 %v4645_v33, %v3438_v34  ;;  %v13127_v56 = vmax.f32 %v4851_v3, %v5022_v6  ;;  %v15023_v33 = vld [vmem:[#allocation59_spill] sm:$0xff] }
 0x616   : > { %v13129_v36 = vld [vmem:[#allocation3 + $0x1cc] sm:$0xff]  ;;  %v6287_v25 = vpop.f32.mrf.mxu0  ;;  %v3441_v6 = vadd.f32 %v3440_v20, %v15023_v33 }
 0x617   : > { %v13131_v49 = vld [vmem:[#allocation3 + $0x1c8] sm:$0xff]  ;;  %v4791_v16 = vadd.f32 %v12685_v38, %v4725_v1  ;;  %5706 = vrot.lane.b32.xlu0 %v13129_v36, %s9082_s19  ;;  %v5218_v17 = vmax.f32 %v12943_v43, %v13127_v56 }
 0x618   : > { %8611 = vmatmul.msk.f32.gmra.mxu1 %vm2655_vm4, %v13131_v49 }
 0x619   : > { %v4853_v19 = vmax.f32 %v4791_v16, 0.0  ;;  %v6479_v3 = vpop.f32.mrf.mxu1  ;;  %v5318_v34 = vmul.f32 %v5218_v17, %v15022_v54 }
 0x61a   : > { %v15024_v3 = vld [vmem:[#allocation41_spill] sm:$0xff] }
 0x61b   : > { %v5023_v32 = vrot.slane %v4853_v19, 2  ;;  %5373 = vst.msk [vmem:[#allocation3 + $0x1d4] sm:$0xff] %vm2655_vm4, %v5318_v34 }
 0x61c   : > { %v4648_v1 = vpop.f32.mrf.mxu3 }
 0x61d   : > { %v5024_v9 = vsel %vm4917_vm7, %v5021_v59, %v5023_v32  ;;  %v4726_v25 = vadd.f32 %v4648_v1, %v3441_v6  ;;  %v3446_v59 = vpop.f32.mrf.mxu2 }
 0x61e   : > { %v13147_v21 = vmax.f32 %v4852_v11, %v5024_v9  ;;  %v6289_v16 = vpop.f32.mrf.mxu0  ;;  %v15025_v11 = vld [vmem:[#allocation92_spill] sm:$0xff] }
 0x61f   : > { %v4792_v43 = vadd.f32 %v12685_v38, %v4726_v25  ;;  %v3444_v10 = vadd.f32 %v3443_v41, %v15025_v11 }
 0x620   : > { %v5219_v20 = vmax.f32 %v12968_v62, %v13147_v21 }
 0x621   : > { %v13152_v17 = vmax.f32 %v4792_v43, 0.0 }
 0x622   : > { %v5319_v54 = vmul.f32 %v5219_v20, %v15024_v3  ;;  %v13158_v33 = vld [vmem:[#allocation3 + $0x1d4] sm:$0xff] }
 0x623   : > { %v13156_v34 = vrot.slane %v13152_v17, 2  ;;  %v13160_v9 = vld [vmem:[#allocation3 + $0x1d0] sm:$0xff]  ;;  %5708 = vrot.lane.b32.xlu1 %v13158_v33, %s9082_s19 }
 0x624   : > { %5374 = vst.msk [vmem:[#allocation3 + $0x1dc] sm:$0xff] %vm2655_vm4, %v5319_v54  ;;  %8612 = vmatmul.msk.f32.gmra.mxu1 %vm2655_vm4, %v13160_v9  ;;  %v4651_v1 = vpop.f32.mrf.mxu3  ;;  %v15026_v3 = vld [vmem:[#allocation44_spill] sm:$0xff] }
 0x625   : > { %v5026_v62 = vsel %vm4917_vm7, %v5023_v32, %v13156_v34  ;;  %v4727_v43 = vadd.f32 %v4651_v1, %v3444_v10  ;;  %v15027_v32 = vld [vmem:[#allocation52_spill] sm:$0xff] }
 0x626   : > { %v13172_v25 = vmax.f32 %v4853_v19, %v5026_v62  ;;  %v6291_v16 = vpop.f32.mrf.mxu0  ;;  %v3447_v26 = vadd.f32 %v3446_v59, %v15027_v32  ;;  %v8715_v10 = vld [vmem:[%s14500_s6 + $0x1c0] sm:$0xff] }
 0x627   : > { %v4793_v20 = vadd.f32 %v12685_v38, %v4727_v43  ;;  %7655 = vmatpush.msra.mxu0 %v8715_v10  ;;  %v13197_v16 = vld [vmem:[%s14499_s5] ss:$0 sm:$0xff] }
 0x628   : > { %v5220_v41 = vmax.f32 %v12992_v45, %v13172_v25  ;;  %v3449_v45 = vpop.f32.mrf.mxu2 }
 0x629   : > { %v4855_v11 = vmax.f32 %v4793_v20, 0.0 }
 0x62a   : > { %v5320_v54 = vmul.f32 %v5220_v41, %v15026_v3 }
 0x62b   : > { %v13178_v39 = vld [vmem:[#allocation3 + $0x1dc] sm:$0xff]  ;;  %v5144_v19 = vrot.slane %v4855_v11, 2 }
 0x62c   : > { %v13180_v28 = vld [vmem:[#allocation3 + $0x1d8] sm:$0xff]  ;;  %5375 = vst.msk [vmem:[#allocation3 + $0x1e4] sm:$0xff] %vm2655_vm4, %v5320_v54  ;;  %5710 = vrot.lane.b32.xlu2 %v13178_v39, %s9082_s19  ;;  %v4654_v38 = vpop.f32.mrf.mxu3 }
 0x62d   : > { %8613 = vmatmul.msk.f32.gmra.mxu1 %vm2655_vm4, %v13180_v28  ;;  %v5145_v62 = vsel %vm4917_vm7, %v13156_v34, %v5144_v19  ;;  %v4728_v1 = vadd.f32 %v4654_v38, %v3447_v26  ;;  %v15029_v26 = vld [vmem:[#allocation46_spill] sm:$0xff] }
 0x62e   : > { %v5166_v59 = vmax.f32 %v13152_v17, %v5145_v62  ;;  %v6293_v43 = vpop.f32.mrf.mxu0 }
 0x62f   : > { %v4794_v41 = vadd.f32 %v13197_v16, %v4728_v1  ;;  %v15030_v43 = vld [vmem:[#allocation60_spill] sm:$0xff] }
 0x630   : > { %v5221_v20 = vmax.f32 %v13035_v46, %v5166_v59  ;;  %v5689_v3 = vpop.permute.xlu0 %5688  ;;  %v3450_v6 = vadd.f32 %v3449_v45, %v15030_v43  ;;  %v5876_v46 = vld [vmem:[%s14500_s6 + $0x40] sm:$0xff]  ;;  %v3452_v45 = vpop.f32.mrf.mxu2 }
 0x631   : > { %v4856_v54 = vmax.f32 %v4794_v41, 0.0  ;;  %v13203_v32 = vsel %vm2655_vm4, %v12911_v63, %v5689_v3  ;;  %8825 = vmatpush.msra.mxu3 %v5876_v46  ;;  %6605 = vmatpush.msra.mxu2 %v5876_v46 }
 0x632   : > { %15028 = vst [vmem:[#allocation36_spill] sm:$0xff] %v13203_v32  ;;  %v5321_v38 = vmul.f32 %v5221_v20, %v15029_v26  ;;  %6315 = vmatmul.f32.gmra.mxu0 %v13203_v32 }
 0x633   : > { %v13207_v10 = vld [vmem:[#allocation3 + $0x1e4] sm:$0xff]  ;;  %v5146_v40 = vrot.slane %v4856_v54, 2 }
 0x634   : > { %v13209_v62 = vld [vmem:[#allocation3 + $0x1e0] sm:$0xff]  ;;  %5712 = vrot.lane.b32.xlu0 %v13207_v10, %s9082_s19  ;;  %5376 = vst.msk [vmem:[#allocation3 + $0x1ec] sm:$0xff] %vm2655_vm4, %v5321_v38  ;;  %v4657_v63 = vpop.f32.mrf.mxu3 }
 0x635   : > { %8614 = vmatmul.msk.f32.gmra.mxu1 %vm2655_vm4, %v13209_v62  ;;  %v5147_v1 = vsel %vm4917_vm7, %v5144_v19, %v5146_v40  ;;  %v4729_v59 = vadd.f32 %v4657_v63, %v3450_v6  ;;  %v15033_v6 = vld [vmem:[#allocation91_spill] sm:$0xff] }
 0x636   : > { %v5167_v41 = vmax.f32 %v4855_v11, %v5147_v1  ;;  %v6295_v20 = vpop.f32.mrf.mxu0  ;;  %v3453_v19 = vadd.f32 %v3452_v45, %v15033_v6 }
 0x637   : > { %v4795_v3 = vadd.f32 %v13197_v16, %v4729_v59  ;;  %v5693_v59 = vpop.permute.xlu2 %5692 }
 0x638   : > { %v5222_v26 = vmax.f32 %v13051_v53, %v5167_v41  ;;  %v5691_v43 = vpop.permute.xlu1 %5690  ;;  %v3455_v20 = vpop.f32.mrf.mxu2 }
 0x639   : > { %v4857_v32 = vmax.f32 %v4795_v3, 0.0  ;;  %v13225_v38 = vsel %vm2655_vm4, %v12930_v5, %v5691_v43  ;;  %v15035_v43 = vld [vmem:[#allocation49_spill] sm:$0xff] }
 0x63a   : > { %15031 = vst [vmem:[#allocation79_spill] sm:$0xff] %v13225_v38  ;;  %v5322_v55 = vmul.f32 %v5222_v26, %v15032_v8  ;;  %6317 = vmatmul.f32.gmra.mxu0 %v13225_v38 }
 0x63b   : > { %v5148_v63 = vrot.slane %v4857_v32, 2  ;;  %v13230_v46 = vld [vmem:[#allocation3 + $0x1ec] sm:$0xff] }
 0x63c   : > { %v6481_v11 = vpop.f32.mrf.mxu1  ;;  %v13232_v1 = vld [vmem:[#allocation3 + $0x1e8] sm:$0xff]  ;;  %5377 = vst.msk [vmem:[#allocation3 + $0x1f4] sm:$0xff] %vm2655_vm4, %v5322_v55  ;;  %5714 = vrot.lane.b32.xlu1 %v13230_v46, %s9082_s19  ;;  %v4660_v53 = vpop.f32.mrf.mxu3  ;;  %v13244_v55 = vsel %vm2655_vm4, %v12948_v7, %v5693_v59 }
 0x63d   : > { %8615 = vmatmul.msk.f32.gmra.mxu1 %vm2655_vm4, %v13232_v1  ;;  %v5149_v8 = vsel %vm4917_vm7, %v5146_v40, %v5148_v63  ;;  %v4730_v5 = vadd.f32 %v4660_v53, %v3453_v19  ;;  %15034 = vst [vmem:[#allocation39_spill] sm:$0xff] %v13244_v55  ;;  %v15036_v11 = vld [vmem:[#allocation61_spill] sm:$0xff] }
 0x63e   : > { %v5168_v45 = vmax.f32 %v4856_v54, %v5149_v8  ;;  %v3456_v38 = vadd.f32 %v3455_v20, %v15036_v11 }
 0x63f   : > { %v4796_v41 = vadd.f32 %v13197_v16, %v4730_v5 }
 0x640   : > { %v5223_v3 = vmax.f32 %v13075_v12, %v5168_v45 }
 0x641   : > { %v4858_v26 = vmax.f32 %v4796_v41, 0.0 }
 0x642   : > { %v5323_v6 = vmul.f32 %v5223_v3, %v15035_v43  ;;  %6319 = vmatmul.f32.gmra.mxu0 %v13244_v55  ;;  %v15038_v43 = vld [vmem:[#allocation50_spill] sm:$0xff] }
 0x643   : > { %v5150_v40 = vrot.slane %v4858_v26, 2  ;;  %v13249_v19 = vld [vmem:[#allocation3 + $0x1f4] sm:$0xff] }
 0x644   : > { %v6483_v54 = vpop.f32.mrf.mxu1  ;;  %v13251_v53 = vld [vmem:[#allocation3 + $0x1f0] sm:$0xff]  ;;  %5378 = vst.msk [vmem:[#allocation3 + $0x1fc] sm:$0xff] %vm2655_vm4, %v5323_v6  ;;  %5716 = vrot.lane.b32.xlu2 %v13249_v19, %s9082_s19  ;;  %v4663_v12 = vpop.f32.mrf.mxu3 }
 0x645   : > { %8616 = vmatmul.msk.f32.gmra.mxu1 %vm2655_vm4, %v13251_v53  ;;  %v5151_v7 = vsel %vm4917_vm7, %v5148_v63, %v5150_v40  ;;  %v4731_v8 = vadd.f32 %v4663_v12, %v3456_v38  ;;  %v8726_v12 = vld [vmem:[%s14500_s6 + $0x218] sm:$0xff] }
 0x646   : > { %v5169_v5 = vmax.f32 %v4857_v32, %v5151_v7  ;;  %v8714_v32 = vld [vmem:[%s14500_s6 + $0x1b8] sm:$0xff]  ;;  %7827 = vmatpush.msra.mxu1 %v8726_v12 }
 0x647   : > { %v4797_v59 = vadd.f32 %v13197_v16, %v4731_v8  ;;  %v5875_v7 = vld [vmem:[%s14500_s6 + $0x38] sm:$0xff]  ;;  %7656 = vmatpush.msra.mxu0 %v8714_v32  ;;  %v15041_v32 = vld [vmem:[#allocation86_spill] sm:$0xff] }
 0x648   : > { %v5224_v45 = vmax.f32 %v13098_v18, %v5169_v5  ;;  %v5695_v41 = vpop.permute.xlu0 %5694  ;;  %8826 = vmatpush.msra.mxu3 %v5875_v7  ;;  %6606 = vmatpush.msra.mxu2 %v5875_v7 }
 0x649   : > { %v4859_v20 = vmax.f32 %v4797_v59, 0.0  ;;  %v13263_v3 = vsel %vm2655_vm4, %v12961_v22, %v5695_v41 }
 0x64a   : > { %15037 = vst [vmem:[#allocation80_spill] sm:$0xff] %v13263_v3  ;;  %v5324_v6 = vmul.f32 %v5224_v45, %v15038_v43  ;;  %6321 = vmatmul.f32.gmra.mxu0 %v13263_v3 }
 0x64b   : > { %v5152_v11 = vrot.slane %v4859_v20, 2  ;;  %v13267_v54 = vld [vmem:[#allocation3 + $0x1fc] sm:$0xff] }
 0x64c   : > { %v6485_v63 = vpop.f32.mrf.mxu1  ;;  %v13269_v38 = vld [vmem:[#allocation3 + $0x1f8] sm:$0xff]  ;;  %5379 = vst.msk [vmem:[#allocation3 + $0x204] sm:$0xff] %vm2655_vm4, %v5324_v6  ;;  %5718 = vrot.lane.b32.xlu0 %v13267_v54, %s9082_s19  ;;  %v3458_v6 = vpop.f32.mrf.mxu2 }
 0x64d   : > { %8617 = vmatmul.msk.f32.gmra.mxu1 %vm2655_vm4, %v13269_v38  ;;  %v5153_v22 = vsel %vm4917_vm7, %v5150_v40, %v5152_v11  ;;  %v3459_v12 = vadd.f32 %v3458_v6, %v15041_v32  ;;  %v8713_v6 = vld [vmem:[%s14500_s6 + $0x1b0] sm:$0xff] }
 0x64e   : > { %v5170_v18 = vmax.f32 %v4858_v26, %v5153_v22  ;;  %v15039_v26 = vld [vmem:[#allocation55_spill] sm:$0xff]  ;;  %7657 = vmatpush.msra.mxu0 %v8713_v6 }
 0x650   : > { %v5225_v8 = vmax.f32 %v13127_v56, %v5170_v18 }
 0x652   : > { %v6297_v40 = vpop.f32.mrf.mxu0  ;;  %v5325_v5 = vmul.f32 %v5225_v8, %v15039_v26  ;;  %v5699_v8 = vpop.permute.xlu2 %5698 }
 0x653   : > { %v13288_v59 = vld [vmem:[#allocation3 + $0x204] sm:$0xff] }
 0x654   : > { %v6487_v45 = vpop.f32.mrf.mxu1  ;;  %v13290_v41 = vld [vmem:[#allocation3 + $0x200] sm:$0xff]  ;;  %5380 = vst.msk [vmem:[#allocation3 + $0x20c] sm:$0xff] %vm2655_vm4, %v5325_v5  ;;  %5720 = vrot.lane.b32.xlu1 %v13288_v59, %s9082_s19  ;;  %v13316_v5 = vsel %vm2655_vm4, %v13029_v58, %v5699_v8 }
 0x655   : > { %8618 = vmatmul.msk.f32.gmra.mxu1 %vm2655_vm4, %v13290_v41  ;;  %15043 = vst [vmem:[#allocation85_spill] sm:$0xff] %v13316_v5 }
 0x659   : > { %v5697_v56 = vpop.permute.xlu1 %5696 }
 0x65a   : > { %v6299_v43 = vpop.f32.mrf.mxu0  ;;  %v13299_v63 = vsel %vm2655_vm4, %v13009_v30, %v5697_v56 }
 0x65b   : > { %15040 = vst [vmem:[#allocation84_spill] sm:$0xff] %v13299_v63  ;;  %v13301_v22 = vld [vmem:[#allocation3 + $0x20c] sm:$0xff]  ;;  %6323 = vmatmul.f32.gmra.mxu0 %v13299_v63 }
 0x65c   : > { %v13304_v18 = vld [vmem:[#allocation3 + $0x208] sm:$0xff]  ;;  %5722 = vrot.lane.b32.xlu2 %v13301_v22, %s9082_s19 }
 0x65d   : > { %8619 = vmatmul.msk.f32.gmra.mxu1 %vm2655_vm4, %v13304_v18 }
 0x65f   : > { %v4666_v7 = vpop.f32.mrf.mxu3 }
 0x660   : > { %v4732_v40 = vadd.f32 %v4666_v7, %v3459_v12  ;;  %v5874_v7 = vld [vmem:[%s14500_s6 + $0x30] sm:$0xff] }
 0x661   : > { %8827 = vmatpush.msra.mxu3 %v5874_v7  ;;  %6607 = vmatpush.msra.mxu2 %v5874_v7 }
 0x662   : > { %v4798_v30 = vadd.f32 %v13197_v16, %v4732_v40  ;;  %v13312_v26 = vpop.f32.mrf.mxu0 }
 0x663   : > { %15042 = vst [vmem:[#allocation38_spill] sm:$0xff] %v13312_v26  ;;  %6325 = vmatmul.f32.gmra.mxu0 %v13316_v5  ;;  %v15046_v5 = vld [vmem:[#allocation87_spill] sm:$0xff] }
 0x664   : > { %v4860_v45 = vmax.f32 %v4798_v30, 0.0  ;;  %v15045_v30 = vld [vmem:[#allocation58_spill] sm:$0xff] }
 0x665   : > { %v6489_v43 = vpop.f32.mrf.mxu1 }
 0x666   : > { %v5154_v56 = vrot.slane %v4860_v45, 2 }
 0x667   : > { %v3461_v40 = vpop.f32.mrf.mxu2 }
 0x668   : > { %v5155_v32 = vsel %vm4917_vm7, %v5152_v11, %v5154_v56  ;;  %v3462_v63 = vadd.f32 %v3461_v40, %v15046_v5 }
 0x669   : > { %v5171_v12 = vmax.f32 %v4859_v20, %v5155_v32 }
 0x66a   : > { %v13326_v58 = vpop.f32.mrf.mxu0 }
 0x66b   : > { %15044 = vst [vmem:[#allocation81_spill] sm:$0xff] %v13326_v58  ;;  %v5226_v8 = vmax.f32 %v13147_v21, %v5171_v12 }
 0x66d   : > { %v5326_v43 = vmul.f32 %v5226_v8, %v15045_v30  ;;  %v6491_v3 = vpop.f32.mrf.mxu1 }
 0x66e   : > { %v4669_v55 = vpop.f32.mrf.mxu3 }
 0x66f   : > { %5381 = vst.msk [vmem:[#allocation3 + $0x214] sm:$0xff] %vm2655_vm4, %v5326_v43  ;;  %v4733_v20 = vadd.f32 %v4669_v55, %v3462_v63 }
 0x671   : > { %v4799_v11 = vadd.f32 %v13197_v16, %v4733_v20  ;;  %v5701_v6 = vpop.permute.xlu0 %5700 }
 0x672   : > { %v13333_v32 = vpop.f32.mrf.mxu0  ;;  %v13337_v58 = vsel %vm2655_vm4, %v13068_v60, %v5701_v6  ;;  %v15049_v60 = vmax.f32 %v13152_v17, %v13156_v34  ;;  %v5705_v17 = vpop.permute.xlu2 %5704 }
 0x673   : > { %15047 = vst [vmem:[#allocation51_spill] sm:$0xff] %v13333_v32  ;;  %v4861_v7 = vmax.f32 %v4799_v11, 0.0  ;;  %6327 = vmatmul.f32.gmra.mxu0 %v13337_v58  ;;  %v15052_v11 = vld [vmem:[#allocation62_spill] sm:$0xff]  ;;  %v13365_v34 = vsel %vm2655_vm4, %v13112_v51, %v5705_v17  ;;  %v13402_v17 = vld [vmem:[#allocation3 + $0x228] sm:$0xff] }
 0x674   : > { %15048 = vst [vmem:[#allocation83_spill] sm:$0xff] %v13337_v58  ;;  %v5384_v58 = vld [vmem:[#allocation3] sm:$0xff] }
 0x675   : > { %v5156_v21 = vrot.slane %v4861_v7, 2  ;;  %15053 = vst [vmem:[#allocation35_spill] sm:$0xff] %v13365_v34  ;;  %v6936_v32 = vld [vmem:[#allocation3 + $0x100] sm:$0xff] }
 0x676   : > { %v13340_v12 = vld [vmem:[#allocation3 + $0x214] sm:$0xff] }
 0x677   : > { %v13342_v3 = vld [vmem:[#allocation3 + $0x210] sm:$0xff]  ;;  %v5157_v5 = vsel %vm4917_vm7, %v5154_v56, %v5156_v21  ;;  %v5173_v55 = vmax.f32 %v4861_v7, %v5156_v21  ;;  %5724 = vrot.lane.b32.xlu0 %v13340_v12, %s9082_s19  ;;  %v15051_v56 = vld [vmem:[#allocation63_spill] sm:$0xff] }
 0x678   : > { %8620 = vmatmul.msk.f32.gmra.mxu1 %vm2655_vm4, %v13342_v3  ;;  %v5172_v16 = vmax.f32 %v4860_v45, %v5157_v5  ;;  %v5905_v45 = vld [vmem:[#allocation3 + $0x22c] sm:$0xff]  ;;  %v5908_v21 = vld [vmem:[#allocation3 + $0x244] sm:$0xff] }
 0x679   : > { %v5228_v63 = vmax.f32 %v15049_v60, %v5173_v55  ;;  %v5703_v40 = vpop.permute.xlu1 %5702  ;;  %v5873_v60 = vld [vmem:[%s14500_s6 + $0x28] sm:$0xff] }
 0x67a   : > { %v5227_v8 = vmax.f32 %v13172_v25, %v5172_v16  ;;  %v6310_v30 = vpop.f32.mrf.mxu0  ;;  %v13355_v43 = vsel %vm2655_vm4, %v13083_v48, %v5703_v40  ;;  %v8725_v40 = vld [vmem:[%s14500_s6 + $0x210] sm:$0xff]  ;;  %8828 = vmatpush.msra.mxu3 %v5873_v60  ;;  %6608 = vmatpush.msra.mxu2 %v5873_v60  ;;  %v5913_v60 = vld [vmem:[#allocation3 + $0x26c] sm:$0xff] }
 0x67b   : > { %15050 = vst [vmem:[#allocation53_spill] sm:$0xff] %v13355_v43  ;;  %v5328_v20 = vmul.f32 %v5228_v63, %v15051_v56  ;;  %6329 = vmatmul.f32.gmra.mxu0 %v13355_v43  ;;  %v8712_v63 = vld [vmem:[%s14500_s6 + $0x1a8] sm:$0xff]  ;;  %7828 = vmatpush.msra.mxu1 %v8725_v40  ;;  %v13416_v40 = vld [vmem:[#allocation3 + $0x230] sm:$0xff] }
 0x67c   : > { %v5327_v6 = vmul.f32 %v5227_v8, %v15052_v11  ;;  %v5907_v30 = vld [vmem:[#allocation3 + $0x23c] sm:$0xff]  ;;  %7658 = vmatpush.msra.mxu0 %v8712_v63  ;;  %v5906_v56 = vld [vmem:[#allocation3 + $0x234] sm:$0xff]  ;;  %v5912_v63 = vld [vmem:[#allocation3 + $0x264] sm:$0xff] }
 0x67d   : > { %v6493_v7 = vpop.f32.mrf.mxu1  ;;  %5383 = vst.msk [vmem:[#allocation3 + $0x224] sm:$0xf] %vm5243_vm6, %v5328_v20  ;;  %v5911_v11 = vld [vmem:[#allocation3 + $0x25c] sm:$0xff] }
 0x67e   : > { %5382 = vst.msk [vmem:[#allocation3 + $0x21c] sm:$0xff] %vm2655_vm4, %v5327_v6 }
 0x67f   : > { %5934 = vrot.lane.b32.xlu0 %v5905_v45, %s9082_s19  ;;  %v5909_v45 = vld [vmem:[#allocation3 + $0x24c] sm:$0xff] }
 0x683   : > { %6331 = vmatmul.f32.gmra.mxu0 %v13365_v34 }
 0x684   : > { %v13368_v48 = vld [vmem:[#allocation3 + $0x224] sm:$0xff]  ;;  %v6312_v5 = vpop.f32.mrf.mxu0 }
 0x685   : > { %v6495_v25 = vpop.f32.mrf.mxu1  ;;  %5728 = vrot.lane.b32.xlu2 %v13368_v48, %s9082_s19  ;;  %v13372_v55 = vld [vmem:[#allocation3 + $0x21c] sm:$0xff] }
 0x686   : > { %v13374_v16 = vld [vmem:[#allocation3 + $0x218] sm:$0xff]  ;;  %5726 = vrot.lane.b32.xlu1 %v13372_v55, %s9082_s19  ;;  %v13396_v7 = vld [vmem:[#allocation3 + $0x220] sm:$0xff] }
 0x687   : > { %8621 = vmatmul.msk.f32.gmra.mxu1 %vm2655_vm4, %v13374_v16  ;;  %5940 = vrot.lane.b32.xlu0 %v5908_v21, %s9082_s19  ;;  %v5914_v25 = vld [vmem:[#allocation3 + $0x274] sm:$0xff] }
 0x689   : > { %v5707_v51 = vpop.permute.xlu0 %5706 }
 0x68a   : > { %v13392_v8 = vsel %vm2655_vm4, %v13131_v49, %v5707_v51  ;;  %v5910_v49 = vld [vmem:[#allocation3 + $0x254] sm:$0xff] }
 0x68b   : > { %15054 = vst [vmem:[#allocation88_spill] sm:$0xff] %v13392_v8  ;;  %6334 = vmatmul.f32.gmra.mxu0 %v13392_v8 }
 0x68c   : > { %v6314_v6 = vpop.f32.mrf.mxu0 }
 0x68d   : > { %v6497_v20 = vpop.f32.mrf.mxu1  ;;  %5938 = vrot.lane.b32.xlu2 %v5907_v30, %s9082_s19  ;;  %v5711_v30 = vpop.permute.xlu2 %5710  ;;  %v5455_v6 = vld [vmem:[#allocation3 + $0x14] sm:$0xff] }
 0x68e   : > { %5936 = vrot.lane.b32.xlu1 %v5906_v56, %s9082_s19  ;;  %v5917_v56 = vld [vmem:[#allocation3 + $0x28c] sm:$0xff] }
 0x68f   : > { %8622 = vmatmul.msk.f32.gmra.mxu1 %vm2655_vm4, %v13396_v7  ;;  %5946 = vrot.lane.b32.xlu0 %v5911_v11, %s9082_s19  ;;  %v5916_v11 = vld [vmem:[#allocation3 + $0x284] sm:$0xff] }
 0x695   : > { %5944 = vrot.lane.b32.xlu2 %v5910_v49, %s9082_s19  ;;  %v5709_v21 = vpop.permute.xlu1 %5708  ;;  %v13414_v51 = vpop.f32.mrf.mxu1  ;;  %v7002_v49 = vld [vmem:[#allocation3 + $0xec] sm:$0xff] }
 0x696   : > { %5942 = vrot.lane.b32.xlu1 %v5909_v45, %s9082_s19  ;;  %v13411_v5 = vsel %vm2655_vm4, %v13160_v9, %v5709_v21  ;;  %15056 = vst [vmem:[#allocation90_spill] sm:$0xff] %v13414_v51  ;;  %v13425_v9 = vsel %vm2655_vm4, %v13180_v28, %v5711_v30  ;;  %v5915_v45 = vld [vmem:[#allocation3 + $0x27c] sm:$0xff]  ;;  %v8931_v21 = vpack.i.bf16 %v7002_v49, %v5455_v6  ;;  %v5918_v30 = vld [vmem:[#allocation3 + $0x294] sm:$0xff] }
 0x697   : > { %8623 = vmatmul.msk.f32.gmra.mxu1 %vm2655_vm4, %v13402_v17  ;;  %5952 = vrot.lane.b32.xlu0 %v5914_v25, %s9082_s19  ;;  %15055 = vst [vmem:[#allocation97_spill] sm:$0xff] %v13411_v5  ;;  %v13430_v25 = vld [vmem:[#allocation3 + $0x238] sm:$0xff]  ;;  %v5872_v6 = vld [vmem:[%s14500_s6 + $0x20] sm:$0xff] }
 0x698   : > { %6337 = vmatmul.f32.gmra.mxu0 %v13411_v5  ;;  %15057 = vst [vmem:[#allocation99_spill] sm:$0xff] %v13425_v9  ;;  %8829 = vmatpush.msra.mxu3 %v5872_v6  ;;  %v13462_v5 = vld [vmem:[#allocation3 + $0x248] sm:$0xff] }
 0x699   : > { %6609 = vmatpush.msra.mxu2 %v5872_v6 }
 0x69d   : > { %5950 = vrot.lane.b32.xlu2 %v5913_v60, %s9082_s19 }
 0x69e   : > { %5948 = vrot.lane.b32.xlu1 %v5912_v63, %s9082_s19  ;;  %v5453_v63 = vld [vmem:[#allocation3 + $0x4] sm:$0xff]  ;;  %v5717_v8 = vpop.permute.xlu2 %5716 }
 0x69f   : > { %8624 = vmatmul.msk.f32.gmra.mxu1 %vm2655_vm4, %v13416_v40  ;;  %5958 = vrot.lane.b32.xlu0 %v5917_v56, %s9082_s19  ;;  %v5454_v56 = vld [vmem:[#allocation3 + $0xc] sm:$0xff]  ;;  %v8921_v49 = vpack.i.bf16 %v5918_v30, %v5453_v63 }
 0x6a0   : > { %6340 = vmatmul.f32.gmra.mxu0 %v13425_v9  ;;  %v7005_v9 = vld [vmem:[#allocation3 + $0x104] sm:$0xff] }
 0x6a1   : > { %v13428_v20 = vpop.f32.mrf.mxu1 }
 0x6a2   : > { %15058 = vst [vmem:[#allocation47_spill] sm:$0xff] %v13428_v20  ;;  %v7001_v20 = vld [vmem:[#allocation3 + $0xe4] sm:$0xff] }
 0x6a5   : > { %5956 = vrot.lane.b32.xlu2 %v5916_v11, %s9082_s19 }
 0x6a6   : > { %5954 = vrot.lane.b32.xlu1 %v5915_v45, %s9082_s19  ;;  %v5713_v28 = vpop.permute.xlu0 %5712  ;;  %v5458_v45 = vld [vmem:[#allocation3 + $0x2c] sm:$0xff] }
 0x6a7   : > { %8625 = vmatmul.msk.f32.gmra.mxu1 %vm2655_vm4, %v13430_v25  ;;  %8932 = vrot.lane.b32.xlu0 %v8931_v21, %s9082_s19  ;;  %v13439_v60 = vsel %vm2655_vm4, %v13209_v62, %v5713_v28  ;;  %v8926_v21 = vpack.i.bf16 %v7001_v20, %v5454_v56  ;;  %v13447_v62 = vld [vmem:[#allocation3 + $0x240] sm:$0xff]  ;;  %v8946_v28 = vpack.i.bf16 %v7005_v9, %v5458_v45 }
 0x6a8   : > { %15059 = vst [vmem:[#allocation94_spill] sm:$0xff] %v13439_v60  ;;  %6342 = vmatmul.f32.gmra.mxu0 %v13439_v60  ;;  %v8711_v60 = vld [vmem:[%s14500_s6 + $0x1a0] sm:$0xff]  ;;  %v5457_v56 = vld [vmem:[#allocation3 + $0x24] sm:$0xff]  ;;  %v7004_v9 = vld [vmem:[#allocation3 + $0xfc] sm:$0xff] }
 0x6a9   : > { %7659 = vmatpush.msra.mxu0 %v8711_v60  ;;  %v5456_v45 = vld [vmem:[#allocation3 + $0x1c] sm:$0xff]  ;;  %v8941_v51 = vpack.i.bf16 %v7004_v9, %v5457_v56  ;;  %v7007_v56 = vld [vmem:[#allocation3 + $0x114] sm:$0xff] }
 0x6aa   : > { %v13442_v11 = vpop.f32.mrf.mxu1  ;;  %v5459_v9 = vld [vmem:[#allocation3 + $0x34] sm:$0xff] }
 0x6ab   : > { %15060 = vst [vmem:[#allocation42_spill] sm:$0xff] %v13442_v11  ;;  %v7008_v11 = vld [vmem:[#allocation3 + $0x11c] sm:$0xff] }
 0x6ad   : > { %8927 = vrot.lane.b32.xlu2 %v8926_v21, %s9082_s19  ;;  %v7003_v21 = vld [vmem:[#allocation3 + $0xf4] sm:$0xff] }
 0x6ae   : > { %8922 = vrot.lane.b32.xlu1 %v8921_v49, %s9082_s19  ;;  %v5715_v63 = vpop.permute.xlu1 %5714  ;;  %v5461_v49 = vld [vmem:[#allocation3 + $0x44] sm:$0xff] }
 0x6af   : > { %8626 = vmatmul.msk.f32.gmra.mxu1 %vm2655_vm4, %v13447_v62  ;;  %8947 = vrot.lane.b32.xlu0 %v8946_v28, %s9082_s19  ;;  %v6316_v30 = vpop.f32.mrf.mxu0  ;;  %v13459_v20 = vsel %vm2655_vm4, %v13232_v1, %v5715_v63  ;;  %v8936_v28 = vpack.i.bf16 %v7003_v21, %v5456_v45  ;;  %v8961_v60 = vpack.i.bf16 %v7008_v11, %v5461_v49  ;;  %v5464_v11 = vld [vmem:[#allocation3 + $0x5c] sm:$0xff]  ;;  %v7011_v45 = vld [vmem:[#allocation3 + $0x134] sm:$0xff] }
 0x6b0   : > { %15061 = vst [vmem:[#allocation95_spill] sm:$0xff] %v13459_v20  ;;  %6344 = vmatmul.f32.gmra.mxu0 %v13459_v20  ;;  %v13471_v63 = vsel %vm2655_vm4, %v13251_v53, %v5717_v8  ;;  %v5460_v30 = vld [vmem:[#allocation3 + $0x3c] sm:$0xff]  ;;  %v13474_v49 = vld [vmem:[#allocation3 + $0x250] sm:$0xff] }
 0x6b1   : > { %15062 = vst [vmem:[#allocation45_spill] sm:$0xff] %v13471_v63  ;;  %v8956_v21 = vpack.i.bf16 %v7007_v56, %v5460_v30  ;;  %v5463_v30 = vld [vmem:[#allocation3 + $0x54] sm:$0xff]  ;;  %v7010_v56 = vld [vmem:[#allocation3 + $0x12c] sm:$0xff] }
 0x6b2   : > { %v6508_v6 = vpop.f32.mrf.mxu1 }
 0x6b3   : > { %v7006_v6 = vld [vmem:[#allocation3 + $0x10c] sm:$0xff] }
 0x6b5   : > { %8942 = vrot.lane.b32.xlu2 %v8941_v51, %s9082_s19 }
 0x6b6   : > { %8937 = vrot.lane.b32.xlu1 %v8936_v28, %s9082_s19  ;;  %v8951_v28 = vpack.i.bf16 %v7006_v6, %v5459_v9  ;;  %v5462_v9 = vld [vmem:[#allocation3 + $0x4c] sm:$0xff]  ;;  %v7009_v6 = vld [vmem:[#allocation3 + $0x124] sm:$0xff] }
 0x6b7   : > { %8627 = vmatmul.msk.f32.gmra.mxu1 %vm2655_vm4, %v13462_v5  ;;  %8962 = vrot.lane.b32.xlu0 %v8961_v60, %s9082_s19  ;;  %v6318_v1 = vpop.f32.mrf.mxu0  ;;  %v8976_v60 = vpack.i.bf16 %v7011_v45, %v5464_v11  ;;  %v8971_v11 = vpack.i.bf16 %v7010_v56, %v5463_v30  ;;  %v13486_v45 = vld [vmem:[#allocation3 + $0x258] sm:$0xff]  ;;  %v5466_v30 = vld [vmem:[#allocation3 + $0x6c] sm:$0xff]  ;;  %v7013_v56 = vld [vmem:[#allocation3 + $0x144] sm:$0xff] }
 0x6b8   : > { %6346 = vmatmul.f32.gmra.mxu0 %v13471_v63 }
 0x6ba   : > { %v6510_v51 = vpop.f32.mrf.mxu1 }
 0x6bd   : > { %8957 = vrot.lane.b32.xlu2 %v8956_v21, %s9082_s19  ;;  %v8966_v21 = vpack.i.bf16 %v7009_v6, %v5462_v9  ;;  %v5465_v9 = vld [vmem:[#allocation3 + $0x64] sm:$0xff]  ;;  %v7012_v6 = vld [vmem:[#allocation3 + $0x13c] sm:$0xff] }
 0x6be   : > { %8952 = vrot.lane.b32.xlu1 %v8951_v28, %s9082_s19  ;;  %v5719_v53 = vpop.permute.xlu0 %5718 }
 0x6bf   : > { %8628 = vmatmul.msk.f32.gmra.mxu1 %vm2655_vm4, %v13474_v49  ;;  %8977 = vrot.lane.b32.xlu0 %v8976_v60, %s9082_s19  ;;  %v6320_v8 = vpop.f32.mrf.mxu0  ;;  %v13483_v1 = vsel %vm2655_vm4, %v13269_v38, %v5719_v53  ;;  %v7014_v38 = vld [vmem:[#allocation3 + $0x14c] sm:$0xff] }
 0x6c0   : > { %15063 = vst [vmem:[#allocation96_spill] sm:$0xff] %v13483_v1  ;;  %6348 = vmatmul.f32.gmra.mxu0 %v13483_v1  ;;  %v5871_v60 = vld [vmem:[%s14500_s6 + $0x18] sm:$0xff]  ;;  %v5723_v1 = vpop.permute.xlu2 %5722 }
 0x6c1   : > { %8830 = vmatpush.msra.mxu3 %v5871_v60  ;;  %6610 = vmatpush.msra.mxu2 %v5871_v60  ;;  %v8724_v60 = vld [vmem:[%s14500_s6 + $0x208] sm:$0xff] }
 0x6c2   : > { %v6512_v51 = vpop.f32.mrf.mxu1  ;;  %7829 = vmatpush.msra.mxu1 %v8724_v60  ;;  %v5890_v60 = vld [vmem:[%s14500_s6 + $0xb0] sm:$0xff] }
 0x6c5   : > { %8972 = vrot.lane.b32.xlu2 %v8971_v11, %s9082_s19  ;;  %v8986_v11 = vpack.i.bf16 %v7013_v56, %v5466_v30  ;;  %v13519_v56 = vld [vmem:[#allocation3 + $0x268] sm:$0xff] }
 0x6c6   : > { %8967 = vrot.lane.b32.xlu1 %v8966_v21, %s9082_s19  ;;  %v5721_v28 = vpop.permute.xlu1 %5720  ;;  %v13501_v21 = vld [vmem:[#allocation3 + $0x260] sm:$0xff] }
 0x6c7   : > { %8629 = vmatmul.msk.f32.gmra.mxu1 %vm2655_vm4, %v13486_v45  ;;  %7166 = vrot.lane.b32.xlu0 %v7014_v38, %s9082_s19  ;;  %v6322_v53 = vpop.f32.mrf.mxu0  ;;  %v13498_v8 = vsel %vm2655_vm4, %v13290_v41, %v5721_v28  ;;  %v8981_v38 = vpack.i.bf16 %v7012_v6, %v5465_v9  ;;  %v7017_v41 = vld [vmem:[#allocation3 + $0x164] sm:$0xff]  ;;  %v7016_v9 = vld [vmem:[#allocation3 + $0x15c] sm:$0xff] }
 0x6c8   : > { %15064 = vst [vmem:[#allocation11_spill] sm:$0xff] %v13498_v8  ;;  %6350 = vmatmul.f32.gmra.mxu0 %v13498_v8  ;;  %v8710_v28 = vld [vmem:[%s14500_s6 + $0x198] sm:$0xff]  ;;  %v13516_v53 = vsel %vm2655_vm4, %v13304_v18, %v5723_v1  ;;  %v5870_v6 = vld [vmem:[%s14500_s6 + $0x10] sm:$0xff]  ;;  %v5869_v1 = vld [vmem:[%s14500_s6 + $0x8] sm:$0xff] }
 0x6c9   : > { %15065 = vst [vmem:[#allocation98_spill] sm:$0xff] %v13516_v53  ;;  %7660 = vmatpush.msra.mxu0 %v8710_v28  ;;  %8831 = vmatpush.msra.mxu3 %v5870_v6  ;;  %v7020_v18 = vld [vmem:[#allocation3 + $0x17c] sm:$0xff]  ;;  %v5891_v28 = vld [vmem:[%s14500_s6 + $0xb8] sm:$0xff] }
 0x6ca   : > { %v6514_v51 = vpop.f32.mrf.mxu1  ;;  %6611 = vmatpush.msra.mxu2 %v5870_v6  ;;  %v7018_v6 = vld [vmem:[#allocation3 + $0x16c] sm:$0xff] }
 0x6cb   : > { %v7015_v51 = vld [vmem:[#allocation3 + $0x154] sm:$0xff]  ;;  %8832 = vmatpush.msra.mxu3 %v5869_v1 }
 0x6cc   : > { %6612 = vmatpush.msra.mxu2 %v5869_v1 }
 0x6cd   : > { %8987 = vrot.lane.b32.xlu2 %v8986_v11, %s9082_s19  ;;  %v5868_v11 = vld [vmem:[%s14500_s6] sm:$0xff] }
 0x6ce   : > { %8982 = vrot.lane.b32.xlu1 %v8981_v38, %s9082_s19  ;;  %8833 = vmatpush.msra.mxu3 %v5868_v11 }
 0x6cf   : > { %8630 = vmatmul.msk.f32.gmra.mxu1 %vm2655_vm4, %v13501_v21  ;;  %7172 = vrot.lane.b32.xlu0 %v7017_v41, %s9082_s19 }
 0x6d0   : > { %6352 = vmatmul.f32.gmra.mxu0 %v13516_v53  ;;  %6773 = vmatpush.msrb.mxu3 %v5891_v28  ;;  %v5887_v28 = vld [vmem:[%s14500_s6 + $0x98] sm:$0xff]  ;;  %v7024_v53 = vld [vmem:[#allocation3 + $0x19c] sm:$0xff] }
 0x6d1   : > { %6613 = vmatpush.msra.mxu2 %v5868_v11  ;;  %v5888_v11 = vld [vmem:[%s14500_s6 + $0xa0] sm:$0xff] }
 0x6d2   : > { %v6516_v30 = vpop.f32.mrf.mxu1  ;;  %6774 = vmatpush.msrb.mxu3 %v5890_v60  ;;  %v7022_v60 = vld [vmem:[#allocation3 + $0x18c] sm:$0xff] }
 0x6d3   : > { %v13541_v30 = vld [vmem:[#allocation3 + $0x270] sm:$0xff] }
 0x6d5   : > { %7170 = vrot.lane.b32.xlu2 %v7016_v9, %s9082_s19  ;;  %v7019_v9 = vld [vmem:[#allocation3 + $0x174] sm:$0xff] }
 0x6d6   : > { %7168 = vrot.lane.b32.xlu1 %v7015_v51, %s9082_s19  ;;  %v7023_v51 = vld [vmem:[#allocation3 + $0x194] sm:$0xff] }
 0x6d7   : > { %8631 = vmatmul.msk.f32.gmra.mxu1 %vm2655_vm4, %v13519_v56  ;;  %7178 = vrot.lane.b32.xlu0 %v7020_v18, %s9082_s19  ;;  %v5889_v18 = vld [vmem:[%s14500_s6 + $0xa8] sm:$0xff] }
 0x6d8   : > { %v6324_v38 = vpop.f32.mrf.mxu0  ;;  %6775 = vmatpush.msrb.mxu3 %v5889_v18  ;;  %v9012_v18 = vld [vmem:[#allocation3 + $0x1ac] sm:$0xff] }
 0x6da   : > { %v6518_v41 = vpop.f32.mrf.mxu1  ;;  %6776 = vmatpush.msrb.mxu3 %v5888_v11 }
 0x6db   : > { %v13554_v41 = vld [vmem:[#allocation3 + $0x278] sm:$0xff] }
 0x6dc   : > { %6777 = vmatpush.msrb.mxu3 %v5887_v28 }
 0x6dd   : > { %7176 = vrot.lane.b32.xlu2 %v7019_v9, %s9082_s19  ;;  %v5886_v9 = vld [vmem:[%s14500_s6 + $0x90] sm:$0xff] }
 0x6de   : > { %7174 = vrot.lane.b32.xlu1 %v7018_v6, %s9082_s19  ;;  %v7021_v6 = vld [vmem:[#allocation3 + $0x184] sm:$0xff]  ;;  %6778 = vmatpush.msrb.mxu3 %v5886_v9 }
 0x6df   : > { %8632 = vmatmul.msk.f32.gmra.mxu1 %vm2655_vm4, %v13541_v30  ;;  %7184 = vrot.lane.b32.xlu0 %v7023_v51, %s9082_s19  ;;  %v5729_v1 = vpop.permute.xlu2 %5728  ;;  %v5885_v51 = vld [vmem:[%s14500_s6 + $0x88] sm:$0xff]  ;;  %v9013_v9 = vld [vmem:[#allocation3 + $0x1a4] sm:$0xff] }
 0x6e0   : > { %v6326_v38 = vpop.f32.mrf.mxu0  ;;  %6779 = vmatpush.msrb.mxu3 %v5885_v51 }
 0x6e1   : > { %v5884_v38 = vld [vmem:[%s14500_s6 + $0x80] sm:$0xff] }
 0x6e2   : > { %6780 = vmatpush.msrb.mxu3 %v5884_v38 }
 0x6e5   : > { %7182 = vrot.lane.b32.xlu2 %v7022_v60, %s9082_s19 }
 0x6e6   : > { %7180 = vrot.lane.b32.xlu1 %v7021_v6, %s9082_s19  ;;  %v13580_v6 = vld [vmem:[#allocation3 + $0x280] sm:$0xff] }
 0x6e7   : > { %8633 = vmatmul.msk.f32.gmra.mxu1 %vm2655_vm4, %v13554_v41  ;;  %7190 = vrot.lane.b32.xlu0 %v9012_v18, %s9082_s19  ;;  %v13570_v11 = vpop.permute.xlu2 %5938  ;;  %v8723_v18 = vld [vmem:[%s14500_s6 + $0x200] sm:$0xff] }
 0x6e8   : > { %7830 = vmatpush.msra.mxu1 %v8723_v18  ;;  %v8709_v18 = vld [vmem:[%s14500_s6 + $0x190] sm:$0xff] }
 0x6e9   : > { %v5725_v28 = vpop.permute.xlu0 %5724  ;;  %7661 = vmatpush.msra.mxu0 %v8709_v18 }
 0x6ea   : > { %v13577_v60 = vsel %vm2655_vm4, %v13342_v3, %v5725_v28  ;;  %v13593_v28 = vld [vmem:[#allocation3 + $0x288] sm:$0xff] }
 0x6eb   : > { %15066 = vst [vmem:[#allocation14_spill] sm:$0xff] %v13577_v60  ;;  %6354 = vmatmul.f32.gmra.mxu0 %v13577_v60 }
 0x6ed   : > { %7188 = vrot.lane.b32.xlu2 %v9013_v9, %s9082_s19 }
 0x6ee   : > { %7186 = vrot.lane.b32.xlu1 %v7024_v53, %s9082_s19  ;;  %v9014_v53 = vld [vmem:[#allocation3 + $0x1b4] sm:$0xff] }
 0x6ef   : > { %8634 = vmatmul.msk.f32.gmra.mxu1 %vm2655_vm4, %v13580_v6  ;;  %7196 = vrot.lane.b32.xlu0 %v13110_v29, %s9082_s19  ;;  %v13591_v3 = vpop.permute.xlu2 %5944 }
 0x6f0   : > { %v6328_v51 = vpop.f32.mrf.mxu0 }
 0x6f1   : > { %v5935_v38 = vpop.permute.xlu0 %5934 }
 0x6f5   : > { %v6520_v9 = vpop.f32.mrf.mxu1  ;;  %7194 = vrot.lane.b32.xlu2 %v13081_v35, %s9082_s19  ;;  %v13611_v35 = vld [vmem:[#allocation3 + $0x290] sm:$0xff] }
 0x6f6   : > { %7192 = vrot.lane.b32.xlu1 %v9014_v53, %s9082_s19  ;;  %v5867_v9 = vsel %vm2655_vm4, %v13396_v7, %v5729_v1  ;;  %v5976_v7 = vsel %vm2655_vm4, %v13402_v17, %v5935_v38  ;;  %v13640_v1 = vld [vmem:[#allocation3 + $0x8] sm:$0xff] }
 0x6f7   : > { %8635 = vmatmul.msk.f32.gmra.mxu1 %vm2655_vm4, %v13593_v28  ;;  %7202 = vrot.lane.b32.xlu0 %v13178_v39, %s9082_s19  ;;  %v13605_v29 = vpop.permute.xlu2 %5950 }
 0x6f8   : > { %v5727_v51 = vpop.permute.xlu1 %5726  ;;  %v6330_v60 = vpop.f32.mrf.mxu0 }
 0x6f9   : > { %v13607_v8 = vpop.permute.xlu0 %5940  ;;  %v5866_v18 = vsel %vm2655_vm4, %v13374_v16, %v5727_v51 }
 0x6fa   : > { %6356 = vmatmul.f32.gmra.mxu0 %v5866_v18  ;;  %6760 = vmatmul.f32.vlgmr.msra.gmra.mxu3 %v5866_v18 }
 0x6fd   : > { %7200 = vrot.lane.b32.xlu2 %v13158_v33, %s9082_s19 }
 0x6fe   : > { %7198 = vrot.lane.b32.xlu1 %v13129_v36, %s9082_s19  ;;  %v5919_v36 = vld [vmem:[#allocation3 + $0x298] sm:$0xff] }
 0x6ff   : > { %8636 = vmatmul.msk.f32.gmra.mxu1 %vm2655_vm4, %v13611_v35  ;;  %7208 = vrot.lane.b32.xlu0 %v13249_v19, %s9082_s19  ;;  %v13621_v39 = vpop.permute.xlu2 %5956 }
 0x700   : > { %v5937_v60 = vpop.permute.xlu1 %5936  ;;  %v13627_v33 = vpop.f32.mrf.mxu0 }
 0x701   : > { %v13623_v16 = vpop.permute.xlu0 %5946  ;;  %15067 = vst [vmem:[#allocation4_spill] sm:$0xff] %v13627_v33  ;;  %v5977_v38 = vsel %vm2655_vm4, %v13416_v40, %v5937_v60  ;;  %v8708_v40 = vld [vmem:[%s14500_s6 + $0x188] sm:$0xff] }
 0x702   : > { %6358 = vmatmul.f32.gmra.mxu0 %v5867_v9  ;;  %6762 = vmatmul.f32.gmra.mxu3 %v5867_v9  ;;  %v13661_v9 = vld [vmem:[#allocation3 + $0x10] sm:$0xff] }
 0x703   : > { %7662 = vmatpush.msra.mxu0 %v8708_v40  ;;  %v13695_v40 = vld [vmem:[#allocation3 + $0x110] sm:$0xff] }
 0x704   : > { %v6522_v53 = vpop.f32.mrf.mxu1 }
 0x705   : > { %7206 = vrot.lane.b32.xlu2 %v13230_v46, %s9082_s19 }
 0x706   : > { %7204 = vrot.lane.b32.xlu1 %v13207_v10, %s9082_s19 }
 0x707   : > { %8637 = vmatmul.msk.f32.gmra.mxu1 %vm2655_vm4, %v5919_v36  ;;  %7214 = vrot.lane.b32.xlu0 %v13301_v22, %s9082_s19  ;;  %v13636_v19 = vpop.permute.xlu2 %8927  ;;  %v6933_v22 = vld [vmem:[#allocation3 + $0xe8] sm:$0xff] }
 0x708   : > { %v13642_v51 = vpop.permute.xlu1 %5942  ;;  %v13648_v46 = vpop.f32.mrf.mxu0 }
 0x709   : > { %v13644_v18 = vpop.permute.xlu0 %5952  ;;  %15068 = vst [vmem:[#allocation100_spill] sm:$0xff] %v13648_v46 }
 0x70a   : > { %6360 = vmatmul.f32.gmra.mxu0 %v5976_v7  ;;  %8638 = vmatmul.msk.f32.vlgmr.msrb.gmra.mxu3 %vm2655_vm4, %v13640_v1  ;;  %v6935_v7 = vld [vmem:[#allocation3 + $0xf8] sm:$0xff] }
 0x70c   : > { %v6524_v10 = vpop.f32.mrf.mxu1 }
 0x70d   : > { %7212 = vrot.lane.b32.xlu2 %v13288_v59, %s9082_s19  ;;  %v6934_v10 = vld [vmem:[#allocation3 + $0xf0] sm:$0xff] }
 0x70e   : > { %7210 = vrot.lane.b32.xlu1 %v13267_v54, %s9082_s19 }
 0x70f   : > { %8731 = vmatmul.msk.f32.vlgmr.msra.gmra.mxu1 %vm2655_vm4, %v6933_v22  ;;  %7220 = vrot.lane.b32.xlu0 %v13368_v48, %s9082_s19  ;;  %v13657_v17 = vpop.permute.xlu2 %8942 }
 0x710   : > { %v8945_v53 = vunpack.i.h.bf16 %v13657_v17  ;;  %v13664_v36 = vpop.permute.xlu1 %5948 }
 0x711   : > { %v13666_v59 = vpop.permute.xlu0 %5958 }
 0x712   : > { %6362 = vmatmul.f32.gmra.mxu0 %v5977_v38  ;;  %8639 = vmatmul.msk.f32.gmra.mxu3 %vm2655_vm4, %v13661_v9  ;;  %v13671_v54 = vsel %vm2655_vm4, %v6935_v7, %v8945_v53  ;;  %v5978_v53 = vsel %vm2655_vm4, %v13430_v25, %v13570_v11 }
 0x714   : > { %v6526_v48 = vpop.f32.mrf.mxu1 }
 0x715   : > { %7218 = vrot.lane.b32.xlu2 %v13372_v55, %s9082_s19  ;;  %v13678_v60 = vpop.f32.mrf.mxu0  ;;  %v13688_v48 = vld [vmem:[#allocation3 + $0x18] sm:$0xff] }
 0x716   : > { %15069 = vst [vmem:[#allocation101_spill] sm:$0xff] %v13678_v60  ;;  %7216 = vrot.lane.b32.xlu1 %v13340_v12, %s9082_s19 }
 0x717   : > { %8732 = vmatmul.msk.f32.gmra.mxu1 %vm2655_vm4, %v6934_v10  ;;  %v13683_v38 = vpop.permute.xlu2 %8957 }
 0x718   : > { %v8960_v46 = vunpack.i.h.bf16 %v13683_v38  ;;  %v13691_v55 = vpop.permute.xlu1 %5954 }
 0x719   : > { %v13693_v63 = vpop.permute.xlu0 %8932 }
 0x71a   : > { %v8935_v12 = vunpack.i.h.bf16 %v13693_v63  ;;  %6364 = vmatmul.f32.gmra.mxu0 %v5978_v53  ;;  %8640 = vmatmul.msk.f32.gmra.mxu3 %vm2655_vm4, %v13688_v48  ;;  %v13702_v20 = vsel %vm2655_vm4, %v13695_v40, %v8960_v46  ;;  %v5979_v53 = vsel %vm2655_vm4, %v13447_v62, %v13607_v8  ;;  %v8934_v0 = vunpack.i.l.bf16 %v13693_v63 }
 0x71c   : > { %v6528_v25 = vpop.f32.mrf.mxu1  ;;  %v13705_v11 = vsel %vm2655_vm4, %v6933_v22, %v8935_v12  ;;  %v13719_v22 = vld [vmem:[#allocation3 + $0x20] sm:$0xff] }
 0x71d   : > { %v6341_v60 = vpop.f32.mrf.mxu0 }
 0x71e   : > { %v13721_v60 = vld [vmem:[#allocation3 + $0x128] sm:$0xff] }
 0x71f   : > { %8733 = vmatmul.msk.f32.gmra.mxu1 %vm2655_vm4, %v6935_v7  ;;  %v13708_v33 = vpop.permute.xlu2 %8972 }
 0x720   : > { %v8975_v34 = vunpack.i.h.bf16 %v13708_v33  ;;  %v13714_v43 = vpop.permute.xlu1 %8922 }
 0x721   : > { %v8924_v46 = vunpack.i.l.bf16 %v13714_v43  ;;  %v13717_v25 = vpop.permute.xlu0 %8947 }
 0x722   : > { %v8950_v7 = vunpack.i.h.bf16 %v13717_v25  ;;  %6366 = vmatmul.f32.gmra.mxu0 %v5979_v53  ;;  %8641 = vmatmul.msk.f32.gmra.mxu3 %vm2655_vm4, %v13719_v22  ;;  %v13728_v62 = vsel %vm2655_vm4, %v13721_v60, %v8975_v34  ;;  %v8929_v53 = vunpack.i.l.bf16 %v13636_v19  ;;  %v5980_v34 = vsel %vm2655_vm4, %v13462_v5, %v13642_v51 }
 0x723   : > { %15070 = vst [vmem:[#allocation6_spill] sm:$0xff] %v13728_v62  ;;  %v5799_v12 = vsel %vm2655_vm4, %v5384_v58, %v8924_v46 }
 0x724   : > { %v6530_v8 = vpop.f32.mrf.mxu1  ;;  %6614 = vmatmul.f32.vlgmr.msra.gmra.mxu2 %v5799_v12  ;;  %v13732_v26 = vsel %vm2655_vm4, %v6936_v32, %v8950_v7  ;;  %v13744_v12 = vld [vmem:[#allocation3 + $0x28] sm:$0xff]  ;;  %v13746_v7 = vld [vmem:[#allocation3 + $0x140] sm:$0xff]  ;;  %v5800_v51 = vsel %vm2655_vm4, %v13640_v1, %v8929_v53 }
 0x725   : > { %v6343_v47 = vpop.f32.mrf.mxu0 }
 0x727   : > { %8734 = vmatmul.msk.f32.gmra.mxu1 %vm2655_vm4, %v6936_v32  ;;  %v13736_v2 = vpop.permute.xlu2 %8987 }
 0x728   : > { %v8990_v8 = vunpack.i.h.bf16 %v13736_v2  ;;  %v8938_v24 = vpop.permute.xlu1 %8937 }
 0x729   : > { %v8940_v58 = vunpack.i.h.bf16 %v8938_v24  ;;  %v13742_v46 = vpop.permute.xlu0 %8962 }
 0x72a   : > { %v8965_v47 = vunpack.i.h.bf16 %v13742_v46  ;;  %6368 = vmatmul.f32.gmra.mxu0 %v5980_v34  ;;  %8642 = vmatmul.msk.f32.gmra.mxu3 %vm2655_vm4, %v13744_v12  ;;  %v13753_v32 = vsel %vm2655_vm4, %v13746_v7, %v8990_v8  ;;  %v6937_v34 = vld [vmem:[#allocation3 + $0x108] sm:$0xff]  ;;  %v5981_v8 = vsel %vm2655_vm4, %v13474_v49, %v13591_v3 }
 0x72b   : > { %15071 = vst [vmem:[#allocation21_spill] sm:$0xff] %v13753_v32  ;;  %v13758_v57 = vsel %vm2655_vm4, %v6934_v10, %v8940_v58 }
 0x72c   : > { %v6532_v5 = vpop.f32.mrf.mxu1  ;;  %6617 = vmatmul.f32.gmra.mxu2 %v5800_v51  ;;  %v13761_v27 = vsel %vm2655_vm4, %v6939_v61, %v8965_v47  ;;  %v6942_v47 = vld [vmem:[#allocation3 + $0x130] sm:$0xff]  ;;  %v8939_v51 = vunpack.i.l.bf16 %v8938_v24 }
 0x72d   : > { %v6345_v62 = vpop.f32.mrf.mxu0  ;;  %v5390_v5 = vld [vmem:[#allocation3 + $0x30] sm:$0xff] }
 0x72e   : > { %v5801_v62 = vsel %vm2655_vm4, %v13661_v9, %v8934_v0  ;;  %v8707_v0 = vld [vmem:[%s14500_s6 + $0x180] sm:$0xff]  ;;  %v5802_v24 = vsel %vm2655_vm4, %v13688_v48, %v8939_v51  ;;  %v6943_v48 = vld [vmem:[#allocation3 + $0x138] sm:$0xff] }
 0x72f   : > { %8735 = vmatmul.msk.f32.gmra.mxu1 %vm2655_vm4, %v6937_v34  ;;  %7663 = vmatpush.msra.mxu0 %v8707_v0  ;;  %v5392_v0 = vld [vmem:[#allocation3 + $0x40] sm:$0xff] }
 0x730   : > { %v8953_v1 = vpop.permute.xlu1 %8952 }
 0x731   : > { %v8955_v53 = vunpack.i.h.bf16 %v8953_v1  ;;  %v13768_v32 = vpop.permute.xlu0 %8977 }
 0x732   : > { %v8980_v10 = vunpack.i.h.bf16 %v13768_v32  ;;  %6370 = vmatmul.f32.gmra.mxu0 %v5981_v8  ;;  %8643 = vmatmul.msk.f32.gmra.mxu3 %vm2655_vm4, %v5390_v5  ;;  %v5982_v8 = vsel %vm2655_vm4, %v13486_v45, %v13623_v16 }
 0x733   : > { %v13775_v63 = vsel %vm2655_vm4, %v6937_v34, %v8955_v53  ;;  %v5391_v53 = vld [vmem:[#allocation3 + $0x38] sm:$0xff] }
 0x734   : > { %v6534_v58 = vpop.f32.mrf.mxu1  ;;  %6620 = vmatmul.f32.gmra.mxu2 %v5801_v62  ;;  %v13778_v49 = vsel %vm2655_vm4, %v6942_v47, %v8980_v10  ;;  %v6940_v10 = vld [vmem:[#allocation3 + $0x120] sm:$0xff]  ;;  %v5983_v62 = vsel %vm2655_vm4, %v13501_v21, %v13664_v36  ;;  %v8949_v21 = vunpack.i.l.bf16 %v13717_v25  ;;  %v5984_v36 = vsel %vm2655_vm4, %v13519_v56, %v13605_v29 }
 0x735   : > { %v6347_v3 = vpop.f32.mrf.mxu0  ;;  %v8944_v58 = vunpack.i.l.bf16 %v13657_v17  ;;  %v5985_v25 = vsel %vm2655_vm4, %v13541_v30, %v13644_v18 }
 0x737   : > { %8736 = vmatmul.msk.f32.gmra.mxu1 %vm2655_vm4, %v13695_v40 }
 0x738   : > { %v13788_v9 = vpop.permute.xlu1 %8967 }
 0x739   : > { %v8970_v34 = vunpack.i.h.bf16 %v13788_v9 }
 0x73a   : > { %6372 = vmatmul.f32.gmra.mxu0 %v5982_v8  ;;  %8644 = vmatmul.msk.f32.gmra.mxu3 %vm2655_vm4, %v5391_v53 }
 0x73b   : > { %v13795_v45 = vsel %vm2655_vm4, %v6940_v10, %v8970_v34  ;;  %v5803_v34 = vsel %vm2655_vm4, %v13719_v22, %v8944_v58  ;;  %v5804_v22 = vsel %vm2655_vm4, %v13744_v12, %v8949_v21  ;;  %v5394_v58 = vld [vmem:[#allocation3 + $0x50] sm:$0xff]  ;;  %v8959_v12 = vunpack.i.l.bf16 %v13683_v38  ;;  %v6932_v21 = vld [vmem:[#allocation3 + $0xe0] sm:$0xff] }
 0x73c   : > { %v6536_v40 = vpop.f32.mrf.mxu1  ;;  %6623 = vmatmul.f32.gmra.mxu2 %v5802_v24  ;;  %v5987_v38 = vsel %vm2655_vm4, %v13580_v6, %v13621_v39  ;;  %v8925_v6 = vunpack.i.h.bf16 %v13714_v43 }
 0x73d   : > { %v6349_v16 = vpop.f32.mrf.mxu0  ;;  %v5393_v40 = vld [vmem:[#allocation3 + $0x48] sm:$0xff]  ;;  %v5806_v18 = vsel %vm2655_vm4, %v5391_v53, %v8959_v12  ;;  %v8969_v53 = vunpack.i.l.bf16 %v13788_v9  ;;  %v8989_v12 = vunpack.i.l.bf16 %v13736_v2 }
 0x73f   : > { %8737 = vmatmul.msk.f32.gmra.mxu1 %vm2655_vm4, %v6939_v61 }
 0x740   : > { %v13802_v3 = vpop.permute.xlu1 %8982 }
 0x741   : > { %v8985_v8 = vunpack.i.h.bf16 %v13802_v3 }
 0x742   : > { %6374 = vmatmul.f32.gmra.mxu0 %v5983_v62  ;;  %8645 = vmatmul.msk.f32.gmra.mxu3 %vm2655_vm4, %v5392_v0 }
 0x743   : > { %v13809_v61 = vsel %vm2655_vm4, %v6943_v48, %v8985_v8  ;;  %v5397_v8 = vld [vmem:[#allocation3 + $0x68] sm:$0xff] }
 0x744   : > { %v6538_v51 = vpop.f32.mrf.mxu1  ;;  %6625 = vmatmul.f32.gmra.mxu2 %v5803_v34  ;;  %v13859_v34 = vld [vmem:[#allocation3 + $0x150] sm:$0xff] }
 0x745   : > { %v6351_v17 = vpop.f32.mrf.mxu0  ;;  %v8930_v51 = vunpack.i.h.bf16 %v13636_v19 }
 0x747   : > { %8738 = vmatmul.msk.f32.gmra.mxu1 %vm2655_vm4, %v6940_v10  ;;  %v8954_v10 = vunpack.i.l.bf16 %v8953_v1  ;;  %v5395_v1 = vld [vmem:[#allocation3 + $0x58] sm:$0xff] }
 0x749   : > { %v5805_v29 = vsel %vm2655_vm4, %v5390_v5, %v8954_v10  ;;  %v8964_v5 = vunpack.i.l.bf16 %v13742_v46  ;;  %v5988_v46 = vsel %vm2655_vm4, %v13593_v28, %v13666_v59  ;;  %v5989_v28 = vsel %vm2655_vm4, %v13611_v35, %v8925_v6  ;;  %v9015_v59 = vld [vmem:[#allocation3 + $0x70] sm:$0xff]  ;;  %v9017_v10 = vld [vmem:[#allocation3 + $0x80] sm:$0xff] }
 0x74a   : > { %6376 = vmatmul.f32.gmra.mxu0 %v5984_v36  ;;  %8646 = vmatmul.msk.f32.gmra.mxu3 %vm2655_vm4, %v5393_v40  ;;  %v7347_v35 = vsel %vm2655_vm4, %v6932_v21, %v8930_v51  ;;  %v9016_v36 = vld [vmem:[#allocation3 + $0x78] sm:$0xff] }
 0x74c   : > { %v6540_v24 = vpop.f32.mrf.mxu1  ;;  %6627 = vmatmul.f32.gmra.mxu2 %v5804_v22  ;;  %v13867_v22 = vld [vmem:[#allocation3 + $0x158] sm:$0xff] }
 0x74d   : > { %v6353_v16 = vpop.f32.mrf.mxu0 }
 0x74f   : > { %8739 = vmatmul.msk.f32.gmra.mxu1 %vm2655_vm4, %v13721_v60  ;;  %v5986_v60 = vsel %vm2655_vm4, %v13554_v41, %v13691_v55  ;;  %v5807_v55 = vsel %vm2655_vm4, %v5392_v0, %v8964_v5  ;;  %v5808_v0 = vsel %vm2655_vm4, %v5393_v40, %v8969_v53  ;;  %v9020_v53 = vld [vmem:[#allocation3 + $0x98] sm:$0xff] }
 0x752   : > { %6378 = vmatmul.f32.gmra.mxu0 %v5985_v25  ;;  %8647 = vmatmul.msk.f32.gmra.mxu3 %vm2655_vm4, %v5394_v58 }
 0x754   : > { %v6542_v56 = vpop.f32.mrf.mxu1  ;;  %6629 = vmatmul.f32.gmra.mxu2 %v5805_v29  ;;  %v13875_v29 = vld [vmem:[#allocation3 + $0x160] sm:$0xff] }
 0x757   : > { %8740 = vmatmul.msk.f32.gmra.mxu1 %vm2655_vm4, %v6942_v47  ;;  %v5396_v47 = vld [vmem:[#allocation3 + $0x60] sm:$0xff] }
 0x75a   : > { %6380 = vmatmul.f32.gmra.mxu0 %v5986_v60  ;;  %8648 = vmatmul.msk.f32.gmra.mxu3 %vm2655_vm4, %v5395_v1 }
 0x75c   : > { %v6544_v30 = vpop.f32.mrf.mxu1  ;;  %6631 = vmatmul.f32.gmra.mxu2 %v5806_v18  ;;  %v13885_v18 = vld [vmem:[#allocation3 + $0x168] sm:$0xff] }
 0x75f   : > { %8741 = vmatmul.msk.f32.gmra.mxu1 %vm2655_vm4, %v6943_v48  ;;  %v13849_v48 = vld [vmem:[#allocation3 + $0x148] sm:$0xff] }
 0x762   : > { %6382 = vmatmul.f32.gmra.mxu0 %v5987_v38  ;;  %8649 = vmatmul.msk.f32.gmra.mxu3 %vm2655_vm4, %v5396_v47  ;;  %v9019_v38 = vld [vmem:[#allocation3 + $0x90] sm:$0xff] }
 0x764   : > { %v6546_v41 = vpop.f32.mrf.mxu1  ;;  %6633 = vmatmul.f32.gmra.mxu2 %v5807_v55 }
 0x765   : > { %v8120_v41 = vld [vmem:[%s14502_s8 + $0xf8] sm:$0xff] }
 0x766   : > { %8147 = vmatpush.msra.mxu3 %v8120_v41  ;;  %v15075_v41 = vld [vmem:[#allocation64_spill] sm:$0xff] }
 0x767   : > { %8742 = vmatmul.msk.f32.gmra.mxu1 %vm2655_vm4, %v13746_v7  ;;  %v8974_v7 = vunpack.i.l.bf16 %v13708_v33  ;;  %v8979_v33 = vunpack.i.l.bf16 %v13768_v32  ;;  %v8984_v32 = vunpack.i.l.bf16 %v13802_v3  ;;  %v9018_v3 = vld [vmem:[#allocation3 + $0x88] sm:$0xff] }
 0x768   : > { %v6355_v62 = vpop.f32.mrf.mxu0 }
 0x769   : > { %v5809_v43 = vsel %vm2655_vm4, %v5394_v58, %v8974_v7  ;;  %v5810_v24 = vsel %vm2655_vm4, %v5395_v1, %v8979_v33  ;;  %v5811_v58 = vsel %vm2655_vm4, %v5396_v47, %v8984_v32  ;;  %v13894_v47 = vld [vmem:[#allocation3 + $0x170] sm:$0xff] }
 0x76a   : > { %6384 = vmatmul.f32.gmra.mxu0 %v5988_v46  ;;  %8650 = vmatmul.msk.f32.gmra.mxu3 %vm2655_vm4, %v5397_v8  ;;  %v13906_v46 = vld [vmem:[#allocation3 + $0x178] sm:$0xff] }
 0x76c   : > { %v6548_v39 = vpop.f32.mrf.mxu1  ;;  %6635 = vmatmul.f32.gmra.mxu2 %v5808_v0 }
 0x76d   : > { %v13913_v39 = vld [vmem:[#allocation3 + $0x180] sm:$0xff] }
 0x76f   : > { %8743 = vmatmul.msk.f32.gmra.mxu1 %vm2655_vm4, %v13849_v48 }
 0x772   : > { %6386 = vmatmul.f32.gmra.mxu0 %v5989_v28  ;;  %8651 = vmatmul.msk.f32.gmra.mxu3 %vm2655_vm4, %v9015_v59  ;;  %v8119_v28 = vld [vmem:[%s14502_s8 + $0xf0] sm:$0xff] }
 0x773   : > { %8127 = vmatpush.msrb.mxu2 %v8119_v28  ;;  %v9028_v28 = vld [vmem:[#allocation3 + $0xd8] sm:$0xff] }
 0x774   : > { %v6550_v9 = vpop.f32.mrf.mxu1  ;;  %6637 = vmatmul.f32.gmra.mxu2 %v5809_v43  ;;  %v6410_v43 = vadd.f32 %v12409_v42, %v12580_v23  ;;  %v6413_v42 = vadd.f32 %v12427_v4, %v12602_v50  ;;  %v15072_v4 = vld [vmem:[#allocation93_spill] sm:$0xff] }
 0x777   : > { %8744 = vmatmul.msk.f32.gmra.mxu1 %vm2655_vm4, %v13859_v34  ;;  %v6357_v17 = vpop.f32.mrf.mxu0 }
 0x77a   : > { %8652 = vmatmul.msk.f32.gmra.mxu3 %vm2655_vm4, %v9016_v36  ;;  %7664 = vmatmul.f32.vlgmr.msra.gmra.mxu0 %v7347_v35  ;;  %v9023_v35 = vld [vmem:[#allocation3 + $0xb0] sm:$0xff] }
 0x77b   : > { %v13938_v36 = vld [vmem:[#allocation3 + $0x190] sm:$0xff] }
 0x77c   : > { %v6552_v40 = vpop.f32.mrf.mxu1  ;;  %6639 = vmatmul.f32.gmra.mxu2 %v5810_v24  ;;  %v8118_v24 = vld [vmem:[%s14502_s8 + $0xe8] sm:$0xff] }
 0x77d   : > { %v6761_v19 = vpop.f32.mrf.mxu3  ;;  %8148 = vmatpush.msra.mxu3 %v8118_v24  ;;  %v7169_v24 = vpop.permute.xlu1 %7168 }
 0x77f   : > { %8745 = vmatmul.msk.f32.gmra.mxu1 %vm2655_vm4, %v13867_v22  ;;  %v6359_v16 = vpop.f32.mrf.mxu0 }
 0x780   : > { %v13952_v16 = vld [vmem:[#allocation3 + $0x198] sm:$0xff] }
 0x782   : > { %8653 = vmatmul.msk.f32.gmra.mxu3 %vm2655_vm4, %v9017_v10  ;;  %7667 = vmatmul.f32.gmra.mxu0 %v13705_v11  ;;  %v5812_v11 = vsel %vm2655_vm4, %v5397_v8, %v8989_v12  ;;  %v9021_v8 = vld [vmem:[#allocation3 + $0xa0] sm:$0xff] }
 0x784   : > { %v6554_v25 = vpop.f32.mrf.mxu1  ;;  %6641 = vmatmul.f32.gmra.mxu2 %v5811_v58  ;;  %v9025_v58 = vld [vmem:[#allocation3 + $0xc0] sm:$0xff] }
 0x785   : > { %v6763_v56 = vpop.f32.mrf.mxu3 }
 0x786   : > { %v15073_v56 = vld [vmem:[#allocation6_spill] sm:$0xff] }
 0x787   : > { %8746 = vmatmul.msk.f32.gmra.mxu1 %vm2655_vm4, %v13875_v29  ;;  %v6361_v60 = vpop.f32.mrf.mxu0 }
 0x788   : > { %v15074_v60 = vld [vmem:[#allocation73_spill] sm:$0xff] }
 0x78a   : > { %8654 = vmatmul.msk.f32.gmra.mxu3 %vm2655_vm4, %v9018_v3  ;;  %7670 = vmatmul.f32.gmra.mxu0 %v13758_v57  ;;  %v13959_v3 = vld [vmem:[#allocation3 + $0x1a0] sm:$0xff] }
 0x78c   : > { %v13882_v1 = vpop.f32.mrf.mxu1  ;;  %6643 = vmatmul.f32.gmra.mxu2 %v5812_v11 }
 0x78d   : > { %v6782_v30 = vpop.f32.mrf.mxu3 }
 0x78f   : > { %8747 = vmatmul.msk.f32.gmra.mxu1 %vm2655_vm4, %v13885_v18  ;;  %v6363_v5 = vpop.f32.mrf.mxu0 }
 0x790   : > { %v8117_v5 = vld [vmem:[%s14502_s8 + $0xe0] sm:$0xff] }
 0x791   : > { %8128 = vmatpush.msrb.mxu2 %v8117_v5 }
 0x792   : > { %8655 = vmatmul.msk.f32.gmra.mxu3 %vm2655_vm4, %v9019_v38  ;;  %7673 = vmatmul.f32.gmra.mxu0 %v13671_v54  ;;  %v9026_v38 = vld [vmem:[#allocation3 + $0xc8] sm:$0xff] }
 0x794   : > { %v13891_v2 = vpop.f32.mrf.mxu1  ;;  %6645 = vmatmul.f32.gmra.mxu2 %v12211_v37 }
 0x795   : > { %v6785_v57 = vpop.f32.mrf.mxu3 }
 0x797   : > { %8748 = vmatmul.msk.f32.gmra.mxu1 %vm2655_vm4, %v13894_v47  ;;  %v6365_v55 = vpop.f32.mrf.mxu0 }
 0x79a   : > { %8656 = vmatmul.msk.f32.gmra.mxu3 %vm2655_vm4, %v9020_v53  ;;  %7675 = vmatmul.f32.gmra.mxu0 %v13732_v26  ;;  %v13969_v53 = vld [vmem:[#allocation3 + $0x1a8] sm:$0xff] }
 0x79c   : > { %v13903_v54 = vpop.f32.mrf.mxu1  ;;  %6648 = vmatmul.f32.gmra.mxu2 %v12237_v14  ;;  %v6407_v14 = vadd.f32 %v12382_v52, %v12561_v13  ;;  %v13927_v13 = vld [vmem:[#allocation3 + $0x188] sm:$0xff] }
 0x79d   : > { %v6788_v37 = vpop.f32.mrf.mxu3 }
 0x79f   : > { %8749 = vmatmul.msk.f32.gmra.mxu1 %vm2655_vm4, %v13906_v46  ;;  %v6367_v62 = vpop.f32.mrf.mxu0 }
 0x7a2   : > { %8657 = vmatmul.msk.f32.gmra.mxu3 %vm2655_vm4, %v9021_v8  ;;  %7677 = vmatmul.f32.gmra.mxu0 %v13775_v63  ;;  %v9027_v8 = vld [vmem:[#allocation3 + $0xd0] sm:$0xff] }
 0x7a4   : > { %v7841_v6 = vpop.f32.mrf.mxu1  ;;  %6651 = vmatmul.f32.gmra.mxu2 %v12260_v44  ;;  %v9022_v44 = vld [vmem:[#allocation3 + $0xa8] sm:$0xff] }
 0x7a5   : > { %v6791_v26 = vpop.f32.mrf.mxu3 }
 0x7a6   : > { %v15076_v26 = vld [vmem:[#allocation10_spill] sm:$0xff] }
 0x7a7   : > { %8750 = vmatmul.msk.f32.gmra.mxu1 %vm2655_vm4, %v13913_v39  ;;  %v6369_v0 = vpop.f32.mrf.mxu0  ;;  %v6615_v7 = vpop.f32.mrf.mxu2 }
 0x7a8   : > { %v6616_v59 = vadd.f32 %v6615_v7, %v6407_v14  ;;  %v13976_v14 = vld [vmem:[#allocation3 + $0x1b0] sm:$0xff] }
 0x7aa   : > { %v13922_v63 = vadd.f32 %v6782_v30, %v6616_v59  ;;  %8658 = vmatmul.msk.f32.gmra.mxu3 %vm2655_vm4, %v9022_v44  ;;  %7679 = vmatmul.f32.gmra.mxu0 %v13702_v20  ;;  %v15077_v59 = vld [vmem:[#allocation21_spill] sm:$0xff] }
 0x7ac   : > { %v7843_v9 = vpop.f32.mrf.mxu1  ;;  %6654 = vmatmul.f32.gmra.mxu2 %v12283_v31 }
 0x7ad   : > { %v6793_v52 = vpop.f32.mrf.mxu3  ;;  %v15078_v9 = vld [vmem:[#allocation74_spill] sm:$0xff] }
 0x7ae   : > { %v13983_v52 = vld [vmem:[#allocation3 + $0x1b8] sm:$0xff] }
 0x7af   : > { %8751 = vmatmul.msk.f32.gmra.mxu1 %vm2655_vm4, %v13927_v13  ;;  %v6371_v51 = vpop.f32.mrf.mxu0  ;;  %v6618_v33 = vpop.f32.mrf.mxu2 }
 0x7b0   : > { %v6619_v17 = vadd.f32 %v6618_v33, %v6410_v43  ;;  %v7167_v43 = vpop.permute.xlu0 %7166 }
 0x7b2   : > { %v13933_v21 = vadd.f32 %v6785_v57, %v6619_v17  ;;  %8659 = vmatmul.msk.f32.gmra.mxu3 %vm2655_vm4, %v9023_v35  ;;  %7681 = vmatmul.f32.gmra.mxu0 %v13761_v27  ;;  %v8116_v17 = vld [vmem:[%s14502_s8 + $0xd8] sm:$0xff]  ;;  %v7360_v35 = vsel %vm2655_vm4, %v13849_v48, %v7167_v43  ;;  %v7361_v48 = vsel %vm2655_vm4, %v13859_v34, %v7169_v24  ;;  %v8115_v34 = vld [vmem:[%s14502_s8 + $0xd0] sm:$0xff] }
 0x7b3   : > { %8149 = vmatpush.msra.mxu3 %v8116_v17  ;;  %8129 = vmatpush.msrb.mxu2 %v8115_v34  ;;  %v9033_v43 = vld [vmem:[#allocation3 + $0x100] sm:$0xff] }
 0x7b4   : > { %v7845_v31 = vpop.f32.mrf.mxu1  ;;  %6656 = vmatmul.f32.gmra.mxu2 %v12306_v15  ;;  %v9024_v15 = vld [vmem:[#allocation3 + $0xb8] sm:$0xff] }
 0x7b5   : > { %v6795_v20 = vpop.f32.mrf.mxu3  ;;  %v9029_v31 = vld [vmem:[#allocation3 + $0xe0] sm:$0xff] }
 0x7b7   : > { %8752 = vmatmul.msk.f32.gmra.mxu1 %vm2655_vm4, %v13938_v36  ;;  %v6373_v23 = vpop.f32.mrf.mxu0  ;;  %v6621_v40 = vpop.f32.mrf.mxu2 }
 0x7b8   : > { %v6622_v19 = vadd.f32 %v6621_v40, %v6413_v42  ;;  %v15079_v42 = vld [vmem:[#allocation69_spill] sm:$0xff]  ;;  %v13994_v40 = vld [vmem:[#allocation3 + $0x1c0] sm:$0xff] }
 0x7ba   : > { %v13947_v27 = vadd.f32 %v6788_v37, %v6622_v19  ;;  %8660 = vmatmul.msk.f32.gmra.mxu3 %vm2655_vm4, %v9024_v15  ;;  %7683 = vmatmul.f32.gmra.mxu0 %v13795_v45 }
 0x7bc   : > { %v7847_v32 = vpop.f32.mrf.mxu1  ;;  %6658 = vmatmul.f32.gmra.mxu2 %v15072_v4 }
 0x7bd   : > { %v6797_v50 = vpop.f32.mrf.mxu3  ;;  %v9030_v32 = vld [vmem:[#allocation3 + $0xe8] sm:$0xff] }
 0x7be   : > { %v15080_v50 = vld [vmem:[#allocation75_spill] sm:$0xff] }
 0x7bf   : > { %8753 = vmatmul.msk.f32.gmra.mxu1 %vm2655_vm4, %v13952_v16  ;;  %v6375_v10 = vpop.f32.mrf.mxu0  ;;  %v6624_v25 = vpop.f32.mrf.mxu2 }
 0x7c0   : > { %v14002_v25 = vld [vmem:[#allocation3 + $0x1c8] sm:$0xff] }
 0x7c2   : > { %8661 = vmatmul.msk.f32.gmra.mxu3 %vm2655_vm4, %v9025_v58  ;;  %7685 = vmatmul.f32.gmra.mxu0 %v15073_v56  ;;  %v7171_v58 = vpop.permute.xlu2 %7170 }
 0x7c4   : > { %v7849_v12 = vpop.f32.mrf.mxu1  ;;  %6660 = vmatmul.f32.gmra.mxu2 %v15074_v60  ;;  %v7362_v60 = vsel %vm2655_vm4, %v13867_v22, %v7171_v58 }
 0x7c5   : > { %v6799_v45 = vpop.f32.mrf.mxu3 }
 0x7c6   : > { %v9031_v45 = vld [vmem:[#allocation3 + $0xf0] sm:$0xff] }
 0x7c7   : > { %8754 = vmatmul.msk.f32.gmra.mxu1 %vm2655_vm4, %v13959_v3  ;;  %v6377_v11 = vpop.f32.mrf.mxu0  ;;  %v6626_v30 = vpop.f32.mrf.mxu2 }
 0x7c8   : > { %v15081_v30 = vld [vmem:[#allocation76_spill] sm:$0xff] }
 0x7ca   : > { %8662 = vmatmul.msk.f32.gmra.mxu3 %vm2655_vm4, %v9026_v38  ;;  %7687 = vmatmul.f32.gmra.mxu0 %v13778_v49  ;;  %v14013_v38 = vld [vmem:[#allocation3 + $0x1d0] sm:$0xff] }
 0x7cc   : > { %v7851_v57 = vpop.f32.mrf.mxu1  ;;  %6662 = vmatmul.f32.gmra.mxu2 %v15075_v41 }
 0x7cd   : > { %v6801_v55 = vpop.f32.mrf.mxu3  ;;  %v7173_v57 = vpop.permute.xlu0 %7172 }
 0x7ce   : > { %v7363_v22 = vsel %vm2655_vm4, %v13875_v29, %v7173_v57  ;;  %v8114_v29 = vld [vmem:[%s14502_s8 + $0xc8] sm:$0xff] }
 0x7cf   : > { %8755 = vmatmul.msk.f32.gmra.mxu1 %vm2655_vm4, %v13969_v53  ;;  %v6379_v37 = vpop.f32.mrf.mxu0  ;;  %v6628_v62 = vpop.f32.mrf.mxu2  ;;  %8150 = vmatpush.msra.mxu3 %v8114_v29 }
 0x7d0   : > { %v9032_v62 = vld [vmem:[#allocation3 + $0xf8] sm:$0xff] }
 0x7d2   : > { %8663 = vmatmul.msk.f32.gmra.mxu3 %vm2655_vm4, %v9027_v8  ;;  %7689 = vmatmul.f32.gmra.mxu0 %v13809_v61 }
 0x7d4   : > { %v7853_v6 = vpop.f32.mrf.mxu1  ;;  %6664 = vmatmul.f32.gmra.mxu2 %v15076_v26  ;;  %v14027_v26 = vld [vmem:[%s14501_s7] ss:$0 sm:$0xff] }
 0x7d5   : > { %v6803_v49 = vpop.f32.mrf.mxu3 }
 0x7d6   : > { %v15082_v49 = vld [vmem:[#allocation24_spill] sm:$0xff] }
 0x7d7   : > { %8756 = vmatmul.msk.f32.gmra.mxu1 %vm2655_vm4, %v13976_v14  ;;  %v6381_v0 = vpop.f32.mrf.mxu0  ;;  %v6630_v7 = vpop.f32.mrf.mxu2 }
 0x7d8   : > { %v7175_v7 = vpop.permute.xlu1 %7174 }
 0x7da   : > { %8664 = vmatmul.msk.f32.gmra.mxu3 %vm2655_vm4, %v9028_v28  ;;  %7691 = vmatmul.f32.gmra.mxu0 %v15077_v59 }
 0x7dc   : > { %v7855_v44 = vpop.f32.mrf.mxu1  ;;  %6666 = vmatmul.f32.gmra.mxu2 %v15078_v9  ;;  %v7364_v9 = vsel %vm2655_vm4, %v13885_v18, %v7175_v7 }
 0x7dd   : > { %v6805_v61 = vpop.f32.mrf.mxu3 }
 0x7df   : > { %8757 = vmatmul.msk.f32.gmra.mxu1 %vm2655_vm4, %v13983_v52  ;;  %v6383_v51 = vpop.f32.mrf.mxu0  ;;  %v6632_v33 = vpop.f32.mrf.mxu2 }
 0x7e0   : > { %v7181_v7 = vpop.permute.xlu1 %7180 }
 0x7e2   : > { %8665 = vmatmul.msk.f32.gmra.mxu3 %vm2655_vm4, %v9029_v31  ;;  %7693 = vmatmul.f32.gmra.mxu0 %v7360_v35  ;;  %v15083_v35 = vld [vmem:[#allocation66_spill] sm:$0xff] }
 0x7e4   : > { %v7857_v20 = vpop.f32.mrf.mxu1  ;;  %6668 = vmatmul.f32.gmra.mxu2 %v15079_v42 }
 0x7e5   : > { %v6807_v23 = vpop.f32.mrf.mxu3  ;;  %v14051_v20 = vld [vmem:[#allocation3 + $0x1e0] sm:$0xff] }
 0x7e7   : > { %8758 = vmatmul.msk.f32.gmra.mxu1 %vm2655_vm4, %v13994_v40  ;;  %v6385_v19 = vpop.f32.mrf.mxu0  ;;  %v6634_v15 = vpop.f32.mrf.mxu2 }
 0x7ea   : > { %8666 = vmatmul.msk.f32.gmra.mxu3 %vm2655_vm4, %v9030_v32  ;;  %7695 = vmatmul.f32.gmra.mxu0 %v7361_v48  ;;  %v9034_v32 = vld [vmem:[#allocation3 + $0x108] sm:$0xff] }
 0x7ec   : > { %v7859_v4 = vpop.f32.mrf.mxu1  ;;  %6670 = vmatmul.f32.gmra.mxu2 %v15080_v50 }
 0x7ed   : > { %v6809_v10 = vpop.f32.mrf.mxu3 }
 0x7ef   : > { %8759 = vmatmul.msk.f32.gmra.mxu1 %vm2655_vm4, %v14002_v25  ;;  %v6387_v56 = vpop.f32.mrf.mxu0  ;;  %v6636_v12 = vpop.f32.mrf.mxu2 }
 0x7f0   : > { %v15084_v56 = vld [vmem:[#allocation67_spill] sm:$0xff]  ;;  %v7179_v12 = vpop.permute.xlu0 %7178 }
 0x7f2   : > { %8667 = vmatmul.msk.f32.gmra.mxu3 %vm2655_vm4, %v9031_v45  ;;  %7698 = vmatmul.f32.gmra.mxu0 %v7362_v60 }
 0x7f4   : > { %v7861_v11 = vpop.f32.mrf.mxu1  ;;  %6672 = vmatmul.f32.gmra.mxu2 %v15081_v30  ;;  %v7366_v30 = vsel %vm2655_vm4, %v13906_v46, %v7179_v12 }
 0x7f5   : > { %v6811_v5 = vpop.f32.mrf.mxu3 }
 0x7f6   : > { %v9035_v5 = vld [vmem:[#allocation3 + $0x110] sm:$0xff] }
 0x7f7   : > { %8760 = vmatmul.msk.f32.gmra.mxu1 %vm2655_vm4, %v14013_v38  ;;  %v6638_v41 = vpop.f32.mrf.mxu2  ;;  %v7665_v55 = vpop.f32.mrf.mxu0 }
 0x7f8   : > { %v7833_v37 = vadd.f32 %v13882_v1, %v7665_v55  ;;  %v14032_v1 = vld [vmem:[#allocation3 + $0x1d8] sm:$0xff] }
 0x7fa   : > { %8668 = vmatmul.msk.f32.gmra.mxu3 %vm2655_vm4, %v9032_v62  ;;  %7701 = vmatmul.f32.gmra.mxu0 %v7363_v22  ;;  %v7982_v6 = vadd.f32 %v7833_v37, %v13922_v63  ;;  %v15085_v37 = vld [vmem:[#allocation70_spill] sm:$0xff]  ;;  %v14081_v62 = vld [vmem:[#allocation3 + $0x1f0] sm:$0xff] }
 0x7fc   : > { %v14021_v8 = vpop.f32.mrf.mxu1  ;;  %6674 = vmatmul.f32.gmra.mxu2 %v15082_v49  ;;  %v7998_v59 = vadd.f32 %v14027_v26, %v7982_v6  ;;  %v15086_v6 = vld [vmem:[#allocation31_spill] sm:$0xff]  ;;  %v15087_v49 = vld [vmem:[#allocation68_spill] sm:$0xff] }
 0x7fd   : > { %v14030_v0 = vpop.f32.mrf.mxu3  ;;  %v6438_v29 = vadd.f32 %v15087_v49, %v15086_v6  ;;  %v7042_v6 = vld [vmem:[#allocation3 + $0x22c] sm:$0xff]  ;;  %v7043_v49 = vld [vmem:[#allocation3 + $0x234] sm:$0xff] }
 0x7fe   : > { %v8010_v33 = vmax.f32 %v7998_v59, 0.0  ;;  %v7367_v59 = vsel %vm2655_vm4, %v13913_v39, %v7181_v7  ;;  %7222 = vrot.lane.b32.xlu1 %v7042_v6, %s9082_s19  ;;  %7224 = vrot.lane.b32.xlu2 %v7043_v49, %s9082_s19 }
 0x7ff   : > { %8761 = vmatmul.msk.f32.gmra.mxu1 %vm2655_vm4, %v14032_v1  ;;  %v6640_v63 = vpop.f32.mrf.mxu2  ;;  %v7668_v28 = vpop.f32.mrf.mxu0 }
 0x800   : > { %v7836_v44 = vadd.f32 %v13891_v2, %v7668_v28  ;;  %v7177_v2 = vpop.permute.xlu2 %7176  ;;  %v8028_v23 = vrot.slane %v8010_v33, 4 }
 0x801   : > { %v7365_v15 = vsel %vm2655_vm4, %v13894_v47, %v7177_v2  ;;  %v8113_v47 = vld [vmem:[%s14502_s8 + $0xc0] sm:$0xff]  ;;  %v15090_v2 = vld [vmem:[#allocation19_spill] sm:$0xff] }
 0x802   : > { %v7983_v61 = vadd.f32 %v7836_v44, %v13933_v21  ;;  %8669 = vmatmul.msk.f32.gmra.mxu3 %vm2655_vm4, %v9033_v43  ;;  %7704 = vmatmul.f32.gmra.mxu0 %v7364_v9  ;;  %v9036_v9 = vld [vmem:[#allocation3 + $0x118] sm:$0xff] }
 0x803   : > { %8130 = vmatpush.msrb.mxu2 %v8113_v47  ;;  %v15088_v43 = vld [vmem:[#allocation57_spill] sm:$0xff] }
 0x804   : > { %v14045_v51 = vpop.f32.mrf.mxu1  ;;  %v7999_v17 = vadd.f32 %v14027_v26, %v7983_v61  ;;  %6676 = vmatmul.f32.gmra.mxu2 %v15083_v35  ;;  %v15089_v35 = vld [vmem:[#allocation77_spill] sm:$0xff] }
 0x805   : > { %v14049_v31 = vpop.f32.mrf.mxu3  ;;  %v15093_v47 = vld [vmem:[#allocation65_spill] sm:$0xff] }
 0x806   : > { %v8011_v42 = vmax.f32 %v7999_v17, 0.0  ;;  %v14094_v17 = vld [vmem:[#allocation3 + $0x1f8] sm:$0xff] }
 0x807   : > { %8762 = vmatmul.msk.f32.gmra.mxu1 %vm2655_vm4, %v14051_v20  ;;  %v6642_v18 = vpop.f32.mrf.mxu2  ;;  %v7671_v21 = vpop.f32.mrf.mxu0 }
 0x808   : > { %v8029_v24 = vrot.slane %v8011_v42, 4  ;;  %v7839_v19 = vadd.f32 %v13903_v54, %v7671_v21  ;;  %v7183_v18 = vpop.permute.xlu2 %7182  ;;  %v8112_v21 = vld [vmem:[%s14502_s8 + $0xb8] sm:$0xff] }
 0x809   : > { %8151 = vmatpush.msra.mxu3 %v8112_v21  ;;  %v7044_v21 = vld [vmem:[#allocation3 + $0x23c] sm:$0xff] }
 0x80a   : > { %v7984_v48 = vadd.f32 %v7839_v19, %v13947_v27  ;;  %8670 = vmatmul.msk.f32.gmra.mxu3 %vm2655_vm4, %v9034_v32  ;;  %7706 = vmatmul.f32.gmra.mxu0 %v7365_v15  ;;  %v8030_v4 = vsel %vm1261_vm2, %v8028_v23, %v8029_v24  ;;  %v14070_v27 = vld [vmem:[#allocation3 + $0x1e8] sm:$0xff]  ;;  %v9037_v15 = vld [vmem:[#allocation3 + $0x120] sm:$0xff]  ;;  %v15091_v32 = vld [vmem:[#allocation56_spill] sm:$0xff] }
 0x80b   : > { %v14063_v10 = vmax.f32 %v8010_v33, %v8030_v4  ;;  %7226 = vrot.lane.b32.xlu0 %v7044_v21, %s9082_s19 }
 0x80c   : > { %v14061_v50 = vpop.f32.mrf.mxu1  ;;  %v8000_v58 = vadd.f32 %v14027_v26, %v7984_v48  ;;  %6679 = vmatmul.f32.gmra.mxu2 %v15084_v56  ;;  %v15092_v56 = vld [vmem:[#allocation82_spill] sm:$0xff] }
 0x80d   : > { %v6819_v54 = vpop.f32.mrf.mxu3  ;;  %v6444_v12 = vadd.f32 %v15093_v47, %v15092_v56  ;;  %v15097_v47 = vld [vmem:[#allocation17_spill] sm:$0xff] }
 0x80e   : > { %v8012_v34 = vmax.f32 %v8000_v58, 0.0  ;;  %v14110_v58 = vld [vmem:[#allocation3 + $0x200] sm:$0xff] }
 0x80f   : > { %8763 = vmatmul.msk.f32.gmra.mxu1 %vm2655_vm4, %v14070_v27  ;;  %v6644_v60 = vpop.f32.mrf.mxu2  ;;  %v7674_v45 = vpop.f32.mrf.mxu0 }
 0x810   : > { %v8031_v11 = vrot.slane %v8012_v34, 4  ;;  %v7185_v34 = vpop.permute.xlu0 %7184 }
 0x811   : > { %v7369_v45 = vsel %vm2655_vm4, %v13938_v36, %v7185_v34  ;;  %v14157_v34 = vld [vmem:[#allocation3 + $0x220] sm:$0xff] }
 0x812   : > { %8671 = vmatmul.msk.f32.gmra.mxu3 %vm2655_vm4, %v9035_v5  ;;  %7708 = vmatmul.f32.gmra.mxu0 %v7366_v30  ;;  %v8032_v57 = vsel %vm1261_vm2, %v8029_v24, %v8031_v11  ;;  %v7368_v24 = vsel %vm2655_vm4, %v13927_v13, %v7183_v18  ;;  %v9038_v30 = vld [vmem:[#allocation3 + $0x128] sm:$0xff]  ;;  %v15096_v18 = vld [vmem:[#allocation72_spill] sm:$0xff] }
 0x813   : > { %v14078_v55 = vmax.f32 %v8011_v42, %v8032_v57  ;;  %v6441_v42 = vadd.f32 %v15090_v2, %v15089_v35  ;;  %v15094_v57 = vld [vmem:[#allocation15_spill] sm:$0xff]  ;;  %v9040_v2 = vld [vmem:[#allocation3 + $0x138] sm:$0xff] }
 0x814   : > { %v7872_v41 = vpop.f32.mrf.mxu1  ;;  %6682 = vmatmul.f32.gmra.mxu2 %v15085_v37 }
 0x815   : > { %v6822_v22 = vpop.f32.mrf.mxu3  ;;  %v14122_v41 = vld [vmem:[#allocation3 + $0x208] sm:$0xff] }
 0x816   : > { %v8111_v22 = vld [vmem:[%s14502_s8 + $0xb0] sm:$0xff] }
 0x817   : > { %8764 = vmatmul.msk.f32.gmra.mxu1 %vm2655_vm4, %v14081_v62  ;;  %v6646_v46 = vpop.f32.mrf.mxu2  ;;  %v7676_v63 = vpop.f32.mrf.mxu0  ;;  %8131 = vmatpush.msrb.mxu2 %v8111_v22 }
 0x818   : > { %v6647_v28 = vadd.f32 %v6646_v46, %v6438_v29  ;;  %v7187_v29 = vpop.permute.xlu1 %7186  ;;  %v9039_v46 = vld [vmem:[#allocation3 + $0x130] sm:$0xff] }
 0x819   : > { %v7370_v7 = vsel %vm2655_vm4, %v13952_v16, %v7187_v29 }
 0x81a   : > { %v14090_v44 = vadd.f32 %v14030_v0, %v6647_v28  ;;  %8672 = vmatmul.msk.f32.gmra.mxu3 %vm2655_vm4, %v9036_v9  ;;  %7710 = vmatmul.f32.gmra.mxu0 %v7367_v59  ;;  %v15095_v28 = vld [vmem:[#allocation23_spill] sm:$0xff]  ;;  %v14135_v9 = vld [vmem:[#allocation3 + $0x210] sm:$0xff] }
 0x81c   : > { %v7874_v61 = vpop.f32.mrf.mxu1  ;;  %6685 = vmatmul.f32.gmra.mxu2 %v15088_v43  ;;  %v7189_v43 = vpop.permute.xlu2 %7188 }
 0x81d   : > { %v6824_v33 = vpop.f32.mrf.mxu3  ;;  %v7046_v61 = vld [vmem:[#allocation3 + $0x24c] sm:$0xff]  ;;  %v7371_v16 = vsel %vm2655_vm4, %v13959_v3, %v7189_v43 }
 0x81e   : > { %7230 = vrot.lane.b32.xlu2 %v7046_v61, %s9082_s19 }
 0x81f   : > { %8765 = vmatmul.msk.f32.gmra.mxu1 %vm2655_vm4, %v14094_v17  ;;  %v6649_v39 = vpop.f32.mrf.mxu2  ;;  %v7678_v0 = vpop.f32.mrf.mxu0 }
 0x820   : > { %v6650_v23 = vadd.f32 %v6649_v39, %v6441_v42  ;;  %v14144_v0 = vld [vmem:[#allocation3 + $0x218] sm:$0xff] }
 0x822   : > { %v14106_v19 = vadd.f32 %v14049_v31, %v6650_v23  ;;  %8673 = vmatmul.msk.f32.gmra.mxu3 %vm2655_vm4, %v9037_v15  ;;  %7712 = vmatmul.f32.gmra.mxu0 %v7368_v24  ;;  %v7049_v23 = vld [vmem:[#allocation3 + $0x264] sm:$0xff]  ;;  %v7191_v24 = vpop.permute.xlu0 %7190 }
 0x824   : > { %v7876_v48 = vpop.f32.mrf.mxu1  ;;  %6687 = vmatmul.f32.gmra.mxu2 %v15091_v32  ;;  %v9041_v32 = vld [vmem:[#allocation3 + $0x140] sm:$0xff]  ;;  %v7195_v6 = vpop.permute.xlu2 %7194 }
 0x825   : > { %v6826_v4 = vpop.f32.mrf.mxu3  ;;  %v7372_v48 = vsel %vm2655_vm4, %v13969_v53, %v7191_v24 }
 0x826   : > { %7236 = vrot.lane.b32.xlu2 %v7049_v23, %s9082_s19  ;;  %v8110_v4 = vld [vmem:[%s14502_s8 + $0xa8] sm:$0xff]  ;;  %v7061_v23 = vld [vmem:[#allocation3 + $0x2c4] sm:$0xff] }
 0x827   : > { %8766 = vmatmul.msk.f32.gmra.mxu1 %vm2655_vm4, %v14110_v58  ;;  %v6652_v13 = vpop.f32.mrf.mxu2  ;;  %v7680_v31 = vpop.f32.mrf.mxu0  ;;  %8152 = vmatpush.msra.mxu3 %v8110_v4 }
 0x828   : > { %v6653_v60 = vadd.f32 %v6652_v13, %v6444_v12  ;;  %v7045_v13 = vld [vmem:[#allocation3 + $0x244] sm:$0xff]  ;;  %v7052_v31 = vld [vmem:[#allocation3 + $0x27c] sm:$0xff] }
 0x829   : > { %7228 = vrot.lane.b32.xlu1 %v7045_v13, %s9082_s19  ;;  %v9046_v13 = vld [vmem:[#allocation3 + $0x168] sm:$0xff] }
 0x82a   : > { %v14118_v11 = vadd.f32 %v6819_v54, %v6653_v60  ;;  %8674 = vmatmul.msk.f32.gmra.mxu3 %vm2655_vm4, %v9038_v30  ;;  %7714 = vmatmul.f32.gmra.mxu0 %v7369_v45  ;;  %v7193_v60 = vpop.permute.xlu1 %7192 }
 0x82b   : > { %v7373_v30 = vsel %vm2655_vm4, %v13976_v14, %v7193_v60  ;;  %v9043_v14 = vld [vmem:[#allocation3 + $0x150] sm:$0xff] }
 0x82c   : > { %v7878_v5 = vpop.f32.mrf.mxu1  ;;  %6689 = vmatmul.f32.gmra.mxu2 %v15094_v57  ;;  %v7201_v4 = vpop.permute.xlu2 %7200 }
 0x82d   : > { %v6828_v37 = vpop.f32.mrf.mxu3  ;;  %v9042_v5 = vld [vmem:[#allocation3 + $0x148] sm:$0xff] }
 0x82e   : > { %7242 = vrot.lane.b32.xlu2 %v7052_v31, %s9082_s19  ;;  %v15098_v37 = vld [vmem:[#allocation9_spill] sm:$0xff] }
 0x82f   : > { %8767 = vmatmul.msk.f32.gmra.mxu1 %vm2655_vm4, %v14122_v41  ;;  %v6655_v36 = vpop.f32.mrf.mxu2  ;;  %v7682_v54 = vpop.f32.mrf.mxu0 }
 0x830   : > { %v8109_v36 = vld [vmem:[%s14502_s8 + $0xa0] sm:$0xff] }
 0x831   : > { %v7055_v54 = vld [vmem:[#allocation3 + $0x294] sm:$0xff]  ;;  %8132 = vmatpush.msrb.mxu2 %v8109_v36 }
 0x832   : > { %8675 = vmatmul.msk.f32.gmra.mxu3 %vm2655_vm4, %v9039_v46  ;;  %7716 = vmatmul.f32.gmra.mxu0 %v7370_v7  ;;  %v7374_v7 = vsel %vm2655_vm4, %v13983_v52, %v7195_v6  ;;  %v9044_v52 = vld [vmem:[#allocation3 + $0x158] sm:$0xff]  ;;  %v9047_v6 = vld [vmem:[#allocation3 + $0x170] sm:$0xff] }
 0x834   : > { %v7880_v63 = vpop.f32.mrf.mxu1  ;;  %6691 = vmatmul.f32.gmra.mxu2 %v15095_v28 }
 0x835   : > { %v6830_v59 = vpop.f32.mrf.mxu3  ;;  %v15099_v63 = vld [vmem:[#allocation71_spill] sm:$0xff] }
 0x836   : > { %7248 = vrot.lane.b32.xlu2 %v7055_v54, %s9082_s19  ;;  %v7197_v59 = vpop.permute.xlu0 %7196 }
 0x837   : > { %8768 = vmatmul.msk.f32.gmra.mxu1 %vm2655_vm4, %v14135_v9  ;;  %v6657_v33 = vpop.f32.mrf.mxu2  ;;  %v7684_v35 = vpop.f32.mrf.mxu0 }
 0x838   : > { %v7058_v33 = vld [vmem:[#allocation3 + $0x2ac] sm:$0xff]  ;;  %v7375_v35 = vsel %vm2655_vm4, %v13994_v40, %v7197_v59  ;;  %v9045_v40 = vld [vmem:[#allocation3 + $0x160] sm:$0xff] }
 0x83a   : > { %8676 = vmatmul.msk.f32.gmra.mxu3 %vm2655_vm4, %v9040_v2  ;;  %7718 = vmatmul.f32.gmra.mxu0 %v7371_v16  ;;  %v15100_v2 = vld [vmem:[#allocation5_spill] sm:$0xff] }
 0x83c   : > { %v7882_v42 = vpop.f32.mrf.mxu1  ;;  %6693 = vmatmul.f32.gmra.mxu2 %v15096_v18  ;;  %v7199_v18 = vpop.permute.xlu1 %7198 }
 0x83d   : > { %v6832_v39 = vpop.f32.mrf.mxu3  ;;  %v7376_v24 = vsel %vm2655_vm4, %v14002_v25, %v7199_v18 }
 0x83e   : > { %7254 = vrot.lane.b32.xlu2 %v7058_v33, %s9082_s19 }
 0x83f   : > { %8769 = vmatmul.msk.f32.gmra.mxu1 %vm2655_vm4, %v14144_v0  ;;  %v6659_v15 = vpop.f32.mrf.mxu2  ;;  %v7686_v3 = vpop.f32.mrf.mxu0 }
 0x840   : > { %v15101_v3 = vld [vmem:[#allocation25_spill] sm:$0xff] }
 0x842   : > { %8677 = vmatmul.msk.f32.gmra.mxu3 %vm2655_vm4, %v9041_v32  ;;  %7720 = vmatmul.f32.gmra.mxu0 %v7372_v48  ;;  %v8108_v48 = vld [vmem:[%s14502_s8 + $0x98] sm:$0xff] }
 0x843   : > { %8153 = vmatpush.msra.mxu3 %v8108_v48  ;;  %v15105_v48 = vld [vmem:[#allocation13_spill] sm:$0xff] }
 0x844   : > { %v7884_v56 = vpop.f32.mrf.mxu1  ;;  %6695 = vmatmul.f32.gmra.mxu2 %v15097_v47 }
 0x845   : > { %v6834_v12 = vpop.f32.mrf.mxu3 }
 0x846   : > { %7260 = vrot.lane.b32.xlu2 %v7061_v23, %s9082_s19  ;;  %v7377_v12 = vsel %vm2655_vm4, %v14013_v38, %v7201_v4 }
 0x847   : > { %8770 = vmatmul.msk.f32.gmra.mxu1 %vm2655_vm4, %v14157_v34  ;;  %v6661_v53 = vpop.f32.mrf.mxu2  ;;  %v7688_v45 = vpop.f32.mrf.mxu0 }
 0x848   : > { %v15102_v53 = vld [vmem:[#allocation7_spill] sm:$0xff] }
 0x84a   : > { %8678 = vmatmul.msk.f32.gmra.mxu3 %vm2655_vm4, %v9042_v5  ;;  %7722 = vmatmul.f32.gmra.mxu0 %v7373_v30  ;;  %v7203_v30 = vpop.permute.xlu0 %7202 }
 0x84b   : > { %v7378_v38 = vsel %vm2655_vm4, %v14032_v1, %v7203_v30  ;;  %v7205_v1 = vpop.permute.xlu1 %7204 }
 0x84c   : > { %v7886_v57 = vpop.f32.mrf.mxu1  ;;  %6697 = vmatmul.f32.gmra.mxu2 %v15098_v37  ;;  %v7379_v59 = vsel %vm2655_vm4, %v14051_v20, %v7205_v1  ;;  %v9051_v1 = vld [vmem:[#allocation3 + $0x190] sm:$0xff] }
 0x84d   : > { %v6836_v22 = vpop.f32.mrf.mxu3 }
 0x84f   : > { %v6663_v49 = vpop.f32.mrf.mxu2  ;;  %v7690_v29 = vpop.f32.mrf.mxu0 }
 0x852   : > { %8679 = vmatmul.msk.f32.gmra.mxu3 %vm2655_vm4, %v9043_v14  ;;  %7724 = vmatmul.f32.gmra.mxu0 %v7374_v7 }
 0x854   : > { %v7888_v46 = vpop.f32.mrf.mxu1  ;;  %6699 = vmatmul.f32.gmra.mxu2 %v15099_v63 }
 0x855   : > { %v6838_v28 = vpop.f32.mrf.mxu3 }
 0x857   : > { %v6665_v61 = vpop.f32.mrf.mxu2  ;;  %v7692_v43 = vpop.f32.mrf.mxu0 }
 0x858   : > { %v9048_v43 = vld [vmem:[#allocation3 + $0x178] sm:$0xff] }
 0x85a   : > { %8680 = vmatmul.msk.f32.gmra.mxu3 %vm2655_vm4, %v9044_v52  ;;  %7726 = vmatmul.f32.gmra.mxu0 %v7375_v35 }
 0x85c   : > { %v7890_v16 = vpop.f32.mrf.mxu1  ;;  %6701 = vmatmul.f32.gmra.mxu2 %v15100_v2  ;;  %v15104_v2 = vld [vmem:[#allocation22_spill] sm:$0xff] }
 0x85d   : > { %v6840_v42 = vpop.f32.mrf.mxu3 }
 0x85e   : > { %v7207_v42 = vpop.permute.xlu2 %7206 }
 0x85f   : > { %v6667_v39 = vpop.f32.mrf.mxu2  ;;  %v7694_v21 = vpop.f32.mrf.mxu0  ;;  %v7380_v23 = vsel %vm2655_vm4, %v14070_v27, %v7207_v42  ;;  %v6973_v42 = vld [vmem:[#allocation3 + $0x228] sm:$0xff] }
 0x860   : > { %8771 = vmatmul.msk.f32.gmra.mxu1 %vm2655_vm4, %v6973_v42 }
 0x862   : > { %8681 = vmatmul.msk.f32.gmra.mxu3 %vm2655_vm4, %v9045_v40  ;;  %7729 = vmatmul.f32.gmra.mxu0 %v7376_v24  ;;  %v9049_v24 = vld [vmem:[#allocation3 + $0x180] sm:$0xff] }
 0x864   : > { %v7892_v15 = vpop.f32.mrf.mxu1  ;;  %6703 = vmatmul.f32.gmra.mxu2 %v15101_v3 }
 0x865   : > { %v6842_v32 = vpop.f32.mrf.mxu3 }
 0x867   : > { %v6669_v56 = vpop.f32.mrf.mxu2  ;;  %v7696_v47 = vpop.f32.mrf.mxu0 }
 0x868   : > { %v7864_v25 = vadd.f32 %v14021_v8, %v7696_v47  ;;  %v15106_v56 = vld [vmem:[#allocation38_spill] sm:$0xff]  ;;  %v15107_v47 = vld [vmem:[#allocation89_spill] sm:$0xff] }
 0x86a   : > { %8682 = vmatmul.msk.f32.gmra.mxu3 %vm2655_vm4, %v9046_v13  ;;  %7732 = vmatmul.f32.gmra.mxu0 %v7377_v12  ;;  %v7985_v60 = vadd.f32 %v7864_v25, %v14090_v44  ;;  %v8107_v44 = vld [vmem:[%s14502_s8 + $0x90] sm:$0xff]  ;;  %v6469_v25 = vadd.f32 %v15107_v47, %v15106_v56  ;;  %v7209_v12 = vpop.permute.xlu0 %7208  ;;  %v8104_v47 = vld [vmem:[%s14502_s8 + $0x78] sm:$0xff] }
 0x86b   : > { %8133 = vmatpush.msrb.mxu2 %v8107_v44  ;;  %v7381_v30 = vsel %vm2655_vm4, %v14081_v62, %v7209_v12  ;;  %v7211_v44 = vpop.permute.xlu1 %7210  ;;  %v6975_v12 = vld [vmem:[#allocation3 + $0x238] sm:$0xff] }
 0x86c   : > { %v14192_v31 = vpop.f32.mrf.mxu1  ;;  %6705 = vmatmul.f32.gmra.mxu2 %v15102_v53  ;;  %v8001_v37 = vadd.f32 %v14027_v26, %v7985_v60  ;;  %v8106_v60 = vld [vmem:[%s14502_s8 + $0x88] sm:$0xff]  ;;  %v7382_v62 = vsel %vm2655_vm4, %v14094_v17, %v7211_v44 }
 0x86d   : > { %v6844_v45 = vpop.f32.mrf.mxu3  ;;  %8154 = vmatpush.msra.mxu3 %v8106_v60 }
 0x86e   : > { %v8013_v29 = vmax.f32 %v8001_v37, 0.0  ;;  %v15108_v37 = vld [vmem:[#allocation37_spill] sm:$0xff] }
 0x86f   : > { %v6671_v5 = vpop.f32.mrf.mxu2  ;;  %v7699_v57 = vpop.f32.mrf.mxu0  ;;  %8155 = vmatpush.msra.mxu3 %v8104_v47 }
 0x870   : > { %v7867_v8 = vadd.f32 %v14045_v51, %v7699_v57  ;;  %v15103_v51 = vld [vmem:[#allocation32_spill] sm:$0xff]  ;;  %v8052_v46 = vrot.slane %v8013_v29, 4 }
 0x872   : > { %v7986_v22 = vadd.f32 %v7867_v8, %v14106_v19  ;;  %8683 = vmatmul.msk.f32.gmra.mxu3 %vm2655_vm4, %v9047_v6  ;;  %7735 = vmatmul.f32.gmra.mxu0 %v7378_v38  ;;  %v15109_v38 = vld [vmem:[#allocation81_spill] sm:$0xff] }
 0x874   : > { %v14205_v49 = vpop.f32.mrf.mxu1  ;;  %v8002_v36 = vadd.f32 %v14027_v26, %v7986_v22  ;;  %6707 = vmatmul.f32.gmra.mxu2 %v15103_v51  ;;  %v15110_v22 = vld [vmem:[#allocation78_spill] sm:$0xff] }
 0x875   : > { %v6847_v54 = vpop.f32.mrf.mxu3  ;;  %v6472_v6 = vadd.f32 %v15110_v22, %v15109_v38  ;;  %v15117_v22 = vld [vmem:[#allocation39_spill] sm:$0xff] }
 0x876   : > { %v8014_v7 = vmax.f32 %v8002_v36, 0.0 }
 0x877   : > { %v6673_v19 = vpop.f32.mrf.mxu2  ;;  %v7702_v14 = vpop.f32.mrf.mxu0 }
 0x878   : > { %v8053_v63 = vrot.slane %v8014_v7, 4  ;;  %v7870_v28 = vadd.f32 %v14061_v50, %v7702_v14  ;;  %v15111_v14 = vld [vmem:[#allocation29_spill] sm:$0xff] }
 0x87a   : > { %v7987_v61 = vadd.f32 %v7870_v28, %v14118_v11  ;;  %8684 = vmatmul.msk.f32.gmra.mxu3 %vm2655_vm4, %v9048_v43  ;;  %7737 = vmatmul.f32.gmra.mxu0 %v7379_v59  ;;  %v8054_v33 = vsel %vm1261_vm2, %v8052_v46, %v8053_v63  ;;  %v15113_v28 = vld [vmem:[#allocation40_spill] sm:$0xff] }
 0x87b   : > { %v14217_v52 = vmax.f32 %v8013_v29, %v8054_v33 }
 0x87c   : > { %v14215_v35 = vpop.f32.mrf.mxu1  ;;  %v8003_v16 = vadd.f32 %v14027_v26, %v7987_v61  ;;  %6710 = vmatmul.f32.gmra.mxu2 %v15104_v2  ;;  %v7213_v61 = vpop.permute.xlu2 %7212  ;;  %v9052_v2 = vld [vmem:[#allocation3 + $0x198] sm:$0xff] }
 0x87d   : > { %v6850_v50 = vpop.f32.mrf.mxu3  ;;  %v8070_v20 = vmax.f32 %v14063_v10, %v14217_v52  ;;  %v7383_v33 = vsel %vm2655_vm4, %v14110_v58, %v7213_v61  ;;  %v9053_v58 = vld [vmem:[#allocation3 + $0x1a0] sm:$0xff]  ;;  %v15119_v61 = vld [vmem:[#allocation84_spill] sm:$0xff] }
 0x87e   : > { %v8015_v11 = vmax.f32 %v8003_v16, 0.0 }
 0x87f   : > { %v6675_v18 = vpop.f32.mrf.mxu2  ;;  %v7705_v39 = vpop.f32.mrf.mxu0 }
 0x880   : > { %v8055_v21 = vrot.slane %v8015_v11, 4  ;;  %v15114_v18 = vld [vmem:[#allocation43_spill] sm:$0xff] }
 0x882   : > { %8685 = vmatmul.msk.f32.gmra.mxu3 %vm2655_vm4, %v9049_v24  ;;  %7739 = vmatmul.f32.gmra.mxu0 %v7380_v23  ;;  %v8056_v40 = vsel %vm1261_vm2, %v8053_v63, %v8055_v21  ;;  %v15112_v63 = vld [vmem:[#allocation51_spill] sm:$0xff]  ;;  %v7215_v21 = vpop.permute.xlu0 %7214 }
 0x883   : > { %v8067_v3 = vmax.f32 %v8014_v7, %v8056_v40  ;;  %v8105_v7 = vld [vmem:[%s14502_s8 + $0x80] sm:$0xff]  ;;  %v6475_v59 = vadd.f32 %v15113_v28, %v15112_v63  ;;  %v7384_v40 = vsel %vm2655_vm4, %v14122_v41, %v7215_v21 }
 0x884   : > { %v7903_v15 = vpop.f32.mrf.mxu1  ;;  %6713 = vmatmul.f32.gmra.mxu2 %v15105_v48 }
 0x885   : > { %v6853_v32 = vpop.f32.mrf.mxu3  ;;  %v8071_v4 = vmax.f32 %v14078_v55, %v8067_v3  ;;  %v9050_v55 = vld [vmem:[#allocation3 + $0x188] sm:$0xff]  ;;  %8134 = vmatpush.msrb.mxu2 %v8105_v7  ;;  %v15115_v3 = vld [vmem:[#allocation36_spill] sm:$0xff] }
 0x886   : > { %v7217_v32 = vpop.permute.xlu1 %7216 }
 0x887   : > { %v6677_v13 = vpop.f32.mrf.mxu2  ;;  %8075 = vrot.lane.b32.xlu2 %v8071_v4, %s9081_s18  ;;  %v7707_v27 = vpop.f32.mrf.mxu0  ;;  %v7385_v41 = vsel %vm2655_vm4, %v14135_v9, %v7217_v32  ;;  %v6976_v9 = vld [vmem:[#allocation3 + $0x240] sm:$0xff] }
 0x888   : > { %v6678_v53 = vadd.f32 %v6677_v13, %v6469_v25  ;;  %v9054_v25 = vld [vmem:[#allocation3 + $0x1a8] sm:$0xff] }
 0x889   : > { %v15116_v27 = vld [vmem:[#allocation79_spill] sm:$0xff] }
 0x88a   : > { %v14237_v5 = vadd.f32 %v6844_v45, %v6678_v53  ;;  %8686 = vmatmul.msk.f32.gmra.mxu3 %vm2655_vm4, %v9050_v55  ;;  %7741 = vmatmul.f32.gmra.mxu0 %v7381_v30  ;;  %v7219_v53 = vpop.permute.xlu2 %7218  ;;  %v7221_v44 = vpop.permute.xlu0 %7220 }
 0x88c   : > { %v7905_v57 = vpop.f32.mrf.mxu1  ;;  %6716 = vmatmul.f32.gmra.mxu2 %v15108_v37  ;;  %v9055_v37 = vld [vmem:[#allocation3 + $0x1b0] sm:$0xff] }
 0x88d   : > { %v6855_v8 = vpop.f32.mrf.mxu3  ;;  %v7386_v57 = vsel %vm2655_vm4, %v14144_v0, %v7219_v53  ;;  %v7387_v0 = vsel %vm2655_vm4, %v14157_v34, %v7221_v44 }
 0x88e   : > { %v8103_v8 = vld [vmem:[%s14502_s8 + $0x70] sm:$0xff]  ;;  %v7223_v7 = vpop.permute.xlu1 %7222 }
 0x88f   : > { %v6680_v29 = vpop.f32.mrf.mxu2  ;;  %v7709_v36 = vpop.f32.mrf.mxu0  ;;  %8135 = vmatpush.msrb.mxu2 %v8103_v8  ;;  %v7388_v28 = vsel %vm2655_vm4, %v6973_v42, %v7223_v7  ;;  %v15120_v42 = vld [vmem:[#allocation85_spill] sm:$0xff] }
 0x890   : > { %v6681_v51 = vadd.f32 %v6680_v29, %v6472_v6  ;;  %v7051_v8 = vld [vmem:[#allocation3 + $0x274] sm:$0xff] }
 0x892   : > { %v14245_v45 = vadd.f32 %v6847_v54, %v6681_v51  ;;  %8687 = vmatmul.msk.f32.gmra.mxu3 %vm2655_vm4, %v9051_v1  ;;  %7743 = vmatmul.f32.gmra.mxu0 %v7382_v62  ;;  %v9056_v51 = vld [vmem:[#allocation3 + $0x1b8] sm:$0xff]  ;;  %v15118_v1 = vld [vmem:[#allocation80_spill] sm:$0xff] }
 0x894   : > { %v7907_v19 = vpop.f32.mrf.mxu1  ;;  %6718 = vmatmul.f32.gmra.mxu2 %v15111_v14  ;;  %v14286_v14 = vld [vmem:[#allocation3 + $0x248] sm:$0xff] }
 0x895   : > { %v6857_v46 = vpop.f32.mrf.mxu3 }
 0x897   : > { %v6683_v17 = vpop.f32.mrf.mxu2  ;;  %v7711_v54 = vpop.f32.mrf.mxu0 }
 0x898   : > { %v6684_v43 = vadd.f32 %v6683_v17, %v6475_v59  ;;  %v9057_v59 = vld [vmem:[#allocation3 + $0x1c0] sm:$0xff]  ;;  %v7225_v54 = vpop.permute.xlu2 %7224 }
 0x89a   : > { %v14256_v16 = vadd.f32 %v6850_v50, %v6684_v43  ;;  %8688 = vmatmul.msk.f32.gmra.mxu3 %vm2655_vm4, %v9052_v2  ;;  %7745 = vmatmul.f32.gmra.mxu0 %v7383_v33  ;;  %v6974_v50 = vld [vmem:[#allocation3 + $0x230] sm:$0xff] }
 0x89b   : > { %8772 = vmatmul.msk.f32.gmra.mxu1 %vm2655_vm4, %v6974_v50  ;;  %v7047_v43 = vld [vmem:[#allocation3 + $0x254] sm:$0xff] }
 0x89c   : > { %v7909_v11 = vpop.f32.mrf.mxu1  ;;  %6720 = vmatmul.f32.gmra.mxu2 %v15114_v18  ;;  %7232 = vrot.lane.b32.xlu0 %v7047_v43, %s9082_s19  ;;  %v9058_v18 = vld [vmem:[#allocation3 + $0x1c8] sm:$0xff]  ;;  %v15125_v43 = vld [vmem:[#allocation97_spill] sm:$0xff] }
 0x89d   : > { %v6859_v39 = vpop.f32.mrf.mxu3  ;;  %v7389_v11 = vsel %vm2655_vm4, %v6974_v50, %v7225_v54  ;;  %v8102_v50 = vld [vmem:[%s14502_s8 + $0x68] sm:$0xff] }
 0x89e   : > { %v7227_v39 = vpop.permute.xlu0 %7226  ;;  %8156 = vmatpush.msra.mxu3 %v8102_v50  ;;  %v15128_v50 = vld [vmem:[#allocation99_spill] sm:$0xff] }
 0x89f   : > { %v6686_v23 = vpop.f32.mrf.mxu2  ;;  %v7713_v24 = vpop.f32.mrf.mxu0 }
 0x8a0   : > { %v7048_v23 = vld [vmem:[#allocation3 + $0x25c] sm:$0xff] }
 0x8a1   : > { %7234 = vrot.lane.b32.xlu1 %v7048_v23, %s9082_s19 }
 0x8a2   : > { %8689 = vmatmul.msk.f32.gmra.mxu3 %vm2655_vm4, %v9053_v58  ;;  %7747 = vmatmul.f32.gmra.mxu0 %v7384_v40  ;;  %v7390_v58 = vsel %vm2655_vm4, %v6975_v12, %v7227_v39 }
 0x8a3   : > { %8773 = vmatmul.msk.f32.gmra.mxu1 %vm2655_vm4, %v6975_v12  ;;  %v9060_v12 = vld [vmem:[#allocation3 + $0x1d8] sm:$0xff] }
 0x8a4   : > { %v7911_v15 = vpop.f32.mrf.mxu1  ;;  %6722 = vmatmul.f32.gmra.mxu2 %v15115_v3  ;;  %v15121_v3 = vld [vmem:[#allocation83_spill] sm:$0xff] }
 0x8a5   : > { %v6861_v48 = vpop.f32.mrf.mxu3  ;;  %v9059_v15 = vld [vmem:[#allocation3 + $0x1d0] sm:$0xff] }
 0x8a6   : > { %v7229_v48 = vpop.permute.xlu1 %7228 }
 0x8a7   : > { %v6688_v4 = vpop.f32.mrf.mxu2  ;;  %v7715_v56 = vpop.f32.mrf.mxu0 }
 0x8a8   : > { %v8101_v4 = vld [vmem:[%s14502_s8 + $0x60] sm:$0xff] }
 0x8a9   : > { %8136 = vmatpush.msrb.mxu2 %v8101_v4  ;;  %7240 = vrot.lane.b32.xlu1 %v7051_v8, %s9082_s19  ;;  %v15129_v4 = vld [vmem:[#allocation94_spill] sm:$0xff] }
 0x8aa   : > { %8690 = vmatmul.msk.f32.gmra.mxu3 %vm2655_vm4, %v9054_v25  ;;  %7749 = vmatmul.f32.gmra.mxu0 %v7385_v41  ;;  %v7391_v41 = vsel %vm2655_vm4, %v6976_v9, %v7229_v48  ;;  %v7057_v8 = vld [vmem:[#allocation3 + $0x2a4] sm:$0xff] }
 0x8ab   : > { %8774 = vmatmul.msk.f32.gmra.mxu1 %vm2655_vm4, %v6976_v9  ;;  %v9061_v9 = vld [vmem:[#allocation3 + $0x1e0] sm:$0xff] }
 0x8ac   : > { %v7913_v13 = vpop.f32.mrf.mxu1  ;;  %6724 = vmatmul.f32.gmra.mxu2 %v15116_v27 }
 0x8ad   : > { %v6863_v60 = vpop.f32.mrf.mxu3  ;;  %v7050_v13 = vld [vmem:[#allocation3 + $0x26c] sm:$0xff] }
 0x8ae   : > { %7238 = vrot.lane.b32.xlu0 %v7050_v13, %s9082_s19  ;;  %v15122_v60 = vld [vmem:[#allocation53_spill] sm:$0xff] }
 0x8af   : > { %v6690_v30 = vpop.f32.mrf.mxu2  ;;  %v7717_v55 = vpop.f32.mrf.mxu0 }
 0x8b2   : > { %8691 = vmatmul.msk.f32.gmra.mxu3 %vm2655_vm4, %v9055_v37  ;;  %7751 = vmatmul.f32.gmra.mxu0 %v7386_v57 }
 0x8b3   : > { %8775 = vmatmul.msk.f32.gmra.mxu1 %vm2655_vm4, %v14286_v14 }
 0x8b4   : > { %v7915_v38 = vpop.f32.mrf.mxu1  ;;  %6726 = vmatmul.f32.gmra.mxu2 %v15117_v22  ;;  %v15123_v22 = vld [vmem:[#allocation35_spill] sm:$0xff] }
 0x8b5   : > { %v6865_v6 = vpop.f32.mrf.mxu3 }
 0x8b7   : > { %v6692_v29 = vpop.f32.mrf.mxu2  ;;  %v7719_v36 = vpop.f32.mrf.mxu0 }
 0x8ba   : > { %8692 = vmatmul.msk.f32.gmra.mxu3 %vm2655_vm4, %v9056_v51  ;;  %7753 = vmatmul.f32.gmra.mxu0 %v7387_v0 }
 0x8bc   : > { %v7917_v62 = vpop.f32.mrf.mxu1  ;;  %6728 = vmatmul.f32.gmra.mxu2 %v15118_v1 }
 0x8bd   : > { %v6867_v19 = vpop.f32.mrf.mxu3  ;;  %v9062_v62 = vld [vmem:[#allocation3 + $0x1e8] sm:$0xff] }
 0x8bf   : > { %v6694_v46 = vpop.f32.mrf.mxu2  ;;  %v7721_v63 = vpop.f32.mrf.mxu0 }
 0x8c0   : > { %v15124_v46 = vld [vmem:[#allocation88_spill] sm:$0xff] }
 0x8c2   : > { %8693 = vmatmul.msk.f32.gmra.mxu3 %vm2655_vm4, %v9057_v59  ;;  %7755 = vmatmul.f32.gmra.mxu0 %v7388_v28  ;;  %v8100_v28 = vld [vmem:[%s14502_s8 + $0x58] sm:$0xff] }
 0x8c3   : > { %8157 = vmatpush.msra.mxu3 %v8100_v28  ;;  %v15135_v28 = vld [vmem:[#allocation11_spill] sm:$0xff] }
 0x8c4   : > { %v7919_v34 = vpop.f32.mrf.mxu1  ;;  %6730 = vmatmul.f32.gmra.mxu2 %v15119_v61  ;;  %v9063_v61 = vld [vmem:[#allocation3 + $0x1f0] sm:$0xff] }
 0x8c5   : > { %v6869_v17 = vpop.f32.mrf.mxu3 }
 0x8c6   : > { %v7053_v17 = vld [vmem:[#allocation3 + $0x284] sm:$0xff] }
 0x8c7   : > { %v6696_v33 = vpop.f32.mrf.mxu2  ;;  %v7723_v2 = vpop.f32.mrf.mxu0  ;;  %7244 = vrot.lane.b32.xlu0 %v7053_v17, %s9082_s19 }
 0x8c8   : > { %v8099_v2 = vld [vmem:[%s14502_s8 + $0x50] sm:$0xff] }
 0x8c9   : > { %8137 = vmatpush.msrb.mxu2 %v8099_v2 }
 0x8ca   : > { %8694 = vmatmul.msk.f32.gmra.mxu3 %vm2655_vm4, %v9058_v18  ;;  %7757 = vmatmul.f32.gmra.mxu0 %v7389_v11  ;;  %v15126_v11 = vld [vmem:[#allocation4_spill] sm:$0xff]  ;;  %v15127_v18 = vld [vmem:[#allocation90_spill] sm:$0xff] }
 0x8cc   : > { %6732 = vmatmul.f32.gmra.mxu2 %v15120_v42  ;;  %v6500_v42 = vadd.f32 %v15127_v18, %v15126_v11  ;;  %v6978_v18 = vld [vmem:[#allocation3 + $0x250] sm:$0xff] }
 0x8cd   : > { %v6871_v21 = vpop.f32.mrf.mxu3  ;;  %8776 = vmatmul.msk.f32.gmra.mxu1 %vm2655_vm4, %v6978_v18 }
 0x8cf   : > { %v6698_v24 = vpop.f32.mrf.mxu2  ;;  %v7725_v40 = vpop.f32.mrf.mxu0 }
 0x8d0   : > { %v9064_v40 = vld [vmem:[#allocation3 + $0x1f8] sm:$0xff] }
 0x8d2   : > { %8695 = vmatmul.msk.f32.gmra.mxu3 %vm2655_vm4, %v9059_v15  ;;  %7760 = vmatmul.f32.gmra.mxu0 %v7390_v58  ;;  %v7054_v58 = vld [vmem:[#allocation3 + $0x28c] sm:$0xff] }
 0x8d3   : > { %7246 = vrot.lane.b32.xlu1 %v7054_v58, %s9082_s19 }
 0x8d4   : > { %6734 = vmatmul.f32.gmra.mxu2 %v15121_v3 }
 0x8d5   : > { %v6873_v32 = vpop.f32.mrf.mxu3 }
 0x8d6   : > { %v9065_v32 = vld [vmem:[#allocation3 + $0x200] sm:$0xff] }
 0x8d7   : > { %v6700_v56 = vpop.f32.mrf.mxu2  ;;  %v7727_v47 = vpop.f32.mrf.mxu0 }
 0x8d8   : > { %v7895_v25 = vadd.f32 %v14192_v31, %v7727_v47  ;;  %v15130_v47 = vld [vmem:[#allocation101_spill] sm:$0xff] }
 0x8da   : > { %8696 = vmatmul.msk.f32.gmra.mxu3 %vm2655_vm4, %v9060_v12  ;;  %7763 = vmatmul.f32.gmra.mxu0 %v7391_v41  ;;  %v7988_v27 = vadd.f32 %v7895_v25, %v14237_v5  ;;  %v15131_v41 = vld [vmem:[#allocation42_spill] sm:$0xff] }
 0x8db   : > { %v6506_v25 = vadd.f32 %v15131_v41, %v15130_v47  ;;  %7252 = vrot.lane.b32.xlu1 %v7057_v8, %s9082_s19  ;;  %v8095_v47 = vld [vmem:[%s14502_s8 + $0x30] sm:$0xff] }
 0x8dc   : > { %6736 = vmatmul.f32.gmra.mxu2 %v15122_v60  ;;  %v8004_v57 = vadd.f32 %v14027_v26, %v7988_v27  ;;  %v7056_v27 = vld [vmem:[#allocation3 + $0x29c] sm:$0xff] }
 0x8dd   : > { %v6875_v53 = vpop.f32.mrf.mxu3  ;;  %7250 = vrot.lane.b32.xlu0 %v7056_v27, %s9082_s19  ;;  %v6980_v41 = vld [vmem:[#allocation3 + $0x260] sm:$0xff] }
 0x8de   : > { %v8016_v38 = vmax.f32 %v8004_v57, 0.0 }
 0x8df   : > { %v6702_v30 = vpop.f32.mrf.mxu2  ;;  %v7730_v55 = vpop.f32.mrf.mxu0 }
 0x8e0   : > { %v7898_v37 = vadd.f32 %v14205_v49, %v7730_v55  ;;  %v8033_v0 = vrot.slane %v8016_v38, 4  ;;  %v9066_v30 = vld [vmem:[#allocation3 + $0x208] sm:$0xff] }
 0x8e1   : > { %v15132_v55 = vld [vmem:[#allocation95_spill] sm:$0xff] }
 0x8e2   : > { %v7989_v31 = vadd.f32 %v7898_v37, %v14245_v45  ;;  %8697 = vmatmul.msk.f32.gmra.mxu3 %vm2655_vm4, %v9061_v9  ;;  %v8098_v9 = vld [vmem:[%s14502_s8 + $0x48] sm:$0xff] }
 0x8e3   : > { %8158 = vmatpush.msra.mxu3 %v8098_v9  ;;  %v15139_v9 = vld [vmem:[#allocation47_spill] sm:$0xff] }
 0x8e4   : > { %v8005_v5 = vadd.f32 %v14027_v26, %v7989_v31  ;;  %6738 = vmatmul.f32.gmra.mxu2 %v15123_v22 }
 0x8e5   : > { %v14320_v6 = vpop.f32.mrf.mxu3 }
 0x8e6   : > { %v8017_v44 = vmax.f32 %v8005_v5, 0.0  ;;  %v15133_v5 = vld [vmem:[#allocation45_spill] sm:$0xff] }
 0x8e7   : > { %v6704_v29 = vpop.f32.mrf.mxu2  ;;  %v7733_v36 = vpop.f32.mrf.mxu0 }
 0x8e8   : > { %v8034_v49 = vrot.slane %v8017_v44, 4  ;;  %v7901_v45 = vadd.f32 %v14215_v35, %v7733_v36  ;;  %v8097_v36 = vld [vmem:[%s14502_s8 + $0x40] sm:$0xff] }
 0x8e9   : > { %8138 = vmatpush.msrb.mxu2 %v8097_v36 }
 0x8ea   : > { %v7990_v51 = vadd.f32 %v7901_v45, %v14256_v16  ;;  %8698 = vmatmul.msk.f32.gmra.mxu3 %vm2655_vm4, %v9062_v62  ;;  %v8035_v1 = vsel %vm1261_vm2, %v8033_v0, %v8034_v49  ;;  %v7921_v0 = vpop.f32.mrf.mxu1  ;;  %v15134_v45 = vld [vmem:[#allocation96_spill] sm:$0xff] }
 0x8eb   : > { %v14326_v7 = vmax.f32 %v8016_v38, %v8035_v1  ;;  %v9067_v38 = vld [vmem:[#allocation3 + $0x210] sm:$0xff]  ;;  %8139 = vmatpush.msrb.mxu2 %v8095_v47 }
 0x8ec   : > { %v8006_v19 = vadd.f32 %v14027_v26, %v7990_v51  ;;  %6740 = vmatmul.f32.gmra.mxu2 %v15124_v46 }
 0x8ed   : > { %v6881_v63 = vpop.f32.mrf.mxu3 }
 0x8ee   : > { %v8018_v59 = vmax.f32 %v8006_v19, 0.0  ;;  %v7059_v19 = vld [vmem:[#allocation3 + $0x2b4] sm:$0xff] }
 0x8ef   : > { %v6706_v35 = vpop.f32.mrf.mxu2  ;;  %v7736_v16 = vpop.f32.mrf.mxu0  ;;  %7256 = vrot.lane.b32.xlu0 %v7059_v19, %s9082_s19  ;;  %v6982_v19 = vld [vmem:[#allocation3 + $0x270] sm:$0xff] }
 0x8f0   : > { %v8036_v34 = vrot.slane %v8018_v59, 4 }
 0x8f2   : > { %8699 = vmatmul.msk.f32.gmra.mxu3 %vm2655_vm4, %v9063_v61  ;;  %v8037_v54 = vsel %vm1261_vm2, %v8034_v49, %v8036_v34  ;;  %v9068_v49 = vld [vmem:[#allocation3 + $0x218] sm:$0xff]  ;;  %v9070_v34 = vld [vmem:[#allocation3 + $0x228] sm:$0xff]  ;;  %v15136_v61 = vld [vmem:[#allocation98_spill] sm:$0xff] }
 0x8f3   : > { %v14336_v26 = vmax.f32 %v8017_v44, %v8037_v54  ;;  %v7231_v54 = vpop.permute.xlu2 %7230 }
 0x8f4   : > { %6742 = vmatmul.f32.gmra.mxu2 %v15125_v43  ;;  %v7060_v43 = vld [vmem:[#allocation3 + $0x2bc] sm:$0xff]  ;;  %v7392_v11 = vsel %vm2655_vm4, %v14286_v14, %v7231_v54 }
 0x8f5   : > { %v6884_v33 = vpop.f32.mrf.mxu3  ;;  %7258 = vrot.lane.b32.xlu1 %v7060_v43, %s9082_s19  ;;  %7766 = vmatmul.f32.gmra.mxu0 %v7392_v11 }
 0x8f7   : > { %v6708_v39 = vpop.f32.mrf.mxu2  ;;  %v7738_v21 = vpop.f32.mrf.mxu0 }
 0x8f8   : > { %v6709_v23 = vadd.f32 %v6708_v39, %v6500_v42  ;;  %v15137_v42 = vld [vmem:[#allocation14_spill] sm:$0xff] }
 0x8fa   : > { %v14344_v24 = vadd.f32 %v6875_v53, %v6709_v23  ;;  %8700 = vmatmul.msk.f32.gmra.mxu3 %vm2655_vm4, %v9064_v40  ;;  %v8096_v40 = vld [vmem:[%s14502_s8 + $0x38] sm:$0xff] }
 0x8fb   : > { %8159 = vmatpush.msra.mxu3 %v8096_v40  ;;  %v7237_v27 = vpop.permute.xlu2 %7236 }
 0x8fc   : > { %6744 = vmatmul.f32.gmra.mxu2 %v15128_v50 }
 0x8fd   : > { %v6886_v15 = vpop.f32.mrf.mxu3 }
 0x8fe   : > { %v6979_v15 = vld [vmem:[#allocation3 + $0x258] sm:$0xff] }
 0x8ff   : > { %v14349_v3 = vpop.f32.mrf.mxu2  ;;  %v7740_v48 = vpop.f32.mrf.mxu0  ;;  %8777 = vmatmul.msk.f32.gmra.mxu1 %vm2655_vm4, %v6979_v15 }
 0x900   : > { %v7062_v48 = vld [vmem:[#allocation3 + $0x2cc] sm:$0xff] }
 0x901   : > { %7262 = vrot.lane.b32.xlu0 %v7062_v48, %s9082_s19 }
 0x902   : > { %8701 = vmatmul.msk.f32.gmra.mxu3 %vm2655_vm4, %v9065_v32 }
 0x904   : > { %6746 = vmatmul.f32.gmra.mxu2 %v15129_v4 }
 0x905   : > { %v6888_v56 = vpop.f32.mrf.mxu3 }
 0x907   : > { %v6714_v12 = vpop.f32.mrf.mxu2  ;;  %v7742_v13 = vpop.f32.mrf.mxu0  ;;  %8778 = vmatmul.msk.f32.gmra.mxu1 %vm2655_vm4, %v6980_v41 }
 0x908   : > { %v6715_v60 = vadd.f32 %v6714_v12, %v6506_v25 }
 0x90a   : > { %v14356_v53 = vadd.f32 %v6881_v63, %v6715_v60  ;;  %8702 = vmatmul.msk.f32.gmra.mxu3 %vm2655_vm4, %v9066_v30  ;;  %v9069_v63 = vld [vmem:[#allocation3 + $0x220] sm:$0xff] }
 0x90c   : > { %6748 = vmatmul.f32.gmra.mxu2 %v15132_v55 }
 0x90d   : > { %v6890_v57 = vpop.f32.mrf.mxu3 }
 0x90e   : > { %v7233_v58 = vpop.permute.xlu0 %7232  ;;  %v7395_v57 = vsel %vm2655_vm4, %v6980_v41, %v7237_v27 }
 0x90f   : > { %v6717_v37 = vpop.f32.mrf.mxu2  ;;  %v7744_v31 = vpop.f32.mrf.mxu0  ;;  %v7393_v50 = vsel %vm2655_vm4, %v6978_v18, %v7233_v58 }
 0x910   : > { %7768 = vmatmul.f32.gmra.mxu0 %v7393_v50  ;;  %v6981_v37 = vld [vmem:[#allocation3 + $0x268] sm:$0xff]  ;;  %v15138_v31 = vld [vmem:[#allocation100_spill] sm:$0xff]  ;;  %v7243_v50 = vpop.permute.xlu2 %7242 }
 0x911   : > { %v6503_v8 = vadd.f32 %v15139_v9, %v15138_v31  ;;  %8779 = vmatmul.msk.f32.gmra.mxu1 %vm2655_vm4, %v6981_v37  ;;  %v6986_v9 = vld [vmem:[#allocation3 + $0x290] sm:$0xff] }
 0x912   : > { %8703 = vmatmul.msk.f32.gmra.mxu3 %vm2655_vm4, %v9067_v38 }
 0x913   : > { %v7235_v25 = vpop.permute.xlu1 %7234 }
 0x914   : > { %6750 = vmatmul.f32.gmra.mxu2 %v15133_v5  ;;  %v7394_v12 = vsel %vm2655_vm4, %v6979_v15, %v7235_v25  ;;  %v6712_v5 = vadd.f32 %v14349_v3, %v6503_v8  ;;  %v7064_v25 = vld [vmem:[#allocation3 + $0x2dc] sm:$0xff]  ;;  %v7069_v8 = vld [vmem:[#allocation3 + $0x304] sm:$0xff] }
 0x915   : > { %v6892_v22 = vpop.f32.mrf.mxu3 }
 0x917   : > { %v6719_v44 = vpop.f32.mrf.mxu2  ;;  %v7746_v29 = vpop.f32.mrf.mxu0 }
 0x918   : > { %v7923_v46 = vpop.f32.mrf.mxu1  ;;  %7770 = vmatmul.f32.gmra.mxu0 %v7394_v12 }
 0x919   : > { %8780 = vmatmul.msk.f32.gmra.mxu1 %vm2655_vm4, %v6982_v19 }
 0x91a   : > { %8704 = vmatmul.msk.f32.gmra.mxu3 %vm2655_vm4, %v9068_v49  ;;  %v6879_v49 = vadd.f32 %v14320_v6, %v6712_v5  ;;  %v8094_v6 = vld [vmem:[%s14502_s8 + $0x28] sm:$0xff]  ;;  %v7249_v5 = vpop.permute.xlu2 %7248 }
 0x91b   : > { %8160 = vmatpush.msra.mxu3 %v8094_v6 }
 0x91c   : > { %6752 = vmatmul.f32.gmra.mxu2 %v15134_v45  ;;  %v9071_v45 = vld [vmem:[%s14501_s7] ss:$0 sm:$0xff] }
 0x91d   : > { %v6894_v51 = vpop.f32.mrf.mxu3 }
 0x91f   : > { %v6721_v62 = vpop.f32.mrf.mxu2  ;;  %v7748_v1 = vpop.f32.mrf.mxu0 }
 0x920   : > { %v7925_v56 = vpop.f32.mrf.mxu1  ;;  %7772 = vmatmul.f32.gmra.mxu0 %v7395_v57  ;;  %v7239_v29 = vpop.permute.xlu0 %7238 }
 0x921   : > { %v7396_v1 = vsel %vm2655_vm4, %v6981_v37, %v7239_v29  ;;  %v8091_v29 = vld [vmem:[%s14502_s8 + $0x10] sm:$0xff] }
 0x922   : > { %8705 = vmatmul.msk.f32.gmra.mxu3 %vm2655_vm4, %v9069_v63  ;;  %v7255_v6 = vpop.permute.xlu2 %7254 }
 0x924   : > { %6754 = vmatmul.f32.gmra.mxu2 %v15135_v28 }
 0x925   : > { %v6896_v59 = vpop.f32.mrf.mxu3 }
 0x926   : > { %v7241_v59 = vpop.permute.xlu1 %7240 }
 0x927   : > { %v6723_v35 = vpop.f32.mrf.mxu2  ;;  %v7750_v16 = vpop.f32.mrf.mxu0 }
 0x928   : > { %v7928_v38 = vpop.f32.mrf.mxu1  ;;  %7774 = vmatmul.f32.gmra.mxu0 %v7396_v1 }
 0x92a   : > { %8706 = vmatmul.msk.f32.gmra.mxu3 %vm2655_vm4, %v9070_v34 }
 0x92c   : > { %6756 = vmatmul.f32.gmra.mxu2 %v15136_v61  ;;  %v8093_v61 = vld [vmem:[%s14502_s8 + $0x20] sm:$0xff] }
 0x92d   : > { %v6898_v17 = vpop.f32.mrf.mxu3  ;;  %8140 = vmatpush.msrb.mxu2 %v8093_v61 }
 0x92f   : > { %v6725_v33 = vpop.f32.mrf.mxu2  ;;  %v7752_v2 = vpop.f32.mrf.mxu0  ;;  %8141 = vmatpush.msrb.mxu2 %v8091_v29 }
 0x930   : > { %v7931_v63 = vpop.f32.mrf.mxu1  ;;  %v7397_v33 = vsel %vm2655_vm4, %v6982_v19, %v7241_v59  ;;  %v6983_v2 = vld [vmem:[#allocation3 + $0x278] sm:$0xff]  ;;  %v6988_v19 = vld [vmem:[#allocation3 + $0x2a0] sm:$0xff] }
 0x931   : > { %7776 = vmatmul.f32.gmra.mxu0 %v7397_v33  ;;  %8781 = vmatmul.msk.f32.gmra.mxu1 %vm2655_vm4, %v6983_v2  ;;  %v8089_v33 = vld [vmem:[%s14502_s8] sm:$0xff] }
 0x932   : > { %8142 = vmatpush.msrb.mxu2 %v8089_v33 }
 0x934   : > { %6758 = vmatmul.f32.gmra.mxu2 %v15137_v42 }
 0x935   : > { %v6900_v39 = vpop.f32.mrf.mxu3 }
 0x937   : > { %v6727_v21 = vpop.f32.mrf.mxu2  ;;  %v7754_v23 = vpop.f32.mrf.mxu0 }
 0x938   : > { %v7063_v21 = vld [vmem:[#allocation3 + $0x2d4] sm:$0xff] }
 0x93d   : > { %v6902_v14 = vpop.f32.mrf.mxu3 }
 0x93f   : > { %v6729_v32 = vpop.f32.mrf.mxu2  ;;  %v7756_v4 = vpop.f32.mrf.mxu0 }
 0x940   : > { %v7398_v32 = vsel %vm2655_vm4, %v6983_v2, %v7243_v50  ;;  %v6984_v4 = vld [vmem:[#allocation3 + $0x280] sm:$0xff] }
 0x941   : > { %7778 = vmatmul.f32.gmra.mxu0 %v7398_v32  ;;  %8782 = vmatmul.msk.f32.gmra.mxu1 %vm2655_vm4, %v6984_v4 }
 0x945   : > { %v6904_v13 = vpop.f32.mrf.mxu3  ;;  %v7247_v57 = vpop.permute.xlu1 %7246 }
 0x946   : > { %v7065_v13 = vld [vmem:[#allocation3 + $0x2e4] sm:$0xff] }
 0x947   : > { %v6731_v60 = vpop.f32.mrf.mxu2  ;;  %v7758_v30 = vpop.f32.mrf.mxu0  ;;  %7268 = vrot.lane.b32.xlu2 %v7065_v13, %s9082_s19  ;;  %v6995_v13 = vld [vmem:[#allocation3 + $0x2d8] sm:$0xff] }
 0x948   : > { %v7926_v55 = vadd.f32 %v7925_v56, %v7758_v30  ;;  %v6985_v60 = vld [vmem:[#allocation3 + $0x288] sm:$0xff] }
 0x949   : > { %8783 = vmatmul.msk.f32.gmra.mxu1 %vm2655_vm4, %v6985_v60  ;;  %v7066_v30 = vld [vmem:[#allocation3 + $0x2ec] sm:$0xff]  ;;  %v7400_v31 = vsel %vm2655_vm4, %v6985_v60, %v7247_v57 }
 0x94a   : > { %v7991_v22 = vadd.f32 %v7926_v55, %v14344_v24 }
 0x94c   : > { %v8007_v51 = vadd.f32 %v9071_v45, %v7991_v22 }
 0x94d   : > { %v6906_v44 = vpop.f32.mrf.mxu3 }
 0x94e   : > { %v8019_v24 = vmax.f32 %v8007_v51, 0.0  ;;  %v8092_v44 = vld [vmem:[%s14502_s8 + $0x18] sm:$0xff] }
 0x94f   : > { %v6733_v36 = vpop.f32.mrf.mxu2  ;;  %v7761_v0 = vpop.f32.mrf.mxu0  ;;  %8161 = vmatpush.msra.mxu3 %v8092_v44 }
 0x950   : > { %v7929_v62 = vadd.f32 %v7928_v38, %v7761_v0  ;;  %v8057_v17 = vrot.slane %v8019_v24, 4  ;;  %v7401_v36 = vsel %vm2655_vm4, %v6986_v9, %v7249_v5  ;;  %v6987_v0 = vld [vmem:[#allocation3 + $0x298] sm:$0xff] }
 0x951   : > { %8784 = vmatmul.msk.f32.gmra.mxu1 %vm2655_vm4, %v6986_v9  ;;  %v6998_v9 = vld [vmem:[#allocation3 + $0x2f0] sm:$0xff] }
 0x952   : > { %v7992_v46 = vadd.f32 %v7929_v62, %v6879_v49  ;;  %v7068_v62 = vld [vmem:[#allocation3 + $0x2fc] sm:$0xff] }
 0x953   : > { %7274 = vrot.lane.b32.xlu2 %v7068_v62, %s9082_s19 }
 0x954   : > { %v8008_v3 = vadd.f32 %v9071_v45, %v7992_v46 }
 0x955   : > { %v6908_v28 = vpop.f32.mrf.mxu3 }
 0x956   : > { %v8020_v35 = vmax.f32 %v8008_v3, 0.0  ;;  %v6989_v28 = vld [vmem:[#allocation3 + $0x2a8] sm:$0xff] }
 0x957   : > { %v6735_v16 = vpop.f32.mrf.mxu2  ;;  %v7764_v34 = vpop.f32.mrf.mxu0 }
 0x958   : > { %v8058_v54 = vrot.slane %v8020_v35, 4  ;;  %v7932_v43 = vadd.f32 %v7931_v63, %v7764_v34  ;;  %v7404_v16 = vsel %vm2655_vm4, %v6989_v28, %v7255_v6  ;;  %v6990_v34 = vld [vmem:[#allocation3 + $0x2b0] sm:$0xff] }
 0x959   : > { %8785 = vmatmul.msk.f32.gmra.mxu1 %vm2655_vm4, %v6987_v0 }
 0x95a   : > { %v7993_v11 = vadd.f32 %v7932_v43, %v14356_v53  ;;  %v8059_v18 = vsel %vm1261_vm2, %v8057_v17, %v8058_v54  ;;  %v8090_v43 = vld [vmem:[%s14502_s8 + $0x8] sm:$0xff] }
 0x95b   : > { %v8068_v42 = vmax.f32 %v8019_v24, %v8059_v18  ;;  %v7253_v24 = vpop.permute.xlu1 %7252  ;;  %8162 = vmatpush.msra.mxu3 %v8090_v43 }
 0x95c   : > { %v8009_v39 = vadd.f32 %v9071_v45, %v7993_v11  ;;  %v7403_v63 = vsel %vm2655_vm4, %v6988_v19, %v7253_v24  ;;  %v6991_v11 = vld [vmem:[#allocation3 + $0x2b8] sm:$0xff] }
 0x95d   : > { %v6910_v23 = vpop.f32.mrf.mxu3  ;;  %v8072_v40 = vmax.f32 %v14326_v7, %v8068_v42  ;;  %v7245_v7 = vpop.permute.xlu0 %7244 }
 0x95e   : > { %v8021_v58 = vmax.f32 %v8009_v39, 0.0  ;;  %v7399_v27 = vsel %vm2655_vm4, %v6984_v4, %v7245_v7  ;;  %v6992_v39 = vld [vmem:[#allocation3 + $0x2c0] sm:$0xff] }
 0x95f   : > { %v6737_v15 = vpop.f32.mrf.mxu2  ;;  %v8991_v14 = vpack.i.bf16 %v8072_v40, %v7063_v21  ;;  %7780 = vmatmul.f32.gmra.mxu0 %v7399_v27 }
 0x960   : > { %v8060_v48 = vrot.slane %v8021_v58, 4  ;;  %v7261_v58 = vpop.permute.xlu2 %7260 }
 0x961   : > { %8992 = vrot.lane.b32.xlu1 %v8991_v14, %s9082_s19  ;;  %8786 = vmatmul.msk.f32.gmra.mxu1 %vm2655_vm4, %v6988_v19  ;;  %v7407_v15 = vsel %vm2655_vm4, %v6992_v39, %v7261_v58  ;;  %v6993_v14 = vld [vmem:[#allocation3 + $0x2c8] sm:$0xff] }
 0x962   : > { %v8061_v53 = vsel %vm1261_vm2, %v8058_v54, %v8060_v48 }
 0x963   : > { %v8069_v56 = vmax.f32 %v8020_v35, %v8061_v53  ;;  %v7934_v53 = vpop.f32.mrf.mxu1 }
 0x965   : > { %v6912_v47 = vpop.f32.mrf.mxu3  ;;  %v8073_v41 = vmax.f32 %v14336_v26, %v8069_v56  ;;  %v7067_v26 = vld [vmem:[#allocation3 + $0x2f4] sm:$0xff]  ;;  %v7251_v45 = vpop.permute.xlu0 %7250 }
 0x966   : > { %v7402_v1 = vsel %vm2655_vm4, %v6987_v0, %v7251_v45  ;;  %v6994_v56 = vld [vmem:[#allocation3 + $0x2d0] sm:$0xff] }
 0x967   : > { %v6739_v12 = vpop.f32.mrf.mxu2  ;;  %8083 = vrot.lane.b32.xlu0 %v8073_v41, %s9084_s21  ;;  %7782 = vmatmul.f32.gmra.mxu0 %v7400_v31  ;;  %v7259_v21 = vpop.permute.xlu1 %7258 }
 0x968   : > { %v7406_v23 = vsel %vm2655_vm4, %v6991_v11, %v7259_v21  ;;  %v8076_v5 = vpop.permute.xlu2 %8075 }
 0x969   : > { %7266 = vrot.lane.b32.xlu1 %v7064_v25, %s9082_s19  ;;  %8787 = vmatmul.msk.f32.gmra.mxu1 %vm2655_vm4, %v6989_v28  ;;  %v8086_v29 = vsel %vm480_vm0, %v8070_v20, %v8076_v5  ;;  %v7000_v20 = vld [vmem:[#allocation3 + $0x300] sm:$0xff] }
 0x96d   : > { %v6914_v55 = vpop.f32.mrf.mxu3  ;;  %v7257_v17 = vpop.permute.xlu0 %7256 }
 0x96e   : > { %v7405_v2 = vsel %vm2655_vm4, %v6990_v34, %v7257_v17 }
 0x96f   : > { %v6741_v37 = vpop.f32.mrf.mxu2  ;;  %7270 = vrot.lane.b32.xlu0 %v7066_v30, %s9082_s19  ;;  %7784 = vmatmul.f32.gmra.mxu0 %v7401_v36  ;;  %v6996_v30 = vld [vmem:[#allocation3 + $0x2e0] sm:$0xff] }
 0x971   : > { %7272 = vrot.lane.b32.xlu1 %v7067_v26, %s9082_s19  ;;  %8788 = vmatmul.msk.f32.gmra.mxu1 %vm2655_vm4, %v6990_v34  ;;  %v6997_v26 = vld [vmem:[#allocation3 + $0x2e8] sm:$0xff] }
 0x972   : > { %v7767_v32 = vpop.f32.mrf.mxu0 }
 0x975   : > { %v6916_v38 = vpop.f32.mrf.mxu3  ;;  %v7263_v47 = vpop.permute.xlu0 %7262 }
 0x976   : > { %v7408_v41 = vsel %vm2655_vm4, %v6993_v14, %v7263_v47 }
 0x977   : > { %v6743_v22 = vpop.f32.mrf.mxu2  ;;  %7276 = vrot.lane.b32.xlu0 %v7069_v8, %s9082_s19  ;;  %7786 = vmatmul.f32.gmra.mxu0 %v7402_v1 }
 0x979   : > { %8789 = vmatmul.msk.f32.gmra.mxu1 %vm2655_vm4, %v6991_v11 }
 0x97c   : > { %v7936_v12 = vpop.f32.mrf.mxu1 }
 0x97d   : > { %v6918_v49 = vpop.f32.mrf.mxu3  ;;  %v8121_v12 = vld [vmem:[%s14503_s9] sm:$0x3] }
 0x97f   : > { %v6745_v51 = vpop.f32.mrf.mxu2  ;;  %7788 = vmatmul.f32.gmra.mxu0 %v7403_v63 }
 0x980   : > { %v6999_v51 = vld [vmem:[#allocation3 + $0x2f8] sm:$0xff] }
 0x981   : > { %8790 = vmatmul.msk.f32.gmra.mxu1 %vm2655_vm4, %v6992_v39 }
 0x984   : > { %v7938_v60 = vpop.f32.mrf.mxu1 }
 0x985   : > { %v6920_v46 = vpop.f32.mrf.mxu3  ;;  %v8124_v60 = vperm.slane %v8121_v12, 1 }
 0x987   : > { %v6747_v3 = vpop.f32.mrf.mxu2  ;;  %7790 = vmatmul.f32.gmra.mxu0 %v7404_v16 }
 0x989   : > { %8791 = vmatmul.msk.f32.gmra.mxu1 %vm2655_vm4, %v6993_v14 }
 0x98d   : > { %v6922_v59 = vpop.f32.mrf.mxu3  ;;  %v7769_v25 = vpop.f32.mrf.mxu0 }
 0x98e   : > { %v7940_v57 = vpop.f32.mrf.mxu1  ;;  %v7070_v59 = vld [vmem:[#allocation3 + $0x308] sm:$0xff] }
 0x98f   : > { %v6749_v35 = vpop.f32.mrf.mxu2  ;;  %7792 = vmatmul.f32.gmra.mxu0 %v7405_v2 }
 0x991   : > { %8792 = vmatmul.msk.f32.gmra.mxu1 %vm2655_vm4, %v6994_v56 }
 0x995   : > { %v6924_v61 = vpop.f32.mrf.mxu3  ;;  %v7771_v27 = vpop.f32.mrf.mxu0 }
 0x996   : > { %v7942_v31 = vpop.f32.mrf.mxu1  ;;  %v8123_v27 = vperm.slane %v8121_v12, 0 }
 0x997   : > { %v6751_v54 = vpop.f32.mrf.mxu2  ;;  %7794 = vmatmul.f32.gmra.mxu0 %v7406_v23 }
 0x999   : > { %8793 = vmatmul.msk.f32.gmra.mxu1 %vm2655_vm4, %v6995_v13 }
 0x99d   : > { %v6926_v18 = vpop.f32.mrf.mxu3  ;;  %v7773_v55 = vpop.f32.mrf.mxu0 }
 0x99f   : > { %v6753_v42 = vpop.f32.mrf.mxu2  ;;  %7796 = vmatmul.f32.gmra.mxu0 %v7407_v15 }
 0x9a1   : > { %8794 = vmatmul.msk.f32.gmra.mxu1 %vm2655_vm4, %v6996_v30  ;;  %v7269_v52 = vpop.permute.xlu2 %7268 }
 0x9a2   : > { %v7411_v24 = vsel %vm2655_vm4, %v6996_v30, %v7269_v52 }
 0x9a5   : > { %v6928_v40 = vpop.f32.mrf.mxu3  ;;  %v7775_v37 = vpop.f32.mrf.mxu0 }
 0x9a7   : > { %v6755_v50 = vpop.f32.mrf.mxu2  ;;  %7798 = vmatmul.f32.gmra.mxu0 %v7408_v41 }
 0x9a9   : > { %8795 = vmatmul.msk.f32.gmra.mxu1 %vm2655_vm4, %v6997_v26 }
 0x9ad   : > { %v6930_v48 = vpop.f32.mrf.mxu3  ;;  %v7275_v43 = vpop.permute.xlu2 %7274 }
 0x9ae   : > { %v7777_v36 = vpop.f32.mrf.mxu0  ;;  %v7944_v0 = vpop.f32.mrf.mxu1  ;;  %v7414_v33 = vsel %vm2655_vm4, %v6999_v51, %v7275_v43 }
 0x9af   : > { %v6757_v4 = vpop.f32.mrf.mxu2 }
 0x9b1   : > { %8796 = vmatmul.msk.f32.gmra.mxu1 %vm2655_vm4, %v6998_v9 }
 0x9b7   : > { %v6759_v7 = vpop.f32.mrf.mxu2 }
 0x9b9   : > { %8797 = vmatmul.msk.f32.gmra.mxu1 %vm2655_vm4, %v6999_v51 }
 0x9be   : > { %v7779_v46 = vpop.f32.mrf.mxu0  ;;  %v7946_v10 = vpop.f32.mrf.mxu1 }
 0x9c1   : > { %8798 = vmatmul.msk.f32.gmra.mxu1 %vm2655_vm4, %v7000_v20 }
 0x9c6   : > { %v7948_v63 = vpop.f32.mrf.mxu1 }
 0x9c9   : > { %8799 = vmatmul.msk.f32.gmra.mxu1 %vm2655_vm4, %v7070_v59 }
 0x9ce   : > { %v7950_v16 = vpop.f32.mrf.mxu1 }
 0x9d3   : > { %v8993_v8 = vpop.permute.xlu1 %8992 }
 0x9d4   : > { %v8994_v38 = vunpack.i.l.bf16 %v8993_v8  ;;  %v8995_v22 = vunpack.i.h.bf16 %v8993_v8 }
 0x9d6   : > { %v7409_v44 = vsel %vm2655_vm4, %v6994_v56, %v8994_v38  ;;  %v8087_v49 = vsel %vm2655_vm4, %v8086_v29, %v8995_v22  ;;  %v7952_v54 = vpop.f32.mrf.mxu1 }
 0x9d7   : > { %7800 = vmatmul.f32.gmra.mxu0 %v7409_v44 }
 0x9d9   : > { %v8084_v45 = vpop.permute.xlu0 %8083 }
 0x9da   : > { %v8088_v62 = vsel %vm2847_vm5, %v8087_v49, %v8084_v45 }
 0x9db   : > { %8143 = vmatmul.f32.vlgmr.msrb.gmra.mxu2 %v8088_v62  ;;  %8163 = vmatmul.f32.vlgmr.msra.gmra.mxu3 %v8088_v62  ;;  %v7267_v1 = vpop.permute.xlu1 %7266 }
 0x9dc   : > { %v7410_v19 = vsel %vm2655_vm4, %v6995_v13, %v7267_v1  ;;  %v7781_v3 = vpop.f32.mrf.mxu0 }
 0x9de   : > { %v7954_v11 = vpop.f32.mrf.mxu1 }
 0x9df   : > { %7802 = vmatmul.f32.gmra.mxu0 %v7410_v19 }
 0x9e1   : > { %v7271_v28 = vpop.permute.xlu0 %7270 }
 0x9e2   : > { %v7412_v6 = vsel %vm2655_vm4, %v6997_v26, %v7271_v28 }
 0x9e3   : > { %v7273_v34 = vpop.permute.xlu1 %7272 }
 0x9e4   : > { %v7783_v35 = vpop.f32.mrf.mxu0  ;;  %v7413_v61 = vsel %vm2655_vm4, %v6998_v9, %v7273_v34  ;;  %v8211_v34 = vlaneseq }
 0x9e6   : > { %v7956_v21 = vpop.f32.mrf.mxu1  ;;  %vm8213_vm1 = vcmp.lt.s32.totalorder %v8211_v34, 256 }
 0x9e7   : > { %7804 = vmatmul.f32.gmra.mxu0 %v7411_v24 }
 0x9e9   : > { %v7277_v18 = vpop.permute.xlu0 %7276 }
 0x9ea   : > { %v7415_v42 = vsel %vm2655_vm4, %v7000_v20, %v7277_v18 }
 0x9ec   : > { %v7785_v17 = vpop.f32.mrf.mxu0 }
 0x9ee   : > { %v7958_v40 = vpop.f32.mrf.mxu1 }
 0x9ef   : > { %7806 = vmatmul.f32.gmra.mxu0 %v7412_v6 }
 0x9f4   : > { %v7787_v2 = vpop.f32.mrf.mxu0 }
 0x9f6   : > { %v7960_v50 = vpop.f32.mrf.mxu1 }
 0x9f7   : > { %7808 = vmatmul.f32.gmra.mxu0 %v7413_v61 }
 0x9fc   : > { %v7789_v39 = vpop.f32.mrf.mxu0 }
 0x9fe   : > { %v7962_v14 = vpop.f32.mrf.mxu1 }
 0x9ff   : > { %7810 = vmatmul.f32.gmra.mxu0 %v7414_v33 }
 0xa04   : > { %v7791_v23 = vpop.f32.mrf.mxu0 }
 0xa06   : > { %v7964_v32 = vpop.f32.mrf.mxu1 }
 0xa07   : > { %7812 = vmatmul.f32.gmra.mxu0 %v7415_v42 }
 0xa0c   : > { %v7793_v58 = vpop.f32.mrf.mxu0 }
 0xa0e   : > { %v7966_v53 = vpop.f32.mrf.mxu1 }
 0xa14   : > { %v7795_v15 = vpop.f32.mrf.mxu0 }
 0xa16   : > { %v7968_v56 = vpop.f32.mrf.mxu1 }
 0xa1c   : > { %v7797_v48 = vpop.f32.mrf.mxu0 }
 0xa1e   : > { %v7970_v47 = vpop.f32.mrf.mxu1 }
 0xa24   : > { %v7799_v4 = vpop.f32.mrf.mxu0 }
 0xa26   : > { %v7972_v41 = vpop.f32.mrf.mxu1 }
 0xa2e   : > { %v7974_v7 = vpop.f32.mrf.mxu1 }
 0xa36   : > { %v7976_v13 = vpop.f32.mrf.mxu1 }
 0xa3e   : > { %v7978_v8 = vpop.f32.mrf.mxu1 }
 0xa46   : > { %v7980_v44 = vpop.f32.mrf.mxu1 }
 0xa54   : > { %v7801_v25 = vpop.f32.mrf.mxu0 }
 0xa5c   : > { %v7803_v30 = vpop.f32.mrf.mxu0 }
 0xa5e   : > { %v8144_v55 = vpop.f32.mrf.mxu2  ;;  %v8164_v57 = vpop.f32.mrf.mxu3 }
 0xa5f   : > { %v8145_v26 = vadd.f32 %v8144_v55, %v8123_v27  ;;  %v8165_v37 = vadd.f32 %v8164_v57, %v8124_v60 }
 0xa61   : > { %v8167_v31 = vsub.f32 0.0, %v8145_v26  ;;  %v8168_v9 = vsub.f32 0.0, %v8165_v37 }
 0xa63   : > { %v8169_v38 = vmul.f32 1.442695, %v8167_v31  ;;  %v8171_v5 = vmul.f32 1.442695, %v8168_v9 }
 0xa64   : > { %v7805_v22 = vpop.f32.mrf.mxu0 }
 0xa65   : > { %8999 = vpow2.f32 %v8169_v38 }
 0xa66   : > { %9001 = vpow2.f32 %v8171_v5 }
 0xa6b   : > { %v9000_v29 = vpop.eup %8999 }
 0xa6c   : > { %v9002_v36 = vpop.eup %9001  ;;  %v8173_v0 = vadd.f32 1.0, %v9000_v29  ;;  %v7807_v49 = vpop.f32.mrf.mxu0 }
 0xa6d   : > { %v8174_v45 = vadd.f32 1.0, %v9002_v36 }
 0xa6e   : > { %9003 = vrcp.f32 %v8173_v0  ;;  %vm8180_vm10 = vweird.f32 %v8173_v0  ;;  %v8186_v59 = vand.u32 2147483648, %v8173_v0  ;;  %v8184_v35 = vand.u32 2147483647, %v8173_v0 }
 0xa6f   : > { %9005 = vrcp.f32 %v8174_v45  ;;  %v8201_v24 = vand.u32 2147483648, %v8174_v45  ;;  %v8199_v63 = vand.u32 2147483647, %v8174_v45  ;;  %vm8195_vm12 = vweird.f32 %v8174_v45 }
 0xa70   : > { %v8187_v33 = vor.u32 1.1754944e-38, %v8186_v59  ;;  %vm8185_vm0 = vcmp.eq.f32.partialorder %v8184_v35, 8.507059e+37 }
 0xa71   : > { %v8202_v17 = vor.u32 1.1754944e-38, %v8201_v24  ;;  %vm8200_vm14 = vcmp.eq.f32.partialorder %v8199_v63, 8.507059e+37 }
 0xa74   : > { %v9004_v51 = vpop.eup %9003  ;;  %v7809_v62 = vpop.f32.mrf.mxu0 }
 0xa75   : > { %v9006_v1 = vpop.eup %9005  ;;  %v8176_v19 = vmul.f32 %v9004_v51, %v8173_v0  ;;  %vm8181_vm8 = vweird.f32 %v9004_v51 }
 0xa76   : > { %v8191_v46 = vmul.f32 %v9006_v1, %v8174_v45  ;;  %vm8196_vm9 = vweird.f32 %v9006_v1  ;;  %vm14481_vm11 = vmor %vm8180_vm10, %vm8181_vm8 }
 0xa77   : > { %v8177_v10 = vsub.f32 1.0, %v8176_v19  ;;  %vm8197_vm13 = vmor %vm8195_vm12, %vm8196_vm9 }
 0xa78   : > { %v8192_v52 = vsub.f32 1.0, %v8191_v46 }
 0xa79   : > { %v8178_v20 = vmul.f32 %v9004_v51, %v8177_v10 }
 0xa7a   : > { %v8193_v3 = vmul.f32 %v9006_v1, %v8192_v52 }
 0xa7b   : > { %v8179_v28 = vadd.f32 %v9004_v51, %v8178_v20 }
 0xa7c   : > { %v8194_v16 = vadd.f32 %v9006_v1, %v8193_v3  ;;  %v7811_v61 = vpop.f32.mrf.mxu0 }
 0xa7d   : > { %v8183_v54 = vsel %vm14481_vm11, %v9004_v51, %v8179_v28 }
 0xa7e   : > { %v8198_v43 = vsel %vm8197_vm13, %v9006_v1, %v8194_v16  ;;  %v8188_v18 = vsel %vm8185_vm0, %v8187_v33, %v8183_v54 }
 0xa7f   : > { %v8203_v2 = vsel %vm8200_vm14, %v8202_v17, %v8198_v43 }
 0xa80   : > { %v8207_v11 = vrot.slane %v8203_v2, 7 }
 0xa82   : > { %v8209_v42 = vsel %vm8208_vm15, %v8188_v18, %v8207_v11 }
 0xa83   : > { %8215 = vst.msk [vmem:[%s357_s16] sm:$0x3] %vm8213_vm1, %v8209_v42 }
 0xa84   : > { %v7813_v39 = vpop.f32.mrf.mxu0 }
 0xa85 PF: > { %s20_s13 = sadd.s32 1, %s9078_s13  }
 0xa86   : > { %p17_p4 = scmp.ge.s32.totalorder %s20_s13, 4  }
 0xa88   :  { %19 = sbr.rel (!%p17_p4) target bundleno = 1 (0x1), region = 94 }

</bundles_post_ra>
